<compile_context>
chip_gen: v7x
topology: tpu7x:2x2x1
jax: 0.10.0
libtpu: 0.0.40
codegen_flags: <defaults>
</compile_context>

<pallas_src>
import math

import jax
import jax.numpy as jnp
from jax.experimental import pallas as pl
from jax.experimental.pallas import tpu as pltpu

# ----------------------------- configuration --------------------------------
HIDDEN = 32                 # hidden_size (small for the synthetic run)
NUM_HEADS = 4               # num_heads
D_K = HIDDEN // NUM_HEADS
NUM_LAYERS = 2
OUT_SIZE = 2
USE_NORM = True
LN_EPS = 1e-5               # torch.nn.LayerNorm default
SQRT_DK = math.sqrt(D_K)
NEG_BIAS = -1e30

NODE_TYPES = ("contract", "function", "statement")
NTYPES_DICT = {t: i for i, t in enumerate(NODE_TYPES)}
IN_SIZE = len(NODE_TYPES)   # node_feature == 'nodetype' -> one-hot over node types
NUM_NODES = {"contract": 8, "function": 16, "statement": 8}
MAX_N = max(NUM_NODES.values())

CANONICAL_ETYPES = (
    ("contract", "has_fn", "function"),
    ("function", "fn_of", "contract"),
    ("function", "has_stmt", "statement"),
    ("statement", "stmt_of", "function"),
)
ETYPES_DICT = {e: i for i, e in enumerate(CANONICAL_ETYPES)}
NUM_RELATIONS = len(CANONICAL_ETYPES)

# how many relations target each node type (cross_reducer='mean' denominator)
REL_TARGET_COUNT = {nt: sum(1 for (_s, _e, d) in CANONICAL_ETYPES if d == nt)
                    for nt in NODE_TYPES}

VMEM_SPEC = pl.BlockSpec(memory_space=pltpu.MemorySpace.VMEM)


# ------------------------------ fused Pallas kernel --------------------------
def fused_forward_kernel(h0_ref, w_ref, b_ref, gam_ref, bet_ref, alpha_ref,
                         att_ref, msg_ref, adjb_ref, memb_ref, invc_ref,
                         wc_ref, bc_ref, logits_ref, emb_ref):
    """Whole HGTVulGraphClassifier forward in one kernel.

    Ref shapes:
      h0_ref    [3, HIDDEN]                post-gelu adapt rows per node type
      w_ref     [L*3*4, HIDDEN, HIDDEN]    (k,q,v,a) weights, pre-transposed [in,out]
      b_ref     [L*3*4, 1, HIDDEN]
      gam_ref   [L*3, 1, HIDDEN]           LayerNorm gamma
      bet_ref   [L*3, 1, HIDDEN]           LayerNorm beta
      alpha_ref [L*3, 1, 1]                sigmoid(skip)
      att_ref   [L*R, HIDDEN, HIDDEN]      blockdiag(rel_att * pri / sqrt(dk))
      msg_ref   [L*R, HIDDEN, HIDDEN]      blockdiag(rel_msg)
      adjb_ref  [R, MAX_N, MAX_N]          additive mask bias (0 / -1e30)
      memb_ref  [n_graphs, total_nodes]    graph membership (0/1)
      invc_ref  [n_graphs, 1]              1 / nodes_per_graph
      wc_ref    [HIDDEN, OUT_SIZE], bc_ref [1, OUT_SIZE]
    """
    f32 = jnp.float32
    T = len(NODE_TYPES)
    neg_thresh = jnp.float32(-1e29)

    # ---- initial hidden: one-hot 'nodetype' features => broadcast per-type row
    h0 = h0_ref[...]                                        # [3, HIDDEN]
    h = {}
    for t, ntype in enumerate(NODE_TYPES):
        h[ntype] = jnp.broadcast_to(h0[t:t + 1, :], (NUM_NODES[ntype], HIDDEN))

    # ---- HGT layers (fully unrolled at trace time)
    for l in range(NUM_LAYERS):
        # K / Q / V projections once per node type (shared across relations)
        kall, qall, vall = {}, {}, {}
        for t, ntype in enumerate(NODE_TYPES):
            x = h[ntype]
            base = (l * T + t) * 4
            kall[ntype] = jnp.dot(x, w_ref[base + 0],
                                  preferred_element_type=f32) + b_ref[base + 0]
            qall[ntype] = jnp.dot(x, w_ref[base + 1],
                                  preferred_element_type=f32) + b_ref[base + 1]
            vall[ntype] = jnp.dot(x, w_ref[base + 2],
                                  preferred_element_type=f32) + b_ref[base + 2]

        # per-head message accumulators (sum over relations targeting each dst type)
        acc = {ntype: [None] * NUM_HEADS for ntype in NODE_TYPES}

        for e, (src, _, dst) in enumerate(CANONICAL_ETYPES):
            ridx = l * NUM_RELATIONS + e
            n_src, n_dst = NUM_NODES[src], NUM_NODES[dst]

            # relation-specific K/V via folded block-diagonal (att*pri/sqrt_dk, msg)
            k_rel = jnp.dot(kall[src], att_ref[ridx], preferred_element_type=f32)
            v_rel = jnp.dot(vall[src], msg_ref[ridx], preferred_element_type=f32)
            q = qall[dst]

            bias = adjb_ref[e][:n_dst, :n_src]              # additive 0 / -1e30
            # zero-in-degree rows (under this etype) contribute exact zeros (DGL fn.sum)
            row_valid = jnp.where(
                jnp.max(bias, axis=-1, keepdims=True) > neg_thresh, 1.0, 0.0)

            for hh in range(NUM_HEADS):
                lo, hi = hh * D_K, (hh + 1) * D_K
                scores = jax.lax.dot_general(
                    q[:, lo:hi], k_rel[:, lo:hi],
                    dimension_numbers=(((1,), (1,)), ((), ())),
                    preferred_element_type=f32) + bias      # [n_dst, n_src]
                m = jnp.max(scores, axis=-1, keepdims=True)
                p = jnp.exp(scores - m)
                denom = jnp.sum(p, axis=-1, keepdims=True)
                attn = p * (row_valid / jnp.maximum(denom, 1e-30))
                pv = jnp.dot(attn, v_rel[:, lo:hi], preferred_element_type=f32)
                acc[dst][hh] = pv if acc[dst][hh] is None else acc[dst][hh] + pv

        # target-specific aggregation: a_linear(mean over relations) + skip + LayerNorm
        new_h = {}
        for t, ntype in enumerate(NODE_TYPES):
            base = (l * T + t) * 4
            gi = l * T + t
            wa = w_ref[base + 3]                            # [HIDDEN, HIDDEN]
            # a_linear applied to the per-head message sum (Wa split by head rows),
            # then scaled by 1/num_relations_targeting_ntype (cross_reducer='mean').
            trans = None
            for hh in range(NUM_HEADS):
                lo, hi = hh * D_K, (hh + 1) * D_K
                term = jnp.dot(acc[ntype][hh], wa[lo:hi, :],
                               preferred_element_type=f32)
                trans = term if trans is None else trans + term
            trans = trans * (1.0 / REL_TARGET_COUNT[ntype]) + b_ref[base + 3]

            alpha = alpha_ref[gi]                           # [1,1] sigmoid(skip)
            out = trans * alpha + h[ntype] * (1.0 - alpha)
            if USE_NORM:
                mu = jnp.mean(out, axis=-1, keepdims=True)
                var = jnp.mean(jnp.square(out - mu), axis=-1, keepdims=True)
                out = ((out - mu) * jax.lax.rsqrt(var + LN_EPS)
                       * gam_ref[gi] + bet_ref[gi])
            new_h[ntype] = out
        h = new_h

    # ---- mean-pool per graph over its nodes, then classify
    memb = memb_ref[...]                                    # [n_graphs, total_nodes]
    emb = None
    off = 0
    for ntype in NODE_TYPES:
        n = NUM_NODES[ntype]
        part = jnp.dot(memb[:, off:off + n], h[ntype], preferred_element_type=f32)
        emb = part if emb is None else emb + part
        off += n
    emb = emb * invc_ref[...]
    emb_ref[...] = emb
    logits_ref[...] = jnp.dot(emb, wc_ref[...],
                              preferred_element_type=f32) + bc_ref[...]


def model_forward(prep, membership, inv_counts, wc, bc):
    n_graphs = membership.shape[0]
    return pl.pallas_call(
        fused_forward_kernel,
        out_shape=(
            jax.ShapeDtypeStruct((n_graphs, OUT_SIZE), jnp.float32),
            jax.ShapeDtypeStruct((n_graphs, HIDDEN), jnp.float32),
        ),
        in_specs=[VMEM_SPEC] * 13,
        out_specs=(VMEM_SPEC, VMEM_SPEC),
    )(prep["h0"], prep["W"], prep["B"], prep["G"], prep["BE"], prep["A"],
      prep["ATT"], prep["MSG"], prep["ADJB"], membership, inv_counts, wc, bc)


# ------------------------------ parameters -----------------------------------
def init_params(key):
    keys = iter(jax.random.split(key, 512))

    def xavier(shape, fan_in, fan_out):
        bound = math.sqrt(6.0 / (fan_in + fan_out))
        return jax.random.uniform(next(keys), shape, jnp.float32, -bound, bound)

    def small_bias():
        return 0.02 * jax.random.normal(next(keys), (1, HIDDEN), jnp.float32)

    nt = len(NODE_TYPES)
    params = {
        "adapt_w": [xavier((IN_SIZE, HIDDEN), IN_SIZE, HIDDEN) for _ in range(nt)],
        "adapt_b": [small_bias() for _ in range(nt)],
        "layers": [],
        "wc": xavier((HIDDEN, OUT_SIZE), HIDDEN, OUT_SIZE),
        "bc": jnp.zeros((1, OUT_SIZE), jnp.float32),
    }
    for _ in range(NUM_LAYERS):
        lp = {
            "wk": [xavier((HIDDEN, HIDDEN), HIDDEN, HIDDEN) for _ in range(nt)],
            "bk": [small_bias() for _ in range(nt)],
            "wq": [xavier((HIDDEN, HIDDEN), HIDDEN, HIDDEN) for _ in range(nt)],
            "bq": [small_bias() for _ in range(nt)],
            "wv": [xavier((HIDDEN, HIDDEN), HIDDEN, HIDDEN) for _ in range(nt)],
            "bv": [small_bias() for _ in range(nt)],
            "wa": [xavier((HIDDEN, HIDDEN), HIDDEN, HIDDEN) for _ in range(nt)],
            "ba": [small_bias() for _ in range(nt)],
            "gamma": [jnp.ones((1, HIDDEN), jnp.float32) for _ in range(nt)],
            "beta": [jnp.zeros((1, HIDDEN), jnp.float32) for _ in range(nt)],
            "rel_att": xavier((NUM_RELATIONS, NUM_HEADS, D_K, D_K), D_K, D_K),
            "rel_msg": xavier((NUM_RELATIONS, NUM_HEADS, D_K, D_K), D_K, D_K),
            "rel_pri": jnp.ones((NUM_RELATIONS, NUM_HEADS), jnp.float32),
            "skip": jnp.ones((nt,), jnp.float32),
        }
        params["layers"].append(lp)
    return params


def _block_diag(blocks):
    """[H, d, d] -> block-diagonal [H*d, H*d] (host-side prep, pure JAX)."""
    n_blocks, d, _ = blocks.shape
    rows = []
    for i in range(n_blocks):
        row = [blocks[i] if j == i else jnp.zeros((d, d), jnp.float32)
               for j in range(n_blocks)]
        rows.append(jnp.concatenate(row, axis=1))
    return jnp.concatenate(rows, axis=0)


def prepare_inputs(params, masks):
    """One-time parameter / graph preprocessing (exact, done outside the kernel)."""
    T = len(NODE_TYPES)

    # adapt linear on one-hot 'nodetype' features == row select; apply exact gelu here.
    h0_rows = []
    for t in range(T):
        row = params["adapt_w"][t][t, :] + params["adapt_b"][t][0, :]
        h0_rows.append(jax.nn.gelu(row, approximate=False))
    h0 = jnp.stack(h0_rows, axis=0)                         # [3, HIDDEN]

    w_list, b_list, g_list, be_list, a_list = [], [], [], [], []
    att_list, msg_list = [], []
    for l in range(NUM_LAYERS):
        lp = params["layers"][l]
        for t in range(T):
            for name in ("wk", "wq", "wv", "wa"):
                w_list.append(lp[name][t])
            for name in ("bk", "bq", "bv", "ba"):
                b_list.append(lp[name][t])
            g_list.append(lp["gamma"][t])
            be_list.append(lp["beta"][t])
            a_list.append(jax.nn.sigmoid(lp["skip"][t]).reshape(1, 1))
        for e in range(NUM_RELATIONS):
            scale = (lp["rel_pri"][e] / SQRT_DK)[:, None, None]
            att_list.append(_block_diag(lp["rel_att"][e] * scale))
            msg_list.append(_block_diag(lp["rel_msg"][e]))

    adjb = jnp.full((NUM_RELATIONS, MAX_N, MAX_N), NEG_BIAS, jnp.float32)
    for cet, e in ETYPES_DICT.items():
        m = masks[cet]                                      # [n_dst, n_src] 0/1
        bias = jnp.where(m > 0, 0.0, NEG_BIAS).astype(jnp.float32)
        adjb = adjb.at[e, :m.shape[0], :m.shape[1]].set(bias)

    return {
        "h0": h0,
        "W": jnp.stack(w_list),        # [L*3*4, H, H]
        "B": jnp.stack(b_list),        # [L*3*4, 1, H]
        "G": jnp.stack(g_list),        # [L*3, 1, H]
        "BE": jnp.stack(be_list),      # [L*3, 1, H]
        "A": jnp.stack(a_list),        # [L*3, 1, 1]
        "ATT": jnp.stack(att_list),    # [L*R, H, H]
        "MSG": jnp.stack(msg_list),    # [L*R, H, H]
        "ADJB": adjb,                  # [R, MAX_N, MAX_N]
    }


# ----------------------------------- main --------------------------------------
if __name__ == "__main__":
    key = jax.random.PRNGKey(0)
    pkey, gkey = jax.random.split(key)
    params = init_params(pkey)

    # synthetic dense adjacency masks per canonical edge type [n_dst, n_src]
    masks = {}
    gk = gkey
    for cet in CANONICAL_ETYPES:
        gk, sub = jax.random.split(gk)
        src, _, dst = cet
        masks[cet] = jax.random.bernoulli(
            sub, 0.35, (NUM_NODES[dst], NUM_NODES[src])).astype(jnp.float32)

    prep = prepare_inputs(params, masks)

    # global node ids: contract 0..7, function 8..23, statement 24..31
    total_nodes = sum(NUM_NODES.values())
    g0 = [0, 1, 2, 3, 8, 9, 10, 11, 12, 13, 14, 15, 24, 25, 26, 27]
    g1 = [4, 5, 6, 7, 16, 17, 18, 19, 20, 21, 22, 23, 28, 29, 30, 31]
    membership = jnp.zeros((2, total_nodes), jnp.float32)
    membership = membership.at[0, jnp.array(g0)].set(1.0)
    membership = membership.at[1, jnp.array(g1)].set(1.0)
    inv_counts = jnp.array([[1.0 / len(g0)], [1.0 / len(g1)]], jnp.float32)

    logits, emb = model_forward(prep, membership, inv_counts,
                                params["wc"], params["bc"])
    jax.block_until_ready((logits, emb))
    assert logits.shape == (2, OUT_SIZE)
    assert emb.shape == (2, HIDDEN)
    assert bool(jnp.all(jnp.isfinite(logits))) and bool(jnp.all(jnp.isfinite(emb)))
    print("KERNEL_OK")
</pallas_src>

<mosaic_0001>
module attributes {stable_mosaic.version = 11 : i64} {
  func.func @fused_forward_kernel(%arg0: memref<3x32xf32, #tpu.memory_space<vmem>>, %arg1: memref<24x32x32xf32, #tpu.memory_space<vmem>>, %arg2: memref<24x1x32xf32, #tpu.memory_space<vmem>>, %arg3: memref<6x1x32xf32, #tpu.memory_space<vmem>>, %arg4: memref<6x1x32xf32, #tpu.memory_space<vmem>>, %arg5: memref<6x1x1xf32, #tpu.memory_space<vmem>>, %arg6: memref<8x32x32xf32, #tpu.memory_space<vmem>>, %arg7: memref<8x32x32xf32, #tpu.memory_space<vmem>>, %arg8: memref<4x16x16xf32, #tpu.memory_space<vmem>>, %arg9: memref<2x32xf32, #tpu.memory_space<vmem>>, %arg10: memref<2x1xf32, #tpu.memory_space<vmem>>, %arg11: memref<32x2xf32, #tpu.memory_space<vmem>>, %arg12: memref<1x2xf32, #tpu.memory_space<vmem>>, %arg13: memref<2x2xf32, #tpu.memory_space<vmem>>, %arg14: memref<2x32xf32, #tpu.memory_space<vmem>>) attributes {dimension_semantics = [], scalar_prefetch = 0 : i64, scratch_operands = 0 : i64, tpu.core_type = #tpu.core_type<tc>} {
    %c0 = arith.constant 0 : index
    %c0_0 = arith.constant 0 : index
    %0 = vector.load %arg0[%c0, %c0_0] : memref<3x32xf32, #tpu.memory_space<vmem>>, vector<3x32xf32>
    %1 = vector.extract_strided_slice %0 {offsets = [0, 0], sizes = [1, 32], strides = [1, 1]} : vector<3x32xf32> to vector<1x32xf32>
    %2 = vector.shape_cast %1 : vector<1x32xf32> to vector<1x32xf32>
    %3 = vector.broadcast %2 : vector<1x32xf32> to vector<8x32xf32>
    %4 = vector.extract_strided_slice %0 {offsets = [1, 0], sizes = [1, 32], strides = [1, 1]} : vector<3x32xf32> to vector<1x32xf32>
    %5 = vector.shape_cast %4 : vector<1x32xf32> to vector<1x32xf32>
    %6 = vector.broadcast %5 : vector<1x32xf32> to vector<16x32xf32>
    %7 = vector.extract_strided_slice %0 {offsets = [2, 0], sizes = [1, 32], strides = [1, 1]} : vector<3x32xf32> to vector<1x32xf32>
    %8 = vector.shape_cast %7 : vector<1x32xf32> to vector<1x32xf32>
    %9 = vector.broadcast %8 : vector<1x32xf32> to vector<8x32xf32>
    %c0_1 = arith.constant 0 : index
    %c0_2 = arith.constant 0 : index
    %c0_3 = arith.constant 0 : index
    %10 = vector.load %arg1[%c0_1, %c0_2, %c0_3] : memref<24x32x32xf32, #tpu.memory_space<vmem>>, vector<1x32x32xf32>
    %11 = vector.shape_cast %10 : vector<1x32x32xf32> to vector<32x32xf32>
    %cst = arith.constant dense<0.000000e+00> : vector<8x32xf32>
    %12 = tpu.matmul %3, %11, %cst {dimension_numbers = #tpu.dot_dimension_numbers<[1], [0], [0], [1], [0, 0, 1, 1], [], []>} : vector<8x32xf32>, vector<32x32xf32>, vector<8x32xf32> -> vector<8x32xf32>
    %c0_4 = arith.constant 0 : index
    %c0_5 = arith.constant 0 : index
    %c0_6 = arith.constant 0 : index
    %13 = vector.load %arg2[%c0_4, %c0_5, %c0_6] : memref<24x1x32xf32, #tpu.memory_space<vmem>>, vector<1x1x32xf32>
    %14 = vector.shape_cast %13 : vector<1x1x32xf32> to vector<1x32xf32>
    %15 = vector.broadcast %14 : vector<1x32xf32> to vector<8x32xf32>
    %16 = arith.addf %12, %15 : vector<8x32xf32>
    %c1 = arith.constant 1 : index
    %c0_7 = arith.constant 0 : index
    %c0_8 = arith.constant 0 : index
    %17 = vector.load %arg1[%c1, %c0_7, %c0_8] : memref<24x32x32xf32, #tpu.memory_space<vmem>>, vector<1x32x32xf32>
    %18 = vector.shape_cast %17 : vector<1x32x32xf32> to vector<32x32xf32>
    %cst_9 = arith.constant dense<0.000000e+00> : vector<8x32xf32>
    %19 = tpu.matmul %3, %18, %cst_9 {dimension_numbers = #tpu.dot_dimension_numbers<[1], [0], [0], [1], [0, 0, 1, 1], [], []>} : vector<8x32xf32>, vector<32x32xf32>, vector<8x32xf32> -> vector<8x32xf32>
    %c1_10 = arith.constant 1 : index
    %c0_11 = arith.constant 0 : index
    %c0_12 = arith.constant 0 : index
    %20 = vector.load %arg2[%c1_10, %c0_11, %c0_12] : memref<24x1x32xf32, #tpu.memory_space<vmem>>, vector<1x1x32xf32>
    %21 = vector.shape_cast %20 : vector<1x1x32xf32> to vector<1x32xf32>
    %22 = vector.broadcast %21 : vector<1x32xf32> to vector<8x32xf32>
    %23 = arith.addf %19, %22 : vector<8x32xf32>
    %c2 = arith.constant 2 : index
    %c0_13 = arith.constant 0 : index
    %c0_14 = arith.constant 0 : index
    %24 = vector.load %arg1[%c2, %c0_13, %c0_14] : memref<24x32x32xf32, #tpu.memory_space<vmem>>, vector<1x32x32xf32>
    %25 = vector.shape_cast %24 : vector<1x32x32xf32> to vector<32x32xf32>
    %cst_15 = arith.constant dense<0.000000e+00> : vector<8x32xf32>
    %26 = tpu.matmul %3, %25, %cst_15 {dimension_numbers = #tpu.dot_dimension_numbers<[1], [0], [0], [1], [0, 0, 1, 1], [], []>} : vector<8x32xf32>, vector<32x32xf32>, vector<8x32xf32> -> vector<8x32xf32>
    %c2_16 = arith.constant 2 : index
    %c0_17 = arith.constant 0 : index
    %c0_18 = arith.constant 0 : index
    %27 = vector.load %arg2[%c2_16, %c0_17, %c0_18] : memref<24x1x32xf32, #tpu.memory_space<vmem>>, vector<1x1x32xf32>
    %28 = vector.shape_cast %27 : vector<1x1x32xf32> to vector<1x32xf32>
    %29 = vector.broadcast %28 : vector<1x32xf32> to vector<8x32xf32>
    %30 = arith.addf %26, %29 : vector<8x32xf32>
    %c4 = arith.constant 4 : index
    %c0_19 = arith.constant 0 : index
    %c0_20 = arith.constant 0 : index
    %31 = vector.load %arg1[%c4, %c0_19, %c0_20] : memref<24x32x32xf32, #tpu.memory_space<vmem>>, vector<1x32x32xf32>
    %32 = vector.shape_cast %31 : vector<1x32x32xf32> to vector<32x32xf32>
    %cst_21 = arith.constant dense<0.000000e+00> : vector<16x32xf32>
    %33 = tpu.matmul %6, %32, %cst_21 {dimension_numbers = #tpu.dot_dimension_numbers<[1], [0], [0], [1], [0, 0, 1, 1], [], []>} : vector<16x32xf32>, vector<32x32xf32>, vector<16x32xf32> -> vector<16x32xf32>
    %c4_22 = arith.constant 4 : index
    %c0_23 = arith.constant 0 : index
    %c0_24 = arith.constant 0 : index
    %34 = vector.load %arg2[%c4_22, %c0_23, %c0_24] : memref<24x1x32xf32, #tpu.memory_space<vmem>>, vector<1x1x32xf32>
    %35 = vector.shape_cast %34 : vector<1x1x32xf32> to vector<1x32xf32>
    %36 = vector.broadcast %35 : vector<1x32xf32> to vector<16x32xf32>
    %37 = arith.addf %33, %36 : vector<16x32xf32>
    %c5 = arith.constant 5 : index
    %c0_25 = arith.constant 0 : index
    %c0_26 = arith.constant 0 : index
    %38 = vector.load %arg1[%c5, %c0_25, %c0_26] : memref<24x32x32xf32, #tpu.memory_space<vmem>>, vector<1x32x32xf32>
    %39 = vector.shape_cast %38 : vector<1x32x32xf32> to vector<32x32xf32>
    %cst_27 = arith.constant dense<0.000000e+00> : vector<16x32xf32>
    %40 = tpu.matmul %6, %39, %cst_27 {dimension_numbers = #tpu.dot_dimension_numbers<[1], [0], [0], [1], [0, 0, 1, 1], [], []>} : vector<16x32xf32>, vector<32x32xf32>, vector<16x32xf32> -> vector<16x32xf32>
    %c5_28 = arith.constant 5 : index
    %c0_29 = arith.constant 0 : index
    %c0_30 = arith.constant 0 : index
    %41 = vector.load %arg2[%c5_28, %c0_29, %c0_30] : memref<24x1x32xf32, #tpu.memory_space<vmem>>, vector<1x1x32xf32>
    %42 = vector.shape_cast %41 : vector<1x1x32xf32> to vector<1x32xf32>
    %43 = vector.broadcast %42 : vector<1x32xf32> to vector<16x32xf32>
    %44 = arith.addf %40, %43 : vector<16x32xf32>
    %c6 = arith.constant 6 : index
    %c0_31 = arith.constant 0 : index
    %c0_32 = arith.constant 0 : index
    %45 = vector.load %arg1[%c6, %c0_31, %c0_32] : memref<24x32x32xf32, #tpu.memory_space<vmem>>, vector<1x32x32xf32>
    %46 = vector.shape_cast %45 : vector<1x32x32xf32> to vector<32x32xf32>
    %cst_33 = arith.constant dense<0.000000e+00> : vector<16x32xf32>
    %47 = tpu.matmul %6, %46, %cst_33 {dimension_numbers = #tpu.dot_dimension_numbers<[1], [0], [0], [1], [0, 0, 1, 1], [], []>} : vector<16x32xf32>, vector<32x32xf32>, vector<16x32xf32> -> vector<16x32xf32>
    %c6_34 = arith.constant 6 : index
    %c0_35 = arith.constant 0 : index
    %c0_36 = arith.constant 0 : index
    %48 = vector.load %arg2[%c6_34, %c0_35, %c0_36] : memref<24x1x32xf32, #tpu.memory_space<vmem>>, vector<1x1x32xf32>
    %49 = vector.shape_cast %48 : vector<1x1x32xf32> to vector<1x32xf32>
    %50 = vector.broadcast %49 : vector<1x32xf32> to vector<16x32xf32>
    %51 = arith.addf %47, %50 : vector<16x32xf32>
    %c8 = arith.constant 8 : index
    %c0_37 = arith.constant 0 : index
    %c0_38 = arith.constant 0 : index
    %52 = vector.load %arg1[%c8, %c0_37, %c0_38] : memref<24x32x32xf32, #tpu.memory_space<vmem>>, vector<1x32x32xf32>
    %53 = vector.shape_cast %52 : vector<1x32x32xf32> to vector<32x32xf32>
    %cst_39 = arith.constant dense<0.000000e+00> : vector<8x32xf32>
    %54 = tpu.matmul %9, %53, %cst_39 {dimension_numbers = #tpu.dot_dimension_numbers<[1], [0], [0], [1], [0, 0, 1, 1], [], []>} : vector<8x32xf32>, vector<32x32xf32>, vector<8x32xf32> -> vector<8x32xf32>
    %c8_40 = arith.constant 8 : index
    %c0_41 = arith.constant 0 : index
    %c0_42 = arith.constant 0 : index
    %55 = vector.load %arg2[%c8_40, %c0_41, %c0_42] : memref<24x1x32xf32, #tpu.memory_space<vmem>>, vector<1x1x32xf32>
    %56 = vector.shape_cast %55 : vector<1x1x32xf32> to vector<1x32xf32>
    %57 = vector.broadcast %56 : vector<1x32xf32> to vector<8x32xf32>
    %58 = arith.addf %54, %57 : vector<8x32xf32>
    %c9 = arith.constant 9 : index
    %c0_43 = arith.constant 0 : index
    %c0_44 = arith.constant 0 : index
    %59 = vector.load %arg1[%c9, %c0_43, %c0_44] : memref<24x32x32xf32, #tpu.memory_space<vmem>>, vector<1x32x32xf32>
    %60 = vector.shape_cast %59 : vector<1x32x32xf32> to vector<32x32xf32>
    %cst_45 = arith.constant dense<0.000000e+00> : vector<8x32xf32>
    %61 = tpu.matmul %9, %60, %cst_45 {dimension_numbers = #tpu.dot_dimension_numbers<[1], [0], [0], [1], [0, 0, 1, 1], [], []>} : vector<8x32xf32>, vector<32x32xf32>, vector<8x32xf32> -> vector<8x32xf32>
    %c9_46 = arith.constant 9 : index
    %c0_47 = arith.constant 0 : index
    %c0_48 = arith.constant 0 : index
    %62 = vector.load %arg2[%c9_46, %c0_47, %c0_48] : memref<24x1x32xf32, #tpu.memory_space<vmem>>, vector<1x1x32xf32>
    %63 = vector.shape_cast %62 : vector<1x1x32xf32> to vector<1x32xf32>
    %64 = vector.broadcast %63 : vector<1x32xf32> to vector<8x32xf32>
    %65 = arith.addf %61, %64 : vector<8x32xf32>
    %c10 = arith.constant 10 : index
    %c0_49 = arith.constant 0 : index
    %c0_50 = arith.constant 0 : index
    %66 = vector.load %arg1[%c10, %c0_49, %c0_50] : memref<24x32x32xf32, #tpu.memory_space<vmem>>, vector<1x32x32xf32>
    %67 = vector.shape_cast %66 : vector<1x32x32xf32> to vector<32x32xf32>
    %cst_51 = arith.constant dense<0.000000e+00> : vector<8x32xf32>
    %68 = tpu.matmul %9, %67, %cst_51 {dimension_numbers = #tpu.dot_dimension_numbers<[1], [0], [0], [1], [0, 0, 1, 1], [], []>} : vector<8x32xf32>, vector<32x32xf32>, vector<8x32xf32> -> vector<8x32xf32>
    %c10_52 = arith.constant 10 : index
    %c0_53 = arith.constant 0 : index
    %c0_54 = arith.constant 0 : index
    %69 = vector.load %arg2[%c10_52, %c0_53, %c0_54] : memref<24x1x32xf32, #tpu.memory_space<vmem>>, vector<1x1x32xf32>
    %70 = vector.shape_cast %69 : vector<1x1x32xf32> to vector<1x32xf32>
    %71 = vector.broadcast %70 : vector<1x32xf32> to vector<8x32xf32>
    %72 = arith.addf %68, %71 : vector<8x32xf32>
    %c0_55 = arith.constant 0 : index
    %c0_56 = arith.constant 0 : index
    %c0_57 = arith.constant 0 : index
    %73 = vector.load %arg6[%c0_55, %c0_56, %c0_57] : memref<8x32x32xf32, #tpu.memory_space<vmem>>, vector<1x32x32xf32>
    %74 = vector.shape_cast %73 : vector<1x32x32xf32> to vector<32x32xf32>
    %cst_58 = arith.constant dense<0.000000e+00> : vector<8x32xf32>
    %75 = tpu.matmul %16, %74, %cst_58 {dimension_numbers = #tpu.dot_dimension_numbers<[1], [0], [0], [1], [0, 0, 1, 1], [], []>} : vector<8x32xf32>, vector<32x32xf32>, vector<8x32xf32> -> vector<8x32xf32>
    %c0_59 = arith.constant 0 : index
    %c0_60 = arith.constant 0 : index
    %c0_61 = arith.constant 0 : index
    %76 = vector.load %arg7[%c0_59, %c0_60, %c0_61] : memref<8x32x32xf32, #tpu.memory_space<vmem>>, vector<1x32x32xf32>
    %77 = vector.shape_cast %76 : vector<1x32x32xf32> to vector<32x32xf32>
    %cst_62 = arith.constant dense<0.000000e+00> : vector<8x32xf32>
    %78 = tpu.matmul %30, %77, %cst_62 {dimension_numbers = #tpu.dot_dimension_numbers<[1], [0], [0], [1], [0, 0, 1, 1], [], []>} : vector<8x32xf32>, vector<32x32xf32>, vector<8x32xf32> -> vector<8x32xf32>
    %c0_63 = arith.constant 0 : index
    %c0_64 = arith.constant 0 : index
    %c0_65 = arith.constant 0 : index
    %79 = vector.load %arg8[%c0_63, %c0_64, %c0_65] : memref<4x16x16xf32, #tpu.memory_space<vmem>>, vector<1x16x16xf32>
    %80 = vector.shape_cast %79 : vector<1x16x16xf32> to vector<16x16xf32>
    %81 = vector.extract_strided_slice %80 {offsets = [0, 0], sizes = [16, 8], strides = [1, 1]} : vector<16x16xf32> to vector<16x8xf32>
    %cst_66 = arith.constant dense<0xFF800000> : vector<16xf32>
    %82 = vector.multi_reduction <maximumf>, %81, %cst_66 [1] : vector<16x8xf32> to vector<16xf32>
    %83 = vector.shape_cast %82 : vector<16xf32> to vector<16x1xf32>
    %cst_67 = arith.constant -1.000000e+29 : f32
    %84 = vector.broadcast %cst_67 : f32 to vector<16x1xf32>
    %85 = arith.cmpf ogt, %83, %84 : vector<16x1xf32>
    %cst_68 = arith.constant 1.000000e+00 : f32
    %cst_69 = arith.constant 0.000000e+00 : f32
    %86 = vector.broadcast %cst_68 : f32 to vector<16x1xf32>
    %87 = vector.broadcast %cst_69 : f32 to vector<16x1xf32>
    %88 = arith.select %85, %86, %87 : vector<16x1xi1>, vector<16x1xf32>
    %89 = vector.extract_strided_slice %44 {offsets = [0, 0], sizes = [16, 8], strides = [1, 1]} : vector<16x32xf32> to vector<16x8xf32>
    %90 = vector.extract_strided_slice %75 {offsets = [0, 0], sizes = [8, 8], strides = [1, 1]} : vector<8x32xf32> to vector<8x8xf32>
    %cst_70 = arith.constant dense<0.000000e+00> : vector<16x8xf32>
    %91 = tpu.matmul %89, %90, %cst_70 {dimension_numbers = #tpu.dot_dimension_numbers<[1], [1], [0], [0], [0, 0, 1, 0], [], []>} : vector<16x8xf32>, vector<8x8xf32>, vector<16x8xf32> -> vector<16x8xf32>
    %92 = arith.addf %91, %81 : vector<16x8xf32>
    %cst_71 = arith.constant dense<0xFF800000> : vector<16xf32>
    %93 = vector.multi_reduction <maximumf>, %92, %cst_71 [1] : vector<16x8xf32> to vector<16xf32>
    %94 = vector.shape_cast %93 : vector<16xf32> to vector<16x1xf32>
    %95 = vector.broadcast %94 : vector<16x1xf32> to vector<16x8xf32>
    %96 = arith.subf %92, %95 : vector<16x8xf32>
    %97 = math.exp %96 : vector<16x8xf32>
    %cst_72 = arith.constant dense<0.000000e+00> : vector<16xf32>
    %98 = vector.multi_reduction <add>, %97, %cst_72 [1] : vector<16x8xf32> to vector<16xf32>
    %99 = vector.shape_cast %98 : vector<16xf32> to vector<16x1xf32>
    %cst_73 = arith.constant 1.000000e-30 : f32
    %100 = vector.broadcast %cst_73 : f32 to vector<16x1xf32>
    %101 = arith.maximumf %99, %100 : vector<16x1xf32>
    %102 = arith.divf %88, %101 : vector<16x1xf32>
    %103 = vector.broadcast %102 : vector<16x1xf32> to vector<16x8xf32>
    %104 = arith.mulf %97, %103 : vector<16x8xf32>
    %105 = vector.extract_strided_slice %78 {offsets = [0, 0], sizes = [8, 8], strides = [1, 1]} : vector<8x32xf32> to vector<8x8xf32>
    %cst_74 = arith.constant dense<0.000000e+00> : vector<16x8xf32>
    %106 = tpu.matmul %104, %105, %cst_74 {dimension_numbers = #tpu.dot_dimension_numbers<[1], [0], [0], [1], [0, 0, 1, 1], [], []>} : vector<16x8xf32>, vector<8x8xf32>, vector<16x8xf32> -> vector<16x8xf32>
    %107 = vector.extract_strided_slice %44 {offsets = [0, 8], sizes = [16, 8], strides = [1, 1]} : vector<16x32xf32> to vector<16x8xf32>
    %108 = vector.extract_strided_slice %75 {offsets = [0, 8], sizes = [8, 8], strides = [1, 1]} : vector<8x32xf32> to vector<8x8xf32>
    %cst_75 = arith.constant dense<0.000000e+00> : vector<16x8xf32>
    %109 = tpu.matmul %107, %108, %cst_75 {dimension_numbers = #tpu.dot_dimension_numbers<[1], [1], [0], [0], [0, 0, 1, 0], [], []>} : vector<16x8xf32>, vector<8x8xf32>, vector<16x8xf32> -> vector<16x8xf32>
    %110 = arith.addf %109, %81 : vector<16x8xf32>
    %cst_76 = arith.constant dense<0xFF800000> : vector<16xf32>
    %111 = vector.multi_reduction <maximumf>, %110, %cst_76 [1] : vector<16x8xf32> to vector<16xf32>
    %112 = vector.shape_cast %111 : vector<16xf32> to vector<16x1xf32>
    %113 = vector.broadcast %112 : vector<16x1xf32> to vector<16x8xf32>
    %114 = arith.subf %110, %113 : vector<16x8xf32>
    %115 = math.exp %114 : vector<16x8xf32>
    %cst_77 = arith.constant dense<0.000000e+00> : vector<16xf32>
    %116 = vector.multi_reduction <add>, %115, %cst_77 [1] : vector<16x8xf32> to vector<16xf32>
    %117 = vector.shape_cast %116 : vector<16xf32> to vector<16x1xf32>
    %cst_78 = arith.constant 1.000000e-30 : f32
    %118 = vector.broadcast %cst_78 : f32 to vector<16x1xf32>
    %119 = arith.maximumf %117, %118 : vector<16x1xf32>
    %120 = arith.divf %88, %119 : vector<16x1xf32>
    %121 = vector.broadcast %120 : vector<16x1xf32> to vector<16x8xf32>
    %122 = arith.mulf %115, %121 : vector<16x8xf32>
    %123 = vector.extract_strided_slice %78 {offsets = [0, 8], sizes = [8, 8], strides = [1, 1]} : vector<8x32xf32> to vector<8x8xf32>
    %cst_79 = arith.constant dense<0.000000e+00> : vector<16x8xf32>
    %124 = tpu.matmul %122, %123, %cst_79 {dimension_numbers = #tpu.dot_dimension_numbers<[1], [0], [0], [1], [0, 0, 1, 1], [], []>} : vector<16x8xf32>, vector<8x8xf32>, vector<16x8xf32> -> vector<16x8xf32>
    %125 = vector.extract_strided_slice %44 {offsets = [0, 16], sizes = [16, 8], strides = [1, 1]} : vector<16x32xf32> to vector<16x8xf32>
    %126 = vector.extract_strided_slice %75 {offsets = [0, 16], sizes = [8, 8], strides = [1, 1]} : vector<8x32xf32> to vector<8x8xf32>
    %cst_80 = arith.constant dense<0.000000e+00> : vector<16x8xf32>
    %127 = tpu.matmul %125, %126, %cst_80 {dimension_numbers = #tpu.dot_dimension_numbers<[1], [1], [0], [0], [0, 0, 1, 0], [], []>} : vector<16x8xf32>, vector<8x8xf32>, vector<16x8xf32> -> vector<16x8xf32>
    %128 = arith.addf %127, %81 : vector<16x8xf32>
    %cst_81 = arith.constant dense<0xFF800000> : vector<16xf32>
    %129 = vector.multi_reduction <maximumf>, %128, %cst_81 [1] : vector<16x8xf32> to vector<16xf32>
    %130 = vector.shape_cast %129 : vector<16xf32> to vector<16x1xf32>
    %131 = vector.broadcast %130 : vector<16x1xf32> to vector<16x8xf32>
    %132 = arith.subf %128, %131 : vector<16x8xf32>
    %133 = math.exp %132 : vector<16x8xf32>
    %cst_82 = arith.constant dense<0.000000e+00> : vector<16xf32>
    %134 = vector.multi_reduction <add>, %133, %cst_82 [1] : vector<16x8xf32> to vector<16xf32>
    %135 = vector.shape_cast %134 : vector<16xf32> to vector<16x1xf32>
    %cst_83 = arith.constant 1.000000e-30 : f32
    %136 = vector.broadcast %cst_83 : f32 to vector<16x1xf32>
    %137 = arith.maximumf %135, %136 : vector<16x1xf32>
    %138 = arith.divf %88, %137 : vector<16x1xf32>
    %139 = vector.broadcast %138 : vector<16x1xf32> to vector<16x8xf32>
    %140 = arith.mulf %133, %139 : vector<16x8xf32>
    %141 = vector.extract_strided_slice %78 {offsets = [0, 16], sizes = [8, 8], strides = [1, 1]} : vector<8x32xf32> to vector<8x8xf32>
    %cst_84 = arith.constant dense<0.000000e+00> : vector<16x8xf32>
    %142 = tpu.matmul %140, %141, %cst_84 {dimension_numbers = #tpu.dot_dimension_numbers<[1], [0], [0], [1], [0, 0, 1, 1], [], []>} : vector<16x8xf32>, vector<8x8xf32>, vector<16x8xf32> -> vector<16x8xf32>
    %143 = vector.extract_strided_slice %44 {offsets = [0, 24], sizes = [16, 8], strides = [1, 1]} : vector<16x32xf32> to vector<16x8xf32>
    %144 = vector.extract_strided_slice %75 {offsets = [0, 24], sizes = [8, 8], strides = [1, 1]} : vector<8x32xf32> to vector<8x8xf32>
    %cst_85 = arith.constant dense<0.000000e+00> : vector<16x8xf32>
    %145 = tpu.matmul %143, %144, %cst_85 {dimension_numbers = #tpu.dot_dimension_numbers<[1], [1], [0], [0], [0, 0, 1, 0], [], []>} : vector<16x8xf32>, vector<8x8xf32>, vector<16x8xf32> -> vector<16x8xf32>
    %146 = arith.addf %145, %81 : vector<16x8xf32>
    %cst_86 = arith.constant dense<0xFF800000> : vector<16xf32>
    %147 = vector.multi_reduction <maximumf>, %146, %cst_86 [1] : vector<16x8xf32> to vector<16xf32>
    %148 = vector.shape_cast %147 : vector<16xf32> to vector<16x1xf32>
    %149 = vector.broadcast %148 : vector<16x1xf32> to vector<16x8xf32>
    %150 = arith.subf %146, %149 : vector<16x8xf32>
    %151 = math.exp %150 : vector<16x8xf32>
    %cst_87 = arith.constant dense<0.000000e+00> : vector<16xf32>
    %152 = vector.multi_reduction <add>, %151, %cst_87 [1] : vector<16x8xf32> to vector<16xf32>
    %153 = vector.shape_cast %152 : vector<16xf32> to vector<16x1xf32>
    %cst_88 = arith.constant 1.000000e-30 : f32
    %154 = vector.broadcast %cst_88 : f32 to vector<16x1xf32>
    %155 = arith.maximumf %153, %154 : vector<16x1xf32>
    %156 = arith.divf %88, %155 : vector<16x1xf32>
    %157 = vector.broadcast %156 : vector<16x1xf32> to vector<16x8xf32>
    %158 = arith.mulf %151, %157 : vector<16x8xf32>
    %159 = vector.extract_strided_slice %78 {offsets = [0, 24], sizes = [8, 8], strides = [1, 1]} : vector<8x32xf32> to vector<8x8xf32>
    %cst_89 = arith.constant dense<0.000000e+00> : vector<16x8xf32>
    %160 = tpu.matmul %158, %159, %cst_89 {dimension_numbers = #tpu.dot_dimension_numbers<[1], [0], [0], [1], [0, 0, 1, 1], [], []>} : vector<16x8xf32>, vector<8x8xf32>, vector<16x8xf32> -> vector<16x8xf32>
    %c1_90 = arith.constant 1 : index
    %c0_91 = arith.constant 0 : index
    %c0_92 = arith.constant 0 : index
    %161 = vector.load %arg6[%c1_90, %c0_91, %c0_92] : memref<8x32x32xf32, #tpu.memory_space<vmem>>, vector<1x32x32xf32>
    %162 = vector.shape_cast %161 : vector<1x32x32xf32> to vector<32x32xf32>
    %cst_93 = arith.constant dense<0.000000e+00> : vector<16x32xf32>
    %163 = tpu.matmul %37, %162, %cst_93 {dimension_numbers = #tpu.dot_dimension_numbers<[1], [0], [0], [1], [0, 0, 1, 1], [], []>} : vector<16x32xf32>, vector<32x32xf32>, vector<16x32xf32> -> vector<16x32xf32>
    %c1_94 = arith.constant 1 : index
    %c0_95 = arith.constant 0 : index
    %c0_96 = arith.constant 0 : index
    %164 = vector.load %arg7[%c1_94, %c0_95, %c0_96] : memref<8x32x32xf32, #tpu.memory_space<vmem>>, vector<1x32x32xf32>
    %165 = vector.shape_cast %164 : vector<1x32x32xf32> to vector<32x32xf32>
    %cst_97 = arith.constant dense<0.000000e+00> : vector<16x32xf32>
    %166 = tpu.matmul %51, %165, %cst_97 {dimension_numbers = #tpu.dot_dimension_numbers<[1], [0], [0], [1], [0, 0, 1, 1], [], []>} : vector<16x32xf32>, vector<32x32xf32>, vector<16x32xf32> -> vector<16x32xf32>
    %c1_98 = arith.constant 1 : index
    %c0_99 = arith.constant 0 : index
    %c0_100 = arith.constant 0 : index
    %167 = vector.load %arg8[%c1_98, %c0_99, %c0_100] : memref<4x16x16xf32, #tpu.memory_space<vmem>>, vector<1x16x16xf32>
    %168 = vector.shape_cast %167 : vector<1x16x16xf32> to vector<16x16xf32>
    %169 = vector.extract_strided_slice %168 {offsets = [0, 0], sizes = [8, 16], strides = [1, 1]} : vector<16x16xf32> to vector<8x16xf32>
    %cst_101 = arith.constant dense<0xFF800000> : vector<8xf32>
    %170 = vector.multi_reduction <maximumf>, %169, %cst_101 [1] : vector<8x16xf32> to vector<8xf32>
    %171 = vector.shape_cast %170 : vector<8xf32> to vector<8x1xf32>
    %cst_102 = arith.constant -1.000000e+29 : f32
    %172 = vector.broadcast %cst_102 : f32 to vector<8x1xf32>
    %173 = arith.cmpf ogt, %171, %172 : vector<8x1xf32>
    %cst_103 = arith.constant 1.000000e+00 : f32
    %cst_104 = arith.constant 0.000000e+00 : f32
    %174 = vector.broadcast %cst_103 : f32 to vector<8x1xf32>
    %175 = vector.broadcast %cst_104 : f32 to vector<8x1xf32>
    %176 = arith.select %173, %174, %175 : vector<8x1xi1>, vector<8x1xf32>
    %177 = vector.extract_strided_slice %23 {offsets = [0, 0], sizes = [8, 8], strides = [1, 1]} : vector<8x32xf32> to vector<8x8xf32>
    %178 = vector.extract_strided_slice %163 {offsets = [0, 0], sizes = [16, 8], strides = [1, 1]} : vector<16x32xf32> to vector<16x8xf32>
    %cst_105 = arith.constant dense<0.000000e+00> : vector<8x16xf32>
    %179 = tpu.matmul %177, %178, %cst_105 {dimension_numbers = #tpu.dot_dimension_numbers<[1], [1], [0], [0], [0, 0, 1, 0], [], []>} : vector<8x8xf32>, vector<16x8xf32>, vector<8x16xf32> -> vector<8x16xf32>
    %180 = arith.addf %179, %169 : vector<8x16xf32>
    %cst_106 = arith.constant dense<0xFF800000> : vector<8xf32>
    %181 = vector.multi_reduction <maximumf>, %180, %cst_106 [1] : vector<8x16xf32> to vector<8xf32>
    %182 = vector.shape_cast %181 : vector<8xf32> to vector<8x1xf32>
    %183 = vector.broadcast %182 : vector<8x1xf32> to vector<8x16xf32>
    %184 = arith.subf %180, %183 : vector<8x16xf32>
    %185 = math.exp %184 : vector<8x16xf32>
    %cst_107 = arith.constant dense<0.000000e+00> : vector<8xf32>
    %186 = vector.multi_reduction <add>, %185, %cst_107 [1] : vector<8x16xf32> to vector<8xf32>
    %187 = vector.shape_cast %186 : vector<8xf32> to vector<8x1xf32>
    %cst_108 = arith.constant 1.000000e-30 : f32
    %188 = vector.broadcast %cst_108 : f32 to vector<8x1xf32>
    %189 = arith.maximumf %187, %188 : vector<8x1xf32>
    %190 = arith.divf %176, %189 : vector<8x1xf32>
    %191 = vector.broadcast %190 : vector<8x1xf32> to vector<8x16xf32>
    %192 = arith.mulf %185, %191 : vector<8x16xf32>
    %193 = vector.extract_strided_slice %166 {offsets = [0, 0], sizes = [16, 8], strides = [1, 1]} : vector<16x32xf32> to vector<16x8xf32>
    %cst_109 = arith.constant dense<0.000000e+00> : vector<8x8xf32>
    %194 = tpu.matmul %192, %193, %cst_109 {dimension_numbers = #tpu.dot_dimension_numbers<[1], [0], [0], [1], [0, 0, 1, 1], [], []>} : vector<8x16xf32>, vector<16x8xf32>, vector<8x8xf32> -> vector<8x8xf32>
    %195 = vector.extract_strided_slice %23 {offsets = [0, 8], sizes = [8, 8], strides = [1, 1]} : vector<8x32xf32> to vector<8x8xf32>
    %196 = vector.extract_strided_slice %163 {offsets = [0, 8], sizes = [16, 8], strides = [1, 1]} : vector<16x32xf32> to vector<16x8xf32>
    %cst_110 = arith.constant dense<0.000000e+00> : vector<8x16xf32>
    %197 = tpu.matmul %195, %196, %cst_110 {dimension_numbers = #tpu.dot_dimension_numbers<[1], [1], [0], [0], [0, 0, 1, 0], [], []>} : vector<8x8xf32>, vector<16x8xf32>, vector<8x16xf32> -> vector<8x16xf32>
    %198 = arith.addf %197, %169 : vector<8x16xf32>
    %cst_111 = arith.constant dense<0xFF800000> : vector<8xf32>
    %199 = vector.multi_reduction <maximumf>, %198, %cst_111 [1] : vector<8x16xf32> to vector<8xf32>
    %200 = vector.shape_cast %199 : vector<8xf32> to vector<8x1xf32>
    %201 = vector.broadcast %200 : vector<8x1xf32> to vector<8x16xf32>
    %202 = arith.subf %198, %201 : vector<8x16xf32>
    %203 = math.exp %202 : vector<8x16xf32>
    %cst_112 = arith.constant dense<0.000000e+00> : vector<8xf32>
    %204 = vector.multi_reduction <add>, %203, %cst_112 [1] : vector<8x16xf32> to vector<8xf32>
    %205 = vector.shape_cast %204 : vector<8xf32> to vector<8x1xf32>
    %cst_113 = arith.constant 1.000000e-30 : f32
    %206 = vector.broadcast %cst_113 : f32 to vector<8x1xf32>
    %207 = arith.maximumf %205, %206 : vector<8x1xf32>
    %208 = arith.divf %176, %207 : vector<8x1xf32>
    %209 = vector.broadcast %208 : vector<8x1xf32> to vector<8x16xf32>
    %210 = arith.mulf %203, %209 : vector<8x16xf32>
    %211 = vector.extract_strided_slice %166 {offsets = [0, 8], sizes = [16, 8], strides = [1, 1]} : vector<16x32xf32> to vector<16x8xf32>
    %cst_114 = arith.constant dense<0.000000e+00> : vector<8x8xf32>
    %212 = tpu.matmul %210, %211, %cst_114 {dimension_numbers = #tpu.dot_dimension_numbers<[1], [0], [0], [1], [0, 0, 1, 1], [], []>} : vector<8x16xf32>, vector<16x8xf32>, vector<8x8xf32> -> vector<8x8xf32>
    %213 = vector.extract_strided_slice %23 {offsets = [0, 16], sizes = [8, 8], strides = [1, 1]} : vector<8x32xf32> to vector<8x8xf32>
    %214 = vector.extract_strided_slice %163 {offsets = [0, 16], sizes = [16, 8], strides = [1, 1]} : vector<16x32xf32> to vector<16x8xf32>
    %cst_115 = arith.constant dense<0.000000e+00> : vector<8x16xf32>
    %215 = tpu.matmul %213, %214, %cst_115 {dimension_numbers = #tpu.dot_dimension_numbers<[1], [1], [0], [0], [0, 0, 1, 0], [], []>} : vector<8x8xf32>, vector<16x8xf32>, vector<8x16xf32> -> vector<8x16xf32>
    %216 = arith.addf %215, %169 : vector<8x16xf32>
    %cst_116 = arith.constant dense<0xFF800000> : vector<8xf32>
    %217 = vector.multi_reduction <maximumf>, %216, %cst_116 [1] : vector<8x16xf32> to vector<8xf32>
    %218 = vector.shape_cast %217 : vector<8xf32> to vector<8x1xf32>
    %219 = vector.broadcast %218 : vector<8x1xf32> to vector<8x16xf32>
    %220 = arith.subf %216, %219 : vector<8x16xf32>
    %221 = math.exp %220 : vector<8x16xf32>
    %cst_117 = arith.constant dense<0.000000e+00> : vector<8xf32>
    %222 = vector.multi_reduction <add>, %221, %cst_117 [1] : vector<8x16xf32> to vector<8xf32>
    %223 = vector.shape_cast %222 : vector<8xf32> to vector<8x1xf32>
    %cst_118 = arith.constant 1.000000e-30 : f32
    %224 = vector.broadcast %cst_118 : f32 to vector<8x1xf32>
    %225 = arith.maximumf %223, %224 : vector<8x1xf32>
    %226 = arith.divf %176, %225 : vector<8x1xf32>
    %227 = vector.broadcast %226 : vector<8x1xf32> to vector<8x16xf32>
    %228 = arith.mulf %221, %227 : vector<8x16xf32>
    %229 = vector.extract_strided_slice %166 {offsets = [0, 16], sizes = [16, 8], strides = [1, 1]} : vector<16x32xf32> to vector<16x8xf32>
    %cst_119 = arith.constant dense<0.000000e+00> : vector<8x8xf32>
    %230 = tpu.matmul %228, %229, %cst_119 {dimension_numbers = #tpu.dot_dimension_numbers<[1], [0], [0], [1], [0, 0, 1, 1], [], []>} : vector<8x16xf32>, vector<16x8xf32>, vector<8x8xf32> -> vector<8x8xf32>
    %231 = vector.extract_strided_slice %23 {offsets = [0, 24], sizes = [8, 8], strides = [1, 1]} : vector<8x32xf32> to vector<8x8xf32>
    %232 = vector.extract_strided_slice %163 {offsets = [0, 24], sizes = [16, 8], strides = [1, 1]} : vector<16x32xf32> to vector<16x8xf32>
    %cst_120 = arith.constant dense<0.000000e+00> : vector<8x16xf32>
    %233 = tpu.matmul %231, %232, %cst_120 {dimension_numbers = #tpu.dot_dimension_numbers<[1], [1], [0], [0], [0, 0, 1, 0], [], []>} : vector<8x8xf32>, vector<16x8xf32>, vector<8x16xf32> -> vector<8x16xf32>
    %234 = arith.addf %233, %169 : vector<8x16xf32>
    %cst_121 = arith.constant dense<0xFF800000> : vector<8xf32>
    %235 = vector.multi_reduction <maximumf>, %234, %cst_121 [1] : vector<8x16xf32> to vector<8xf32>
    %236 = vector.shape_cast %235 : vector<8xf32> to vector<8x1xf32>
    %237 = vector.broadcast %236 : vector<8x1xf32> to vector<8x16xf32>
    %238 = arith.subf %234, %237 : vector<8x16xf32>
    %239 = math.exp %238 : vector<8x16xf32>
    %cst_122 = arith.constant dense<0.000000e+00> : vector<8xf32>
    %240 = vector.multi_reduction <add>, %239, %cst_122 [1] : vector<8x16xf32> to vector<8xf32>
    %241 = vector.shape_cast %240 : vector<8xf32> to vector<8x1xf32>
    %cst_123 = arith.constant 1.000000e-30 : f32
    %242 = vector.broadcast %cst_123 : f32 to vector<8x1xf32>
    %243 = arith.maximumf %241, %242 : vector<8x1xf32>
    %244 = arith.divf %176, %243 : vector<8x1xf32>
    %245 = vector.broadcast %244 : vector<8x1xf32> to vector<8x16xf32>
    %246 = arith.mulf %239, %245 : vector<8x16xf32>
    %247 = vector.extract_strided_slice %166 {offsets = [0, 24], sizes = [16, 8], strides = [1, 1]} : vector<16x32xf32> to vector<16x8xf32>
    %cst_124 = arith.constant dense<0.000000e+00> : vector<8x8xf32>
    %248 = tpu.matmul %246, %247, %cst_124 {dimension_numbers = #tpu.dot_dimension_numbers<[1], [0], [0], [1], [0, 0, 1, 1], [], []>} : vector<8x16xf32>, vector<16x8xf32>, vector<8x8xf32> -> vector<8x8xf32>
    %c2_125 = arith.constant 2 : index
    %c0_126 = arith.constant 0 : index
    %c0_127 = arith.constant 0 : index
    %249 = vector.load %arg6[%c2_125, %c0_126, %c0_127] : memref<8x32x32xf32, #tpu.memory_space<vmem>>, vector<1x32x32xf32>
    %250 = vector.shape_cast %249 : vector<1x32x32xf32> to vector<32x32xf32>
    %cst_128 = arith.constant dense<0.000000e+00> : vector<16x32xf32>
    %251 = tpu.matmul %37, %250, %cst_128 {dimension_numbers = #tpu.dot_dimension_numbers<[1], [0], [0], [1], [0, 0, 1, 1], [], []>} : vector<16x32xf32>, vector<32x32xf32>, vector<16x32xf32> -> vector<16x32xf32>
    %c2_129 = arith.constant 2 : index
    %c0_130 = arith.constant 0 : index
    %c0_131 = arith.constant 0 : index
    %252 = vector.load %arg7[%c2_129, %c0_130, %c0_131] : memref<8x32x32xf32, #tpu.memory_space<vmem>>, vector<1x32x32xf32>
    %253 = vector.shape_cast %252 : vector<1x32x32xf32> to vector<32x32xf32>
    %cst_132 = arith.constant dense<0.000000e+00> : vector<16x32xf32>
    %254 = tpu.matmul %51, %253, %cst_132 {dimension_numbers = #tpu.dot_dimension_numbers<[1], [0], [0], [1], [0, 0, 1, 1], [], []>} : vector<16x32xf32>, vector<32x32xf32>, vector<16x32xf32> -> vector<16x32xf32>
    %c2_133 = arith.constant 2 : index
    %c0_134 = arith.constant 0 : index
    %c0_135 = arith.constant 0 : index
    %255 = vector.load %arg8[%c2_133, %c0_134, %c0_135] : memref<4x16x16xf32, #tpu.memory_space<vmem>>, vector<1x16x16xf32>
    %256 = vector.shape_cast %255 : vector<1x16x16xf32> to vector<16x16xf32>
    %257 = vector.extract_strided_slice %256 {offsets = [0, 0], sizes = [8, 16], strides = [1, 1]} : vector<16x16xf32> to vector<8x16xf32>
    %cst_136 = arith.constant dense<0xFF800000> : vector<8xf32>
    %258 = vector.multi_reduction <maximumf>, %257, %cst_136 [1] : vector<8x16xf32> to vector<8xf32>
    %259 = vector.shape_cast %258 : vector<8xf32> to vector<8x1xf32>
    %cst_137 = arith.constant -1.000000e+29 : f32
    %260 = vector.broadcast %cst_137 : f32 to vector<8x1xf32>
    %261 = arith.cmpf ogt, %259, %260 : vector<8x1xf32>
    %cst_138 = arith.constant 1.000000e+00 : f32
    %cst_139 = arith.constant 0.000000e+00 : f32
    %262 = vector.broadcast %cst_138 : f32 to vector<8x1xf32>
    %263 = vector.broadcast %cst_139 : f32 to vector<8x1xf32>
    %264 = arith.select %261, %262, %263 : vector<8x1xi1>, vector<8x1xf32>
    %265 = vector.extract_strided_slice %65 {offsets = [0, 0], sizes = [8, 8], strides = [1, 1]} : vector<8x32xf32> to vector<8x8xf32>
    %266 = vector.extract_strided_slice %251 {offsets = [0, 0], sizes = [16, 8], strides = [1, 1]} : vector<16x32xf32> to vector<16x8xf32>
    %cst_140 = arith.constant dense<0.000000e+00> : vector<8x16xf32>
    %267 = tpu.matmul %265, %266, %cst_140 {dimension_numbers = #tpu.dot_dimension_numbers<[1], [1], [0], [0], [0, 0, 1, 0], [], []>} : vector<8x8xf32>, vector<16x8xf32>, vector<8x16xf32> -> vector<8x16xf32>
    %268 = arith.addf %267, %257 : vector<8x16xf32>
    %cst_141 = arith.constant dense<0xFF800000> : vector<8xf32>
    %269 = vector.multi_reduction <maximumf>, %268, %cst_141 [1] : vector<8x16xf32> to vector<8xf32>
    %270 = vector.shape_cast %269 : vector<8xf32> to vector<8x1xf32>
    %271 = vector.broadcast %270 : vector<8x1xf32> to vector<8x16xf32>
    %272 = arith.subf %268, %271 : vector<8x16xf32>
    %273 = math.exp %272 : vector<8x16xf32>
    %cst_142 = arith.constant dense<0.000000e+00> : vector<8xf32>
    %274 = vector.multi_reduction <add>, %273, %cst_142 [1] : vector<8x16xf32> to vector<8xf32>
    %275 = vector.shape_cast %274 : vector<8xf32> to vector<8x1xf32>
    %cst_143 = arith.constant 1.000000e-30 : f32
    %276 = vector.broadcast %cst_143 : f32 to vector<8x1xf32>
    %277 = arith.maximumf %275, %276 : vector<8x1xf32>
    %278 = arith.divf %264, %277 : vector<8x1xf32>
    %279 = vector.broadcast %278 : vector<8x1xf32> to vector<8x16xf32>
    %280 = arith.mulf %273, %279 : vector<8x16xf32>
    %281 = vector.extract_strided_slice %254 {offsets = [0, 0], sizes = [16, 8], strides = [1, 1]} : vector<16x32xf32> to vector<16x8xf32>
    %cst_144 = arith.constant dense<0.000000e+00> : vector<8x8xf32>
    %282 = tpu.matmul %280, %281, %cst_144 {dimension_numbers = #tpu.dot_dimension_numbers<[1], [0], [0], [1], [0, 0, 1, 1], [], []>} : vector<8x16xf32>, vector<16x8xf32>, vector<8x8xf32> -> vector<8x8xf32>
    %283 = vector.extract_strided_slice %65 {offsets = [0, 8], sizes = [8, 8], strides = [1, 1]} : vector<8x32xf32> to vector<8x8xf32>
    %284 = vector.extract_strided_slice %251 {offsets = [0, 8], sizes = [16, 8], strides = [1, 1]} : vector<16x32xf32> to vector<16x8xf32>
    %cst_145 = arith.constant dense<0.000000e+00> : vector<8x16xf32>
    %285 = tpu.matmul %283, %284, %cst_145 {dimension_numbers = #tpu.dot_dimension_numbers<[1], [1], [0], [0], [0, 0, 1, 0], [], []>} : vector<8x8xf32>, vector<16x8xf32>, vector<8x16xf32> -> vector<8x16xf32>
    %286 = arith.addf %285, %257 : vector<8x16xf32>
    %cst_146 = arith.constant dense<0xFF800000> : vector<8xf32>
    %287 = vector.multi_reduction <maximumf>, %286, %cst_146 [1] : vector<8x16xf32> to vector<8xf32>
    %288 = vector.shape_cast %287 : vector<8xf32> to vector<8x1xf32>
    %289 = vector.broadcast %288 : vector<8x1xf32> to vector<8x16xf32>
    %290 = arith.subf %286, %289 : vector<8x16xf32>
    %291 = math.exp %290 : vector<8x16xf32>
    %cst_147 = arith.constant dense<0.000000e+00> : vector<8xf32>
    %292 = vector.multi_reduction <add>, %291, %cst_147 [1] : vector<8x16xf32> to vector<8xf32>
    %293 = vector.shape_cast %292 : vector<8xf32> to vector<8x1xf32>
    %cst_148 = arith.constant 1.000000e-30 : f32
    %294 = vector.broadcast %cst_148 : f32 to vector<8x1xf32>
    %295 = arith.maximumf %293, %294 : vector<8x1xf32>
    %296 = arith.divf %264, %295 : vector<8x1xf32>
    %297 = vector.broadcast %296 : vector<8x1xf32> to vector<8x16xf32>
    %298 = arith.mulf %291, %297 : vector<8x16xf32>
    %299 = vector.extract_strided_slice %254 {offsets = [0, 8], sizes = [16, 8], strides = [1, 1]} : vector<16x32xf32> to vector<16x8xf32>
    %cst_149 = arith.constant dense<0.000000e+00> : vector<8x8xf32>
    %300 = tpu.matmul %298, %299, %cst_149 {dimension_numbers = #tpu.dot_dimension_numbers<[1], [0], [0], [1], [0, 0, 1, 1], [], []>} : vector<8x16xf32>, vector<16x8xf32>, vector<8x8xf32> -> vector<8x8xf32>
    %301 = vector.extract_strided_slice %65 {offsets = [0, 16], sizes = [8, 8], strides = [1, 1]} : vector<8x32xf32> to vector<8x8xf32>
    %302 = vector.extract_strided_slice %251 {offsets = [0, 16], sizes = [16, 8], strides = [1, 1]} : vector<16x32xf32> to vector<16x8xf32>
    %cst_150 = arith.constant dense<0.000000e+00> : vector<8x16xf32>
    %303 = tpu.matmul %301, %302, %cst_150 {dimension_numbers = #tpu.dot_dimension_numbers<[1], [1], [0], [0], [0, 0, 1, 0], [], []>} : vector<8x8xf32>, vector<16x8xf32>, vector<8x16xf32> -> vector<8x16xf32>
    %304 = arith.addf %303, %257 : vector<8x16xf32>
    %cst_151 = arith.constant dense<0xFF800000> : vector<8xf32>
    %305 = vector.multi_reduction <maximumf>, %304, %cst_151 [1] : vector<8x16xf32> to vector<8xf32>
    %306 = vector.shape_cast %305 : vector<8xf32> to vector<8x1xf32>
    %307 = vector.broadcast %306 : vector<8x1xf32> to vector<8x16xf32>
    %308 = arith.subf %304, %307 : vector<8x16xf32>
    %309 = math.exp %308 : vector<8x16xf32>
    %cst_152 = arith.constant dense<0.000000e+00> : vector<8xf32>
    %310 = vector.multi_reduction <add>, %309, %cst_152 [1] : vector<8x16xf32> to vector<8xf32>
    %311 = vector.shape_cast %310 : vector<8xf32> to vector<8x1xf32>
    %cst_153 = arith.constant 1.000000e-30 : f32
    %312 = vector.broadcast %cst_153 : f32 to vector<8x1xf32>
    %313 = arith.maximumf %311, %312 : vector<8x1xf32>
    %314 = arith.divf %264, %313 : vector<8x1xf32>
    %315 = vector.broadcast %314 : vector<8x1xf32> to vector<8x16xf32>
    %316 = arith.mulf %309, %315 : vector<8x16xf32>
    %317 = vector.extract_strided_slice %254 {offsets = [0, 16], sizes = [16, 8], strides = [1, 1]} : vector<16x32xf32> to vector<16x8xf32>
    %cst_154 = arith.constant dense<0.000000e+00> : vector<8x8xf32>
    %318 = tpu.matmul %316, %317, %cst_154 {dimension_numbers = #tpu.dot_dimension_numbers<[1], [0], [0], [1], [0, 0, 1, 1], [], []>} : vector<8x16xf32>, vector<16x8xf32>, vector<8x8xf32> -> vector<8x8xf32>
    %319 = vector.extract_strided_slice %65 {offsets = [0, 24], sizes = [8, 8], strides = [1, 1]} : vector<8x32xf32> to vector<8x8xf32>
    %320 = vector.extract_strided_slice %251 {offsets = [0, 24], sizes = [16, 8], strides = [1, 1]} : vector<16x32xf32> to vector<16x8xf32>
    %cst_155 = arith.constant dense<0.000000e+00> : vector<8x16xf32>
    %321 = tpu.matmul %319, %320, %cst_155 {dimension_numbers = #tpu.dot_dimension_numbers<[1], [1], [0], [0], [0, 0, 1, 0], [], []>} : vector<8x8xf32>, vector<16x8xf32>, vector<8x16xf32> -> vector<8x16xf32>
    %322 = arith.addf %321, %257 : vector<8x16xf32>
    %cst_156 = arith.constant dense<0xFF800000> : vector<8xf32>
    %323 = vector.multi_reduction <maximumf>, %322, %cst_156 [1] : vector<8x16xf32> to vector<8xf32>
    %324 = vector.shape_cast %323 : vector<8xf32> to vector<8x1xf32>
    %325 = vector.broadcast %324 : vector<8x1xf32> to vector<8x16xf32>
    %326 = arith.subf %322, %325 : vector<8x16xf32>
    %327 = math.exp %326 : vector<8x16xf32>
    %cst_157 = arith.constant dense<0.000000e+00> : vector<8xf32>
    %328 = vector.multi_reduction <add>, %327, %cst_157 [1] : vector<8x16xf32> to vector<8xf32>
    %329 = vector.shape_cast %328 : vector<8xf32> to vector<8x1xf32>
    %cst_158 = arith.constant 1.000000e-30 : f32
    %330 = vector.broadcast %cst_158 : f32 to vector<8x1xf32>
    %331 = arith.maximumf %329, %330 : vector<8x1xf32>
    %332 = arith.divf %264, %331 : vector<8x1xf32>
    %333 = vector.broadcast %332 : vector<8x1xf32> to vector<8x16xf32>
    %334 = arith.mulf %327, %333 : vector<8x16xf32>
    %335 = vector.extract_strided_slice %254 {offsets = [0, 24], sizes = [16, 8], strides = [1, 1]} : vector<16x32xf32> to vector<16x8xf32>
    %cst_159 = arith.constant dense<0.000000e+00> : vector<8x8xf32>
    %336 = tpu.matmul %334, %335, %cst_159 {dimension_numbers = #tpu.dot_dimension_numbers<[1], [0], [0], [1], [0, 0, 1, 1], [], []>} : vector<8x16xf32>, vector<16x8xf32>, vector<8x8xf32> -> vector<8x8xf32>
    %c3 = arith.constant 3 : index
    %c0_160 = arith.constant 0 : index
    %c0_161 = arith.constant 0 : index
    %337 = vector.load %arg6[%c3, %c0_160, %c0_161] : memref<8x32x32xf32, #tpu.memory_space<vmem>>, vector<1x32x32xf32>
    %338 = vector.shape_cast %337 : vector<1x32x32xf32> to vector<32x32xf32>
    %cst_162 = arith.constant dense<0.000000e+00> : vector<8x32xf32>
    %339 = tpu.matmul %58, %338, %cst_162 {dimension_numbers = #tpu.dot_dimension_numbers<[1], [0], [0], [1], [0, 0, 1, 1], [], []>} : vector<8x32xf32>, vector<32x32xf32>, vector<8x32xf32> -> vector<8x32xf32>
    %c3_163 = arith.constant 3 : index
    %c0_164 = arith.constant 0 : index
    %c0_165 = arith.constant 0 : index
    %340 = vector.load %arg7[%c3_163, %c0_164, %c0_165] : memref<8x32x32xf32, #tpu.memory_space<vmem>>, vector<1x32x32xf32>
    %341 = vector.shape_cast %340 : vector<1x32x32xf32> to vector<32x32xf32>
    %cst_166 = arith.constant dense<0.000000e+00> : vector<8x32xf32>
    %342 = tpu.matmul %72, %341, %cst_166 {dimension_numbers = #tpu.dot_dimension_numbers<[1], [0], [0], [1], [0, 0, 1, 1], [], []>} : vector<8x32xf32>, vector<32x32xf32>, vector<8x32xf32> -> vector<8x32xf32>
    %c3_167 = arith.constant 3 : index
    %c0_168 = arith.constant 0 : index
    %c0_169 = arith.constant 0 : index
    %343 = vector.load %arg8[%c3_167, %c0_168, %c0_169] : memref<4x16x16xf32, #tpu.memory_space<vmem>>, vector<1x16x16xf32>
    %344 = vector.shape_cast %343 : vector<1x16x16xf32> to vector<16x16xf32>
    %345 = vector.extract_strided_slice %344 {offsets = [0, 0], sizes = [16, 8], strides = [1, 1]} : vector<16x16xf32> to vector<16x8xf32>
    %cst_170 = arith.constant dense<0xFF800000> : vector<16xf32>
    %346 = vector.multi_reduction <maximumf>, %345, %cst_170 [1] : vector<16x8xf32> to vector<16xf32>
    %347 = vector.shape_cast %346 : vector<16xf32> to vector<16x1xf32>
    %cst_171 = arith.constant -1.000000e+29 : f32
    %348 = vector.broadcast %cst_171 : f32 to vector<16x1xf32>
    %349 = arith.cmpf ogt, %347, %348 : vector<16x1xf32>
    %cst_172 = arith.constant 1.000000e+00 : f32
    %cst_173 = arith.constant 0.000000e+00 : f32
    %350 = vector.broadcast %cst_172 : f32 to vector<16x1xf32>
    %351 = vector.broadcast %cst_173 : f32 to vector<16x1xf32>
    %352 = arith.select %349, %350, %351 : vector<16x1xi1>, vector<16x1xf32>
    %353 = vector.extract_strided_slice %44 {offsets = [0, 0], sizes = [16, 8], strides = [1, 1]} : vector<16x32xf32> to vector<16x8xf32>
    %354 = vector.extract_strided_slice %339 {offsets = [0, 0], sizes = [8, 8], strides = [1, 1]} : vector<8x32xf32> to vector<8x8xf32>
    %cst_174 = arith.constant dense<0.000000e+00> : vector<16x8xf32>
    %355 = tpu.matmul %353, %354, %cst_174 {dimension_numbers = #tpu.dot_dimension_numbers<[1], [1], [0], [0], [0, 0, 1, 0], [], []>} : vector<16x8xf32>, vector<8x8xf32>, vector<16x8xf32> -> vector<16x8xf32>
    %356 = arith.addf %355, %345 : vector<16x8xf32>
    %cst_175 = arith.constant dense<0xFF800000> : vector<16xf32>
    %357 = vector.multi_reduction <maximumf>, %356, %cst_175 [1] : vector<16x8xf32> to vector<16xf32>
    %358 = vector.shape_cast %357 : vector<16xf32> to vector<16x1xf32>
    %359 = vector.broadcast %358 : vector<16x1xf32> to vector<16x8xf32>
    %360 = arith.subf %356, %359 : vector<16x8xf32>
    %361 = math.exp %360 : vector<16x8xf32>
    %cst_176 = arith.constant dense<0.000000e+00> : vector<16xf32>
    %362 = vector.multi_reduction <add>, %361, %cst_176 [1] : vector<16x8xf32> to vector<16xf32>
    %363 = vector.shape_cast %362 : vector<16xf32> to vector<16x1xf32>
    %cst_177 = arith.constant 1.000000e-30 : f32
    %364 = vector.broadcast %cst_177 : f32 to vector<16x1xf32>
    %365 = arith.maximumf %363, %364 : vector<16x1xf32>
    %366 = arith.divf %352, %365 : vector<16x1xf32>
    %367 = vector.broadcast %366 : vector<16x1xf32> to vector<16x8xf32>
    %368 = arith.mulf %361, %367 : vector<16x8xf32>
    %369 = vector.extract_strided_slice %342 {offsets = [0, 0], sizes = [8, 8], strides = [1, 1]} : vector<8x32xf32> to vector<8x8xf32>
    %cst_178 = arith.constant dense<0.000000e+00> : vector<16x8xf32>
    %370 = tpu.matmul %368, %369, %cst_178 {dimension_numbers = #tpu.dot_dimension_numbers<[1], [0], [0], [1], [0, 0, 1, 1], [], []>} : vector<16x8xf32>, vector<8x8xf32>, vector<16x8xf32> -> vector<16x8xf32>
    %371 = arith.addf %106, %370 : vector<16x8xf32>
    %372 = vector.extract_strided_slice %44 {offsets = [0, 8], sizes = [16, 8], strides = [1, 1]} : vector<16x32xf32> to vector<16x8xf32>
    %373 = vector.extract_strided_slice %339 {offsets = [0, 8], sizes = [8, 8], strides = [1, 1]} : vector<8x32xf32> to vector<8x8xf32>
    %cst_179 = arith.constant dense<0.000000e+00> : vector<16x8xf32>
    %374 = tpu.matmul %372, %373, %cst_179 {dimension_numbers = #tpu.dot_dimension_numbers<[1], [1], [0], [0], [0, 0, 1, 0], [], []>} : vector<16x8xf32>, vector<8x8xf32>, vector<16x8xf32> -> vector<16x8xf32>
    %375 = arith.addf %374, %345 : vector<16x8xf32>
    %cst_180 = arith.constant dense<0xFF800000> : vector<16xf32>
    %376 = vector.multi_reduction <maximumf>, %375, %cst_180 [1] : vector<16x8xf32> to vector<16xf32>
    %377 = vector.shape_cast %376 : vector<16xf32> to vector<16x1xf32>
    %378 = vector.broadcast %377 : vector<16x1xf32> to vector<16x8xf32>
    %379 = arith.subf %375, %378 : vector<16x8xf32>
    %380 = math.exp %379 : vector<16x8xf32>
    %cst_181 = arith.constant dense<0.000000e+00> : vector<16xf32>
    %381 = vector.multi_reduction <add>, %380, %cst_181 [1] : vector<16x8xf32> to vector<16xf32>
    %382 = vector.shape_cast %381 : vector<16xf32> to vector<16x1xf32>
    %cst_182 = arith.constant 1.000000e-30 : f32
    %383 = vector.broadcast %cst_182 : f32 to vector<16x1xf32>
    %384 = arith.maximumf %382, %383 : vector<16x1xf32>
    %385 = arith.divf %352, %384 : vector<16x1xf32>
    %386 = vector.broadcast %385 : vector<16x1xf32> to vector<16x8xf32>
    %387 = arith.mulf %380, %386 : vector<16x8xf32>
    %388 = vector.extract_strided_slice %342 {offsets = [0, 8], sizes = [8, 8], strides = [1, 1]} : vector<8x32xf32> to vector<8x8xf32>
    %cst_183 = arith.constant dense<0.000000e+00> : vector<16x8xf32>
    %389 = tpu.matmul %387, %388, %cst_183 {dimension_numbers = #tpu.dot_dimension_numbers<[1], [0], [0], [1], [0, 0, 1, 1], [], []>} : vector<16x8xf32>, vector<8x8xf32>, vector<16x8xf32> -> vector<16x8xf32>
    %390 = arith.addf %124, %389 : vector<16x8xf32>
    %391 = vector.extract_strided_slice %44 {offsets = [0, 16], sizes = [16, 8], strides = [1, 1]} : vector<16x32xf32> to vector<16x8xf32>
    %392 = vector.extract_strided_slice %339 {offsets = [0, 16], sizes = [8, 8], strides = [1, 1]} : vector<8x32xf32> to vector<8x8xf32>
    %cst_184 = arith.constant dense<0.000000e+00> : vector<16x8xf32>
    %393 = tpu.matmul %391, %392, %cst_184 {dimension_numbers = #tpu.dot_dimension_numbers<[1], [1], [0], [0], [0, 0, 1, 0], [], []>} : vector<16x8xf32>, vector<8x8xf32>, vector<16x8xf32> -> vector<16x8xf32>
    %394 = arith.addf %393, %345 : vector<16x8xf32>
    %cst_185 = arith.constant dense<0xFF800000> : vector<16xf32>
    %395 = vector.multi_reduction <maximumf>, %394, %cst_185 [1] : vector<16x8xf32> to vector<16xf32>
    %396 = vector.shape_cast %395 : vector<16xf32> to vector<16x1xf32>
    %397 = vector.broadcast %396 : vector<16x1xf32> to vector<16x8xf32>
    %398 = arith.subf %394, %397 : vector<16x8xf32>
    %399 = math.exp %398 : vector<16x8xf32>
    %cst_186 = arith.constant dense<0.000000e+00> : vector<16xf32>
    %400 = vector.multi_reduction <add>, %399, %cst_186 [1] : vector<16x8xf32> to vector<16xf32>
    %401 = vector.shape_cast %400 : vector<16xf32> to vector<16x1xf32>
    %cst_187 = arith.constant 1.000000e-30 : f32
    %402 = vector.broadcast %cst_187 : f32 to vector<16x1xf32>
    %403 = arith.maximumf %401, %402 : vector<16x1xf32>
    %404 = arith.divf %352, %403 : vector<16x1xf32>
    %405 = vector.broadcast %404 : vector<16x1xf32> to vector<16x8xf32>
    %406 = arith.mulf %399, %405 : vector<16x8xf32>
    %407 = vector.extract_strided_slice %342 {offsets = [0, 16], sizes = [8, 8], strides = [1, 1]} : vector<8x32xf32> to vector<8x8xf32>
    %cst_188 = arith.constant dense<0.000000e+00> : vector<16x8xf32>
    %408 = tpu.matmul %406, %407, %cst_188 {dimension_numbers = #tpu.dot_dimension_numbers<[1], [0], [0], [1], [0, 0, 1, 1], [], []>} : vector<16x8xf32>, vector<8x8xf32>, vector<16x8xf32> -> vector<16x8xf32>
    %409 = arith.addf %142, %408 : vector<16x8xf32>
    %410 = vector.extract_strided_slice %44 {offsets = [0, 24], sizes = [16, 8], strides = [1, 1]} : vector<16x32xf32> to vector<16x8xf32>
    %411 = vector.extract_strided_slice %339 {offsets = [0, 24], sizes = [8, 8], strides = [1, 1]} : vector<8x32xf32> to vector<8x8xf32>
    %cst_189 = arith.constant dense<0.000000e+00> : vector<16x8xf32>
    %412 = tpu.matmul %410, %411, %cst_189 {dimension_numbers = #tpu.dot_dimension_numbers<[1], [1], [0], [0], [0, 0, 1, 0], [], []>} : vector<16x8xf32>, vector<8x8xf32>, vector<16x8xf32> -> vector<16x8xf32>
    %413 = arith.addf %412, %345 : vector<16x8xf32>
    %cst_190 = arith.constant dense<0xFF800000> : vector<16xf32>
    %414 = vector.multi_reduction <maximumf>, %413, %cst_190 [1] : vector<16x8xf32> to vector<16xf32>
    %415 = vector.shape_cast %414 : vector<16xf32> to vector<16x1xf32>
    %416 = vector.broadcast %415 : vector<16x1xf32> to vector<16x8xf32>
    %417 = arith.subf %413, %416 : vector<16x8xf32>
    %418 = math.exp %417 : vector<16x8xf32>
    %cst_191 = arith.constant dense<0.000000e+00> : vector<16xf32>
    %419 = vector.multi_reduction <add>, %418, %cst_191 [1] : vector<16x8xf32> to vector<16xf32>
    %420 = vector.shape_cast %419 : vector<16xf32> to vector<16x1xf32>
    %cst_192 = arith.constant 1.000000e-30 : f32
    %421 = vector.broadcast %cst_192 : f32 to vector<16x1xf32>
    %422 = arith.maximumf %420, %421 : vector<16x1xf32>
    %423 = arith.divf %352, %422 : vector<16x1xf32>
    %424 = vector.broadcast %423 : vector<16x1xf32> to vector<16x8xf32>
    %425 = arith.mulf %418, %424 : vector<16x8xf32>
    %426 = vector.extract_strided_slice %342 {offsets = [0, 24], sizes = [8, 8], strides = [1, 1]} : vector<8x32xf32> to vector<8x8xf32>
    %cst_193 = arith.constant dense<0.000000e+00> : vector<16x8xf32>
    %427 = tpu.matmul %425, %426, %cst_193 {dimension_numbers = #tpu.dot_dimension_numbers<[1], [0], [0], [1], [0, 0, 1, 1], [], []>} : vector<16x8xf32>, vector<8x8xf32>, vector<16x8xf32> -> vector<16x8xf32>
    %428 = arith.addf %160, %427 : vector<16x8xf32>
    %c3_194 = arith.constant 3 : index
    %c0_195 = arith.constant 0 : index
    %c0_196 = arith.constant 0 : index
    %429 = vector.load %arg1[%c3_194, %c0_195, %c0_196] : memref<24x32x32xf32, #tpu.memory_space<vmem>>, vector<1x32x32xf32>
    %430 = vector.shape_cast %429 : vector<1x32x32xf32> to vector<32x32xf32>
    %431 = vector.extract_strided_slice %430 {offsets = [0, 0], sizes = [8, 32], strides = [1, 1]} : vector<32x32xf32> to vector<8x32xf32>
    %cst_197 = arith.constant dense<0.000000e+00> : vector<8x32xf32>
    %432 = tpu.matmul %194, %431, %cst_197 {dimension_numbers = #tpu.dot_dimension_numbers<[1], [0], [0], [1], [0, 0, 1, 1], [], []>} : vector<8x8xf32>, vector<8x32xf32>, vector<8x32xf32> -> vector<8x32xf32>
    %433 = vector.extract_strided_slice %430 {offsets = [8, 0], sizes = [8, 32], strides = [1, 1]} : vector<32x32xf32> to vector<8x32xf32>
    %cst_198 = arith.constant dense<0.000000e+00> : vector<8x32xf32>
    %434 = tpu.matmul %212, %433, %cst_198 {dimension_numbers = #tpu.dot_dimension_numbers<[1], [0], [0], [1], [0, 0, 1, 1], [], []>} : vector<8x8xf32>, vector<8x32xf32>, vector<8x32xf32> -> vector<8x32xf32>
    %435 = arith.addf %432, %434 : vector<8x32xf32>
    %436 = vector.extract_strided_slice %430 {offsets = [16, 0], sizes = [8, 32], strides = [1, 1]} : vector<32x32xf32> to vector<8x32xf32>
    %cst_199 = arith.constant dense<0.000000e+00> : vector<8x32xf32>
    %437 = tpu.matmul %230, %436, %cst_199 {dimension_numbers = #tpu.dot_dimension_numbers<[1], [0], [0], [1], [0, 0, 1, 1], [], []>} : vector<8x8xf32>, vector<8x32xf32>, vector<8x32xf32> -> vector<8x32xf32>
    %438 = arith.addf %435, %437 : vector<8x32xf32>
    %439 = vector.extract_strided_slice %430 {offsets = [24, 0], sizes = [8, 32], strides = [1, 1]} : vector<32x32xf32> to vector<8x32xf32>
    %cst_200 = arith.constant dense<0.000000e+00> : vector<8x32xf32>
    %440 = tpu.matmul %248, %439, %cst_200 {dimension_numbers = #tpu.dot_dimension_numbers<[1], [0], [0], [1], [0, 0, 1, 1], [], []>} : vector<8x8xf32>, vector<8x32xf32>, vector<8x32xf32> -> vector<8x32xf32>
    %441 = arith.addf %438, %440 : vector<8x32xf32>
    %cst_201 = arith.constant 1.000000e+00 : f32
    %442 = vector.broadcast %cst_201 : f32 to vector<8x32xf32>
    %443 = arith.mulf %441, %442 : vector<8x32xf32>
    %c3_202 = arith.constant 3 : index
    %c0_203 = arith.constant 0 : index
    %c0_204 = arith.constant 0 : index
    %444 = vector.load %arg2[%c3_202, %c0_203, %c0_204] : memref<24x1x32xf32, #tpu.memory_space<vmem>>, vector<1x1x32xf32>
    %445 = vector.shape_cast %444 : vector<1x1x32xf32> to vector<1x32xf32>
    %446 = vector.broadcast %445 : vector<1x32xf32> to vector<8x32xf32>
    %447 = arith.addf %443, %446 : vector<8x32xf32>
    %c0_205 = arith.constant 0 : index
    %c0_206 = arith.constant 0 : index
    %c0_207 = arith.constant 0 : index
    %448 = vector.load %arg5[%c0_205, %c0_206, %c0_207] : memref<6x1x1xf32, #tpu.memory_space<vmem>>, vector<1x1x1xf32>
    %449 = vector.shape_cast %448 : vector<1x1x1xf32> to vector<1x1xf32>
    %450 = vector.broadcast %449 : vector<1x1xf32> to vector<8x32xf32>
    %451 = arith.mulf %447, %450 : vector<8x32xf32>
    %cst_208 = arith.constant 1.000000e+00 : f32
    %452 = vector.broadcast %cst_208 : f32 to vector<1x1xf32>
    %453 = arith.subf %452, %449 : vector<1x1xf32>
    %454 = vector.broadcast %453 : vector<1x1xf32> to vector<8x32xf32>
    %455 = arith.mulf %3, %454 : vector<8x32xf32>
    %456 = arith.addf %451, %455 : vector<8x32xf32>
    %cst_209 = arith.constant dense<0.000000e+00> : vector<8xf32>
    %457 = vector.multi_reduction <add>, %456, %cst_209 [1] : vector<8x32xf32> to vector<8xf32>
    %458 = vector.shape_cast %457 : vector<8xf32> to vector<8x1xf32>
    %cst_210 = arith.constant 3.200000e+01 : f32
    %459 = vector.broadcast %cst_210 : f32 to vector<8x1xf32>
    %460 = arith.divf %458, %459 : vector<8x1xf32>
    %461 = vector.broadcast %460 : vector<8x1xf32> to vector<8x32xf32>
    %462 = arith.subf %456, %461 : vector<8x32xf32>
    %463 = arith.mulf %462, %462 : vector<8x32xf32>
    %cst_211 = arith.constant dense<0.000000e+00> : vector<8xf32>
    %464 = vector.multi_reduction <add>, %463, %cst_211 [1] : vector<8x32xf32> to vector<8xf32>
    %465 = vector.shape_cast %464 : vector<8xf32> to vector<8x1xf32>
    %cst_212 = arith.constant 3.200000e+01 : f32
    %466 = vector.broadcast %cst_212 : f32 to vector<8x1xf32>
    %467 = arith.divf %465, %466 : vector<8x1xf32>
    %468 = vector.broadcast %460 : vector<8x1xf32> to vector<8x32xf32>
    %469 = arith.subf %456, %468 : vector<8x32xf32>
    %cst_213 = arith.constant 9.99999974E-6 : f32
    %470 = vector.broadcast %cst_213 : f32 to vector<8x1xf32>
    %471 = arith.addf %467, %470 : vector<8x1xf32>
    %472 = math.rsqrt %471 : vector<8x1xf32>
    %473 = vector.broadcast %472 : vector<8x1xf32> to vector<8x32xf32>
    %474 = arith.mulf %469, %473 : vector<8x32xf32>
    %c0_214 = arith.constant 0 : index
    %c0_215 = arith.constant 0 : index
    %c0_216 = arith.constant 0 : index
    %475 = vector.load %arg3[%c0_214, %c0_215, %c0_216] : memref<6x1x32xf32, #tpu.memory_space<vmem>>, vector<1x1x32xf32>
    %476 = vector.shape_cast %475 : vector<1x1x32xf32> to vector<1x32xf32>
    %477 = vector.broadcast %476 : vector<1x32xf32> to vector<8x32xf32>
    %478 = arith.mulf %474, %477 : vector<8x32xf32>
    %c0_217 = arith.constant 0 : index
    %c0_218 = arith.constant 0 : index
    %c0_219 = arith.constant 0 : index
    %479 = vector.load %arg4[%c0_217, %c0_218, %c0_219] : memref<6x1x32xf32, #tpu.memory_space<vmem>>, vector<1x1x32xf32>
    %480 = vector.shape_cast %479 : vector<1x1x32xf32> to vector<1x32xf32>
    %481 = vector.broadcast %480 : vector<1x32xf32> to vector<8x32xf32>
    %482 = arith.addf %478, %481 : vector<8x32xf32>
    %c7 = arith.constant 7 : index
    %c0_220 = arith.constant 0 : index
    %c0_221 = arith.constant 0 : index
    %483 = vector.load %arg1[%c7, %c0_220, %c0_221] : memref<24x32x32xf32, #tpu.memory_space<vmem>>, vector<1x32x32xf32>
    %484 = vector.shape_cast %483 : vector<1x32x32xf32> to vector<32x32xf32>
    %485 = vector.extract_strided_slice %484 {offsets = [0, 0], sizes = [8, 32], strides = [1, 1]} : vector<32x32xf32> to vector<8x32xf32>
    %cst_222 = arith.constant dense<0.000000e+00> : vector<16x32xf32>
    %486 = tpu.matmul %371, %485, %cst_222 {dimension_numbers = #tpu.dot_dimension_numbers<[1], [0], [0], [1], [0, 0, 1, 1], [], []>} : vector<16x8xf32>, vector<8x32xf32>, vector<16x32xf32> -> vector<16x32xf32>
    %487 = vector.extract_strided_slice %484 {offsets = [8, 0], sizes = [8, 32], strides = [1, 1]} : vector<32x32xf32> to vector<8x32xf32>
    %cst_223 = arith.constant dense<0.000000e+00> : vector<16x32xf32>
    %488 = tpu.matmul %390, %487, %cst_223 {dimension_numbers = #tpu.dot_dimension_numbers<[1], [0], [0], [1], [0, 0, 1, 1], [], []>} : vector<16x8xf32>, vector<8x32xf32>, vector<16x32xf32> -> vector<16x32xf32>
    %489 = arith.addf %486, %488 : vector<16x32xf32>
    %490 = vector.extract_strided_slice %484 {offsets = [16, 0], sizes = [8, 32], strides = [1, 1]} : vector<32x32xf32> to vector<8x32xf32>
    %cst_224 = arith.constant dense<0.000000e+00> : vector<16x32xf32>
    %491 = tpu.matmul %409, %490, %cst_224 {dimension_numbers = #tpu.dot_dimension_numbers<[1], [0], [0], [1], [0, 0, 1, 1], [], []>} : vector<16x8xf32>, vector<8x32xf32>, vector<16x32xf32> -> vector<16x32xf32>
    %492 = arith.addf %489, %491 : vector<16x32xf32>
    %493 = vector.extract_strided_slice %484 {offsets = [24, 0], sizes = [8, 32], strides = [1, 1]} : vector<32x32xf32> to vector<8x32xf32>
    %cst_225 = arith.constant dense<0.000000e+00> : vector<16x32xf32>
    %494 = tpu.matmul %428, %493, %cst_225 {dimension_numbers = #tpu.dot_dimension_numbers<[1], [0], [0], [1], [0, 0, 1, 1], [], []>} : vector<16x8xf32>, vector<8x32xf32>, vector<16x32xf32> -> vector<16x32xf32>
    %495 = arith.addf %492, %494 : vector<16x32xf32>
    %cst_226 = arith.constant 5.000000e-01 : f32
    %496 = vector.broadcast %cst_226 : f32 to vector<16x32xf32>
    %497 = arith.mulf %495, %496 : vector<16x32xf32>
    %c7_227 = arith.constant 7 : index
    %c0_228 = arith.constant 0 : index
    %c0_229 = arith.constant 0 : index
    %498 = vector.load %arg2[%c7_227, %c0_228, %c0_229] : memref<24x1x32xf32, #tpu.memory_space<vmem>>, vector<1x1x32xf32>
    %499 = vector.shape_cast %498 : vector<1x1x32xf32> to vector<1x32xf32>
    %500 = vector.broadcast %499 : vector<1x32xf32> to vector<16x32xf32>
    %501 = arith.addf %497, %500 : vector<16x32xf32>
    %c1_230 = arith.constant 1 : index
    %c0_231 = arith.constant 0 : index
    %c0_232 = arith.constant 0 : index
    %502 = vector.load %arg5[%c1_230, %c0_231, %c0_232] : memref<6x1x1xf32, #tpu.memory_space<vmem>>, vector<1x1x1xf32>
    %503 = vector.shape_cast %502 : vector<1x1x1xf32> to vector<1x1xf32>
    %504 = vector.broadcast %503 : vector<1x1xf32> to vector<16x32xf32>
    %505 = arith.mulf %501, %504 : vector<16x32xf32>
    %cst_233 = arith.constant 1.000000e+00 : f32
    %506 = vector.broadcast %cst_233 : f32 to vector<1x1xf32>
    %507 = arith.subf %506, %503 : vector<1x1xf32>
    %508 = vector.broadcast %507 : vector<1x1xf32> to vector<16x32xf32>
    %509 = arith.mulf %6, %508 : vector<16x32xf32>
    %510 = arith.addf %505, %509 : vector<16x32xf32>
    %cst_234 = arith.constant dense<0.000000e+00> : vector<16xf32>
    %511 = vector.multi_reduction <add>, %510, %cst_234 [1] : vector<16x32xf32> to vector<16xf32>
    %512 = vector.shape_cast %511 : vector<16xf32> to vector<16x1xf32>
    %cst_235 = arith.constant 3.200000e+01 : f32
    %513 = vector.broadcast %cst_235 : f32 to vector<16x1xf32>
    %514 = arith.divf %512, %513 : vector<16x1xf32>
    %515 = vector.broadcast %514 : vector<16x1xf32> to vector<16x32xf32>
    %516 = arith.subf %510, %515 : vector<16x32xf32>
    %517 = arith.mulf %516, %516 : vector<16x32xf32>
    %cst_236 = arith.constant dense<0.000000e+00> : vector<16xf32>
    %518 = vector.multi_reduction <add>, %517, %cst_236 [1] : vector<16x32xf32> to vector<16xf32>
    %519 = vector.shape_cast %518 : vector<16xf32> to vector<16x1xf32>
    %cst_237 = arith.constant 3.200000e+01 : f32
    %520 = vector.broadcast %cst_237 : f32 to vector<16x1xf32>
    %521 = arith.divf %519, %520 : vector<16x1xf32>
    %522 = vector.broadcast %514 : vector<16x1xf32> to vector<16x32xf32>
    %523 = arith.subf %510, %522 : vector<16x32xf32>
    %cst_238 = arith.constant 9.99999974E-6 : f32
    %524 = vector.broadcast %cst_238 : f32 to vector<16x1xf32>
    %525 = arith.addf %521, %524 : vector<16x1xf32>
    %526 = math.rsqrt %525 : vector<16x1xf32>
    %527 = vector.broadcast %526 : vector<16x1xf32> to vector<16x32xf32>
    %528 = arith.mulf %523, %527 : vector<16x32xf32>
    %c1_239 = arith.constant 1 : index
    %c0_240 = arith.constant 0 : index
    %c0_241 = arith.constant 0 : index
    %529 = vector.load %arg3[%c1_239, %c0_240, %c0_241] : memref<6x1x32xf32, #tpu.memory_space<vmem>>, vector<1x1x32xf32>
    %530 = vector.shape_cast %529 : vector<1x1x32xf32> to vector<1x32xf32>
    %531 = vector.broadcast %530 : vector<1x32xf32> to vector<16x32xf32>
    %532 = arith.mulf %528, %531 : vector<16x32xf32>
    %c1_242 = arith.constant 1 : index
    %c0_243 = arith.constant 0 : index
    %c0_244 = arith.constant 0 : index
    %533 = vector.load %arg4[%c1_242, %c0_243, %c0_244] : memref<6x1x32xf32, #tpu.memory_space<vmem>>, vector<1x1x32xf32>
    %534 = vector.shape_cast %533 : vector<1x1x32xf32> to vector<1x32xf32>
    %535 = vector.broadcast %534 : vector<1x32xf32> to vector<16x32xf32>
    %536 = arith.addf %532, %535 : vector<16x32xf32>
    %c11 = arith.constant 11 : index
    %c0_245 = arith.constant 0 : index
    %c0_246 = arith.constant 0 : index
    %537 = vector.load %arg1[%c11, %c0_245, %c0_246] : memref<24x32x32xf32, #tpu.memory_space<vmem>>, vector<1x32x32xf32>
    %538 = vector.shape_cast %537 : vector<1x32x32xf32> to vector<32x32xf32>
    %539 = vector.extract_strided_slice %538 {offsets = [0, 0], sizes = [8, 32], strides = [1, 1]} : vector<32x32xf32> to vector<8x32xf32>
    %cst_247 = arith.constant dense<0.000000e+00> : vector<8x32xf32>
    %540 = tpu.matmul %282, %539, %cst_247 {dimension_numbers = #tpu.dot_dimension_numbers<[1], [0], [0], [1], [0, 0, 1, 1], [], []>} : vector<8x8xf32>, vector<8x32xf32>, vector<8x32xf32> -> vector<8x32xf32>
    %541 = vector.extract_strided_slice %538 {offsets = [8, 0], sizes = [8, 32], strides = [1, 1]} : vector<32x32xf32> to vector<8x32xf32>
    %cst_248 = arith.constant dense<0.000000e+00> : vector<8x32xf32>
    %542 = tpu.matmul %300, %541, %cst_248 {dimension_numbers = #tpu.dot_dimension_numbers<[1], [0], [0], [1], [0, 0, 1, 1], [], []>} : vector<8x8xf32>, vector<8x32xf32>, vector<8x32xf32> -> vector<8x32xf32>
    %543 = arith.addf %540, %542 : vector<8x32xf32>
    %544 = vector.extract_strided_slice %538 {offsets = [16, 0], sizes = [8, 32], strides = [1, 1]} : vector<32x32xf32> to vector<8x32xf32>
    %cst_249 = arith.constant dense<0.000000e+00> : vector<8x32xf32>
    %545 = tpu.matmul %318, %544, %cst_249 {dimension_numbers = #tpu.dot_dimension_numbers<[1], [0], [0], [1], [0, 0, 1, 1], [], []>} : vector<8x8xf32>, vector<8x32xf32>, vector<8x32xf32> -> vector<8x32xf32>
    %546 = arith.addf %543, %545 : vector<8x32xf32>
    %547 = vector.extract_strided_slice %538 {offsets = [24, 0], sizes = [8, 32], strides = [1, 1]} : vector<32x32xf32> to vector<8x32xf32>
    %cst_250 = arith.constant dense<0.000000e+00> : vector<8x32xf32>
    %548 = tpu.matmul %336, %547, %cst_250 {dimension_numbers = #tpu.dot_dimension_numbers<[1], [0], [0], [1], [0, 0, 1, 1], [], []>} : vector<8x8xf32>, vector<8x32xf32>, vector<8x32xf32> -> vector<8x32xf32>
    %549 = arith.addf %546, %548 : vector<8x32xf32>
    %cst_251 = arith.constant 1.000000e+00 : f32
    %550 = vector.broadcast %cst_251 : f32 to vector<8x32xf32>
    %551 = arith.mulf %549, %550 : vector<8x32xf32>
    %c11_252 = arith.constant 11 : index
    %c0_253 = arith.constant 0 : index
    %c0_254 = arith.constant 0 : index
    %552 = vector.load %arg2[%c11_252, %c0_253, %c0_254] : memref<24x1x32xf32, #tpu.memory_space<vmem>>, vector<1x1x32xf32>
    %553 = vector.shape_cast %552 : vector<1x1x32xf32> to vector<1x32xf32>
    %554 = vector.broadcast %553 : vector<1x32xf32> to vector<8x32xf32>
    %555 = arith.addf %551, %554 : vector<8x32xf32>
    %c2_255 = arith.constant 2 : index
    %c0_256 = arith.constant 0 : index
    %c0_257 = arith.constant 0 : index
    %556 = vector.load %arg5[%c2_255, %c0_256, %c0_257] : memref<6x1x1xf32, #tpu.memory_space<vmem>>, vector<1x1x1xf32>
    %557 = vector.shape_cast %556 : vector<1x1x1xf32> to vector<1x1xf32>
    %558 = vector.broadcast %557 : vector<1x1xf32> to vector<8x32xf32>
    %559 = arith.mulf %555, %558 : vector<8x32xf32>
    %cst_258 = arith.constant 1.000000e+00 : f32
    %560 = vector.broadcast %cst_258 : f32 to vector<1x1xf32>
    %561 = arith.subf %560, %557 : vector<1x1xf32>
    %562 = vector.broadcast %561 : vector<1x1xf32> to vector<8x32xf32>
    %563 = arith.mulf %9, %562 : vector<8x32xf32>
    %564 = arith.addf %559, %563 : vector<8x32xf32>
    %cst_259 = arith.constant dense<0.000000e+00> : vector<8xf32>
    %565 = vector.multi_reduction <add>, %564, %cst_259 [1] : vector<8x32xf32> to vector<8xf32>
    %566 = vector.shape_cast %565 : vector<8xf32> to vector<8x1xf32>
    %cst_260 = arith.constant 3.200000e+01 : f32
    %567 = vector.broadcast %cst_260 : f32 to vector<8x1xf32>
    %568 = arith.divf %566, %567 : vector<8x1xf32>
    %569 = vector.broadcast %568 : vector<8x1xf32> to vector<8x32xf32>
    %570 = arith.subf %564, %569 : vector<8x32xf32>
    %571 = arith.mulf %570, %570 : vector<8x32xf32>
    %cst_261 = arith.constant dense<0.000000e+00> : vector<8xf32>
    %572 = vector.multi_reduction <add>, %571, %cst_261 [1] : vector<8x32xf32> to vector<8xf32>
    %573 = vector.shape_cast %572 : vector<8xf32> to vector<8x1xf32>
    %cst_262 = arith.constant 3.200000e+01 : f32
    %574 = vector.broadcast %cst_262 : f32 to vector<8x1xf32>
    %575 = arith.divf %573, %574 : vector<8x1xf32>
    %576 = vector.broadcast %568 : vector<8x1xf32> to vector<8x32xf32>
    %577 = arith.subf %564, %576 : vector<8x32xf32>
    %cst_263 = arith.constant 9.99999974E-6 : f32
    %578 = vector.broadcast %cst_263 : f32 to vector<8x1xf32>
    %579 = arith.addf %575, %578 : vector<8x1xf32>
    %580 = math.rsqrt %579 : vector<8x1xf32>
    %581 = vector.broadcast %580 : vector<8x1xf32> to vector<8x32xf32>
    %582 = arith.mulf %577, %581 : vector<8x32xf32>
    %c2_264 = arith.constant 2 : index
    %c0_265 = arith.constant 0 : index
    %c0_266 = arith.constant 0 : index
    %583 = vector.load %arg3[%c2_264, %c0_265, %c0_266] : memref<6x1x32xf32, #tpu.memory_space<vmem>>, vector<1x1x32xf32>
    %584 = vector.shape_cast %583 : vector<1x1x32xf32> to vector<1x32xf32>
    %585 = vector.broadcast %584 : vector<1x32xf32> to vector<8x32xf32>
    %586 = arith.mulf %582, %585 : vector<8x32xf32>
    %c2_267 = arith.constant 2 : index
    %c0_268 = arith.constant 0 : index
    %c0_269 = arith.constant 0 : index
    %587 = vector.load %arg4[%c2_267, %c0_268, %c0_269] : memref<6x1x32xf32, #tpu.memory_space<vmem>>, vector<1x1x32xf32>
    %588 = vector.shape_cast %587 : vector<1x1x32xf32> to vector<1x32xf32>
    %589 = vector.broadcast %588 : vector<1x32xf32> to vector<8x32xf32>
    %590 = arith.addf %586, %589 : vector<8x32xf32>
    %c12 = arith.constant 12 : index
    %c0_270 = arith.constant 0 : index
    %c0_271 = arith.constant 0 : index
    %591 = vector.load %arg1[%c12, %c0_270, %c0_271] : memref<24x32x32xf32, #tpu.memory_space<vmem>>, vector<1x32x32xf32>
    %592 = vector.shape_cast %591 : vector<1x32x32xf32> to vector<32x32xf32>
    %cst_272 = arith.constant dense<0.000000e+00> : vector<8x32xf32>
    %593 = tpu.matmul %482, %592, %cst_272 {dimension_numbers = #tpu.dot_dimension_numbers<[1], [0], [0], [1], [0, 0, 1, 1], [], []>} : vector<8x32xf32>, vector<32x32xf32>, vector<8x32xf32> -> vector<8x32xf32>
    %c12_273 = arith.constant 12 : index
    %c0_274 = arith.constant 0 : index
    %c0_275 = arith.constant 0 : index
    %594 = vector.load %arg2[%c12_273, %c0_274, %c0_275] : memref<24x1x32xf32, #tpu.memory_space<vmem>>, vector<1x1x32xf32>
    %595 = vector.shape_cast %594 : vector<1x1x32xf32> to vector<1x32xf32>
    %596 = vector.broadcast %595 : vector<1x32xf32> to vector<8x32xf32>
    %597 = arith.addf %593, %596 : vector<8x32xf32>
    %c13 = arith.constant 13 : index
    %c0_276 = arith.constant 0 : index
    %c0_277 = arith.constant 0 : index
    %598 = vector.load %arg1[%c13, %c0_276, %c0_277] : memref<24x32x32xf32, #tpu.memory_space<vmem>>, vector<1x32x32xf32>
    %599 = vector.shape_cast %598 : vector<1x32x32xf32> to vector<32x32xf32>
    %cst_278 = arith.constant dense<0.000000e+00> : vector<8x32xf32>
    %600 = tpu.matmul %482, %599, %cst_278 {dimension_numbers = #tpu.dot_dimension_numbers<[1], [0], [0], [1], [0, 0, 1, 1], [], []>} : vector<8x32xf32>, vector<32x32xf32>, vector<8x32xf32> -> vector<8x32xf32>
    %c13_279 = arith.constant 13 : index
    %c0_280 = arith.constant 0 : index
    %c0_281 = arith.constant 0 : index
    %601 = vector.load %arg2[%c13_279, %c0_280, %c0_281] : memref<24x1x32xf32, #tpu.memory_space<vmem>>, vector<1x1x32xf32>
    %602 = vector.shape_cast %601 : vector<1x1x32xf32> to vector<1x32xf32>
    %603 = vector.broadcast %602 : vector<1x32xf32> to vector<8x32xf32>
    %604 = arith.addf %600, %603 : vector<8x32xf32>
    %c14 = arith.constant 14 : index
    %c0_282 = arith.constant 0 : index
    %c0_283 = arith.constant 0 : index
    %605 = vector.load %arg1[%c14, %c0_282, %c0_283] : memref<24x32x32xf32, #tpu.memory_space<vmem>>, vector<1x32x32xf32>
    %606 = vector.shape_cast %605 : vector<1x32x32xf32> to vector<32x32xf32>
    %cst_284 = arith.constant dense<0.000000e+00> : vector<8x32xf32>
    %607 = tpu.matmul %482, %606, %cst_284 {dimension_numbers = #tpu.dot_dimension_numbers<[1], [0], [0], [1], [0, 0, 1, 1], [], []>} : vector<8x32xf32>, vector<32x32xf32>, vector<8x32xf32> -> vector<8x32xf32>
    %c14_285 = arith.constant 14 : index
    %c0_286 = arith.constant 0 : index
    %c0_287 = arith.constant 0 : index
    %608 = vector.load %arg2[%c14_285, %c0_286, %c0_287] : memref<24x1x32xf32, #tpu.memory_space<vmem>>, vector<1x1x32xf32>
    %609 = vector.shape_cast %608 : vector<1x1x32xf32> to vector<1x32xf32>
    %610 = vector.broadcast %609 : vector<1x32xf32> to vector<8x32xf32>
    %611 = arith.addf %607, %610 : vector<8x32xf32>
    %c16 = arith.constant 16 : index
    %c0_288 = arith.constant 0 : index
    %c0_289 = arith.constant 0 : index
    %612 = vector.load %arg1[%c16, %c0_288, %c0_289] : memref<24x32x32xf32, #tpu.memory_space<vmem>>, vector<1x32x32xf32>
    %613 = vector.shape_cast %612 : vector<1x32x32xf32> to vector<32x32xf32>
    %cst_290 = arith.constant dense<0.000000e+00> : vector<16x32xf32>
    %614 = tpu.matmul %536, %613, %cst_290 {dimension_numbers = #tpu.dot_dimension_numbers<[1], [0], [0], [1], [0, 0, 1, 1], [], []>} : vector<16x32xf32>, vector<32x32xf32>, vector<16x32xf32> -> vector<16x32xf32>
    %c16_291 = arith.constant 16 : index
    %c0_292 = arith.constant 0 : index
    %c0_293 = arith.constant 0 : index
    %615 = vector.load %arg2[%c16_291, %c0_292, %c0_293] : memref<24x1x32xf32, #tpu.memory_space<vmem>>, vector<1x1x32xf32>
    %616 = vector.shape_cast %615 : vector<1x1x32xf32> to vector<1x32xf32>
    %617 = vector.broadcast %616 : vector<1x32xf32> to vector<16x32xf32>
    %618 = arith.addf %614, %617 : vector<16x32xf32>
    %c17 = arith.constant 17 : index
    %c0_294 = arith.constant 0 : index
    %c0_295 = arith.constant 0 : index
    %619 = vector.load %arg1[%c17, %c0_294, %c0_295] : memref<24x32x32xf32, #tpu.memory_space<vmem>>, vector<1x32x32xf32>
    %620 = vector.shape_cast %619 : vector<1x32x32xf32> to vector<32x32xf32>
    %cst_296 = arith.constant dense<0.000000e+00> : vector<16x32xf32>
    %621 = tpu.matmul %536, %620, %cst_296 {dimension_numbers = #tpu.dot_dimension_numbers<[1], [0], [0], [1], [0, 0, 1, 1], [], []>} : vector<16x32xf32>, vector<32x32xf32>, vector<16x32xf32> -> vector<16x32xf32>
    %c17_297 = arith.constant 17 : index
    %c0_298 = arith.constant 0 : index
    %c0_299 = arith.constant 0 : index
    %622 = vector.load %arg2[%c17_297, %c0_298, %c0_299] : memref<24x1x32xf32, #tpu.memory_space<vmem>>, vector<1x1x32xf32>
    %623 = vector.shape_cast %622 : vector<1x1x32xf32> to vector<1x32xf32>
    %624 = vector.broadcast %623 : vector<1x32xf32> to vector<16x32xf32>
    %625 = arith.addf %621, %624 : vector<16x32xf32>
    %c18 = arith.constant 18 : index
    %c0_300 = arith.constant 0 : index
    %c0_301 = arith.constant 0 : index
    %626 = vector.load %arg1[%c18, %c0_300, %c0_301] : memref<24x32x32xf32, #tpu.memory_space<vmem>>, vector<1x32x32xf32>
    %627 = vector.shape_cast %626 : vector<1x32x32xf32> to vector<32x32xf32>
    %cst_302 = arith.constant dense<0.000000e+00> : vector<16x32xf32>
    %628 = tpu.matmul %536, %627, %cst_302 {dimension_numbers = #tpu.dot_dimension_numbers<[1], [0], [0], [1], [0, 0, 1, 1], [], []>} : vector<16x32xf32>, vector<32x32xf32>, vector<16x32xf32> -> vector<16x32xf32>
    %c18_303 = arith.constant 18 : index
    %c0_304 = arith.constant 0 : index
    %c0_305 = arith.constant 0 : index
    %629 = vector.load %arg2[%c18_303, %c0_304, %c0_305] : memref<24x1x32xf32, #tpu.memory_space<vmem>>, vector<1x1x32xf32>
    %630 = vector.shape_cast %629 : vector<1x1x32xf32> to vector<1x32xf32>
    %631 = vector.broadcast %630 : vector<1x32xf32> to vector<16x32xf32>
    %632 = arith.addf %628, %631 : vector<16x32xf32>
    %c20 = arith.constant 20 : index
    %c0_306 = arith.constant 0 : index
    %c0_307 = arith.constant 0 : index
    %633 = vector.load %arg1[%c20, %c0_306, %c0_307] : memref<24x32x32xf32, #tpu.memory_space<vmem>>, vector<1x32x32xf32>
    %634 = vector.shape_cast %633 : vector<1x32x32xf32> to vector<32x32xf32>
    %cst_308 = arith.constant dense<0.000000e+00> : vector<8x32xf32>
    %635 = tpu.matmul %590, %634, %cst_308 {dimension_numbers = #tpu.dot_dimension_numbers<[1], [0], [0], [1], [0, 0, 1, 1], [], []>} : vector<8x32xf32>, vector<32x32xf32>, vector<8x32xf32> -> vector<8x32xf32>
    %c20_309 = arith.constant 20 : index
    %c0_310 = arith.constant 0 : index
    %c0_311 = arith.constant 0 : index
    %636 = vector.load %arg2[%c20_309, %c0_310, %c0_311] : memref<24x1x32xf32, #tpu.memory_space<vmem>>, vector<1x1x32xf32>
    %637 = vector.shape_cast %636 : vector<1x1x32xf32> to vector<1x32xf32>
    %638 = vector.broadcast %637 : vector<1x32xf32> to vector<8x32xf32>
    %639 = arith.addf %635, %638 : vector<8x32xf32>
    %c21 = arith.constant 21 : index
    %c0_312 = arith.constant 0 : index
    %c0_313 = arith.constant 0 : index
    %640 = vector.load %arg1[%c21, %c0_312, %c0_313] : memref<24x32x32xf32, #tpu.memory_space<vmem>>, vector<1x32x32xf32>
    %641 = vector.shape_cast %640 : vector<1x32x32xf32> to vector<32x32xf32>
    %cst_314 = arith.constant dense<0.000000e+00> : vector<8x32xf32>
    %642 = tpu.matmul %590, %641, %cst_314 {dimension_numbers = #tpu.dot_dimension_numbers<[1], [0], [0], [1], [0, 0, 1, 1], [], []>} : vector<8x32xf32>, vector<32x32xf32>, vector<8x32xf32> -> vector<8x32xf32>
    %c21_315 = arith.constant 21 : index
    %c0_316 = arith.constant 0 : index
    %c0_317 = arith.constant 0 : index
    %643 = vector.load %arg2[%c21_315, %c0_316, %c0_317] : memref<24x1x32xf32, #tpu.memory_space<vmem>>, vector<1x1x32xf32>
    %644 = vector.shape_cast %643 : vector<1x1x32xf32> to vector<1x32xf32>
    %645 = vector.broadcast %644 : vector<1x32xf32> to vector<8x32xf32>
    %646 = arith.addf %642, %645 : vector<8x32xf32>
    %c22 = arith.constant 22 : index
    %c0_318 = arith.constant 0 : index
    %c0_319 = arith.constant 0 : index
    %647 = vector.load %arg1[%c22, %c0_318, %c0_319] : memref<24x32x32xf32, #tpu.memory_space<vmem>>, vector<1x32x32xf32>
    %648 = vector.shape_cast %647 : vector<1x32x32xf32> to vector<32x32xf32>
    %cst_320 = arith.constant dense<0.000000e+00> : vector<8x32xf32>
    %649 = tpu.matmul %590, %648, %cst_320 {dimension_numbers = #tpu.dot_dimension_numbers<[1], [0], [0], [1], [0, 0, 1, 1], [], []>} : vector<8x32xf32>, vector<32x32xf32>, vector<8x32xf32> -> vector<8x32xf32>
    %c22_321 = arith.constant 22 : index
    %c0_322 = arith.constant 0 : index
    %c0_323 = arith.constant 0 : index
    %650 = vector.load %arg2[%c22_321, %c0_322, %c0_323] : memref<24x1x32xf32, #tpu.memory_space<vmem>>, vector<1x1x32xf32>
    %651 = vector.shape_cast %650 : vector<1x1x32xf32> to vector<1x32xf32>
    %652 = vector.broadcast %651 : vector<1x32xf32> to vector<8x32xf32>
    %653 = arith.addf %649, %652 : vector<8x32xf32>
    %c4_324 = arith.constant 4 : index
    %c0_325 = arith.constant 0 : index
    %c0_326 = arith.constant 0 : index
    %654 = vector.load %arg6[%c4_324, %c0_325, %c0_326] : memref<8x32x32xf32, #tpu.memory_space<vmem>>, vector<1x32x32xf32>
    %655 = vector.shape_cast %654 : vector<1x32x32xf32> to vector<32x32xf32>
    %cst_327 = arith.constant dense<0.000000e+00> : vector<8x32xf32>
    %656 = tpu.matmul %597, %655, %cst_327 {dimension_numbers = #tpu.dot_dimension_numbers<[1], [0], [0], [1], [0, 0, 1, 1], [], []>} : vector<8x32xf32>, vector<32x32xf32>, vector<8x32xf32> -> vector<8x32xf32>
    %c4_328 = arith.constant 4 : index
    %c0_329 = arith.constant 0 : index
    %c0_330 = arith.constant 0 : index
    %657 = vector.load %arg7[%c4_328, %c0_329, %c0_330] : memref<8x32x32xf32, #tpu.memory_space<vmem>>, vector<1x32x32xf32>
    %658 = vector.shape_cast %657 : vector<1x32x32xf32> to vector<32x32xf32>
    %cst_331 = arith.constant dense<0.000000e+00> : vector<8x32xf32>
    %659 = tpu.matmul %611, %658, %cst_331 {dimension_numbers = #tpu.dot_dimension_numbers<[1], [0], [0], [1], [0, 0, 1, 1], [], []>} : vector<8x32xf32>, vector<32x32xf32>, vector<8x32xf32> -> vector<8x32xf32>
    %c0_332 = arith.constant 0 : index
    %c0_333 = arith.constant 0 : index
    %c0_334 = arith.constant 0 : index
    %660 = vector.load %arg8[%c0_332, %c0_333, %c0_334] : memref<4x16x16xf32, #tpu.memory_space<vmem>>, vector<1x16x16xf32>
    %661 = vector.shape_cast %660 : vector<1x16x16xf32> to vector<16x16xf32>
    %662 = vector.extract_strided_slice %661 {offsets = [0, 0], sizes = [16, 8], strides = [1, 1]} : vector<16x16xf32> to vector<16x8xf32>
    %cst_335 = arith.constant dense<0xFF800000> : vector<16xf32>
    %663 = vector.multi_reduction <maximumf>, %662, %cst_335 [1] : vector<16x8xf32> to vector<16xf32>
    %664 = vector.shape_cast %663 : vector<16xf32> to vector<16x1xf32>
    %cst_336 = arith.constant -1.000000e+29 : f32
    %665 = vector.broadcast %cst_336 : f32 to vector<16x1xf32>
    %666 = arith.cmpf ogt, %664, %665 : vector<16x1xf32>
    %cst_337 = arith.constant 1.000000e+00 : f32
    %cst_338 = arith.constant 0.000000e+00 : f32
    %667 = vector.broadcast %cst_337 : f32 to vector<16x1xf32>
    %668 = vector.broadcast %cst_338 : f32 to vector<16x1xf32>
    %669 = arith.select %666, %667, %668 : vector<16x1xi1>, vector<16x1xf32>
    %670 = vector.extract_strided_slice %625 {offsets = [0, 0], sizes = [16, 8], strides = [1, 1]} : vector<16x32xf32> to vector<16x8xf32>
    %671 = vector.extract_strided_slice %656 {offsets = [0, 0], sizes = [8, 8], strides = [1, 1]} : vector<8x32xf32> to vector<8x8xf32>
    %cst_339 = arith.constant dense<0.000000e+00> : vector<16x8xf32>
    %672 = tpu.matmul %670, %671, %cst_339 {dimension_numbers = #tpu.dot_dimension_numbers<[1], [1], [0], [0], [0, 0, 1, 0], [], []>} : vector<16x8xf32>, vector<8x8xf32>, vector<16x8xf32> -> vector<16x8xf32>
    %673 = arith.addf %672, %662 : vector<16x8xf32>
    %cst_340 = arith.constant dense<0xFF800000> : vector<16xf32>
    %674 = vector.multi_reduction <maximumf>, %673, %cst_340 [1] : vector<16x8xf32> to vector<16xf32>
    %675 = vector.shape_cast %674 : vector<16xf32> to vector<16x1xf32>
    %676 = vector.broadcast %675 : vector<16x1xf32> to vector<16x8xf32>
    %677 = arith.subf %673, %676 : vector<16x8xf32>
    %678 = math.exp %677 : vector<16x8xf32>
    %cst_341 = arith.constant dense<0.000000e+00> : vector<16xf32>
    %679 = vector.multi_reduction <add>, %678, %cst_341 [1] : vector<16x8xf32> to vector<16xf32>
    %680 = vector.shape_cast %679 : vector<16xf32> to vector<16x1xf32>
    %cst_342 = arith.constant 1.000000e-30 : f32
    %681 = vector.broadcast %cst_342 : f32 to vector<16x1xf32>
    %682 = arith.maximumf %680, %681 : vector<16x1xf32>
    %683 = arith.divf %669, %682 : vector<16x1xf32>
    %684 = vector.broadcast %683 : vector<16x1xf32> to vector<16x8xf32>
    %685 = arith.mulf %678, %684 : vector<16x8xf32>
    %686 = vector.extract_strided_slice %659 {offsets = [0, 0], sizes = [8, 8], strides = [1, 1]} : vector<8x32xf32> to vector<8x8xf32>
    %cst_343 = arith.constant dense<0.000000e+00> : vector<16x8xf32>
    %687 = tpu.matmul %685, %686, %cst_343 {dimension_numbers = #tpu.dot_dimension_numbers<[1], [0], [0], [1], [0, 0, 1, 1], [], []>} : vector<16x8xf32>, vector<8x8xf32>, vector<16x8xf32> -> vector<16x8xf32>
    %688 = vector.extract_strided_slice %625 {offsets = [0, 8], sizes = [16, 8], strides = [1, 1]} : vector<16x32xf32> to vector<16x8xf32>
    %689 = vector.extract_strided_slice %656 {offsets = [0, 8], sizes = [8, 8], strides = [1, 1]} : vector<8x32xf32> to vector<8x8xf32>
    %cst_344 = arith.constant dense<0.000000e+00> : vector<16x8xf32>
    %690 = tpu.matmul %688, %689, %cst_344 {dimension_numbers = #tpu.dot_dimension_numbers<[1], [1], [0], [0], [0, 0, 1, 0], [], []>} : vector<16x8xf32>, vector<8x8xf32>, vector<16x8xf32> -> vector<16x8xf32>
    %691 = arith.addf %690, %662 : vector<16x8xf32>
    %cst_345 = arith.constant dense<0xFF800000> : vector<16xf32>
    %692 = vector.multi_reduction <maximumf>, %691, %cst_345 [1] : vector<16x8xf32> to vector<16xf32>
    %693 = vector.shape_cast %692 : vector<16xf32> to vector<16x1xf32>
    %694 = vector.broadcast %693 : vector<16x1xf32> to vector<16x8xf32>
    %695 = arith.subf %691, %694 : vector<16x8xf32>
    %696 = math.exp %695 : vector<16x8xf32>
    %cst_346 = arith.constant dense<0.000000e+00> : vector<16xf32>
    %697 = vector.multi_reduction <add>, %696, %cst_346 [1] : vector<16x8xf32> to vector<16xf32>
    %698 = vector.shape_cast %697 : vector<16xf32> to vector<16x1xf32>
    %cst_347 = arith.constant 1.000000e-30 : f32
    %699 = vector.broadcast %cst_347 : f32 to vector<16x1xf32>
    %700 = arith.maximumf %698, %699 : vector<16x1xf32>
    %701 = arith.divf %669, %700 : vector<16x1xf32>
    %702 = vector.broadcast %701 : vector<16x1xf32> to vector<16x8xf32>
    %703 = arith.mulf %696, %702 : vector<16x8xf32>
    %704 = vector.extract_strided_slice %659 {offsets = [0, 8], sizes = [8, 8], strides = [1, 1]} : vector<8x32xf32> to vector<8x8xf32>
    %cst_348 = arith.constant dense<0.000000e+00> : vector<16x8xf32>
    %705 = tpu.matmul %703, %704, %cst_348 {dimension_numbers = #tpu.dot_dimension_numbers<[1], [0], [0], [1], [0, 0, 1, 1], [], []>} : vector<16x8xf32>, vector<8x8xf32>, vector<16x8xf32> -> vector<16x8xf32>
    %706 = vector.extract_strided_slice %625 {offsets = [0, 16], sizes = [16, 8], strides = [1, 1]} : vector<16x32xf32> to vector<16x8xf32>
    %707 = vector.extract_strided_slice %656 {offsets = [0, 16], sizes = [8, 8], strides = [1, 1]} : vector<8x32xf32> to vector<8x8xf32>
    %cst_349 = arith.constant dense<0.000000e+00> : vector<16x8xf32>
    %708 = tpu.matmul %706, %707, %cst_349 {dimension_numbers = #tpu.dot_dimension_numbers<[1], [1], [0], [0], [0, 0, 1, 0], [], []>} : vector<16x8xf32>, vector<8x8xf32>, vector<16x8xf32> -> vector<16x8xf32>
    %709 = arith.addf %708, %662 : vector<16x8xf32>
    %cst_350 = arith.constant dense<0xFF800000> : vector<16xf32>
    %710 = vector.multi_reduction <maximumf>, %709, %cst_350 [1] : vector<16x8xf32> to vector<16xf32>
    %711 = vector.shape_cast %710 : vector<16xf32> to vector<16x1xf32>
    %712 = vector.broadcast %711 : vector<16x1xf32> to vector<16x8xf32>
    %713 = arith.subf %709, %712 : vector<16x8xf32>
    %714 = math.exp %713 : vector<16x8xf32>
    %cst_351 = arith.constant dense<0.000000e+00> : vector<16xf32>
    %715 = vector.multi_reduction <add>, %714, %cst_351 [1] : vector<16x8xf32> to vector<16xf32>
    %716 = vector.shape_cast %715 : vector<16xf32> to vector<16x1xf32>
    %cst_352 = arith.constant 1.000000e-30 : f32
    %717 = vector.broadcast %cst_352 : f32 to vector<16x1xf32>
    %718 = arith.maximumf %716, %717 : vector<16x1xf32>
    %719 = arith.divf %669, %718 : vector<16x1xf32>
    %720 = vector.broadcast %719 : vector<16x1xf32> to vector<16x8xf32>
    %721 = arith.mulf %714, %720 : vector<16x8xf32>
    %722 = vector.extract_strided_slice %659 {offsets = [0, 16], sizes = [8, 8], strides = [1, 1]} : vector<8x32xf32> to vector<8x8xf32>
    %cst_353 = arith.constant dense<0.000000e+00> : vector<16x8xf32>
    %723 = tpu.matmul %721, %722, %cst_353 {dimension_numbers = #tpu.dot_dimension_numbers<[1], [0], [0], [1], [0, 0, 1, 1], [], []>} : vector<16x8xf32>, vector<8x8xf32>, vector<16x8xf32> -> vector<16x8xf32>
    %724 = vector.extract_strided_slice %625 {offsets = [0, 24], sizes = [16, 8], strides = [1, 1]} : vector<16x32xf32> to vector<16x8xf32>
    %725 = vector.extract_strided_slice %656 {offsets = [0, 24], sizes = [8, 8], strides = [1, 1]} : vector<8x32xf32> to vector<8x8xf32>
    %cst_354 = arith.constant dense<0.000000e+00> : vector<16x8xf32>
    %726 = tpu.matmul %724, %725, %cst_354 {dimension_numbers = #tpu.dot_dimension_numbers<[1], [1], [0], [0], [0, 0, 1, 0], [], []>} : vector<16x8xf32>, vector<8x8xf32>, vector<16x8xf32> -> vector<16x8xf32>
    %727 = arith.addf %726, %662 : vector<16x8xf32>
    %cst_355 = arith.constant dense<0xFF800000> : vector<16xf32>
    %728 = vector.multi_reduction <maximumf>, %727, %cst_355 [1] : vector<16x8xf32> to vector<16xf32>
    %729 = vector.shape_cast %728 : vector<16xf32> to vector<16x1xf32>
    %730 = vector.broadcast %729 : vector<16x1xf32> to vector<16x8xf32>
    %731 = arith.subf %727, %730 : vector<16x8xf32>
    %732 = math.exp %731 : vector<16x8xf32>
    %cst_356 = arith.constant dense<0.000000e+00> : vector<16xf32>
    %733 = vector.multi_reduction <add>, %732, %cst_356 [1] : vector<16x8xf32> to vector<16xf32>
    %734 = vector.shape_cast %733 : vector<16xf32> to vector<16x1xf32>
    %cst_357 = arith.constant 1.000000e-30 : f32
    %735 = vector.broadcast %cst_357 : f32 to vector<16x1xf32>
    %736 = arith.maximumf %734, %735 : vector<16x1xf32>
    %737 = arith.divf %669, %736 : vector<16x1xf32>
    %738 = vector.broadcast %737 : vector<16x1xf32> to vector<16x8xf32>
    %739 = arith.mulf %732, %738 : vector<16x8xf32>
    %740 = vector.extract_strided_slice %659 {offsets = [0, 24], sizes = [8, 8], strides = [1, 1]} : vector<8x32xf32> to vector<8x8xf32>
    %cst_358 = arith.constant dense<0.000000e+00> : vector<16x8xf32>
    %741 = tpu.matmul %739, %740, %cst_358 {dimension_numbers = #tpu.dot_dimension_numbers<[1], [0], [0], [1], [0, 0, 1, 1], [], []>} : vector<16x8xf32>, vector<8x8xf32>, vector<16x8xf32> -> vector<16x8xf32>
    %c5_359 = arith.constant 5 : index
    %c0_360 = arith.constant 0 : index
    %c0_361 = arith.constant 0 : index
    %742 = vector.load %arg6[%c5_359, %c0_360, %c0_361] : memref<8x32x32xf32, #tpu.memory_space<vmem>>, vector<1x32x32xf32>
    %743 = vector.shape_cast %742 : vector<1x32x32xf32> to vector<32x32xf32>
    %cst_362 = arith.constant dense<0.000000e+00> : vector<16x32xf32>
    %744 = tpu.matmul %618, %743, %cst_362 {dimension_numbers = #tpu.dot_dimension_numbers<[1], [0], [0], [1], [0, 0, 1, 1], [], []>} : vector<16x32xf32>, vector<32x32xf32>, vector<16x32xf32> -> vector<16x32xf32>
    %c5_363 = arith.constant 5 : index
    %c0_364 = arith.constant 0 : index
    %c0_365 = arith.constant 0 : index
    %745 = vector.load %arg7[%c5_363, %c0_364, %c0_365] : memref<8x32x32xf32, #tpu.memory_space<vmem>>, vector<1x32x32xf32>
    %746 = vector.shape_cast %745 : vector<1x32x32xf32> to vector<32x32xf32>
    %cst_366 = arith.constant dense<0.000000e+00> : vector<16x32xf32>
    %747 = tpu.matmul %632, %746, %cst_366 {dimension_numbers = #tpu.dot_dimension_numbers<[1], [0], [0], [1], [0, 0, 1, 1], [], []>} : vector<16x32xf32>, vector<32x32xf32>, vector<16x32xf32> -> vector<16x32xf32>
    %c1_367 = arith.constant 1 : index
    %c0_368 = arith.constant 0 : index
    %c0_369 = arith.constant 0 : index
    %748 = vector.load %arg8[%c1_367, %c0_368, %c0_369] : memref<4x16x16xf32, #tpu.memory_space<vmem>>, vector<1x16x16xf32>
    %749 = vector.shape_cast %748 : vector<1x16x16xf32> to vector<16x16xf32>
    %750 = vector.extract_strided_slice %749 {offsets = [0, 0], sizes = [8, 16], strides = [1, 1]} : vector<16x16xf32> to vector<8x16xf32>
    %cst_370 = arith.constant dense<0xFF800000> : vector<8xf32>
    %751 = vector.multi_reduction <maximumf>, %750, %cst_370 [1] : vector<8x16xf32> to vector<8xf32>
    %752 = vector.shape_cast %751 : vector<8xf32> to vector<8x1xf32>
    %cst_371 = arith.constant -1.000000e+29 : f32
    %753 = vector.broadcast %cst_371 : f32 to vector<8x1xf32>
    %754 = arith.cmpf ogt, %752, %753 : vector<8x1xf32>
    %cst_372 = arith.constant 1.000000e+00 : f32
    %cst_373 = arith.constant 0.000000e+00 : f32
    %755 = vector.broadcast %cst_372 : f32 to vector<8x1xf32>
    %756 = vector.broadcast %cst_373 : f32 to vector<8x1xf32>
    %757 = arith.select %754, %755, %756 : vector<8x1xi1>, vector<8x1xf32>
    %758 = vector.extract_strided_slice %604 {offsets = [0, 0], sizes = [8, 8], strides = [1, 1]} : vector<8x32xf32> to vector<8x8xf32>
    %759 = vector.extract_strided_slice %744 {offsets = [0, 0], sizes = [16, 8], strides = [1, 1]} : vector<16x32xf32> to vector<16x8xf32>
    %cst_374 = arith.constant dense<0.000000e+00> : vector<8x16xf32>
    %760 = tpu.matmul %758, %759, %cst_374 {dimension_numbers = #tpu.dot_dimension_numbers<[1], [1], [0], [0], [0, 0, 1, 0], [], []>} : vector<8x8xf32>, vector<16x8xf32>, vector<8x16xf32> -> vector<8x16xf32>
    %761 = arith.addf %760, %750 : vector<8x16xf32>
    %cst_375 = arith.constant dense<0xFF800000> : vector<8xf32>
    %762 = vector.multi_reduction <maximumf>, %761, %cst_375 [1] : vector<8x16xf32> to vector<8xf32>
    %763 = vector.shape_cast %762 : vector<8xf32> to vector<8x1xf32>
    %764 = vector.broadcast %763 : vector<8x1xf32> to vector<8x16xf32>
    %765 = arith.subf %761, %764 : vector<8x16xf32>
    %766 = math.exp %765 : vector<8x16xf32>
    %cst_376 = arith.constant dense<0.000000e+00> : vector<8xf32>
    %767 = vector.multi_reduction <add>, %766, %cst_376 [1] : vector<8x16xf32> to vector<8xf32>
    %768 = vector.shape_cast %767 : vector<8xf32> to vector<8x1xf32>
    %cst_377 = arith.constant 1.000000e-30 : f32
    %769 = vector.broadcast %cst_377 : f32 to vector<8x1xf32>
    %770 = arith.maximumf %768, %769 : vector<8x1xf32>
    %771 = arith.divf %757, %770 : vector<8x1xf32>
    %772 = vector.broadcast %771 : vector<8x1xf32> to vector<8x16xf32>
    %773 = arith.mulf %766, %772 : vector<8x16xf32>
    %774 = vector.extract_strided_slice %747 {offsets = [0, 0], sizes = [16, 8], strides = [1, 1]} : vector<16x32xf32> to vector<16x8xf32>
    %cst_378 = arith.constant dense<0.000000e+00> : vector<8x8xf32>
    %775 = tpu.matmul %773, %774, %cst_378 {dimension_numbers = #tpu.dot_dimension_numbers<[1], [0], [0], [1], [0, 0, 1, 1], [], []>} : vector<8x16xf32>, vector<16x8xf32>, vector<8x8xf32> -> vector<8x8xf32>
    %776 = vector.extract_strided_slice %604 {offsets = [0, 8], sizes = [8, 8], strides = [1, 1]} : vector<8x32xf32> to vector<8x8xf32>
    %777 = vector.extract_strided_slice %744 {offsets = [0, 8], sizes = [16, 8], strides = [1, 1]} : vector<16x32xf32> to vector<16x8xf32>
    %cst_379 = arith.constant dense<0.000000e+00> : vector<8x16xf32>
    %778 = tpu.matmul %776, %777, %cst_379 {dimension_numbers = #tpu.dot_dimension_numbers<[1], [1], [0], [0], [0, 0, 1, 0], [], []>} : vector<8x8xf32>, vector<16x8xf32>, vector<8x16xf32> -> vector<8x16xf32>
    %779 = arith.addf %778, %750 : vector<8x16xf32>
    %cst_380 = arith.constant dense<0xFF800000> : vector<8xf32>
    %780 = vector.multi_reduction <maximumf>, %779, %cst_380 [1] : vector<8x16xf32> to vector<8xf32>
    %781 = vector.shape_cast %780 : vector<8xf32> to vector<8x1xf32>
    %782 = vector.broadcast %781 : vector<8x1xf32> to vector<8x16xf32>
    %783 = arith.subf %779, %782 : vector<8x16xf32>
    %784 = math.exp %783 : vector<8x16xf32>
    %cst_381 = arith.constant dense<0.000000e+00> : vector<8xf32>
    %785 = vector.multi_reduction <add>, %784, %cst_381 [1] : vector<8x16xf32> to vector<8xf32>
    %786 = vector.shape_cast %785 : vector<8xf32> to vector<8x1xf32>
    %cst_382 = arith.constant 1.000000e-30 : f32
    %787 = vector.broadcast %cst_382 : f32 to vector<8x1xf32>
    %788 = arith.maximumf %786, %787 : vector<8x1xf32>
    %789 = arith.divf %757, %788 : vector<8x1xf32>
    %790 = vector.broadcast %789 : vector<8x1xf32> to vector<8x16xf32>
    %791 = arith.mulf %784, %790 : vector<8x16xf32>
    %792 = vector.extract_strided_slice %747 {offsets = [0, 8], sizes = [16, 8], strides = [1, 1]} : vector<16x32xf32> to vector<16x8xf32>
    %cst_383 = arith.constant dense<0.000000e+00> : vector<8x8xf32>
    %793 = tpu.matmul %791, %792, %cst_383 {dimension_numbers = #tpu.dot_dimension_numbers<[1], [0], [0], [1], [0, 0, 1, 1], [], []>} : vector<8x16xf32>, vector<16x8xf32>, vector<8x8xf32> -> vector<8x8xf32>
    %794 = vector.extract_strided_slice %604 {offsets = [0, 16], sizes = [8, 8], strides = [1, 1]} : vector<8x32xf32> to vector<8x8xf32>
    %795 = vector.extract_strided_slice %744 {offsets = [0, 16], sizes = [16, 8], strides = [1, 1]} : vector<16x32xf32> to vector<16x8xf32>
    %cst_384 = arith.constant dense<0.000000e+00> : vector<8x16xf32>
    %796 = tpu.matmul %794, %795, %cst_384 {dimension_numbers = #tpu.dot_dimension_numbers<[1], [1], [0], [0], [0, 0, 1, 0], [], []>} : vector<8x8xf32>, vector<16x8xf32>, vector<8x16xf32> -> vector<8x16xf32>
    %797 = arith.addf %796, %750 : vector<8x16xf32>
    %cst_385 = arith.constant dense<0xFF800000> : vector<8xf32>
    %798 = vector.multi_reduction <maximumf>, %797, %cst_385 [1] : vector<8x16xf32> to vector<8xf32>
    %799 = vector.shape_cast %798 : vector<8xf32> to vector<8x1xf32>
    %800 = vector.broadcast %799 : vector<8x1xf32> to vector<8x16xf32>
    %801 = arith.subf %797, %800 : vector<8x16xf32>
    %802 = math.exp %801 : vector<8x16xf32>
    %cst_386 = arith.constant dense<0.000000e+00> : vector<8xf32>
    %803 = vector.multi_reduction <add>, %802, %cst_386 [1] : vector<8x16xf32> to vector<8xf32>
    %804 = vector.shape_cast %803 : vector<8xf32> to vector<8x1xf32>
    %cst_387 = arith.constant 1.000000e-30 : f32
    %805 = vector.broadcast %cst_387 : f32 to vector<8x1xf32>
    %806 = arith.maximumf %804, %805 : vector<8x1xf32>
    %807 = arith.divf %757, %806 : vector<8x1xf32>
    %808 = vector.broadcast %807 : vector<8x1xf32> to vector<8x16xf32>
    %809 = arith.mulf %802, %808 : vector<8x16xf32>
    %810 = vector.extract_strided_slice %747 {offsets = [0, 16], sizes = [16, 8], strides = [1, 1]} : vector<16x32xf32> to vector<16x8xf32>
    %cst_388 = arith.constant dense<0.000000e+00> : vector<8x8xf32>
    %811 = tpu.matmul %809, %810, %cst_388 {dimension_numbers = #tpu.dot_dimension_numbers<[1], [0], [0], [1], [0, 0, 1, 1], [], []>} : vector<8x16xf32>, vector<16x8xf32>, vector<8x8xf32> -> vector<8x8xf32>
    %812 = vector.extract_strided_slice %604 {offsets = [0, 24], sizes = [8, 8], strides = [1, 1]} : vector<8x32xf32> to vector<8x8xf32>
    %813 = vector.extract_strided_slice %744 {offsets = [0, 24], sizes = [16, 8], strides = [1, 1]} : vector<16x32xf32> to vector<16x8xf32>
    %cst_389 = arith.constant dense<0.000000e+00> : vector<8x16xf32>
    %814 = tpu.matmul %812, %813, %cst_389 {dimension_numbers = #tpu.dot_dimension_numbers<[1], [1], [0], [0], [0, 0, 1, 0], [], []>} : vector<8x8xf32>, vector<16x8xf32>, vector<8x16xf32> -> vector<8x16xf32>
    %815 = arith.addf %814, %750 : vector<8x16xf32>
    %cst_390 = arith.constant dense<0xFF800000> : vector<8xf32>
    %816 = vector.multi_reduction <maximumf>, %815, %cst_390 [1] : vector<8x16xf32> to vector<8xf32>
    %817 = vector.shape_cast %816 : vector<8xf32> to vector<8x1xf32>
    %818 = vector.broadcast %817 : vector<8x1xf32> to vector<8x16xf32>
    %819 = arith.subf %815, %818 : vector<8x16xf32>
    %820 = math.exp %819 : vector<8x16xf32>
    %cst_391 = arith.constant dense<0.000000e+00> : vector<8xf32>
    %821 = vector.multi_reduction <add>, %820, %cst_391 [1] : vector<8x16xf32> to vector<8xf32>
    %822 = vector.shape_cast %821 : vector<8xf32> to vector<8x1xf32>
    %cst_392 = arith.constant 1.000000e-30 : f32
    %823 = vector.broadcast %cst_392 : f32 to vector<8x1xf32>
    %824 = arith.maximumf %822, %823 : vector<8x1xf32>
    %825 = arith.divf %757, %824 : vector<8x1xf32>
    %826 = vector.broadcast %825 : vector<8x1xf32> to vector<8x16xf32>
    %827 = arith.mulf %820, %826 : vector<8x16xf32>
    %828 = vector.extract_strided_slice %747 {offsets = [0, 24], sizes = [16, 8], strides = [1, 1]} : vector<16x32xf32> to vector<16x8xf32>
    %cst_393 = arith.constant dense<0.000000e+00> : vector<8x8xf32>
    %829 = tpu.matmul %827, %828, %cst_393 {dimension_numbers = #tpu.dot_dimension_numbers<[1], [0], [0], [1], [0, 0, 1, 1], [], []>} : vector<8x16xf32>, vector<16x8xf32>, vector<8x8xf32> -> vector<8x8xf32>
    %c6_394 = arith.constant 6 : index
    %c0_395 = arith.constant 0 : index
    %c0_396 = arith.constant 0 : index
    %830 = vector.load %arg6[%c6_394, %c0_395, %c0_396] : memref<8x32x32xf32, #tpu.memory_space<vmem>>, vector<1x32x32xf32>
    %831 = vector.shape_cast %830 : vector<1x32x32xf32> to vector<32x32xf32>
    %cst_397 = arith.constant dense<0.000000e+00> : vector<16x32xf32>
    %832 = tpu.matmul %618, %831, %cst_397 {dimension_numbers = #tpu.dot_dimension_numbers<[1], [0], [0], [1], [0, 0, 1, 1], [], []>} : vector<16x32xf32>, vector<32x32xf32>, vector<16x32xf32> -> vector<16x32xf32>
    %c6_398 = arith.constant 6 : index
    %c0_399 = arith.constant 0 : index
    %c0_400 = arith.constant 0 : index
    %833 = vector.load %arg7[%c6_398, %c0_399, %c0_400] : memref<8x32x32xf32, #tpu.memory_space<vmem>>, vector<1x32x32xf32>
    %834 = vector.shape_cast %833 : vector<1x32x32xf32> to vector<32x32xf32>
    %cst_401 = arith.constant dense<0.000000e+00> : vector<16x32xf32>
    %835 = tpu.matmul %632, %834, %cst_401 {dimension_numbers = #tpu.dot_dimension_numbers<[1], [0], [0], [1], [0, 0, 1, 1], [], []>} : vector<16x32xf32>, vector<32x32xf32>, vector<16x32xf32> -> vector<16x32xf32>
    %c2_402 = arith.constant 2 : index
    %c0_403 = arith.constant 0 : index
    %c0_404 = arith.constant 0 : index
    %836 = vector.load %arg8[%c2_402, %c0_403, %c0_404] : memref<4x16x16xf32, #tpu.memory_space<vmem>>, vector<1x16x16xf32>
    %837 = vector.shape_cast %836 : vector<1x16x16xf32> to vector<16x16xf32>
    %838 = vector.extract_strided_slice %837 {offsets = [0, 0], sizes = [8, 16], strides = [1, 1]} : vector<16x16xf32> to vector<8x16xf32>
    %cst_405 = arith.constant dense<0xFF800000> : vector<8xf32>
    %839 = vector.multi_reduction <maximumf>, %838, %cst_405 [1] : vector<8x16xf32> to vector<8xf32>
    %840 = vector.shape_cast %839 : vector<8xf32> to vector<8x1xf32>
    %cst_406 = arith.constant -1.000000e+29 : f32
    %841 = vector.broadcast %cst_406 : f32 to vector<8x1xf32>
    %842 = arith.cmpf ogt, %840, %841 : vector<8x1xf32>
    %cst_407 = arith.constant 1.000000e+00 : f32
    %cst_408 = arith.constant 0.000000e+00 : f32
    %843 = vector.broadcast %cst_407 : f32 to vector<8x1xf32>
    %844 = vector.broadcast %cst_408 : f32 to vector<8x1xf32>
    %845 = arith.select %842, %843, %844 : vector<8x1xi1>, vector<8x1xf32>
    %846 = vector.extract_strided_slice %646 {offsets = [0, 0], sizes = [8, 8], strides = [1, 1]} : vector<8x32xf32> to vector<8x8xf32>
    %847 = vector.extract_strided_slice %832 {offsets = [0, 0], sizes = [16, 8], strides = [1, 1]} : vector<16x32xf32> to vector<16x8xf32>
    %cst_409 = arith.constant dense<0.000000e+00> : vector<8x16xf32>
    %848 = tpu.matmul %846, %847, %cst_409 {dimension_numbers = #tpu.dot_dimension_numbers<[1], [1], [0], [0], [0, 0, 1, 0], [], []>} : vector<8x8xf32>, vector<16x8xf32>, vector<8x16xf32> -> vector<8x16xf32>
    %849 = arith.addf %848, %838 : vector<8x16xf32>
    %cst_410 = arith.constant dense<0xFF800000> : vector<8xf32>
    %850 = vector.multi_reduction <maximumf>, %849, %cst_410 [1] : vector<8x16xf32> to vector<8xf32>
    %851 = vector.shape_cast %850 : vector<8xf32> to vector<8x1xf32>
    %852 = vector.broadcast %851 : vector<8x1xf32> to vector<8x16xf32>
    %853 = arith.subf %849, %852 : vector<8x16xf32>
    %854 = math.exp %853 : vector<8x16xf32>
    %cst_411 = arith.constant dense<0.000000e+00> : vector<8xf32>
    %855 = vector.multi_reduction <add>, %854, %cst_411 [1] : vector<8x16xf32> to vector<8xf32>
    %856 = vector.shape_cast %855 : vector<8xf32> to vector<8x1xf32>
    %cst_412 = arith.constant 1.000000e-30 : f32
    %857 = vector.broadcast %cst_412 : f32 to vector<8x1xf32>
    %858 = arith.maximumf %856, %857 : vector<8x1xf32>
    %859 = arith.divf %845, %858 : vector<8x1xf32>
    %860 = vector.broadcast %859 : vector<8x1xf32> to vector<8x16xf32>
    %861 = arith.mulf %854, %860 : vector<8x16xf32>
    %862 = vector.extract_strided_slice %835 {offsets = [0, 0], sizes = [16, 8], strides = [1, 1]} : vector<16x32xf32> to vector<16x8xf32>
    %cst_413 = arith.constant dense<0.000000e+00> : vector<8x8xf32>
    %863 = tpu.matmul %861, %862, %cst_413 {dimension_numbers = #tpu.dot_dimension_numbers<[1], [0], [0], [1], [0, 0, 1, 1], [], []>} : vector<8x16xf32>, vector<16x8xf32>, vector<8x8xf32> -> vector<8x8xf32>
    %864 = vector.extract_strided_slice %646 {offsets = [0, 8], sizes = [8, 8], strides = [1, 1]} : vector<8x32xf32> to vector<8x8xf32>
    %865 = vector.extract_strided_slice %832 {offsets = [0, 8], sizes = [16, 8], strides = [1, 1]} : vector<16x32xf32> to vector<16x8xf32>
    %cst_414 = arith.constant dense<0.000000e+00> : vector<8x16xf32>
    %866 = tpu.matmul %864, %865, %cst_414 {dimension_numbers = #tpu.dot_dimension_numbers<[1], [1], [0], [0], [0, 0, 1, 0], [], []>} : vector<8x8xf32>, vector<16x8xf32>, vector<8x16xf32> -> vector<8x16xf32>
    %867 = arith.addf %866, %838 : vector<8x16xf32>
    %cst_415 = arith.constant dense<0xFF800000> : vector<8xf32>
    %868 = vector.multi_reduction <maximumf>, %867, %cst_415 [1] : vector<8x16xf32> to vector<8xf32>
    %869 = vector.shape_cast %868 : vector<8xf32> to vector<8x1xf32>
    %870 = vector.broadcast %869 : vector<8x1xf32> to vector<8x16xf32>
    %871 = arith.subf %867, %870 : vector<8x16xf32>
    %872 = math.exp %871 : vector<8x16xf32>
    %cst_416 = arith.constant dense<0.000000e+00> : vector<8xf32>
    %873 = vector.multi_reduction <add>, %872, %cst_416 [1] : vector<8x16xf32> to vector<8xf32>
    %874 = vector.shape_cast %873 : vector<8xf32> to vector<8x1xf32>
    %cst_417 = arith.constant 1.000000e-30 : f32
    %875 = vector.broadcast %cst_417 : f32 to vector<8x1xf32>
    %876 = arith.maximumf %874, %875 : vector<8x1xf32>
    %877 = arith.divf %845, %876 : vector<8x1xf32>
    %878 = vector.broadcast %877 : vector<8x1xf32> to vector<8x16xf32>
    %879 = arith.mulf %872, %878 : vector<8x16xf32>
    %880 = vector.extract_strided_slice %835 {offsets = [0, 8], sizes = [16, 8], strides = [1, 1]} : vector<16x32xf32> to vector<16x8xf32>
    %cst_418 = arith.constant dense<0.000000e+00> : vector<8x8xf32>
    %881 = tpu.matmul %879, %880, %cst_418 {dimension_numbers = #tpu.dot_dimension_numbers<[1], [0], [0], [1], [0, 0, 1, 1], [], []>} : vector<8x16xf32>, vector<16x8xf32>, vector<8x8xf32> -> vector<8x8xf32>
    %882 = vector.extract_strided_slice %646 {offsets = [0, 16], sizes = [8, 8], strides = [1, 1]} : vector<8x32xf32> to vector<8x8xf32>
    %883 = vector.extract_strided_slice %832 {offsets = [0, 16], sizes = [16, 8], strides = [1, 1]} : vector<16x32xf32> to vector<16x8xf32>
    %cst_419 = arith.constant dense<0.000000e+00> : vector<8x16xf32>
    %884 = tpu.matmul %882, %883, %cst_419 {dimension_numbers = #tpu.dot_dimension_numbers<[1], [1], [0], [0], [0, 0, 1, 0], [], []>} : vector<8x8xf32>, vector<16x8xf32>, vector<8x16xf32> -> vector<8x16xf32>
    %885 = arith.addf %884, %838 : vector<8x16xf32>
    %cst_420 = arith.constant dense<0xFF800000> : vector<8xf32>
    %886 = vector.multi_reduction <maximumf>, %885, %cst_420 [1] : vector<8x16xf32> to vector<8xf32>
    %887 = vector.shape_cast %886 : vector<8xf32> to vector<8x1xf32>
    %888 = vector.broadcast %887 : vector<8x1xf32> to vector<8x16xf32>
    %889 = arith.subf %885, %888 : vector<8x16xf32>
    %890 = math.exp %889 : vector<8x16xf32>
    %cst_421 = arith.constant dense<0.000000e+00> : vector<8xf32>
    %891 = vector.multi_reduction <add>, %890, %cst_421 [1] : vector<8x16xf32> to vector<8xf32>
    %892 = vector.shape_cast %891 : vector<8xf32> to vector<8x1xf32>
    %cst_422 = arith.constant 1.000000e-30 : f32
    %893 = vector.broadcast %cst_422 : f32 to vector<8x1xf32>
    %894 = arith.maximumf %892, %893 : vector<8x1xf32>
    %895 = arith.divf %845, %894 : vector<8x1xf32>
    %896 = vector.broadcast %895 : vector<8x1xf32> to vector<8x16xf32>
    %897 = arith.mulf %890, %896 : vector<8x16xf32>
    %898 = vector.extract_strided_slice %835 {offsets = [0, 16], sizes = [16, 8], strides = [1, 1]} : vector<16x32xf32> to vector<16x8xf32>
    %cst_423 = arith.constant dense<0.000000e+00> : vector<8x8xf32>
    %899 = tpu.matmul %897, %898, %cst_423 {dimension_numbers = #tpu.dot_dimension_numbers<[1], [0], [0], [1], [0, 0, 1, 1], [], []>} : vector<8x16xf32>, vector<16x8xf32>, vector<8x8xf32> -> vector<8x8xf32>
    %900 = vector.extract_strided_slice %646 {offsets = [0, 24], sizes = [8, 8], strides = [1, 1]} : vector<8x32xf32> to vector<8x8xf32>
    %901 = vector.extract_strided_slice %832 {offsets = [0, 24], sizes = [16, 8], strides = [1, 1]} : vector<16x32xf32> to vector<16x8xf32>
    %cst_424 = arith.constant dense<0.000000e+00> : vector<8x16xf32>
    %902 = tpu.matmul %900, %901, %cst_424 {dimension_numbers = #tpu.dot_dimension_numbers<[1], [1], [0], [0], [0, 0, 1, 0], [], []>} : vector<8x8xf32>, vector<16x8xf32>, vector<8x16xf32> -> vector<8x16xf32>
    %903 = arith.addf %902, %838 : vector<8x16xf32>
    %cst_425 = arith.constant dense<0xFF800000> : vector<8xf32>
    %904 = vector.multi_reduction <maximumf>, %903, %cst_425 [1] : vector<8x16xf32> to vector<8xf32>
    %905 = vector.shape_cast %904 : vector<8xf32> to vector<8x1xf32>
    %906 = vector.broadcast %905 : vector<8x1xf32> to vector<8x16xf32>
    %907 = arith.subf %903, %906 : vector<8x16xf32>
    %908 = math.exp %907 : vector<8x16xf32>
    %cst_426 = arith.constant dense<0.000000e+00> : vector<8xf32>
    %909 = vector.multi_reduction <add>, %908, %cst_426 [1] : vector<8x16xf32> to vector<8xf32>
    %910 = vector.shape_cast %909 : vector<8xf32> to vector<8x1xf32>
    %cst_427 = arith.constant 1.000000e-30 : f32
    %911 = vector.broadcast %cst_427 : f32 to vector<8x1xf32>
    %912 = arith.maximumf %910, %911 : vector<8x1xf32>
    %913 = arith.divf %845, %912 : vector<8x1xf32>
    %914 = vector.broadcast %913 : vector<8x1xf32> to vector<8x16xf32>
    %915 = arith.mulf %908, %914 : vector<8x16xf32>
    %916 = vector.extract_strided_slice %835 {offsets = [0, 24], sizes = [16, 8], strides = [1, 1]} : vector<16x32xf32> to vector<16x8xf32>
    %cst_428 = arith.constant dense<0.000000e+00> : vector<8x8xf32>
    %917 = tpu.matmul %915, %916, %cst_428 {dimension_numbers = #tpu.dot_dimension_numbers<[1], [0], [0], [1], [0, 0, 1, 1], [], []>} : vector<8x16xf32>, vector<16x8xf32>, vector<8x8xf32> -> vector<8x8xf32>
    %c7_429 = arith.constant 7 : index
    %c0_430 = arith.constant 0 : index
    %c0_431 = arith.constant 0 : index
    %918 = vector.load %arg6[%c7_429, %c0_430, %c0_431] : memref<8x32x32xf32, #tpu.memory_space<vmem>>, vector<1x32x32xf32>
    %919 = vector.shape_cast %918 : vector<1x32x32xf32> to vector<32x32xf32>
    %cst_432 = arith.constant dense<0.000000e+00> : vector<8x32xf32>
    %920 = tpu.matmul %639, %919, %cst_432 {dimension_numbers = #tpu.dot_dimension_numbers<[1], [0], [0], [1], [0, 0, 1, 1], [], []>} : vector<8x32xf32>, vector<32x32xf32>, vector<8x32xf32> -> vector<8x32xf32>
    %c7_433 = arith.constant 7 : index
    %c0_434 = arith.constant 0 : index
    %c0_435 = arith.constant 0 : index
    %921 = vector.load %arg7[%c7_433, %c0_434, %c0_435] : memref<8x32x32xf32, #tpu.memory_space<vmem>>, vector<1x32x32xf32>
    %922 = vector.shape_cast %921 : vector<1x32x32xf32> to vector<32x32xf32>
    %cst_436 = arith.constant dense<0.000000e+00> : vector<8x32xf32>
    %923 = tpu.matmul %653, %922, %cst_436 {dimension_numbers = #tpu.dot_dimension_numbers<[1], [0], [0], [1], [0, 0, 1, 1], [], []>} : vector<8x32xf32>, vector<32x32xf32>, vector<8x32xf32> -> vector<8x32xf32>
    %c3_437 = arith.constant 3 : index
    %c0_438 = arith.constant 0 : index
    %c0_439 = arith.constant 0 : index
    %924 = vector.load %arg8[%c3_437, %c0_438, %c0_439] : memref<4x16x16xf32, #tpu.memory_space<vmem>>, vector<1x16x16xf32>
    %925 = vector.shape_cast %924 : vector<1x16x16xf32> to vector<16x16xf32>
    %926 = vector.extract_strided_slice %925 {offsets = [0, 0], sizes = [16, 8], strides = [1, 1]} : vector<16x16xf32> to vector<16x8xf32>
    %cst_440 = arith.constant dense<0xFF800000> : vector<16xf32>
    %927 = vector.multi_reduction <maximumf>, %926, %cst_440 [1] : vector<16x8xf32> to vector<16xf32>
    %928 = vector.shape_cast %927 : vector<16xf32> to vector<16x1xf32>
    %cst_441 = arith.constant -1.000000e+29 : f32
    %929 = vector.broadcast %cst_441 : f32 to vector<16x1xf32>
    %930 = arith.cmpf ogt, %928, %929 : vector<16x1xf32>
    %cst_442 = arith.constant 1.000000e+00 : f32
    %cst_443 = arith.constant 0.000000e+00 : f32
    %931 = vector.broadcast %cst_442 : f32 to vector<16x1xf32>
    %932 = vector.broadcast %cst_443 : f32 to vector<16x1xf32>
    %933 = arith.select %930, %931, %932 : vector<16x1xi1>, vector<16x1xf32>
    %934 = vector.extract_strided_slice %625 {offsets = [0, 0], sizes = [16, 8], strides = [1, 1]} : vector<16x32xf32> to vector<16x8xf32>
    %935 = vector.extract_strided_slice %920 {offsets = [0, 0], sizes = [8, 8], strides = [1, 1]} : vector<8x32xf32> to vector<8x8xf32>
    %cst_444 = arith.constant dense<0.000000e+00> : vector<16x8xf32>
    %936 = tpu.matmul %934, %935, %cst_444 {dimension_numbers = #tpu.dot_dimension_numbers<[1], [1], [0], [0], [0, 0, 1, 0], [], []>} : vector<16x8xf32>, vector<8x8xf32>, vector<16x8xf32> -> vector<16x8xf32>
    %937 = arith.addf %936, %926 : vector<16x8xf32>
    %cst_445 = arith.constant dense<0xFF800000> : vector<16xf32>
    %938 = vector.multi_reduction <maximumf>, %937, %cst_445 [1] : vector<16x8xf32> to vector<16xf32>
    %939 = vector.shape_cast %938 : vector<16xf32> to vector<16x1xf32>
    %940 = vector.broadcast %939 : vector<16x1xf32> to vector<16x8xf32>
    %941 = arith.subf %937, %940 : vector<16x8xf32>
    %942 = math.exp %941 : vector<16x8xf32>
    %cst_446 = arith.constant dense<0.000000e+00> : vector<16xf32>
    %943 = vector.multi_reduction <add>, %942, %cst_446 [1] : vector<16x8xf32> to vector<16xf32>
    %944 = vector.shape_cast %943 : vector<16xf32> to vector<16x1xf32>
    %cst_447 = arith.constant 1.000000e-30 : f32
    %945 = vector.broadcast %cst_447 : f32 to vector<16x1xf32>
    %946 = arith.maximumf %944, %945 : vector<16x1xf32>
    %947 = arith.divf %933, %946 : vector<16x1xf32>
    %948 = vector.broadcast %947 : vector<16x1xf32> to vector<16x8xf32>
    %949 = arith.mulf %942, %948 : vector<16x8xf32>
    %950 = vector.extract_strided_slice %923 {offsets = [0, 0], sizes = [8, 8], strides = [1, 1]} : vector<8x32xf32> to vector<8x8xf32>
    %cst_448 = arith.constant dense<0.000000e+00> : vector<16x8xf32>
    %951 = tpu.matmul %949, %950, %cst_448 {dimension_numbers = #tpu.dot_dimension_numbers<[1], [0], [0], [1], [0, 0, 1, 1], [], []>} : vector<16x8xf32>, vector<8x8xf32>, vector<16x8xf32> -> vector<16x8xf32>
    %952 = arith.addf %687, %951 : vector<16x8xf32>
    %953 = vector.extract_strided_slice %625 {offsets = [0, 8], sizes = [16, 8], strides = [1, 1]} : vector<16x32xf32> to vector<16x8xf32>
    %954 = vector.extract_strided_slice %920 {offsets = [0, 8], sizes = [8, 8], strides = [1, 1]} : vector<8x32xf32> to vector<8x8xf32>
    %cst_449 = arith.constant dense<0.000000e+00> : vector<16x8xf32>
    %955 = tpu.matmul %953, %954, %cst_449 {dimension_numbers = #tpu.dot_dimension_numbers<[1], [1], [0], [0], [0, 0, 1, 0], [], []>} : vector<16x8xf32>, vector<8x8xf32>, vector<16x8xf32> -> vector<16x8xf32>
    %956 = arith.addf %955, %926 : vector<16x8xf32>
    %cst_450 = arith.constant dense<0xFF800000> : vector<16xf32>
    %957 = vector.multi_reduction <maximumf>, %956, %cst_450 [1] : vector<16x8xf32> to vector<16xf32>
    %958 = vector.shape_cast %957 : vector<16xf32> to vector<16x1xf32>
    %959 = vector.broadcast %958 : vector<16x1xf32> to vector<16x8xf32>
    %960 = arith.subf %956, %959 : vector<16x8xf32>
    %961 = math.exp %960 : vector<16x8xf32>
    %cst_451 = arith.constant dense<0.000000e+00> : vector<16xf32>
    %962 = vector.multi_reduction <add>, %961, %cst_451 [1] : vector<16x8xf32> to vector<16xf32>
    %963 = vector.shape_cast %962 : vector<16xf32> to vector<16x1xf32>
    %cst_452 = arith.constant 1.000000e-30 : f32
    %964 = vector.broadcast %cst_452 : f32 to vector<16x1xf32>
    %965 = arith.maximumf %963, %964 : vector<16x1xf32>
    %966 = arith.divf %933, %965 : vector<16x1xf32>
    %967 = vector.broadcast %966 : vector<16x1xf32> to vector<16x8xf32>
    %968 = arith.mulf %961, %967 : vector<16x8xf32>
    %969 = vector.extract_strided_slice %923 {offsets = [0, 8], sizes = [8, 8], strides = [1, 1]} : vector<8x32xf32> to vector<8x8xf32>
    %cst_453 = arith.constant dense<0.000000e+00> : vector<16x8xf32>
    %970 = tpu.matmul %968, %969, %cst_453 {dimension_numbers = #tpu.dot_dimension_numbers<[1], [0], [0], [1], [0, 0, 1, 1], [], []>} : vector<16x8xf32>, vector<8x8xf32>, vector<16x8xf32> -> vector<16x8xf32>
    %971 = arith.addf %705, %970 : vector<16x8xf32>
    %972 = vector.extract_strided_slice %625 {offsets = [0, 16], sizes = [16, 8], strides = [1, 1]} : vector<16x32xf32> to vector<16x8xf32>
    %973 = vector.extract_strided_slice %920 {offsets = [0, 16], sizes = [8, 8], strides = [1, 1]} : vector<8x32xf32> to vector<8x8xf32>
    %cst_454 = arith.constant dense<0.000000e+00> : vector<16x8xf32>
    %974 = tpu.matmul %972, %973, %cst_454 {dimension_numbers = #tpu.dot_dimension_numbers<[1], [1], [0], [0], [0, 0, 1, 0], [], []>} : vector<16x8xf32>, vector<8x8xf32>, vector<16x8xf32> -> vector<16x8xf32>
    %975 = arith.addf %974, %926 : vector<16x8xf32>
    %cst_455 = arith.constant dense<0xFF800000> : vector<16xf32>
    %976 = vector.multi_reduction <maximumf>, %975, %cst_455 [1] : vector<16x8xf32> to vector<16xf32>
    %977 = vector.shape_cast %976 : vector<16xf32> to vector<16x1xf32>
    %978 = vector.broadcast %977 : vector<16x1xf32> to vector<16x8xf32>
    %979 = arith.subf %975, %978 : vector<16x8xf32>
    %980 = math.exp %979 : vector<16x8xf32>
    %cst_456 = arith.constant dense<0.000000e+00> : vector<16xf32>
    %981 = vector.multi_reduction <add>, %980, %cst_456 [1] : vector<16x8xf32> to vector<16xf32>
    %982 = vector.shape_cast %981 : vector<16xf32> to vector<16x1xf32>
    %cst_457 = arith.constant 1.000000e-30 : f32
    %983 = vector.broadcast %cst_457 : f32 to vector<16x1xf32>
    %984 = arith.maximumf %982, %983 : vector<16x1xf32>
    %985 = arith.divf %933, %984 : vector<16x1xf32>
    %986 = vector.broadcast %985 : vector<16x1xf32> to vector<16x8xf32>
    %987 = arith.mulf %980, %986 : vector<16x8xf32>
    %988 = vector.extract_strided_slice %923 {offsets = [0, 16], sizes = [8, 8], strides = [1, 1]} : vector<8x32xf32> to vector<8x8xf32>
    %cst_458 = arith.constant dense<0.000000e+00> : vector<16x8xf32>
    %989 = tpu.matmul %987, %988, %cst_458 {dimension_numbers = #tpu.dot_dimension_numbers<[1], [0], [0], [1], [0, 0, 1, 1], [], []>} : vector<16x8xf32>, vector<8x8xf32>, vector<16x8xf32> -> vector<16x8xf32>
    %990 = arith.addf %723, %989 : vector<16x8xf32>
    %991 = vector.extract_strided_slice %625 {offsets = [0, 24], sizes = [16, 8], strides = [1, 1]} : vector<16x32xf32> to vector<16x8xf32>
    %992 = vector.extract_strided_slice %920 {offsets = [0, 24], sizes = [8, 8], strides = [1, 1]} : vector<8x32xf32> to vector<8x8xf32>
    %cst_459 = arith.constant dense<0.000000e+00> : vector<16x8xf32>
    %993 = tpu.matmul %991, %992, %cst_459 {dimension_numbers = #tpu.dot_dimension_numbers<[1], [1], [0], [0], [0, 0, 1, 0], [], []>} : vector<16x8xf32>, vector<8x8xf32>, vector<16x8xf32> -> vector<16x8xf32>
    %994 = arith.addf %993, %926 : vector<16x8xf32>
    %cst_460 = arith.constant dense<0xFF800000> : vector<16xf32>
    %995 = vector.multi_reduction <maximumf>, %994, %cst_460 [1] : vector<16x8xf32> to vector<16xf32>
    %996 = vector.shape_cast %995 : vector<16xf32> to vector<16x1xf32>
    %997 = vector.broadcast %996 : vector<16x1xf32> to vector<16x8xf32>
    %998 = arith.subf %994, %997 : vector<16x8xf32>
    %999 = math.exp %998 : vector<16x8xf32>
    %cst_461 = arith.constant dense<0.000000e+00> : vector<16xf32>
    %1000 = vector.multi_reduction <add>, %999, %cst_461 [1] : vector<16x8xf32> to vector<16xf32>
    %1001 = vector.shape_cast %1000 : vector<16xf32> to vector<16x1xf32>
    %cst_462 = arith.constant 1.000000e-30 : f32
    %1002 = vector.broadcast %cst_462 : f32 to vector<16x1xf32>
    %1003 = arith.maximumf %1001, %1002 : vector<16x1xf32>
    %1004 = arith.divf %933, %1003 : vector<16x1xf32>
    %1005 = vector.broadcast %1004 : vector<16x1xf32> to vector<16x8xf32>
    %1006 = arith.mulf %999, %1005 : vector<16x8xf32>
    %1007 = vector.extract_strided_slice %923 {offsets = [0, 24], sizes = [8, 8], strides = [1, 1]} : vector<8x32xf32> to vector<8x8xf32>
    %cst_463 = arith.constant dense<0.000000e+00> : vector<16x8xf32>
    %1008 = tpu.matmul %1006, %1007, %cst_463 {dimension_numbers = #tpu.dot_dimension_numbers<[1], [0], [0], [1], [0, 0, 1, 1], [], []>} : vector<16x8xf32>, vector<8x8xf32>, vector<16x8xf32> -> vector<16x8xf32>
    %1009 = arith.addf %741, %1008 : vector<16x8xf32>
    %c15 = arith.constant 15 : index
    %c0_464 = arith.constant 0 : index
    %c0_465 = arith.constant 0 : index
    %1010 = vector.load %arg1[%c15, %c0_464, %c0_465] : memref<24x32x32xf32, #tpu.memory_space<vmem>>, vector<1x32x32xf32>
    %1011 = vector.shape_cast %1010 : vector<1x32x32xf32> to vector<32x32xf32>
    %1012 = vector.extract_strided_slice %1011 {offsets = [0, 0], sizes = [8, 32], strides = [1, 1]} : vector<32x32xf32> to vector<8x32xf32>
    %cst_466 = arith.constant dense<0.000000e+00> : vector<8x32xf32>
    %1013 = tpu.matmul %775, %1012, %cst_466 {dimension_numbers = #tpu.dot_dimension_numbers<[1], [0], [0], [1], [0, 0, 1, 1], [], []>} : vector<8x8xf32>, vector<8x32xf32>, vector<8x32xf32> -> vector<8x32xf32>
    %1014 = vector.extract_strided_slice %1011 {offsets = [8, 0], sizes = [8, 32], strides = [1, 1]} : vector<32x32xf32> to vector<8x32xf32>
    %cst_467 = arith.constant dense<0.000000e+00> : vector<8x32xf32>
    %1015 = tpu.matmul %793, %1014, %cst_467 {dimension_numbers = #tpu.dot_dimension_numbers<[1], [0], [0], [1], [0, 0, 1, 1], [], []>} : vector<8x8xf32>, vector<8x32xf32>, vector<8x32xf32> -> vector<8x32xf32>
    %1016 = arith.addf %1013, %1015 : vector<8x32xf32>
    %1017 = vector.extract_strided_slice %1011 {offsets = [16, 0], sizes = [8, 32], strides = [1, 1]} : vector<32x32xf32> to vector<8x32xf32>
    %cst_468 = arith.constant dense<0.000000e+00> : vector<8x32xf32>
    %1018 = tpu.matmul %811, %1017, %cst_468 {dimension_numbers = #tpu.dot_dimension_numbers<[1], [0], [0], [1], [0, 0, 1, 1], [], []>} : vector<8x8xf32>, vector<8x32xf32>, vector<8x32xf32> -> vector<8x32xf32>
    %1019 = arith.addf %1016, %1018 : vector<8x32xf32>
    %1020 = vector.extract_strided_slice %1011 {offsets = [24, 0], sizes = [8, 32], strides = [1, 1]} : vector<32x32xf32> to vector<8x32xf32>
    %cst_469 = arith.constant dense<0.000000e+00> : vector<8x32xf32>
    %1021 = tpu.matmul %829, %1020, %cst_469 {dimension_numbers = #tpu.dot_dimension_numbers<[1], [0], [0], [1], [0, 0, 1, 1], [], []>} : vector<8x8xf32>, vector<8x32xf32>, vector<8x32xf32> -> vector<8x32xf32>
    %1022 = arith.addf %1019, %1021 : vector<8x32xf32>
    %cst_470 = arith.constant 1.000000e+00 : f32
    %1023 = vector.broadcast %cst_470 : f32 to vector<8x32xf32>
    %1024 = arith.mulf %1022, %1023 : vector<8x32xf32>
    %c15_471 = arith.constant 15 : index
    %c0_472 = arith.constant 0 : index
    %c0_473 = arith.constant 0 : index
    %1025 = vector.load %arg2[%c15_471, %c0_472, %c0_473] : memref<24x1x32xf32, #tpu.memory_space<vmem>>, vector<1x1x32xf32>
    %1026 = vector.shape_cast %1025 : vector<1x1x32xf32> to vector<1x32xf32>
    %1027 = vector.broadcast %1026 : vector<1x32xf32> to vector<8x32xf32>
    %1028 = arith.addf %1024, %1027 : vector<8x32xf32>
    %c3_474 = arith.constant 3 : index
    %c0_475 = arith.constant 0 : index
    %c0_476 = arith.constant 0 : index
    %1029 = vector.load %arg5[%c3_474, %c0_475, %c0_476] : memref<6x1x1xf32, #tpu.memory_space<vmem>>, vector<1x1x1xf32>
    %1030 = vector.shape_cast %1029 : vector<1x1x1xf32> to vector<1x1xf32>
    %1031 = vector.broadcast %1030 : vector<1x1xf32> to vector<8x32xf32>
    %1032 = arith.mulf %1028, %1031 : vector<8x32xf32>
    %cst_477 = arith.constant 1.000000e+00 : f32
    %1033 = vector.broadcast %cst_477 : f32 to vector<1x1xf32>
    %1034 = arith.subf %1033, %1030 : vector<1x1xf32>
    %1035 = vector.broadcast %1034 : vector<1x1xf32> to vector<8x32xf32>
    %1036 = arith.mulf %482, %1035 : vector<8x32xf32>
    %1037 = arith.addf %1032, %1036 : vector<8x32xf32>
    %cst_478 = arith.constant dense<0.000000e+00> : vector<8xf32>
    %1038 = vector.multi_reduction <add>, %1037, %cst_478 [1] : vector<8x32xf32> to vector<8xf32>
    %1039 = vector.shape_cast %1038 : vector<8xf32> to vector<8x1xf32>
    %cst_479 = arith.constant 3.200000e+01 : f32
    %1040 = vector.broadcast %cst_479 : f32 to vector<8x1xf32>
    %1041 = arith.divf %1039, %1040 : vector<8x1xf32>
    %1042 = vector.broadcast %1041 : vector<8x1xf32> to vector<8x32xf32>
    %1043 = arith.subf %1037, %1042 : vector<8x32xf32>
    %1044 = arith.mulf %1043, %1043 : vector<8x32xf32>
    %cst_480 = arith.constant dense<0.000000e+00> : vector<8xf32>
    %1045 = vector.multi_reduction <add>, %1044, %cst_480 [1] : vector<8x32xf32> to vector<8xf32>
    %1046 = vector.shape_cast %1045 : vector<8xf32> to vector<8x1xf32>
    %cst_481 = arith.constant 3.200000e+01 : f32
    %1047 = vector.broadcast %cst_481 : f32 to vector<8x1xf32>
    %1048 = arith.divf %1046, %1047 : vector<8x1xf32>
    %1049 = vector.broadcast %1041 : vector<8x1xf32> to vector<8x32xf32>
    %1050 = arith.subf %1037, %1049 : vector<8x32xf32>
    %cst_482 = arith.constant 9.99999974E-6 : f32
    %1051 = vector.broadcast %cst_482 : f32 to vector<8x1xf32>
    %1052 = arith.addf %1048, %1051 : vector<8x1xf32>
    %1053 = math.rsqrt %1052 : vector<8x1xf32>
    %1054 = vector.broadcast %1053 : vector<8x1xf32> to vector<8x32xf32>
    %1055 = arith.mulf %1050, %1054 : vector<8x32xf32>
    %c3_483 = arith.constant 3 : index
    %c0_484 = arith.constant 0 : index
    %c0_485 = arith.constant 0 : index
    %1056 = vector.load %arg3[%c3_483, %c0_484, %c0_485] : memref<6x1x32xf32, #tpu.memory_space<vmem>>, vector<1x1x32xf32>
    %1057 = vector.shape_cast %1056 : vector<1x1x32xf32> to vector<1x32xf32>
    %1058 = vector.broadcast %1057 : vector<1x32xf32> to vector<8x32xf32>
    %1059 = arith.mulf %1055, %1058 : vector<8x32xf32>
    %c3_486 = arith.constant 3 : index
    %c0_487 = arith.constant 0 : index
    %c0_488 = arith.constant 0 : index
    %1060 = vector.load %arg4[%c3_486, %c0_487, %c0_488] : memref<6x1x32xf32, #tpu.memory_space<vmem>>, vector<1x1x32xf32>
    %1061 = vector.shape_cast %1060 : vector<1x1x32xf32> to vector<1x32xf32>
    %1062 = vector.broadcast %1061 : vector<1x32xf32> to vector<8x32xf32>
    %1063 = arith.addf %1059, %1062 : vector<8x32xf32>
    %c19 = arith.constant 19 : index
    %c0_489 = arith.constant 0 : index
    %c0_490 = arith.constant 0 : index
    %1064 = vector.load %arg1[%c19, %c0_489, %c0_490] : memref<24x32x32xf32, #tpu.memory_space<vmem>>, vector<1x32x32xf32>
    %1065 = vector.shape_cast %1064 : vector<1x32x32xf32> to vector<32x32xf32>
    %1066 = vector.extract_strided_slice %1065 {offsets = [0, 0], sizes = [8, 32], strides = [1, 1]} : vector<32x32xf32> to vector<8x32xf32>
    %cst_491 = arith.constant dense<0.000000e+00> : vector<16x32xf32>
    %1067 = tpu.matmul %952, %1066, %cst_491 {dimension_numbers = #tpu.dot_dimension_numbers<[1], [0], [0], [1], [0, 0, 1, 1], [], []>} : vector<16x8xf32>, vector<8x32xf32>, vector<16x32xf32> -> vector<16x32xf32>
    %1068 = vector.extract_strided_slice %1065 {offsets = [8, 0], sizes = [8, 32], strides = [1, 1]} : vector<32x32xf32> to vector<8x32xf32>
    %cst_492 = arith.constant dense<0.000000e+00> : vector<16x32xf32>
    %1069 = tpu.matmul %971, %1068, %cst_492 {dimension_numbers = #tpu.dot_dimension_numbers<[1], [0], [0], [1], [0, 0, 1, 1], [], []>} : vector<16x8xf32>, vector<8x32xf32>, vector<16x32xf32> -> vector<16x32xf32>
    %1070 = arith.addf %1067, %1069 : vector<16x32xf32>
    %1071 = vector.extract_strided_slice %1065 {offsets = [16, 0], sizes = [8, 32], strides = [1, 1]} : vector<32x32xf32> to vector<8x32xf32>
    %cst_493 = arith.constant dense<0.000000e+00> : vector<16x32xf32>
    %1072 = tpu.matmul %990, %1071, %cst_493 {dimension_numbers = #tpu.dot_dimension_numbers<[1], [0], [0], [1], [0, 0, 1, 1], [], []>} : vector<16x8xf32>, vector<8x32xf32>, vector<16x32xf32> -> vector<16x32xf32>
    %1073 = arith.addf %1070, %1072 : vector<16x32xf32>
    %1074 = vector.extract_strided_slice %1065 {offsets = [24, 0], sizes = [8, 32], strides = [1, 1]} : vector<32x32xf32> to vector<8x32xf32>
    %cst_494 = arith.constant dense<0.000000e+00> : vector<16x32xf32>
    %1075 = tpu.matmul %1009, %1074, %cst_494 {dimension_numbers = #tpu.dot_dimension_numbers<[1], [0], [0], [1], [0, 0, 1, 1], [], []>} : vector<16x8xf32>, vector<8x32xf32>, vector<16x32xf32> -> vector<16x32xf32>
    %1076 = arith.addf %1073, %1075 : vector<16x32xf32>
    %cst_495 = arith.constant 5.000000e-01 : f32
    %1077 = vector.broadcast %cst_495 : f32 to vector<16x32xf32>
    %1078 = arith.mulf %1076, %1077 : vector<16x32xf32>
    %c19_496 = arith.constant 19 : index
    %c0_497 = arith.constant 0 : index
    %c0_498 = arith.constant 0 : index
    %1079 = vector.load %arg2[%c19_496, %c0_497, %c0_498] : memref<24x1x32xf32, #tpu.memory_space<vmem>>, vector<1x1x32xf32>
    %1080 = vector.shape_cast %1079 : vector<1x1x32xf32> to vector<1x32xf32>
    %1081 = vector.broadcast %1080 : vector<1x32xf32> to vector<16x32xf32>
    %1082 = arith.addf %1078, %1081 : vector<16x32xf32>
    %c4_499 = arith.constant 4 : index
    %c0_500 = arith.constant 0 : index
    %c0_501 = arith.constant 0 : index
    %1083 = vector.load %arg5[%c4_499, %c0_500, %c0_501] : memref<6x1x1xf32, #tpu.memory_space<vmem>>, vector<1x1x1xf32>
    %1084 = vector.shape_cast %1083 : vector<1x1x1xf32> to vector<1x1xf32>
    %1085 = vector.broadcast %1084 : vector<1x1xf32> to vector<16x32xf32>
    %1086 = arith.mulf %1082, %1085 : vector<16x32xf32>
    %cst_502 = arith.constant 1.000000e+00 : f32
    %1087 = vector.broadcast %cst_502 : f32 to vector<1x1xf32>
    %1088 = arith.subf %1087, %1084 : vector<1x1xf32>
    %1089 = vector.broadcast %1088 : vector<1x1xf32> to vector<16x32xf32>
    %1090 = arith.mulf %536, %1089 : vector<16x32xf32>
    %1091 = arith.addf %1086, %1090 : vector<16x32xf32>
    %cst_503 = arith.constant dense<0.000000e+00> : vector<16xf32>
    %1092 = vector.multi_reduction <add>, %1091, %cst_503 [1] : vector<16x32xf32> to vector<16xf32>
    %1093 = vector.shape_cast %1092 : vector<16xf32> to vector<16x1xf32>
    %cst_504 = arith.constant 3.200000e+01 : f32
    %1094 = vector.broadcast %cst_504 : f32 to vector<16x1xf32>
    %1095 = arith.divf %1093, %1094 : vector<16x1xf32>
    %1096 = vector.broadcast %1095 : vector<16x1xf32> to vector<16x32xf32>
    %1097 = arith.subf %1091, %1096 : vector<16x32xf32>
    %1098 = arith.mulf %1097, %1097 : vector<16x32xf32>
    %cst_505 = arith.constant dense<0.000000e+00> : vector<16xf32>
    %1099 = vector.multi_reduction <add>, %1098, %cst_505 [1] : vector<16x32xf32> to vector<16xf32>
    %1100 = vector.shape_cast %1099 : vector<16xf32> to vector<16x1xf32>
    %cst_506 = arith.constant 3.200000e+01 : f32
    %1101 = vector.broadcast %cst_506 : f32 to vector<16x1xf32>
    %1102 = arith.divf %1100, %1101 : vector<16x1xf32>
    %1103 = vector.broadcast %1095 : vector<16x1xf32> to vector<16x32xf32>
    %1104 = arith.subf %1091, %1103 : vector<16x32xf32>
    %cst_507 = arith.constant 9.99999974E-6 : f32
    %1105 = vector.broadcast %cst_507 : f32 to vector<16x1xf32>
    %1106 = arith.addf %1102, %1105 : vector<16x1xf32>
    %1107 = math.rsqrt %1106 : vector<16x1xf32>
    %1108 = vector.broadcast %1107 : vector<16x1xf32> to vector<16x32xf32>
    %1109 = arith.mulf %1104, %1108 : vector<16x32xf32>
    %c4_508 = arith.constant 4 : index
    %c0_509 = arith.constant 0 : index
    %c0_510 = arith.constant 0 : index
    %1110 = vector.load %arg3[%c4_508, %c0_509, %c0_510] : memref<6x1x32xf32, #tpu.memory_space<vmem>>, vector<1x1x32xf32>
    %1111 = vector.shape_cast %1110 : vector<1x1x32xf32> to vector<1x32xf32>
    %1112 = vector.broadcast %1111 : vector<1x32xf32> to vector<16x32xf32>
    %1113 = arith.mulf %1109, %1112 : vector<16x32xf32>
    %c4_511 = arith.constant 4 : index
    %c0_512 = arith.constant 0 : index
    %c0_513 = arith.constant 0 : index
    %1114 = vector.load %arg4[%c4_511, %c0_512, %c0_513] : memref<6x1x32xf32, #tpu.memory_space<vmem>>, vector<1x1x32xf32>
    %1115 = vector.shape_cast %1114 : vector<1x1x32xf32> to vector<1x32xf32>
    %1116 = vector.broadcast %1115 : vector<1x32xf32> to vector<16x32xf32>
    %1117 = arith.addf %1113, %1116 : vector<16x32xf32>
    %c23 = arith.constant 23 : index
    %c0_514 = arith.constant 0 : index
    %c0_515 = arith.constant 0 : index
    %1118 = vector.load %arg1[%c23, %c0_514, %c0_515] : memref<24x32x32xf32, #tpu.memory_space<vmem>>, vector<1x32x32xf32>
    %1119 = vector.shape_cast %1118 : vector<1x32x32xf32> to vector<32x32xf32>
    %1120 = vector.extract_strided_slice %1119 {offsets = [0, 0], sizes = [8, 32], strides = [1, 1]} : vector<32x32xf32> to vector<8x32xf32>
    %cst_516 = arith.constant dense<0.000000e+00> : vector<8x32xf32>
    %1121 = tpu.matmul %863, %1120, %cst_516 {dimension_numbers = #tpu.dot_dimension_numbers<[1], [0], [0], [1], [0, 0, 1, 1], [], []>} : vector<8x8xf32>, vector<8x32xf32>, vector<8x32xf32> -> vector<8x32xf32>
    %1122 = vector.extract_strided_slice %1119 {offsets = [8, 0], sizes = [8, 32], strides = [1, 1]} : vector<32x32xf32> to vector<8x32xf32>
    %cst_517 = arith.constant dense<0.000000e+00> : vector<8x32xf32>
    %1123 = tpu.matmul %881, %1122, %cst_517 {dimension_numbers = #tpu.dot_dimension_numbers<[1], [0], [0], [1], [0, 0, 1, 1], [], []>} : vector<8x8xf32>, vector<8x32xf32>, vector<8x32xf32> -> vector<8x32xf32>
    %1124 = arith.addf %1121, %1123 : vector<8x32xf32>
    %1125 = vector.extract_strided_slice %1119 {offsets = [16, 0], sizes = [8, 32], strides = [1, 1]} : vector<32x32xf32> to vector<8x32xf32>
    %cst_518 = arith.constant dense<0.000000e+00> : vector<8x32xf32>
    %1126 = tpu.matmul %899, %1125, %cst_518 {dimension_numbers = #tpu.dot_dimension_numbers<[1], [0], [0], [1], [0, 0, 1, 1], [], []>} : vector<8x8xf32>, vector<8x32xf32>, vector<8x32xf32> -> vector<8x32xf32>
    %1127 = arith.addf %1124, %1126 : vector<8x32xf32>
    %1128 = vector.extract_strided_slice %1119 {offsets = [24, 0], sizes = [8, 32], strides = [1, 1]} : vector<32x32xf32> to vector<8x32xf32>
    %cst_519 = arith.constant dense<0.000000e+00> : vector<8x32xf32>
    %1129 = tpu.matmul %917, %1128, %cst_519 {dimension_numbers = #tpu.dot_dimension_numbers<[1], [0], [0], [1], [0, 0, 1, 1], [], []>} : vector<8x8xf32>, vector<8x32xf32>, vector<8x32xf32> -> vector<8x32xf32>
    %1130 = arith.addf %1127, %1129 : vector<8x32xf32>
    %cst_520 = arith.constant 1.000000e+00 : f32
    %1131 = vector.broadcast %cst_520 : f32 to vector<8x32xf32>
    %1132 = arith.mulf %1130, %1131 : vector<8x32xf32>
    %c23_521 = arith.constant 23 : index
    %c0_522 = arith.constant 0 : index
    %c0_523 = arith.constant 0 : index
    %1133 = vector.load %arg2[%c23_521, %c0_522, %c0_523] : memref<24x1x32xf32, #tpu.memory_space<vmem>>, vector<1x1x32xf32>
    %1134 = vector.shape_cast %1133 : vector<1x1x32xf32> to vector<1x32xf32>
    %1135 = vector.broadcast %1134 : vector<1x32xf32> to vector<8x32xf32>
    %1136 = arith.addf %1132, %1135 : vector<8x32xf32>
    %c5_524 = arith.constant 5 : index
    %c0_525 = arith.constant 0 : index
    %c0_526 = arith.constant 0 : index
    %1137 = vector.load %arg5[%c5_524, %c0_525, %c0_526] : memref<6x1x1xf32, #tpu.memory_space<vmem>>, vector<1x1x1xf32>
    %1138 = vector.shape_cast %1137 : vector<1x1x1xf32> to vector<1x1xf32>
    %1139 = vector.broadcast %1138 : vector<1x1xf32> to vector<8x32xf32>
    %1140 = arith.mulf %1136, %1139 : vector<8x32xf32>
    %cst_527 = arith.constant 1.000000e+00 : f32
    %1141 = vector.broadcast %cst_527 : f32 to vector<1x1xf32>
    %1142 = arith.subf %1141, %1138 : vector<1x1xf32>
    %1143 = vector.broadcast %1142 : vector<1x1xf32> to vector<8x32xf32>
    %1144 = arith.mulf %590, %1143 : vector<8x32xf32>
    %1145 = arith.addf %1140, %1144 : vector<8x32xf32>
    %cst_528 = arith.constant dense<0.000000e+00> : vector<8xf32>
    %1146 = vector.multi_reduction <add>, %1145, %cst_528 [1] : vector<8x32xf32> to vector<8xf32>
    %1147 = vector.shape_cast %1146 : vector<8xf32> to vector<8x1xf32>
    %cst_529 = arith.constant 3.200000e+01 : f32
    %1148 = vector.broadcast %cst_529 : f32 to vector<8x1xf32>
    %1149 = arith.divf %1147, %1148 : vector<8x1xf32>
    %1150 = vector.broadcast %1149 : vector<8x1xf32> to vector<8x32xf32>
    %1151 = arith.subf %1145, %1150 : vector<8x32xf32>
    %1152 = arith.mulf %1151, %1151 : vector<8x32xf32>
    %cst_530 = arith.constant dense<0.000000e+00> : vector<8xf32>
    %1153 = vector.multi_reduction <add>, %1152, %cst_530 [1] : vector<8x32xf32> to vector<8xf32>
    %1154 = vector.shape_cast %1153 : vector<8xf32> to vector<8x1xf32>
    %cst_531 = arith.constant 3.200000e+01 : f32
    %1155 = vector.broadcast %cst_531 : f32 to vector<8x1xf32>
    %1156 = arith.divf %1154, %1155 : vector<8x1xf32>
    %1157 = vector.broadcast %1149 : vector<8x1xf32> to vector<8x32xf32>
    %1158 = arith.subf %1145, %1157 : vector<8x32xf32>
    %cst_532 = arith.constant 9.99999974E-6 : f32
    %1159 = vector.broadcast %cst_532 : f32 to vector<8x1xf32>
    %1160 = arith.addf %1156, %1159 : vector<8x1xf32>
    %1161 = math.rsqrt %1160 : vector<8x1xf32>
    %1162 = vector.broadcast %1161 : vector<8x1xf32> to vector<8x32xf32>
    %1163 = arith.mulf %1158, %1162 : vector<8x32xf32>
    %c5_533 = arith.constant 5 : index
    %c0_534 = arith.constant 0 : index
    %c0_535 = arith.constant 0 : index
    %1164 = vector.load %arg3[%c5_533, %c0_534, %c0_535] : memref<6x1x32xf32, #tpu.memory_space<vmem>>, vector<1x1x32xf32>
    %1165 = vector.shape_cast %1164 : vector<1x1x32xf32> to vector<1x32xf32>
    %1166 = vector.broadcast %1165 : vector<1x32xf32> to vector<8x32xf32>
    %1167 = arith.mulf %1163, %1166 : vector<8x32xf32>
    %c5_536 = arith.constant 5 : index
    %c0_537 = arith.constant 0 : index
    %c0_538 = arith.constant 0 : index
    %1168 = vector.load %arg4[%c5_536, %c0_537, %c0_538] : memref<6x1x32xf32, #tpu.memory_space<vmem>>, vector<1x1x32xf32>
    %1169 = vector.shape_cast %1168 : vector<1x1x32xf32> to vector<1x32xf32>
    %1170 = vector.broadcast %1169 : vector<1x32xf32> to vector<8x32xf32>
    %1171 = arith.addf %1167, %1170 : vector<8x32xf32>
    %c0_539 = arith.constant 0 : index
    %c0_540 = arith.constant 0 : index
    %1172 = vector.load %arg9[%c0_539, %c0_540] : memref<2x32xf32, #tpu.memory_space<vmem>>, vector<2x32xf32>
    %1173 = vector.extract_strided_slice %1172 {offsets = [0, 0], sizes = [2, 8], strides = [1, 1]} : vector<2x32xf32> to vector<2x8xf32>
    %cst_541 = arith.constant dense<0.000000e+00> : vector<2x32xf32>
    %1174 = tpu.matmul %1173, %1063, %cst_541 {dimension_numbers = #tpu.dot_dimension_numbers<[1], [0], [0], [1], [0, 0, 1, 1], [], []>} : vector<2x8xf32>, vector<8x32xf32>, vector<2x32xf32> -> vector<2x32xf32>
    %1175 = vector.extract_strided_slice %1172 {offsets = [0, 8], sizes = [2, 16], strides = [1, 1]} : vector<2x32xf32> to vector<2x16xf32>
    %cst_542 = arith.constant dense<0.000000e+00> : vector<2x32xf32>
    %1176 = tpu.matmul %1175, %1117, %cst_542 {dimension_numbers = #tpu.dot_dimension_numbers<[1], [0], [0], [1], [0, 0, 1, 1], [], []>} : vector<2x16xf32>, vector<16x32xf32>, vector<2x32xf32> -> vector<2x32xf32>
    %1177 = arith.addf %1174, %1176 : vector<2x32xf32>
    %1178 = vector.extract_strided_slice %1172 {offsets = [0, 24], sizes = [2, 8], strides = [1, 1]} : vector<2x32xf32> to vector<2x8xf32>
    %cst_543 = arith.constant dense<0.000000e+00> : vector<2x32xf32>
    %1179 = tpu.matmul %1178, %1171, %cst_543 {dimension_numbers = #tpu.dot_dimension_numbers<[1], [0], [0], [1], [0, 0, 1, 1], [], []>} : vector<2x8xf32>, vector<8x32xf32>, vector<2x32xf32> -> vector<2x32xf32>
    %1180 = arith.addf %1177, %1179 : vector<2x32xf32>
    %c0_544 = arith.constant 0 : index
    %c0_545 = arith.constant 0 : index
    %1181 = vector.load %arg10[%c0_544, %c0_545] : memref<2x1xf32, #tpu.memory_space<vmem>>, vector<2x1xf32>
    %1182 = vector.broadcast %1181 : vector<2x1xf32> to vector<2x32xf32>
    %1183 = arith.mulf %1180, %1182 : vector<2x32xf32>
    %c0_546 = arith.constant 0 : index
    %c0_547 = arith.constant 0 : index
    %1184 = vector.load %arg14[%c0_546, %c0_547] : memref<2x32xf32, #tpu.memory_space<vmem>>, vector<2x32xf32>
    tpu.vector_store %arg14[%c0_546, %c0_547], %1183 {strides = array<i32>} : memref<2x32xf32, #tpu.memory_space<vmem>>, vector<2x32xf32>,
    %c0_548 = arith.constant 0 : index
    %c0_549 = arith.constant 0 : index
    %1185 = vector.load %arg11[%c0_548, %c0_549] : memref<32x2xf32, #tpu.memory_space<vmem>>, vector<32x2xf32>
    %cst_550 = arith.constant dense<0.000000e+00> : vector<2x2xf32>
    %1186 = tpu.matmul %1183, %1185, %cst_550 {dimension_numbers = #tpu.dot_dimension_numbers<[1], [0], [0], [1], [0, 0, 1, 1], [], []>} : vector<2x32xf32>, vector<32x2xf32>, vector<2x2xf32> -> vector<2x2xf32>
    %c0_551 = arith.constant 0 : index
    %c0_552 = arith.constant 0 : index
    %1187 = vector.load %arg12[%c0_551, %c0_552] : memref<1x2xf32, #tpu.memory_space<vmem>>, vector<1x2xf32>
    %1188 = vector.broadcast %1187 : vector<1x2xf32> to vector<2x2xf32>
    %1189 = arith.addf %1186, %1188 : vector<2x2xf32>
    %c0_553 = arith.constant 0 : index
    %c0_554 = arith.constant 0 : index
    %1190 = vector.load %arg13[%c0_553, %c0_554] : memref<2x2xf32, #tpu.memory_space<vmem>>, vector<2x2xf32>
    tpu.vector_store %arg13[%c0_553, %c0_554], %1189 {strides = array<i32>} : memref<2x2xf32, #tpu.memory_space<vmem>>, vector<2x2xf32>,
    return
  }
}

</mosaic_0001>

<bundles_post_ra>
// kernel: tpu_custom_call.1
= control target key start
LH: loop header
LB: loop body
LE: loop exit
PB: predicated region body
PF: predicated region fallthrough
CT: control target
= control target key end

     0   :  { %20 = vsyncpa [#allocation3], 0  ;;  %s15677_s0 = inlined_call_operand.vmem [shape: f32[3,32], index: 0, kind: input, shape index: {}]   ;;  %s15678_s1 = inlined_call_operand.hbm [shape: f32[24,32,32], index: 1, kind: input, shape index: {}]   ;;  %s15679_s2 = inlined_call_operand.hbm [shape: f32[24,1,32], index: 2, kind: input, shape index: {}]   ;;  %s15680_s3 = inlined_call_operand.vmem [shape: f32[6,1,32], index: 3, kind: input, shape index: {}]   ;;  %s15681_s4 = inlined_call_operand.hbm [shape: f32[6,1,32], index: 4, kind: input, shape index: {}]   ;;  %s15682_s5 = inlined_call_operand.vmem [shape: f32[6,1,1], index: 5, kind: input, shape index: {}]   ;;  %s15683_s6 = inlined_call_operand.hbm [shape: f32[8,32,32], index: 6, kind: input, shape index: {}]   ;;  %s15684_s7 = inlined_call_operand.hbm [shape: f32[8,32,32], index: 7, kind: input, shape index: {}]   ;;  %s15685_s8 = inlined_call_operand.vmem [shape: f32[4,16,16], index: 8, kind: input, shape index: {}]   ;;  %s15686_s9 = inlined_call_operand.vmem [shape: f32[2,32], index: 9, kind: input, shape index: {}]   ;;  %s15687_s10 = inlined_call_operand.vmem [shape: f32[2,1], index: 10, kind: input, shape index: {}]   ;;  %s15688_s11 = inlined_call_operand.vmem [shape: f32[32,2], index: 11, kind: input, shape index: {}]   ;;  %s15689_s12 = inlined_call_operand.vmem [shape: f32[1,2], index: 12, kind: input, shape index: {}]   ;;  %s15690_s13 = inlined_call_operand.hbm [shape: f32[2,2], index: 13, kind: output, shape index: {0}]   ;;  %s15691_s14 = inlined_call_operand.hbm [shape: f32[2,32], index: 14, kind: output, shape index: {1}]  }
   0x1   :  { %21 = vsyncpa [#allocation6], 0 }
   0x2   :  { %22 = vsyncpa [#allocation9], 0 }
   0x3   :  { %23 = vsyncpa [#allocation4], 0 }
   0x4   :  { %24 = vsyncpa [#allocation13], 0  ;;  %s13994_s29 = smov [#allocation5]   ;;  %s13830_s17 = scalar_lea.hbm %s15679_s2, 384 }
   0x5   :  { %s44_s30 = sshll.u32 %s13994_s29, 4  ;;  %p13831_p0 = scmp.ne.s32.totalorder %s15679_s2, %s13830_s17  ;;  %s45_s30 = int_to_ptr.vmem [resolvable:$true] %s44_s30 }
   0x6   :  { %p13834_p1 = scmp.lt.u32.totalorder %s13830_s17, %s15679_s2 }
   0x8   :  { %p13836_p2 = pnand %p13834_p1, %p13831_p0 }
   0xa   :  { %13839 = shalt.err (!%p13836_p2)
}
   0xb   :  { %s13840_s22 = scalar_lea.vmem %s45_s30, 384  ;;  %p13845_p4 = scmp.lt.s32.totalorder %s45_s30, %s45_s30 }
   0xc   :  { %p13841_p3 = scmp.ne.s32.totalorder %s45_s30, %s13840_s22  ;;  %p13846_p5 = scmp.lt.s32.totalorder %s13840_s22, %s13840_s22 }
   0xe   :  { %p13847_p6 = por %p13846_p5, %p13845_p4 }
  0x10   :  { %p13848_p7 = pnand %p13847_p6, %p13841_p3 }
  0x12   :  { %13851 = shalt.err (!%p13848_p7)
}
  0x13   :  { %s13995_s23 = smov 16   ;;  %s13996_s24 = smov 1  }
  0x14   :  { %50 = dma.hbm_to_vmem [thread:$0]  %s15679_s2, 384, %s45_s30, [#allocation6], %s13995_s23, %s13995_s23, %s13996_s24  }
  0x15   :  { %s13997_s27 = smov [#allocation8]   ;;  %s13998_s29 = smov [#allocation2]  }
  0x16   :  { %s72_s28 = sshll.u32 %s13997_s27, 4  ;;  %s32_s15 = sshll.u32 %s13998_s29, 4  ;;  %s73_s28 = int_to_ptr.vmem [resolvable:$true] %s72_s28  ;;  %s33_s15 = int_to_ptr.vmem [resolvable:$true] %s32_s15 }
  0x17   :  { %s13852_s18 = scalar_lea.hbm %s15683_s6, 4096 }
  0x18   :  { %p13853_p8 = scmp.ne.s32.totalorder %s15683_s6, %s13852_s18  ;;  %p13856_p9 = scmp.lt.u32.totalorder %s13852_s18, %s15683_s6 }
  0x1a   :  { %p13858_p10 = pnand %p13856_p9, %p13853_p8 }
  0x1c   :  { %13861 = shalt.err (!%p13858_p10)
}
  0x1d   :  { %s13862_s2 = scalar_lea.vmem %s73_s28, 4096  ;;  %p13867_p12 = scmp.lt.s32.totalorder %s73_s28, %s73_s28 }
  0x1e   :  { %p13863_p11 = scmp.ne.s32.totalorder %s73_s28, %s13862_s2  ;;  %p13868_p13 = scmp.lt.s32.totalorder %s13862_s2, %s13862_s2 }
  0x20   :  { %p13869_p0 = por %p13868_p13, %p13867_p12 }
  0x22   :  { %p13870_p1 = pnand %p13869_p0, %p13863_p11 }
  0x24   :  { %13873 = shalt.err (!%p13870_p1)
}
  0x25   :  { %s13999_s30 = smov 128   ;;  %s14000_s25 = smov 8  }
  0x26   :  { %78 = dma.hbm_to_vmem [thread:$0]  %s15683_s6, 4096, %s73_s28, [#allocation9], %s13999_s30, %s13999_s30, %s14000_s25  }
  0x27   :  { %s13874_s17 = scalar_lea.hbm %s15678_s1, 12288 }
  0x28   :  { %p13875_p2 = scmp.ne.s32.totalorder %s15678_s1, %s13874_s17  ;;  %p13878_p3 = scmp.lt.u32.totalorder %s13874_s17, %s15678_s1 }
  0x2a   :  { %p13880_p4 = pnand %p13878_p3, %p13875_p2 }
  0x2c   :  { %13883 = shalt.err (!%p13880_p4)
}
  0x2d   :  { %s13884_s22 = scalar_lea.vmem %s33_s15, 12288  ;;  %p13889_p6 = scmp.lt.s32.totalorder %s33_s15, %s33_s15 }
  0x2e   :  { %p13885_p5 = scmp.ne.s32.totalorder %s33_s15, %s13884_s22  ;;  %p13890_p7 = scmp.lt.s32.totalorder %s13884_s22, %s13884_s22 }
  0x30   :  { %p13891_p8 = por %p13890_p7, %p13889_p6 }
  0x32   :  { %p13892_p9 = pnand %p13891_p8, %p13885_p5 }
  0x34   :  { %13895 = shalt.err (!%p13892_p9)
}
  0x35   :  { %38 = dma.hbm_to_vmem [thread:$0]  %s15678_s1, 12288, %s33_s15, [#allocation3], %s13999_s30, %s13999_s30, %s14000_s25  }
  0x36   :  { %s14001_s2 = smov [#allocation7]   ;;  %s14002_s27 = smov [#allocation10]  }
  0x37   :  { %s58_s26 = sshll.u32 %s14001_s2, 4  ;;  %s84_s29 = sshll.u32 %s14002_s27, 4  ;;  %s59_s26 = int_to_ptr.vmem [resolvable:$true] %s58_s26  ;;  %s85_s29 = int_to_ptr.vmem [resolvable:$true] %s84_s29 }
  0x38   :  { %s13896_s18 = scalar_lea.hbm %s15681_s4, 96 }
  0x39   :  { %p13897_p10 = scmp.ne.s32.totalorder %s15681_s4, %s13896_s18  ;;  %p13900_p11 = scmp.lt.u32.totalorder %s13896_s18, %s15681_s4 }
  0x3b   :  { %p13902_p12 = pnand %p13900_p11, %p13897_p10 }
  0x3d   :  { %13905 = shalt.err (!%p13902_p12)
}
  0x3e   :  { %s13906_s1 = scalar_lea.vmem %s59_s26, 96  ;;  %p13911_p0 = scmp.lt.s32.totalorder %s59_s26, %s59_s26 }
  0x3f   :  { %p13907_p13 = scmp.ne.s32.totalorder %s59_s26, %s13906_s1  ;;  %p13912_p1 = scmp.lt.s32.totalorder %s13906_s1, %s13906_s1 }
  0x41   :  { %p13913_p2 = por %p13912_p1, %p13911_p0 }
  0x43   :  { %p13914_p3 = pnand %p13913_p2, %p13907_p13 }
  0x45   :  { %13917 = shalt.err (!%p13914_p3)
}
  0x46   :  { %64 = dma.hbm_to_vmem [thread:$0]  %s15681_s4, 96, %s59_s26, [#allocation6], %s13995_s23, %s13995_s23, %s13996_s24  }
  0x47   :  { %s13918_s27 = scalar_lea.hbm %s15684_s7, 4096 }
  0x48   :  { %p13919_p4 = scmp.ne.s32.totalorder %s15684_s7, %s13918_s27  ;;  %p13922_p5 = scmp.lt.u32.totalorder %s13918_s27, %s15684_s7 }
  0x4a   :  { %p13924_p6 = pnand %p13922_p5, %p13919_p4 }
  0x4c   :  { %13927 = shalt.err (!%p13924_p6)
}
  0x4d   :  { %s13928_s20 = scalar_lea.vmem %s85_s29, 4096  ;;  %p13933_p8 = scmp.lt.s32.totalorder %s85_s29, %s85_s29 }
  0x4e   :  { %p13929_p7 = scmp.ne.s32.totalorder %s85_s29, %s13928_s20  ;;  %p13934_p9 = scmp.lt.s32.totalorder %s13928_s20, %s13928_s20 }
  0x50   :  { %p13935_p10 = por %p13934_p9, %p13933_p8 }
  0x52   :  { %p13936_p11 = pnand %p13935_p10, %p13929_p7 }
  0x54   :  { %13939 = shalt.err (!%p13936_p11)
}
  0x55   :  { %90 = dma.hbm_to_vmem [thread:$0]  %s15684_s7, 4096, %s85_s29, [#allocation9], %s13999_s30, %s13999_s30, %s14000_s25  }
  0x56   :  { %13984 = dma.done.wait [#allocation3], 12288  }
  0x57   :  { %13985 = vsyncadd [#allocation3], 4294955008 }
  0x58   :  { %13986 = dma.done.wait [#allocation6], 480  }
  0x59   :  { %13987 = vsyncadd [#allocation6], 4294966816 }
  0x5a   :  { %13988 = dma.done.wait [#allocation9], 8192  }
  0x5b   :  { %13989 = vsyncadd [#allocation9], 4294959104  ;;  %v14003_v0 = vmov 0.0|0.0   ;;  %vm14004_vm0 = vmmov 0   ;;  %v14005_v1 = vmov 0.0   ;;  %v117_v2 = vlaneseq  ;;  %v129_v4 = vld [vmem:[#allocation2] sm:$0xff] }
  0x5c   :  { %13091 = vmatprep.subr.bf16.mxu0 %v14003_v0  ;;  %12193 = vmatprep.mubr.msk.f32.mxu0 %vm14004_vm0, %v14005_v1  ;;  %v130_v5 = vld [vmem:[#allocation2 + $0x8] sm:$0xff]  ;;  %v131_v6 = vld [vmem:[#allocation2 + $0x10] sm:$0xff]  ;;  %v132_v8 = vld [vmem:[#allocation2 + $0x18] sm:$0xff]  ;;  %vm140_vm1 = vcmask 261120   ;;  %vm1055_vm2 = vcmask 64512   ;;  %s14007_s30 = smov 120  }
  0x5d   :  { %13097 = vmatprep.subr.bf16.mxu1 %v14003_v0  ;;  %12204 = vmatprep.mubr.msk.f32.mxu1 %vm14004_vm0, %v14005_v1  ;;  %v14168_v3 = vshrl.u32 %v117_v2, 7  ;;  %v13092_v7 = vpack.c.bf16 %v130_v5, %v129_v4  ;;  %v215_v9 = vld [vmem:[#allocation2 + $0x20] sm:$0xff]  ;;  %v216_v11 = vld [vmem:[#allocation2 + $0x28] sm:$0xff]  ;;  %v217_v12 = vld [vmem:[#allocation2 + $0x30] sm:$0xff]  ;;  %v13095_v14 = vpack.c.bf16 %v132_v8, %v131_v6  ;;  %s14008_s25 = smov 104   ;;  %vm1689_vm4 = vcmask 130048  }
  0x5e   :  { %v218_v13 = vld [vmem:[#allocation2 + $0x38] sm:$0xff]  ;;  %v14176_v15 = vld [vmem:[%s15677_s0] sm:$0x7]  ;;  %v13098_v16 = vpack.c.bf16 %v216_v11, %v215_v9  ;;  %v382_v18 = vld [vmem:[#allocation2 + $0x88] sm:$0xff]  ;;  %s14006_s0 = smov 112   ;;  %vm11343_vm11 = vcmask 254976  }
  0x5f   :  { %v14171_v10 = vsub.s32 0, %v14168_v3  ;;  %13093 = vmatpush3.bf16.msra.mxu0 %v13092_v7  ;;  %v381_v17 = vld [vmem:[#allocation2 + $0x80] sm:$0xff]  ;;  %v123_v19 = vsub.s32 1, %v14168_v3  ;;  %v13101_v20 = vpack.c.bf16 %v218_v13, %v217_v12  ;;  %v299_v22 = vld [vmem:[#allocation2 + $0x48] sm:$0xff]  ;;  %v383_v25 = vld [vmem:[#allocation2 + $0x90] sm:$0xff]  ;;  %v127_v50 = vsub.s32 2, %v14168_v3 }
  0x60   :  { %13094 = vmatprep.subr.bf16.mxu0 %v14003_v0  ;;  %13099 = vmatpush3.bf16.msra.mxu1 %v13098_v16  ;;  %v298_v21 = vld [vmem:[#allocation2 + $0x40] sm:$0xff]  ;;  %v13109_v24 = vpack.c.bf16 %v382_v18, %v381_v17  ;;  %v384_v26 = vld [vmem:[#allocation2 + $0x98] sm:$0xff]  ;;  %v300_v28 = vld [vmem:[#allocation2 + $0x50] sm:$0xff]  ;;  %s14010_s20 = smov [#allocation12]  }
  0x61   :  { %v14182_v23 = vrot.slane %v14176_v15, %v14171_v10  ;;  %13100 = vmatprep.subr.bf16.mxu1 %v14003_v0  ;;  %v13104_v27 = vpack.c.bf16 %v299_v22, %v298_v21  ;;  %v301_v29 = vld [vmem:[#allocation2 + $0x58] sm:$0xff]  ;;  %v14187_v30 = vrot.slane %v14176_v15, %v123_v19  ;;  %v472_v31 = vld [vmem:[#allocation2 + $0xa0] sm:$0xff]  ;;  %v473_v32 = vld [vmem:[#allocation2 + $0xa8] sm:$0xff]  ;;  %v13113_v33 = vpack.c.bf16 %v384_v26, %v383_v25  ;;  %s11447_s4 = sshll.u32 %s14010_s20, 4  ;;  %s11448_s4 = int_to_ptr.vmem [resolvable:$true] %s11447_s4 }
  0x62   :  { %v560_v34 = vld [vmem:[#allocation2 + $0xc0] sm:$0xff]  ;;  %v561_v35 = vld [vmem:[#allocation2 + $0xc8] sm:$0xff]  ;;  %v13107_v36 = vpack.c.bf16 %v301_v29, %v300_v28  ;;  %v13117_v37 = vpack.c.bf16 %v473_v32, %v472_v31  ;;  %v474_v38 = vld [vmem:[#allocation2 + $0xb0] sm:$0xff]  ;;  %v14219_v54 = vrot.slane %v14176_v15, %v127_v50  ;;  %s13940_s23 = scalar_lea.vmem %s11448_s4, 32  ;;  %p13945_p13 = scmp.lt.s32.totalorder %s11448_s4, %s11448_s4 }
  0x63   :  { %13096 = vmatpush3.bf16.msra.mxu0 %v13095_v14  ;;  %v475_v39 = vld [vmem:[#allocation2 + $0xb8] sm:$0xff]  ;;  %v13125_v40 = vpack.c.bf16 %v561_v35, %v560_v34  ;;  %v562_v41 = vld [vmem:[#allocation2 + $0xd0] sm:$0xff]  ;;  %v734_v45 = vld [vmem:[#allocation2 + $0x120] sm:$0xff]  ;;  %p13941_p12 = scmp.ne.s32.totalorder %s11448_s4, %s13940_s23  ;;  %p13946_p0 = scmp.lt.s32.totalorder %s13940_s23, %s13940_s23 }
  0x64   :  { %13103 = vmatprep.subr.bf16.mxu0 %v14003_v0  ;;  %13102 = vmatpush3.bf16.msra.mxu1 %v13101_v20  ;;  %v563_v42 = vld [vmem:[#allocation2 + $0xd8] sm:$0xff]  ;;  %v13121_v43 = vpack.c.bf16 %v475_v39, %v474_v38  ;;  %v735_v46 = vld [vmem:[#allocation2 + $0x128] sm:$0xff]  ;;  %v736_v48 = vld [vmem:[#allocation2 + $0x130] sm:$0xff] }
  0x65   :  { %13110 = vmatprep.subr.bf16.mxu1 %v13109_v24  ;;  %v13129_v44 = vpack.c.bf16 %v563_v42, %v562_v41  ;;  %v13140_v47 = vpack.c.bf16 %v735_v46, %v734_v45  ;;  %v737_v49 = vld [vmem:[#allocation2 + $0x138] sm:$0xff]  ;;  %v900_v53 = vld [vmem:[#allocation8 + $0x8] sm:$0xff]  ;;  %v901_v56 = vld [vmem:[#allocation8 + $0x10] sm:$0xff]  ;;  %p13947_p1 = por %p13946_p0, %p13945_p13 }
  0x66   :  { %12194 = vmatmul.mubr.msk.f32.vlgmr.msra.gmra.mrb[0].mxu0 %vm140_vm1, %v14182_v23  ;;  %v13143_v51 = vpack.c.bf16 %v737_v49, %v736_v48  ;;  %v899_v52 = vld [vmem:[#allocation8] sm:$0xff]  ;;  %v902_v57 = vld [vmem:[#allocation8 + $0x18] sm:$0xff]  ;;  %v649_v60 = vld [vmem:[#allocation2 + $0x108] sm:$0xff] }
  0x67   :  { %13105 = vmatpush3.bf16.msra.mxu0 %v13104_v27  ;;  %12215 = vmatprep.mubr.msk.f32.mxu0 %vm14004_vm0, %v14005_v1  ;;  %v13152_v55 = vpack.c.bf16 %v900_v53, %v899_v52  ;;  %v13155_v58 = vpack.c.bf16 %v902_v57, %v901_v56  ;;  %v648_v59 = vld [vmem:[#allocation2 + $0x100] sm:$0xff]  ;;  %v650_v62 = vld [vmem:[#allocation2 + $0x110] sm:$0xff]  ;;  %v651_v63 = vld [vmem:[#allocation2 + $0x118] sm:$0xff]  ;;  %p13948_p2 = pnand %p13947_p1, %p13941_p12 }
  0x68   :  { %12205 = vmatmul.mubr.msk.f32.vlgmr.msra.gmra.mrb[0].mxu1 %vm140_vm1, %v14182_v23  ;;  %13106 = vmatprep.subr.bf16.mxu0 %v14003_v0  ;;  %v13134_v61 = vpack.c.bf16 %v649_v60, %v648_v59  ;;  %v817_v2 = vld [vmem:[#allocation2 + $0x140] sm:$0xff]  ;;  %v13137_v3 = vpack.c.bf16 %v651_v63, %v650_v62  ;;  %v818_v4 = vld [vmem:[#allocation2 + $0x148] sm:$0xff]  ;;  %v819_v6 = vld [vmem:[#allocation2 + $0x150] sm:$0xff] }
  0x69   :  { %13112 = vmatpush3.bf16.msra.mxu1 %v13109_v24  ;;  %12226 = vmatprep.mubr.msk.f32.mxu1 %vm140_vm1, %v14187_v30  ;;  %v13146_v5 = vpack.c.bf16 %v818_v4, %v817_v2  ;;  %v820_v7 = vld [vmem:[#allocation2 + $0x158] sm:$0xff]  ;;  %v977_v11 = vld [vmem:[#allocation10 + $0x8] sm:$0xff]  ;;  %v978_v13 = vld [vmem:[#allocation10 + $0x10] sm:$0xff] }
  0x6a   :  { %13114 = vmatprep.subr.bf16.mxu1 %v13113_v33  ;;  %v976_v8 = vld [vmem:[#allocation10] sm:$0xff]  ;;  %v13149_v9 = vpack.c.bf16 %v820_v7, %v819_v6  ;;  %v979_v14 = vld [vmem:[#allocation10 + $0x18] sm:$0xff]  ;;  %v1517_v49 = vld [vmem:[#allocation8 + $0x28] sm:$0xff] }
  0x6b   :  { %13108 = vmatpush3.bf16.msra.mxu0 %v13107_v36  ;;  %v13158_v12 = vpack.c.bf16 %v977_v11, %v976_v8  ;;  %v13161_v15 = vpack.c.bf16 %v979_v14, %v978_v13  ;;  %v11462_v16 = vld [vmem:[#allocation5] ss:$0 sm:$0xff]  ;;  %v11466_v22 = vld [vmem:[#allocation5 + $0x2] ss:$0 sm:$0xff]  ;;  %v11471_v29 = vld [vmem:[#allocation5 + $0x5] ss:$0 sm:$0xff] }
  0x6c   :  { %13118 = vmatprep.subr.bf16.mxu0 %v13117_v37  ;;  %v1516_v48 = vld [vmem:[#allocation8 + $0x20] sm:$0xff]  ;;  %v1518_v53 = vld [vmem:[#allocation8 + $0x30] sm:$0xff]  ;;  %v1603_v63 = vld [vmem:[#allocation10 + $0x28] sm:$0xff] }
  0x6d   :  { %13116 = vmatpush3.bf16.msra.mxu1 %v13113_v33  ;;  %v13163_v50 = vpack.c.bf16 %v1517_v49, %v1516_v48  ;;  %v11468_v56 = vld [vmem:[#allocation5 + $0x4] ss:$0 sm:$0xff]  ;;  %v1605_v6 = vld [vmem:[#allocation10 + $0x38] sm:$0xff]  ;;  %v11474_v7 = vld [vmem:[#allocation5 + $0x6] ss:$0 sm:$0xff] }
  0x6e   :  { %13126 = vmatprep.subr.bf16.mxu1 %v13125_v40  ;;  %12216 = vmatmul.mubr.msk.f32.vlgmr.msra.gmra.mrb[2].mxu0 %vm140_vm1, %v14182_v23  ;;  %v1602_v62 = vld [vmem:[#allocation10 + $0x20] sm:$0xff]  ;;  %vm14352_vm3 = vmpackc.low %vm1055_vm2, %vm1055_vm2 }
  0x6f   :  { %13120 = vmatpush3.bf16.msra.mxu0 %v13117_v37  ;;  %12237 = vmatprep.mubr.msk.f32.mxu0 %vm140_vm1, %v14187_v30  ;;  %v13171_v2 = vpack.c.bf16 %v1603_v63, %v1602_v62 }
  0x70   :  { %12227 = vmatmul.mubr.msk.f32.vlgmr.msra.gmra.mrb[2].mxu1 %vm140_vm1, %v14187_v30  ;;  %13122 = vmatprep.subr.bf16.mxu0 %v13121_v43 }
  0x71   :  { %13128 = vmatpush3.bf16.msra.mxu1 %v13125_v40  ;;  %12248 = vmatprep.mubr.msk.f32.mxu1 %vm140_vm1, %v14187_v30 }
  0x72   :  { %13130 = vmatprep.subr.bf16.mxu1 %v13129_v44 }
  0x73   :  { %13124 = vmatpush3.bf16.msra.mxu0 %v13121_v43 }
  0x74   :  { %13133 = vmatprep.subr.bf16.mxu0 %v14003_v0 }
  0x75   :  { %13132 = vmatpush3.bf16.msra.mxu1 %v13129_v44 }
  0x76   :  { %13139 = vmatprep.subr.bf16.mxu1 %v14003_v0  ;;  %12238 = vmatmul.mubr.msk.f32.vlgmr.msra.gmra.mrb[4].mxu0 %vm140_vm1, %v14187_v30 }
  0x77   :  { %12259 = vmatprep.mubr.msk.f32.mxu0 %vm14004_vm0, %v14005_v1  ;;  %13135 = vmatpush3.bf16.msra.mxu0 %v13134_v61 }
  0x78   :  { %12249 = vmatmul.mubr.msk.f32.vlgmr.msra.gmra.mrb[4].mxu1 %vm140_vm1, %v14187_v30  ;;  %13136 = vmatprep.subr.bf16.mxu0 %v14003_v0 }
  0x79   :  { %13141 = vmatpush3.bf16.msra.mxu1 %v13140_v47  ;;  %12270 = vmatprep.mubr.msk.f32.mxu1 %vm14004_vm0, %v14005_v1 }
  0x7a   :  { %13142 = vmatprep.subr.bf16.mxu1 %v14003_v0 }
  0x7b   :  { %13138 = vmatpush3.bf16.msra.mxu0 %v13137_v3 }
  0x7c   :  { %13145 = vmatprep.subr.bf16.mxu0 %v14003_v0 }
  0x7d   :  { %13144 = vmatpush3.bf16.msra.mxu1 %v13143_v51 }
  0x7e   :  { %13151 = vmatprep.subr.bf16.mxu1 %v14003_v0  ;;  %12260 = vmatmul.mubr.msk.f32.vlgmr.msra.gmra.mrb[6].mxu0 %vm140_vm1, %v14219_v54 }
  0x7f   :  { %13147 = vmatpush3.bf16.msra.mxu0 %v13146_v5  ;;  %12281 = vmatprep.mubr.msk.f32.mxu0 %vm14004_vm0, %v14005_v1  ;;  %v1604_v5 = vld [vmem:[#allocation10 + $0x30] sm:$0xff] }
  0x80   :  { %12271 = vmatmul.mubr.msk.f32.vlgmr.msra.gmra.mrb[6].mxu1 %vm140_vm1, %v14219_v54  ;;  %13148 = vmatprep.subr.bf16.mxu0 %v14003_v0 }
  0x81   :  { %13153 = vmatpush3.bf16.msra.mxu1 %v13152_v55  ;;  %12292 = vmatprep.mubr.msk.f32.mxu1 %vm14004_vm0, %v14005_v1  ;;  %v1519_v55 = vld [vmem:[#allocation8 + $0x38] sm:$0xff] }
  0x82   :  { %13154 = vmatprep.subr.bf16.mxu1 %v14003_v0 }
  0x83   :  { %13150 = vmatpush3.bf16.msra.mxu0 %v13149_v9  ;;  %v13175_v9 = vpack.c.bf16 %v1605_v6, %v1604_v5 }
  0x84   :  { %13157 = vmatprep.subr.bf16.mxu0 %v14003_v0 }
  0x85   :  { %13156 = vmatpush3.bf16.msra.mxu1 %v13155_v58  ;;  %v13167_v58 = vpack.c.bf16 %v1519_v55, %v1518_v53 }
  0x86   :  { %12282 = vmatmul.mubr.msk.f32.vlgmr.msra.gmra.mrb[8].mxu0 %vm140_vm1, %v14219_v54 }
  0x87   :  { %13159 = vmatpush3.bf16.msra.mxu0 %v13158_v12  ;;  %12303 = vmatprep.mubr.msk.f32.mxu0 %vm14004_vm0, %v14005_v1 }
  0x88   :  { %13160 = vmatprep.subr.bf16.mxu0 %v14003_v0 }
  0x8b   :  { %13162 = vmatpush3.bf16.msra.mxu0 %v13161_v15 }
 0x139   :  { %v210_v17 = vpop.f32.mrb[0].mxu0 }
 0x13a   :  { %v211_v18 = vadd.f32 %v11462_v16, %v210_v17  ;;  %v12195_v19 = vpop.f32.mrb[1].mxu0 }
 0x13b   :  { %v14240_v20 = vpop.f32.mrb[0].mxu1 }
 0x13c   :  { %12293 = vmatmul.mubr.msk.f32.vlgmr.msra.gmra.mrb[8].mxu1 %vm140_vm1, %v211_v18  ;;  %v12206_v21 = vpop.f32.mrb[1].mxu1 }
 0x141   :  { %v376_v24 = vpop.f32.mrb[2].mxu0 }
 0x142   :  { %v377_v25 = vadd.f32 %v11466_v22, %v376_v24  ;;  %v12217_v26 = vpop.f32.mrb[3].mxu0  ;;  %v11619_v24 = vld [vmem:[#allocation5 + $0x16] ss:$0 sm:$0xff] }
 0x143   :  { %v14243_v27 = vpop.f32.mrb[2].mxu1 }
 0x144   :  { %v462_v28 = vpop.f32.mrb[3].mxu1  ;;  %12304 = vmatmul.mubr.msk.f32.vlgmr.msra.gmra.mrb[10].mxu0 %vm140_vm1, %v377_v25  ;;  %v14305_v3 = vadd.f32 %v14243_v27, %v11468_v56 }
 0x145   :  { %v14291_v59 = vadd.f32 %v11468_v56, %v462_v28 }
 0x149   :  { %v12239_v31 = vpop.f32.mrb[4].mxu0 }
 0x14a   :  { %v14246_v32 = vadd.f32 %v12239_v31, %v11471_v29  ;;  %v550_v37 = vpop.f32.mrb[5].mxu0 }
 0x14b   :  { %v14248_v33 = vpop.f32.mrb[4].mxu1  ;;  %v14256_v38 = vadd.f32 %v11471_v29, %v550_v37  ;;  %v11464_v29 = vld [vmem:[#allocation5 + $0x1] ss:$0 sm:$0xff] }
 0x14c   :  { %v14250_v34 = vpop.f32.mrb[5].mxu1  ;;  %1291 = vrot.lane.b32.xlu1 %v14246_v32, %s14006_s0  ;;  %v14331_v13 = vadd.f32 %v14248_v33, %v11474_v7  ;;  %v14366_v31 = vadd.f32 %v11464_v29, %v14240_v20 }
 0x14d   :  { %12308 = vmatprep.mubr.msk.f32.mxu1 %vm1055_vm2, %v14256_v38  ;;  %v14320_v11 = vadd.f32 %v11474_v7, %v14250_v34 }
 0x151   :  { %v14273_v41 = vpop.f32.mrb[6].mxu0 }
 0x152   :  { %v12261_v42 = vpop.f32.mrb[7].mxu0 }
 0x153   :  { %v14254_v35 = vpop.f32.mrb[6].mxu1 }
 0x154   :  { %v12272_v36 = vpop.f32.mrb[7].mxu1 }
 0x159   :  { %v14277_v43 = vpop.f32.mrb[8].mxu0 }
 0x15a   :  { %v12283_v44 = vpop.f32.mrb[9].mxu0 }
 0x1be   :  { %v14283_v47 = vpop.permute.xlu1 %1291 }
 0x20f   :  { %v972_v39 = vpop.f32.mrb[8].mxu1 }
 0x210   :  { %1293 = vrot.lane.b32.xlu0 %v972_v39, %s14006_s0  ;;  %v12294_v40 = vpop.f32.mrb[9].mxu1  ;;  %12306 = vmatprep.subr.msk.mxu1 %vm1055_vm2, %v972_v39 }
 0x211   :  { %1180 = vrot.lane.b32.xlu1 %v972_v39, %s14007_s30  ;;  %12307 = vmatpush3.xpose.msk.msra.mxu1 %vm1055_vm2, %v972_v39 }
 0x214   :  { %1289 = vrot.lane.b32.xlu0 %v14256_v38, %s14006_s0  ;;  %12309 = vmatmul.mubr.msk.f32.vlgmr.msra.gmra.mrb[10].mxu1 %vm1055_vm2, %v14246_v32 }
 0x215   :  { %1406 = vrot.lane.b32.xlu1 %v972_v39, %s14008_s25  ;;  %v14378_v39 = vld [vmem:[%s15685_s8 + $0x10] sm:$0xff] }
 0x217   :  { %v14279_v45 = vpop.f32.mrb[10].mxu0 }
 0x218   :  { %1176 = vrot.lane.b32.xlu0 %v14256_v38, %s14007_s30  ;;  %v12305_v46 = vpop.f32.mrb[11].mxu0 }
 0x219   :  { %1402 = vrot.lane.b32.xlu1 %v14256_v38, %s14008_s25 }
 0x21c   :  { %1178 = vrot.lane.b32.xlu0 %v14246_v32, %s14007_s30 }
 0x220   :  { %1404 = vrot.lane.b32.xlu0 %v14246_v32, %s14008_s25 }
 0x282   :  { %v1294_v51 = vpop.permute.xlu0 %1293 }
 0x283   :  { %v1181_v52 = vpop.permute.xlu1 %1180  ;;  %12316 = vmatprep.subr.msk.mxu0 %vm1055_vm2, %v1294_v51 }
 0x284   :  { %12311 = vmatprep.subr.msk.mxu1 %vm1055_vm2, %v1181_v52  ;;  %12317 = vmatpush3.xpose.msk.msra.mxu0 %vm1055_vm2, %v1294_v51 }
 0x285   :  { %12312 = vmatpush3.xpose.msk.msra.mxu1 %vm1055_vm2, %v1181_v52  ;;  %13164 = vmatprep.subr.bf16.mxu0 %v13163_v50  ;;  %v1690_v52 = vsel %vm1689_vm4, %v14378_v39, -inf }
 0x286   :  { %v14289_v57 = vpop.permute.xlu0 %1289 }
 0x287   :  { %v1407_v60 = vpop.permute.xlu1 %1406  ;;  %12318 = vmatprep.mubr.msk.f32.mxu0 %vm1055_vm2, %v14289_v57 }
 0x288   :  { %12321 = vmatprep.subr.msk.mxu1 %vm1055_vm2, %v1407_v60  ;;  %12319 = vmatmul.mubr.msk.f32.vlgmr.msra.gmra.mrb[12].mxu0 %vm1055_vm2, %v14283_v47 }
 0x289   :  { %13166 = vmatpush3.bf16.msra.mxu0 %v13163_v50  ;;  %12334 = vmatprep.mubr.msk.f32.mxu0 %vm140_vm1, %v14291_v59 }
 0x28a   :  { %v14300_v61 = vpop.permute.xlu0 %1176  ;;  %13168 = vmatprep.subr.bf16.mxu0 %v13167_v58 }
 0x28b   :  { %12313 = vmatprep.mubr.msk.f32.mxu1 %vm1055_vm2, %v14300_v61  ;;  %v14312_v8 = vpop.permute.xlu1 %1402 }
 0x28d   :  { %13170 = vmatpush3.bf16.msra.mxu0 %v13167_v58 }
 0x28e   :  { %v14307_v4 = vpop.permute.xlu0 %1178  ;;  %13179 = vmatprep.subr.bf16.mxu0 %v14003_v0 }
 0x28f   :  { %12314 = vmatmul.mubr.msk.f32.vlgmr.msra.gmra.mrb[12].mxu1 %vm1055_vm2, %v14307_v4 }
 0x290   :  { %12322 = vmatpush3.xpose.msk.msra.mxu1 %vm1055_vm2, %v1407_v60  ;;  %12335 = vmatmul.mubr.msk.f32.vlgmr.msra.gmra.mrb[14].mxu0 %vm140_vm1, %v14305_v3 }
 0x291   :  { %12323 = vmatprep.mubr.msk.f32.mxu1 %vm1055_vm2, %v14312_v8  ;;  %13172 = vmatprep.subr.bf16.mxu1 %v13171_v2 }
 0x292   :  { %v14322_v12 = vpop.permute.xlu0 %1404  ;;  %12352 = vmatprep.mubr.msk.f32.mxu0 %vm14004_vm0, %v14005_v1 }
 0x293   :  { %12324 = vmatmul.mubr.msk.f32.vlgmr.msra.gmra.mrb[14].mxu1 %vm1055_vm2, %v14322_v12 }
 0x294   :  { %13174 = vmatpush3.bf16.msra.mxu1 %v13171_v2  ;;  %12345 = vmatprep.mubr.msk.f32.mxu1 %vm140_vm1, %v14320_v11 }
 0x295   :  { %13176 = vmatprep.subr.bf16.mxu1 %v13175_v9 }
 0x298   :  { %13178 = vmatpush3.bf16.msra.mxu1 %v13175_v9 }
 0x299   :  { %13183 = vmatprep.subr.bf16.mxu1 %v14003_v0 }
 0x29b   :  { %12346 = vmatmul.mubr.msk.f32.vlgmr.msra.gmra.mrb[16].mxu1 %vm140_vm1, %v14331_v13 }
 0x29c   :  { %12359 = vmatprep.mubr.msk.f32.mxu1 %vm14004_vm0, %v14005_v1 }
 0x2e7   :  { %v14338_v14 = vpop.f32.mrb[10].mxu1 }
 0x2e8   :  { %v14340_v15 = vpop.f32.mrb[11].mxu1 }
 0x35b   :  { %v14342_v16 = vpop.f32.mrb[12].mxu0 }
 0x35c   :  { %v14344_v17 = vpop.f32.mrb[13].mxu0 }
 0x362   :  { %v14346_v18 = vpop.f32.mrb[12].mxu1 }
 0x363   :  { %v12336_v19 = vpop.f32.mrb[14].mxu0  ;;  %v14348_v21 = vpop.f32.mrb[13].mxu1 }
 0x364   :  { %v1592_v22 = vpop.f32.mrb[15].mxu0 }
 0x365   :  { %v13180_v25 = vpack.c.bf16 %v12336_v19, %v1592_v22  ;;  %v14356_v26 = vpack.i.bf16 %v12336_v19, %v1592_v22 }
 0x366   :  { %v14358_v27 = vpop.f32.mrb[14].mxu1 }
 0x367   :  { %13182 = vmatpush3.bf16.xpose.msk.msra.mxu0 %vm14352_vm3, %v13180_v25  ;;  %v14362_v28 = vpop.f32.mrb[15].mxu1 }
 0x368   :  { %13190 = vmatprep.subr.bf16.mxu0 %v14003_v0 }
 0x36e   :  { %v12347_v33 = vpop.f32.mrb[16].mxu1  ;;  %12353 = vmatmul.mubr.msk.f32.vlgmr.msra.gmra.mrb[16].mxu0 %vm1055_vm2, %v14366_v31 }
 0x36f   :  { %v1678_v34 = vpop.f32.mrb[17].mxu1  ;;  %12373 = vmatprep.mubr.msk.f32.mxu0 %vm14004_vm0, %v14005_v1 }
 0x370   :  { %v13184_v36 = vpack.c.bf16 %v12347_v33, %v1678_v34  ;;  %v14372_v37 = vpack.i.bf16 %v12347_v33, %v1678_v34 }
 0x372   :  { %13185 = vmatpush3.bf16.msra.mxu1 %v13184_v36 }
 0x373   :  { %13186 = vmatprep.subr.bf16.mxu1 %v14003_v0 }
 0x441   :  { %v1770_v20 = vpop.f32.mrb[16].mxu0 }
 0x442   :  { %v1771_v40 = vadd.f32 %v14378_v39, %v1770_v20  ;;  %v12354_v42 = vpop.f32.mrb[17].mxu0 }
 0x444   :  { %v1774_v44 = vsel %vm1689_vm4, %v1771_v40, -inf }
 0x445   :  { %1775 = vmax.xlane.f32.xlu1 %v1774_v44 }
 0x456   :  { %13495 = vrot.lane.b32.xlu1 %v14356_v26, %s14007_s30 }
 0x4d2   :  { %v1776_v46 = vpop.xlane.xlu1 %1775 }
 0x4d3   :  { %v1777_v48 = vsub.f32 %v1771_v40, %v1776_v46 }
 0x4d5   :  { %v1778_v49 = vmul.f32 1.442695, %v1777_v48 }
 0x4d6   :  { %v13496_v58 = vpop.permute.xlu1 %13495 }
 0x4d7   :  { %13616 = vpow2.f32 %v1778_v49  ;;  %v13498_v63 = vunpack.i.h.bf16 %v13496_v58  ;;  %v13497_v2 = vunpack.i.l.bf16 %v13496_v58 }
 0x4d9   :  { %v13187_v7 = vpack.c.bf16 %v13498_v63, %v13497_v2 }
 0x4e1   :  { %v13617_v50 = vpop.eup %13616 }
 0x4e2   :  { %v1780_v51 = vsel %vm1689_vm4, %v13617_v50, 0.0 }
 0x4e3   :  { %1781 = vadd.xlane.f32.xlu0 %v1780_v51 }
 0x4e7   :  { %1691 = vmax.xlane.f32.xlu0 %v1690_v52 }
 0x4fd   :  { %1860 = vrot.lane.b32.xlu0 %v14366_v31, %s14007_s30 }
 0x570   :  { %v1782_v53 = vpop.xlane.xlu0 %1781 }
 0x571   :  { %v1783_v55 = vmax.f32 %v1782_v53, 1e-30 }
 0x573   :  { %13618 = vrcp.f32 %v1783_v55 }
 0x574   :  { %v1692_v56 = vpop.xlane.xlu0 %1691 }
 0x575   :  { %vm1693_vm5 = vcmp.gt.f32.partialorder %v1692_v56, -1e+29 }
 0x576   :  { %v14390_v60 = vsel %vm1693_vm5, 1.0, %v14005_v1 }
 0x578   :  { %v1861_v9 = vpop.permute.xlu0 %1860 }
 0x57d   :  { %v13619_v62 = vpop.eup %13618 }
 0x57e   :  { %v1785_v5 = vmul.f32 %v13619_v62, %v14390_v60 }
 0x580   :  { %v1786_v6 = vmul.f32 %v13617_v50, %v1785_v5 }
 0x582   :  { %12360 = vmatmul.mubr.msk.f32.vlgmr.msra.gmra.mrb[18].mxu1 %vm1689_vm4, %v1786_v6 }
 0x583   :  { %13189 = vmatpush3.bf16.xpose.msk.msra.mxu1 %vm14352_vm3, %v13187_v7  ;;  %12366 = vmatprep.mubr.msk.f32.mxu1 %vm14004_vm0, %v14005_v1 }
 0x584   :  { %13197 = vmatprep.subr.bf16.mxu1 %v14003_v0 }
 0x58a   :  { %12367 = vmatmul.mubr.msk.f32.vlgmr.msra.gmra.mrb[20].mxu1 %vm1055_vm2, %v1861_v9 }
 0x58b   :  { %12387 = vmatprep.mubr.msk.f32.mxu1 %vm14004_vm0, %v14005_v1 }
 0x655   :  { %v14402_v19 = vpop.f32.mrb[18].mxu1 }
 0x656   :  { %v12361_v22 = vpop.f32.mrb[19].mxu1 }
 0x65d   :  { %v1938_v25 = vpop.f32.mrb[20].mxu1 }
 0x65e   :  { %v1939_v29 = vadd.f32 %v14378_v39, %v1938_v25  ;;  %v12368_v33 = vpop.f32.mrb[21].mxu1 }
 0x660   :  { %v1942_v34 = vsel %vm1689_vm4, %v1939_v29, -inf }
 0x661   :  { %1943 = vmax.xlane.f32.xlu1 %v1942_v34 }
 0x672   :  { %13500 = vrot.lane.b32.xlu1 %v14372_v37, %s14007_s30 }
 0x676   :  { %2036 = vrot.lane.b32.xlu1 %v14366_v31, %s14006_s0 }
 0x6ee   :  { %v1944_v36 = vpop.xlane.xlu1 %1943 }
 0x6ef   :  { %v1945_v20 = vsub.f32 %v1939_v29, %v1944_v36 }
 0x6f1   :  { %v1946_v40 = vmul.f32 1.442695, %v1945_v20 }
 0x6f2   :  { %v13501_v42 = vpop.permute.xlu1 %13500 }
 0x6f3   :  { %13620 = vpow2.f32 %v1946_v40  ;;  %v13503_v44 = vunpack.i.h.bf16 %v13501_v42  ;;  %v13502_v46 = vunpack.i.l.bf16 %v13501_v42 }
 0x6f5   :  { %v13191_v48 = vpack.c.bf16 %v13503_v44, %v13502_v46 }
 0x6f6   :  { %v2037_v5 = vpop.permute.xlu1 %2036 }
 0x6f7   :  { %13192 = vmatpush3.bf16.msra.mxu0 %v13191_v48 }
 0x6f8   :  { %13193 = vmatprep.subr.bf16.mxu0 %v14003_v0 }
 0x6fd   :  { %v13621_v49 = vpop.eup %13620 }
 0x6fe   :  { %v1948_v50 = vsel %vm1689_vm4, %v13621_v49, 0.0 }
 0x6ff   :  { %1949 = vadd.xlane.f32.xlu0 %v1948_v50 }
 0x715   :  { %13505 = vrot.lane.b32.xlu0 %v14356_v26, %s14006_s0 }
 0x78c   :  { %v1950_v51 = vpop.xlane.xlu0 %1949 }
 0x78d   :  { %v1951_v52 = vmax.f32 %v1950_v51, 1e-30 }
 0x78f   :  { %13622 = vrcp.f32 %v1951_v52 }
 0x790   :  { %v13506_v53 = vpop.permute.xlu0 %13505 }
 0x791   :  { %v13508_v56 = vunpack.i.h.bf16 %v13506_v53  ;;  %v13507_v58 = vunpack.i.l.bf16 %v13506_v53  ;;  %v2465_v53 = vld [vmem:[#allocation10 + $0x40] sm:$0xff] }
 0x793   :  { %v13194_v2 = vpack.c.bf16 %v13508_v56, %v13507_v58 }
 0x799   :  { %v13623_v55 = vpop.eup %13622 }
 0x79a   :  { %v1953_v62 = vmul.f32 %v13623_v55, %v14390_v60  ;;  %v2466_v55 = vld [vmem:[#allocation10 + $0x48] sm:$0xff] }
 0x79c   :  { %v1954_v63 = vmul.f32 %v13621_v49, %v1953_v62  ;;  %v13215_v62 = vpack.c.bf16 %v2466_v55, %v2465_v53  ;;  %v2386_v53 = vld [vmem:[#allocation8 + $0x48] sm:$0xff] }
 0x79e   :  { %12374 = vmatmul.mubr.msk.f32.vlgmr.msra.gmra.mrb[18].mxu0 %vm1689_vm4, %v1954_v63 }
 0x79f   :  { %13196 = vmatpush3.bf16.xpose.msk.msra.mxu0 %vm14352_vm3, %v13194_v2  ;;  %12380 = vmatprep.mubr.msk.f32.mxu0 %vm14004_vm0, %v14005_v1  ;;  %v2467_v2 = vld [vmem:[#allocation10 + $0x50] sm:$0xff] }
 0x7a0   :  { %13204 = vmatprep.subr.bf16.mxu0 %v14003_v0 }
 0x7a6   :  { %12381 = vmatmul.mubr.msk.f32.vlgmr.msra.gmra.mrb[20].mxu0 %vm1055_vm2, %v2037_v5  ;;  %v2468_v5 = vld [vmem:[#allocation10 + $0x58] sm:$0xff] }
 0x7a7   :  { %12401 = vmatprep.mubr.msk.f32.mxu0 %vm14004_vm0, %v14005_v1 }
 0x871   :  { %v14424_v6 = vpop.f32.mrb[18].mxu0 }
 0x872   :  { %v12375_v7 = vpop.f32.mrb[19].mxu0 }
 0x873   :  { %v13219_v7 = vpack.c.bf16 %v2468_v5, %v2467_v2 }
 0x879   :  { %v2114_v9 = vpop.f32.mrb[20].mxu0 }
 0x87a   :  { %v2115_v22 = vadd.f32 %v14378_v39, %v2114_v9  ;;  %v12382_v25 = vpop.f32.mrb[21].mxu0 }
 0x87c   :  { %v2118_v29 = vsel %vm1689_vm4, %v2115_v22, -inf }
 0x87d   :  { %2119 = vmax.xlane.f32.xlu1 %v2118_v29 }
 0x88e   :  { %13515 = vrot.lane.b32.xlu1 %v14356_v26, %s14008_s25 }
 0x892   :  { %2210 = vrot.lane.b32.xlu1 %v14366_v31, %s14008_s25 }
 0x90a   :  { %v2120_v33 = vpop.xlane.xlu1 %2119 }
 0x90b   :  { %v2121_v34 = vsub.f32 %v2115_v22, %v2120_v33 }
 0x90d   :  { %v2122_v36 = vmul.f32 1.442695, %v2121_v34 }
 0x90e   :  { %v13516_v31 = vpop.permute.xlu1 %13515 }
 0x90f   :  { %13624 = vpow2.f32 %v2122_v36  ;;  %v13518_v51 = vunpack.i.h.bf16 %v13516_v31  ;;  %v13517_v52 = vunpack.i.l.bf16 %v13516_v31 }
 0x911   :  { %v13201_v63 = vpack.c.bf16 %v13518_v51, %v13517_v52 }
 0x912   :  { %v2211_v9 = vpop.permute.xlu1 %2210 }
 0x919   :  { %v13625_v20 = vpop.eup %13624 }
 0x91a   :  { %v2124_v40 = vsel %vm1689_vm4, %v13625_v20, 0.0 }
 0x91b   :  { %2125 = vadd.xlane.f32.xlu0 %v2124_v40 }
 0x931   :  { %13510 = vrot.lane.b32.xlu0 %v14372_v37, %s14006_s0 }
 0x9a8   :  { %v2126_v42 = vpop.xlane.xlu0 %2125 }
 0x9a9   :  { %v2127_v44 = vmax.f32 %v2126_v42, 1e-30 }
 0x9ab   :  { %13626 = vrcp.f32 %v2127_v44 }
 0x9ac   :  { %v13511_v46 = vpop.permute.xlu0 %13510 }
 0x9ad   :  { %v13513_v48 = vunpack.i.h.bf16 %v13511_v46  ;;  %v13512_v26 = vunpack.i.l.bf16 %v13511_v46 }
 0x9af   :  { %v13198_v49 = vpack.c.bf16 %v13513_v48, %v13512_v26 }
 0x9b1   :  { %13199 = vmatpush3.bf16.msra.mxu1 %v13198_v49 }
 0x9b2   :  { %13200 = vmatprep.subr.bf16.mxu1 %v14003_v0 }
 0x9b5   :  { %v13627_v50 = vpop.eup %13626 }
 0x9b6   :  { %v2129_v56 = vmul.f32 %v13627_v50, %v14390_v60 }
 0x9b8   :  { %v2130_v58 = vmul.f32 %v13625_v20, %v2129_v56 }
 0x9ba   :  { %12388 = vmatmul.mubr.msk.f32.vlgmr.msra.gmra.mrb[22].mxu1 %vm1689_vm4, %v2130_v58 }
 0x9bb   :  { %13203 = vmatpush3.bf16.xpose.msk.msra.mxu1 %vm14352_vm3, %v13201_v63  ;;  %12394 = vmatprep.mubr.msk.f32.mxu1 %vm14004_vm0, %v14005_v1  ;;  %v2388_v63 = vld [vmem:[#allocation8 + $0x58] sm:$0xff] }
 0x9bc   :  { %13216 = vmatprep.subr.bf16.mxu1 %v13215_v62 }
 0x9c2   :  { %12395 = vmatmul.mubr.msk.f32.vlgmr.msra.gmra.mrb[24].mxu1 %vm1055_vm2, %v2211_v9 }
 0x9c3   :  { %13218 = vmatpush3.bf16.msra.mxu1 %v13215_v62  ;;  %12423 = vmatprep.mubr.msk.f32.mxu1 %vm140_vm1, %v14320_v11  ;;  %v2387_v62 = vld [vmem:[#allocation8 + $0x50] sm:$0xff] }
 0x9c4   :  { %13220 = vmatprep.subr.bf16.mxu1 %v13219_v7 }
 0x9c7   :  { %13222 = vmatpush3.bf16.msra.mxu1 %v13219_v7  ;;  %v13211_v7 = vpack.c.bf16 %v2388_v63, %v2387_v62 }
 0x9c8   :  { %13227 = vmatprep.subr.bf16.mxu1 %v14003_v0 }
 0x9ca   :  { %12424 = vmatmul.mubr.msk.f32.vlgmr.msra.gmra.mrb[26].mxu1 %vm140_vm1, %v14331_v13  ;;  %v11479_v13 = vld [vmem:[#allocation5 + $0x9] ss:$0 sm:$0xff] }
 0x9cb   :  { %12437 = vmatprep.mubr.msk.f32.mxu1 %vm14004_vm0, %v14005_v1  ;;  %v14460_v44 = vadd.f32 %v11479_v13, %v14254_v35 }
 0xa8d   :  { %v14450_v22 = vpop.f32.mrb[22].mxu1 }
 0xa8e   :  { %v12389_v25 = vpop.f32.mrb[23].mxu1 }
 0xa95   :  { %v2288_v29 = vpop.f32.mrb[24].mxu1 }
 0xa96   :  { %v2289_v33 = vadd.f32 %v14378_v39, %v2288_v29  ;;  %v12396_v34 = vpop.f32.mrb[25].mxu1 }
 0xa98   :  { %v2292_v36 = vsel %vm1689_vm4, %v2289_v33, -inf }
 0xa99   :  { %2293 = vmax.xlane.f32.xlu0 %v2292_v36 }
 0xa9d   :  { %v12425_v11 = vpop.f32.mrb[26].mxu1 }
 0xa9e   :  { %v2535_v20 = vpop.f32.mrb[27].mxu1 }
 0xa9f   :  { %v13228_v40 = vpack.c.bf16 %v12425_v11, %v2535_v20  ;;  %v14454_v42 = vpack.i.bf16 %v12425_v11, %v2535_v20 }
 0xaa1   :  { %13229 = vmatpush3.bf16.msra.mxu1 %v13228_v40 }
 0xaa2   :  { %13230 = vmatprep.subr.bf16.mxu1 %v14003_v0 }
 0xaaf   :  { %13520 = vrot.lane.b32.xlu0 %v14372_v37, %s14008_s25  ;;  %v2385_v37 = vld [vmem:[#allocation8 + $0x40] sm:$0xff] }
 0xab0   :  { %v13207_v35 = vpack.c.bf16 %v2386_v53, %v2385_v37 }
 0xab3   :  { %2716 = vrot.lane.b32.xlu0 %v14460_v44, %s14007_s30 }
 0xb26   :  { %v2294_v39 = vpop.xlane.xlu0 %2293 }
 0xb27   :  { %v2295_v46 = vsub.f32 %v2289_v33, %v2294_v39 }
 0xb29   :  { %v2296_v48 = vmul.f32 1.442695, %v2295_v46 }
 0xb2a   :  { %v13521_v26 = vpop.permute.xlu0 %13520 }
 0xb2b   :  { %13628 = vpow2.f32 %v2296_v48  ;;  %v13523_v49 = vunpack.i.h.bf16 %v13521_v26  ;;  %v13522_v31 = vunpack.i.l.bf16 %v13521_v26 }
 0xb2d   :  { %v13205_v50 = vpack.c.bf16 %v13523_v49, %v13522_v31 }
 0xb2e   :  { %v2717_v63 = vpop.permute.xlu0 %2716 }
 0xb2f   :  { %13206 = vmatpush3.bf16.msra.mxu0 %v13205_v50 }
 0xb30   :  { %13208 = vmatprep.subr.bf16.mxu0 %v13207_v35 }
 0xb35   :  { %v13629_v51 = vpop.eup %13628 }
 0xb36   :  { %v2298_v52 = vsel %vm1689_vm4, %v13629_v51, 0.0 }
 0xb37   :  { %2299 = vadd.xlane.f32.xlu1 %v2298_v52 }
 0xbc4   :  { %v2300_v55 = vpop.xlane.xlu1 %2299 }
 0xbc5   :  { %v2301_v56 = vmax.f32 %v2300_v55, 1e-30 }
 0xbc7   :  { %13630 = vrcp.f32 %v2301_v56 }
 0xbd1   :  { %v13631_v58 = vpop.eup %13630 }
 0xbd2   :  { %v2303_v2 = vmul.f32 %v13631_v58, %v14390_v60 }
 0xbd4   :  { %v2304_v5 = vmul.f32 %v13629_v51, %v2303_v2 }
 0xbd6   :  { %12402 = vmatmul.mubr.msk.f32.vlgmr.msra.gmra.mrb[22].mxu0 %vm1689_vm4, %v2304_v5 }
 0xbd7   :  { %13210 = vmatpush3.bf16.msra.mxu0 %v13207_v35  ;;  %12412 = vmatprep.mubr.msk.f32.mxu0 %vm140_vm1, %v14291_v59  ;;  %v14488_v59 = vld [vmem:[%s15685_s8 + $0x20] sm:$0xff] }
 0xbd8   :  { %13212 = vmatprep.subr.bf16.mxu0 %v13211_v7  ;;  %v2546_v13 = vsel %vm1689_vm4, %v14488_v59, -inf }
 0xbdb   :  { %13214 = vmatpush3.bf16.msra.mxu0 %v13211_v7 }
 0xbdc   :  { %13223 = vmatprep.subr.bf16.mxu0 %v14003_v0 }
 0xbde   :  { %12413 = vmatmul.mubr.msk.f32.vlgmr.msra.gmra.mrb[24].mxu0 %vm140_vm1, %v14305_v3 }
 0xbdf   :  { %12430 = vmatprep.mubr.msk.f32.mxu0 %vm14004_vm0, %v14005_v1 }
 0xca9   :  { %v14474_v9 = vpop.f32.mrb[22].mxu0 }
 0xcaa   :  { %v12403_v25 = vpop.f32.mrb[23].mxu0 }
 0xcb1   :  { %v12414_v29 = vpop.f32.mrb[24].mxu0 }
 0xcb2   :  { %v2455_v33 = vpop.f32.mrb[25].mxu0 }
 0xcb3   :  { %v13224_v34 = vpack.c.bf16 %v12414_v29, %v2455_v33  ;;  %v14476_v36 = vpack.i.bf16 %v12414_v29, %v2455_v33 }
 0xcb5   :  { %13226 = vmatpush3.bf16.xpose.msk.msra.mxu0 %vm14352_vm3, %v13224_v34 }
 0xcb6   :  { %13234 = vmatprep.subr.bf16.mxu0 %v14003_v0 }
 0xcbc   :  { %12431 = vmatmul.mubr.msk.f32.vlgmr.msra.gmra.mrb[26].mxu0 %vm1055_vm2, %v14460_v44 }
 0xcbd   :  { %12451 = vmatprep.mubr.msk.f32.mxu0 %vm14004_vm0, %v14005_v1 }
 0xd8f   :  { %v2626_v3 = vpop.f32.mrb[26].mxu0 }
 0xd90   :  { %v2627_v11 = vadd.f32 %v14488_v59, %v2626_v3  ;;  %v12432_v20 = vpop.f32.mrb[27].mxu0 }
 0xd92   :  { %v2630_v40 = vsel %vm1689_vm4, %v2627_v11, -inf }
 0xd93   :  { %2631 = vmax.xlane.f32.xlu1 %v2630_v40 }
 0xd97   :  { %2547 = vmax.xlane.f32.xlu1 %v2546_v13 }
 0xe20   :  { %v2632_v39 = vpop.xlane.xlu1 %2631 }
 0xe21   :  { %v2633_v46 = vsub.f32 %v2627_v11, %v2632_v39 }
 0xe23   :  { %v2634_v48 = vmul.f32 1.442695, %v2633_v46 }
 0xe24   :  { %v2548_v31 = vpop.xlane.xlu1 %2547 }
 0xe25   :  { %13632 = vpow2.f32 %v2634_v48  ;;  %vm2549_vm6 = vcmp.gt.f32.partialorder %v2548_v31, -1e+29 }
 0xe26   :  { %v14498_v53 = vsel %vm2549_vm6, 1.0, %v14005_v1 }
 0xe2f   :  { %v13633_v26 = vpop.eup %13632 }
 0xe30   :  { %v2636_v49 = vsel %vm1689_vm4, %v13633_v26, 0.0 }
 0xe31   :  { %2637 = vadd.xlane.f32.xlu1 %v2636_v49 }
 0xe42   :  { %13525 = vrot.lane.b32.xlu1 %v14476_v36, %s14007_s30 }
 0xebe   :  { %v2638_v50 = vpop.xlane.xlu1 %2637 }
 0xebf   :  { %v2639_v51 = vmax.f32 %v2638_v50, 1e-30 }
 0xec1   :  { %13634 = vrcp.f32 %v2639_v51 }
 0xec2   :  { %v13526_v52 = vpop.permute.xlu1 %13525 }
 0xec3   :  { %v13528_v35 = vunpack.i.h.bf16 %v13526_v52  ;;  %v13527_v55 = vunpack.i.l.bf16 %v13526_v52 }
 0xec5   :  { %v13231_v62 = vpack.c.bf16 %v13528_v35, %v13527_v55 }
 0xecb   :  { %v13635_v37 = vpop.eup %13634 }
 0xecc   :  { %v2641_v56 = vmul.f32 %v13635_v37, %v14498_v53 }
 0xece   :  { %v2642_v58 = vmul.f32 %v13633_v26, %v2641_v56 }
 0xed0   :  { %12438 = vmatmul.mubr.msk.f32.vlgmr.msra.gmra.mrb[28].mxu1 %vm1689_vm4, %v2642_v58 }
 0xed1   :  { %13233 = vmatpush3.bf16.xpose.msk.msra.mxu1 %vm14352_vm3, %v13231_v62  ;;  %12444 = vmatprep.mubr.msk.f32.mxu1 %vm14004_vm0, %v14005_v1 }
 0xed2   :  { %13241 = vmatprep.subr.bf16.mxu1 %v14003_v0 }
 0xed8   :  { %12445 = vmatmul.mubr.msk.f32.vlgmr.msra.gmra.mrb[30].mxu1 %vm1055_vm2, %v2717_v63 }
 0xed9   :  { %12465 = vmatprep.mubr.msk.f32.mxu1 %vm14004_vm0, %v14005_v1 }
 0xfa3   :  { %v14510_v2 = vpop.f32.mrb[28].mxu1 }
 0xfa4   :  { %v12439_v5 = vpop.f32.mrb[29].mxu1 }
 0xfab   :  { %v2794_v7 = vpop.f32.mrb[30].mxu1 }
 0xfac   :  { %v2795_v25 = vadd.f32 %v14488_v59, %v2794_v7  ;;  %v12446_v29 = vpop.f32.mrb[31].mxu1 }
 0xfae   :  { %v2798_v33 = vsel %vm1689_vm4, %v2795_v25, -inf }
 0xfaf   :  { %2799 = vmax.xlane.f32.xlu0 %v2798_v33 }
 0xfc5   :  { %13530 = vrot.lane.b32.xlu0 %v14454_v42, %s14007_s30 }
 0xfc9   :  { %2892 = vrot.lane.b32.xlu0 %v14460_v44, %s14006_s0 }
0x103c   :  { %v2800_v34 = vpop.xlane.xlu0 %2799 }
0x103d   :  { %v2801_v3 = vsub.f32 %v2795_v25, %v2800_v34 }
0x103f   :  { %v2802_v11 = vmul.f32 1.442695, %v2801_v3 }
0x1040   :  { %v13531_v20 = vpop.permute.xlu0 %13530 }
0x1041   :  { %13636 = vpow2.f32 %v2802_v11  ;;  %v13533_v40 = vunpack.i.h.bf16 %v13531_v20  ;;  %v13532_v13 = vunpack.i.l.bf16 %v13531_v20 }
0x1043   :  { %v13235_v39 = vpack.c.bf16 %v13533_v40, %v13532_v13 }
0x1044   :  { %v2893_v56 = vpop.permute.xlu0 %2892 }
0x1045   :  { %13236 = vmatpush3.bf16.msra.mxu0 %v13235_v39 }
0x1046   :  { %13237 = vmatprep.subr.bf16.mxu0 %v14003_v0 }
0x104b   :  { %v13637_v46 = vpop.eup %13636 }
0x104c   :  { %v2804_v48 = vsel %vm1689_vm4, %v13637_v46, 0.0 }
0x104d   :  { %2805 = vadd.xlane.f32.xlu1 %v2804_v48 }
0x105e   :  { %13535 = vrot.lane.b32.xlu1 %v14476_v36, %s14006_s0 }
0x10da   :  { %v2806_v26 = vpop.xlane.xlu1 %2805 }
0x10db   :  { %v2807_v49 = vmax.f32 %v2806_v26, 1e-30 }
0x10dd   :  { %13638 = vrcp.f32 %v2807_v49 }
0x10de   :  { %v13536_v31 = vpop.permute.xlu1 %13535 }
0x10df   :  { %v13538_v51 = vunpack.i.h.bf16 %v13536_v31  ;;  %v13537_v52 = vunpack.i.l.bf16 %v13536_v31 }
0x10e1   :  { %v13238_v55 = vpack.c.bf16 %v13538_v51, %v13537_v52 }
0x10e7   :  { %v13639_v50 = vpop.eup %13638 }
0x10e8   :  { %v2809_v37 = vmul.f32 %v13639_v50, %v14498_v53 }
0x10ea   :  { %v2810_v35 = vmul.f32 %v13637_v46, %v2809_v37  ;;  %v3320_v37 = vld [vmem:[#allocation10 + $0x68] sm:$0xff] }
0x10ec   :  { %12452 = vmatmul.mubr.msk.f32.vlgmr.msra.gmra.mrb[28].mxu0 %vm1689_vm4, %v2810_v35 }
0x10ed   :  { %13240 = vmatpush3.bf16.xpose.msk.msra.mxu0 %vm14352_vm3, %v13238_v55  ;;  %12458 = vmatprep.mubr.msk.f32.mxu0 %vm14004_vm0, %v14005_v1  ;;  %v3321_v55 = vld [vmem:[#allocation10 + $0x70] sm:$0xff] }
0x10ee   :  { %13248 = vmatprep.subr.bf16.mxu0 %v14003_v0 }
0x10f4   :  { %12459 = vmatmul.mubr.msk.f32.vlgmr.msra.gmra.mrb[30].mxu0 %vm1055_vm2, %v2893_v56  ;;  %v3322_v56 = vld [vmem:[#allocation10 + $0x78] sm:$0xff] }
0x10f5   :  { %12479 = vmatprep.mubr.msk.f32.mxu0 %vm14004_vm0, %v14005_v1 }
0x11bf   :  { %v14532_v58 = vpop.f32.mrb[28].mxu0 }
0x11c0   :  { %v12453_v62 = vpop.f32.mrb[29].mxu0 }
0x11c7   :  { %v2970_v63 = vpop.f32.mrb[30].mxu0 }
0x11c8   :  { %v2971_v5 = vadd.f32 %v14488_v59, %v2970_v63  ;;  %v12460_v7 = vpop.f32.mrb[31].mxu0  ;;  %v13261_v63 = vpack.c.bf16 %v3322_v56, %v3321_v55  ;;  %v3243_v55 = vld [vmem:[#allocation8 + $0x70] sm:$0xff]  ;;  %v3244_v56 = vld [vmem:[#allocation8 + $0x78] sm:$0xff] }
0x11ca   :  { %v2974_v25 = vsel %vm1689_vm4, %v2971_v5, -inf }
0x11cb   :  { %2975 = vmax.xlane.f32.xlu0 %v2974_v25 }
0x11e1   :  { %13540 = vrot.lane.b32.xlu0 %v14454_v42, %s14006_s0 }
0x11e5   :  { %3066 = vrot.lane.b32.xlu0 %v14460_v44, %s14008_s25 }
0x1258   :  { %v2976_v29 = vpop.xlane.xlu0 %2975 }
0x1259   :  { %v2977_v33 = vsub.f32 %v2971_v5, %v2976_v29  ;;  %v11481_v5 = vld [vmem:[#allocation5 + $0xa] ss:$0 sm:$0xff] }
0x125a   :  { %v896_v7 = vadd.f32 %v11481_v5, %v14277_v43 }
0x125b   :  { %v2978_v34 = vmul.f32 1.442695, %v2977_v33 }
0x125c   :  { %v13541_v3 = vpop.permute.xlu0 %13540 }
0x125d   :  { %13640 = vpow2.f32 %v2978_v34  ;;  %v13543_v11 = vunpack.i.h.bf16 %v13541_v3  ;;  %v13542_v20 = vunpack.i.l.bf16 %v13541_v3 }
0x125f   :  { %v13242_v40 = vpack.c.bf16 %v13543_v11, %v13542_v20 }
0x1260   :  { %v3067_v62 = vpop.permute.xlu0 %3066 }
0x1261   :  { %13243 = vmatpush3.bf16.msra.mxu1 %v13242_v40 }
0x1262   :  { %13244 = vmatprep.subr.bf16.mxu1 %v14003_v0 }
0x1267   :  { %v13641_v13 = vpop.eup %13640 }
0x1268   :  { %v2980_v39 = vsel %vm1689_vm4, %v13641_v13, 0.0 }
0x1269   :  { %2981 = vadd.xlane.f32.xlu1 %v2980_v39 }
0x127a   :  { %13545 = vrot.lane.b32.xlu1 %v14476_v36, %s14008_s25  ;;  %v3319_v36 = vld [vmem:[#allocation10 + $0x60] sm:$0xff] }
0x127b   :  { %v13258_v35 = vpack.c.bf16 %v3320_v37, %v3319_v36 }
0x12f6   :  { %v2982_v46 = vpop.xlane.xlu1 %2981 }
0x12f7   :  { %v2983_v44 = vmax.f32 %v2982_v46, 1e-30 }
0x12f9   :  { %13642 = vrcp.f32 %v2983_v44 }
0x12fa   :  { %v13546_v48 = vpop.permute.xlu1 %13545 }
0x12fb   :  { %v13548_v49 = vunpack.i.h.bf16 %v13546_v48  ;;  %v13547_v31 = vunpack.i.l.bf16 %v13546_v48 }
0x12fd   :  { %v13245_v52 = vpack.c.bf16 %v13548_v49, %v13547_v31 }
0x1303   :  { %v13643_v26 = vpop.eup %13642 }
0x1304   :  { %v2985_v50 = vmul.f32 %v13643_v26, %v14498_v53 }
0x1306   :  { %v2986_v51 = vmul.f32 %v13641_v13, %v2985_v50 }
0x1308   :  { %12466 = vmatmul.mubr.msk.f32.vlgmr.msra.gmra.mrb[32].mxu1 %vm1689_vm4, %v2986_v51  ;;  %v3241_v51 = vld [vmem:[#allocation8 + $0x60] sm:$0xff] }
0x1309   :  { %13247 = vmatpush3.bf16.xpose.msk.msra.mxu1 %vm14352_vm3, %v13245_v52  ;;  %12472 = vmatprep.mubr.msk.f32.mxu1 %vm14004_vm0, %v14005_v1 }
0x130a   :  { %13257 = vmatprep.subr.bf16.mxu1 %v14003_v0 }
0x1310   :  { %12473 = vmatmul.mubr.msk.f32.vlgmr.msra.gmra.mrb[34].mxu1 %vm1055_vm2, %v3067_v62  ;;  %v13255_v62 = vpack.c.bf16 %v3244_v56, %v3243_v55 }
0x1311   :  { %13259 = vmatpush3.bf16.msra.mxu1 %v13258_v35  ;;  %12501 = vmatprep.mubr.msk.f32.mxu1 %vm14004_vm0, %v14005_v1 }
0x1312   :  { %13260 = vmatprep.subr.bf16.mxu1 %v14003_v0 }
0x1315   :  { %13262 = vmatpush3.bf16.msra.mxu1 %v13261_v63  ;;  %v11477_v63 = vld [vmem:[#allocation5 + $0x8] ss:$0 sm:$0xff] }
0x1316   :  { %v730_v5 = vadd.f32 %v11477_v63, %v14273_v41  ;;  %v14600_v41 = vld [vmem:[%s15685_s8 + $0x38] sm:$0xff] }
0x1318   :  { %12502 = vmatmul.mubr.msk.f32.vlgmr.msra.gmra.mrb[36].mxu1 %vm140_vm1, %v896_v7 }
0x13db   :  { %v14557_v25 = vpop.f32.mrb[32].mxu1 }
0x13dc   :  { %v12467_v29 = vpop.f32.mrb[33].mxu1 }
0x13e3   :  { %v3144_v33 = vpop.f32.mrb[34].mxu1 }
0x13e4   :  { %v3145_v34 = vadd.f32 %v14488_v59, %v3144_v33  ;;  %v12474_v3 = vpop.f32.mrb[35].mxu1 }
0x13e6   :  { %v3148_v11 = vsel %vm1689_vm4, %v3145_v34, -inf }
0x13e7   :  { %3149 = vmax.xlane.f32.xlu0 %v3148_v11 }
0x13eb   :  { %v14561_v20 = vpop.f32.mrb[36].mxu1 }
0x13ec   :  { %v12503_v40 = vpop.f32.mrb[37].mxu1  ;;  %12509 = vmatprep.subr.mxu1 %v14561_v20 }
0x13ed   :  { %12510 = vmatpush3.msra.mxu1 %v14561_v20 }
0x13ee   :  { %12514 = vmatprep.subr.mxu1 %v14279_v45 }
0x13fd   :  { %13550 = vrot.lane.b32.xlu0 %v14454_v42, %s14008_s25  ;;  %v3242_v42 = vld [vmem:[#allocation8 + $0x68] sm:$0xff] }
0x13fe   :  { %v13252_v37 = vpack.c.bf16 %v3242_v42, %v3241_v51 }
0x1474   :  { %v3150_v43 = vpop.xlane.xlu0 %3149 }
0x1475   :  { %v3151_v13 = vsub.f32 %v3145_v34, %v3150_v43 }
0x1477   :  { %v3152_v39 = vmul.f32 1.442695, %v3151_v13 }
0x1478   :  { %v13551_v59 = vpop.permute.xlu0 %13550 }
0x1479   :  { %13644 = vpow2.f32 %v3152_v39  ;;  %v13553_v46 = vunpack.i.h.bf16 %v13551_v59  ;;  %v13552_v44 = vunpack.i.l.bf16 %v13551_v59 }
0x147b   :  { %v13249_v48 = vpack.c.bf16 %v13553_v46, %v13552_v44 }
0x147d   :  { %13250 = vmatpush3.bf16.msra.mxu0 %v13249_v48 }
0x147e   :  { %13251 = vmatprep.subr.bf16.mxu0 %v14003_v0 }
0x1483   :  { %v13645_v26 = vpop.eup %13644 }
0x1484   :  { %v3154_v49 = vsel %vm1689_vm4, %v13645_v26, 0.0 }
0x1485   :  { %3155 = vadd.xlane.f32.xlu1 %v3154_v49 }
0x1512   :  { %v3156_v31 = vpop.xlane.xlu1 %3155 }
0x1513   :  { %v3157_v50 = vmax.f32 %v3156_v31, 1e-30 }
0x1515   :  { %13646 = vrcp.f32 %v3157_v50 }
0x151f   :  { %v13647_v52 = vpop.eup %13646 }
0x1520   :  { %v3159_v36 = vmul.f32 %v13647_v52, %v14498_v53 }
0x1522   :  { %v3160_v35 = vmul.f32 %v13645_v26, %v3159_v36 }
0x1524   :  { %12480 = vmatmul.mubr.msk.f32.vlgmr.msra.gmra.mrb[32].mxu0 %vm1689_vm4, %v3160_v35  ;;  %v3402_v35 = vsel %vm1055_vm2, %v14600_v41, -inf }
0x1525   :  { %13253 = vmatpush3.bf16.msra.mxu0 %v13252_v37  ;;  %12490 = vmatprep.mubr.msk.f32.mxu0 %vm14004_vm0, %v14005_v1 }
0x1526   :  { %13254 = vmatprep.subr.bf16.mxu0 %v14003_v0 }
0x1529   :  { %13256 = vmatpush3.bf16.msra.mxu0 %v13255_v62 }
0x152c   :  { %12491 = vmatmul.mubr.msk.f32.vlgmr.msra.gmra.mrb[34].mxu0 %vm140_vm1, %v730_v5 }
0x152d   :  { %12506 = vmatprep.mubr.msk.f32.mxu0 %vm1055_vm2, %v14256_v38 }
0x15f7   :  { %v14579_v7 = vpop.f32.mrb[32].mxu0 }
0x15f8   :  { %v12481_v29 = vpop.f32.mrb[33].mxu0 }
0x15ff   :  { %v14581_v33 = vpop.f32.mrb[34].mxu0 }
0x1600   :  { %3675 = vrot.lane.b32.xlu1 %v14581_v33, %s14007_s30  ;;  %v12492_v34 = vpop.f32.mrb[35].mxu0  ;;  %12504 = vmatprep.subr.msk.mxu0 %vm1055_vm2, %v14581_v33 }
0x1601   :  { %12505 = vmatpush3.xpose.msk.msra.mxu0 %vm1055_vm2, %v14581_v33 }
0x1604   :  { %12507 = vmatmul.mubr.msk.f32.vlgmr.msra.gmra.mrb[36].mxu0 %vm1055_vm2, %v14246_v32  ;;  %v14605_v32 = vld [vmem:[%s15685_s8 + $0x30] sm:$0xff] }
0x1605   :  { %12521 = vmatprep.mubr.msk.f32.mxu0 %vm1055_vm2, %v14300_v61  ;;  %v14610_v61 = vld [vmem:[%s15685_s8 + $0x8] sm:$0xff] }
0x1606   :  { %v1147_v13 = vadd.f32 %v14338_v14, %v14610_v61 }
0x1608   :  { %v1153_v48 = vsel %vm1055_vm2, %v1147_v13, -inf }
0x1672   :  { %v3676_v38 = vpop.permute.xlu1 %3675 }
0x1673   :  { %12519 = vmatprep.subr.msk.mxu0 %vm1055_vm2, %v3676_v38 }
0x1674   :  { %12520 = vmatpush3.xpose.msk.msra.mxu0 %vm1055_vm2, %v3676_v38 }
0x1677   :  { %12522 = vmatmul.mubr.msk.f32.vlgmr.msra.gmra.mrb[38].mxu0 %vm1055_vm2, %v14307_v4  ;;  %v14615_v4 = vld [vmem:[%s15685_s8] sm:$0xff] }
0x1678   :  { %v1142_v59 = vadd.f32 %v14340_v15, %v14615_v4  ;;  %v1255_v44 = vadd.f32 %v14348_v21, %v14615_v4  ;;  %v1260_v21 = vadd.f32 %v14346_v18, %v14610_v61 }
0x167a   :  { %v1150_v26 = vsel %vm1055_vm2, %v1142_v59, -inf  ;;  %v1263_v14 = vsel %vm1055_vm2, %v1255_v44, -inf  ;;  %v1266_v52 = vsel %vm1055_vm2, %v1260_v21, -inf }
0x16d7   :  { %v12508_v3 = vpop.f32.mrb[36].mxu0 }
0x16d8   :  { %v14618_v11 = vadd.f32 %v12508_v3, %v14600_v41  ;;  %v3478_v40 = vpop.f32.mrb[37].mxu0 }
0x16d9   :  { %v3479_v43 = vadd.f32 %v14605_v32, %v3478_v40 }
0x16da   :  { %v3490_v39 = vsel %vm1055_vm2, %v14618_v11, -inf }
0x16db   :  { %3491 = vmax.xlane.f32.xlu1 %v3490_v39  ;;  %v3487_v46 = vsel %vm1055_vm2, %v3479_v43, -inf }
0x16dc   :  { %3488 = vmax.xlane.f32.xlu0 %v3487_v46 }
0x16df   :  { %1154 = vmax.xlane.f32.xlu1 %v1153_v48 }
0x16e0   :  { %1151 = vmax.xlane.f32.xlu0 %v1150_v26 }
0x16e3   :  { %1264 = vmax.xlane.f32.xlu1 %v1263_v14 }
0x174a   :  { %v12523_v49 = vpop.f32.mrb[38].mxu0 }
0x174b   :  { %v3745_v31 = vpop.f32.mrb[39].mxu0  ;;  %v3751_v50 = vadd.f32 %v12523_v49, %v14600_v41  ;;  %v1056_v49 = vsel %vm1055_vm2, %v14615_v4, -inf }
0x174c   :  { %v3746_v15 = vadd.f32 %v14605_v32, %v3745_v31 }
0x174d   :  { %v3757_v42 = vsel %vm1055_vm2, %v3751_v50, -inf }
0x174e   :  { %v3754_v51 = vsel %vm1055_vm2, %v3746_v15, -inf }
0x174f   :  { %3755 = vmax.xlane.f32.xlu0 %v3754_v51 }
0x1753   :  { %3758 = vmax.xlane.f32.xlu0 %v3757_v42 }
0x1757   :  { %1267 = vmax.xlane.f32.xlu0 %v1266_v52 }
0x175b   :  { %3403 = vmax.xlane.f32.xlu0 %v3402_v35 }
0x1768   :  { %v3492_v36 = vpop.xlane.xlu1 %3491 }
0x1769   :  { %v3489_v37 = vpop.xlane.xlu0 %3488  ;;  %v3494_v42 = vsub.f32 %v14618_v11, %v3492_v36 }
0x176a   :  { %v3493_v38 = vsub.f32 %v3479_v43, %v3489_v37 }
0x176b   :  { %v3497_v35 = vmul.f32 1.442695, %v3494_v42 }
0x176c   :  { %v1155_v55 = vpop.xlane.xlu1 %1154  ;;  %v3495_v39 = vmul.f32 1.442695, %v3493_v38  ;;  %v1059_v38 = vsel %vm1055_vm2, %v14610_v61, -inf }
0x176d   :  { %v1157_v56 = vsub.f32 %v1147_v13, %v1155_v55  ;;  %v1152_v62 = vpop.xlane.xlu0 %1151 }
0x176e   :  { %v1156_v63 = vsub.f32 %v1142_v59, %v1152_v62  ;;  %v3399_v59 = vsel %vm1055_vm2, %v14605_v32, -inf }
0x176f   :  { %v1160_v5 = vmul.f32 1.442695, %v1157_v56 }
0x1770   :  { %v1158_v29 = vmul.f32 1.442695, %v1156_v63  ;;  %v1265_v34 = vpop.xlane.xlu1 %1264 }
0x1771   :  { %v1269_v18 = vsub.f32 %v1255_v44, %v1265_v34 }
0x1772   :  { %13648 = vpow2.f32 %v1158_v29 }
0x1773   :  { %13650 = vpow2.f32 %v1160_v5  ;;  %v1271_v3 = vmul.f32 1.442695, %v1269_v18 }
0x1775   :  { %13652 = vpow2.f32 %v1271_v3 }
0x1776   :  { %13654 = vpow2.f32 %v3495_v39 }
0x177c   :  { %v14642_v40 = vpop.eup %13648 }
0x177d   :  { %v1162_v46 = vsel %vm1055_vm2, %v14642_v40, 0.0  ;;  %v14646_v48 = vpop.eup %13650 }
0x177e   :  { %1163 = vadd.xlane.f32.xlu1 %v1162_v46  ;;  %v1165_v13 = vsel %vm1055_vm2, %v14646_v48, 0.0 }
0x177f   :  { %v14652_v43 = vpop.eup %13652 }
0x1780   :  { %v1275_v44 = vsel %vm1055_vm2, %v14652_v43, 0.0  ;;  %v13655_v26 = vpop.eup %13654 }
0x1781   :  { %v3499_v14 = vsel %vm1055_vm2, %v13655_v26, 0.0 }
0x1782   :  { %1166 = vadd.xlane.f32.xlu1 %v1165_v13 }
0x1786   :  { %3400 = vmax.xlane.f32.xlu1 %v3399_v59 }
0x178a   :  { %1276 = vadd.xlane.f32.xlu1 %v1275_v44 }
0x178e   :  { %3500 = vadd.xlane.f32.xlu1 %v3499_v14 }
0x1792   :  { %1057 = vmax.xlane.f32.xlu1 %v1056_v49 }
0x17a3   :  { %3781 = vrot.lane.b32.xlu1 %v14561_v20, %s14007_s30 }
0x17a7   :  { %3866 = vrot.lane.b32.xlu1 %v14279_v45, %s14007_s30 }
0x17ab   :  { %4223 = vrot.lane.b32.xlu1 %v14581_v33, %s14008_s25 }
0x17dc   :  { %v3756_v31 = vpop.xlane.xlu0 %3755 }
0x17dd   :  { %v3760_v62 = vsub.f32 %v3746_v15, %v3756_v31 }
0x17df   :  { %v3762_v5 = vmul.f32 1.442695, %v3760_v62 }
0x17e0   :  { %v3759_v51 = vpop.xlane.xlu0 %3758 }
0x17e1   :  { %v3761_v55 = vsub.f32 %v3751_v50, %v3759_v51 }
0x17e3   :  { %v3764_v63 = vmul.f32 1.442695, %v3761_v55 }
0x17e4   :  { %v1268_v52 = vpop.xlane.xlu0 %1267 }
0x17e5   :  { %v1270_v37 = vsub.f32 %v1260_v21, %v1268_v52 }
0x17e7   :  { %v1273_v56 = vmul.f32 1.442695, %v1270_v37 }
0x17e9   :  { %13656 = vpow2.f32 %v1273_v56 }
0x17ea   :  { %13658 = vpow2.f32 %v3497_v35  ;;  %v3404_v35 = vpop.xlane.xlu0 %3403 }
0x17eb   :  { %13660 = vpow2.f32 %v3764_v63  ;;  %vm3406_vm9 = vcmp.gt.f32.partialorder %v3404_v35, -1e+29 }
0x17ec   :  { %13662 = vpow2.f32 %v3762_v5 }
0x17f3   :  { %v14666_v29 = vpop.eup %13656 }
0x17f4   :  { %v1278_v34 = vsel %vm1055_vm2, %v14666_v29, 0.0  ;;  %v13659_v18 = vpop.eup %13658 }
0x17f5   :  { %1279 = vadd.xlane.f32.xlu0 %v1278_v34  ;;  %v3502_v11 = vsel %vm1055_vm2, %v13659_v18, 0.0  ;;  %v14671_v21 = vpop.eup %13660 }
0x17f6   :  { %v3769_v50 = vsel %vm1055_vm2, %v14671_v21, 0.0  ;;  %v14675_v15 = vpop.eup %13662 }
0x17f7   :  { %v3766_v36 = vsel %vm1055_vm2, %v14675_v15, 0.0 }
0x17f9   :  { %3503 = vadd.xlane.f32.xlu0 %v3502_v11 }
0x17fd   :  { %3770 = vadd.xlane.f32.xlu0 %v3769_v50 }
0x1801   :  { %3767 = vadd.xlane.f32.xlu0 %v3766_v36 }
0x1805   :  { %1060 = vmax.xlane.f32.xlu0 %v1059_v38 }
0x180b   :  { %v1164_v3 = vpop.xlane.xlu1 %1163 }
0x180c   :  { %v1168_v55 = vmax.f32 %v1164_v3, 1e-30 }
0x180f   :  { %v1167_v39 = vpop.xlane.xlu1 %1166 }
0x1810   :  { %v1169_v5 = vmax.f32 %v1167_v39, 1e-30 }
0x1813   :  { %v3401_v46 = vpop.xlane.xlu1 %3400 }
0x1814   :  { %vm3405_vm7 = vcmp.gt.f32.partialorder %v3401_v46, -1e+29 }
0x1815   :  { %v14684_v31 = vsel %vm3405_vm7, 1.0, %v14005_v1 }
0x1817   :  { %v1277_v13 = vpop.xlane.xlu1 %1276 }
0x1818   :  { %v1281_v11 = vmax.f32 %v1277_v13, 1e-30 }
0x181b   :  { %v3501_v59 = vpop.xlane.xlu1 %3500  ;;  %3950 = vrot.lane.b32.xlu0 %v14581_v33, %s14006_s0 }
0x181c   :  { %v3505_v44 = vmax.f32 %v3501_v59, 1e-30  ;;  %v14692_v59 = vsel %vm3406_vm9, 1.0, %v14005_v1 }
0x181e   :  { %13664 = vrcp.f32 %v3505_v44 }
0x181f   :  { %v1058_v14 = vpop.xlane.xlu1 %1057  ;;  %13666 = vrcp.f32 %v1168_v55 }
0x1820   :  { %vm1062_vm8 = vcmp.gt.f32.partialorder %v1058_v14, -1e+29 }
0x1823   :  { %v3782_v49 = vpop.permute.xlu1 %3781 }
0x1824   :  { %12524 = vmatprep.subr.mxu0 %v3782_v49 }
0x1825   :  { %12525 = vmatpush3.msra.mxu0 %v3782_v49 }
0x1827   :  { %v3867_v51 = vpop.permute.xlu1 %3866 }
0x1828   :  { %v13665_v42 = vpop.eup %13664  ;;  %12529 = vmatprep.subr.mxu0 %v3867_v51 }
0x1829   :  { %v3508_v52 = vmul.f32 %v13665_v42, %v14684_v31  ;;  %v13667_v38 = vpop.eup %13666 }
0x182b   :  { %v3511_v37 = vmul.f32 %v13655_v26, %v3508_v52  ;;  %v14689_v26 = vsel %vm1062_vm8, 1.0, %v14005_v1 }
0x182c   :  { %v1171_v39 = vmul.f32 %v13667_v38, %v14689_v26  ;;  %v1373_v38 = vadd.f32 %v14342_v16, %v14610_v61 }
0x182d   :  { %12511 = vmatprep.mubr.msk.f32.mxu1 %vm1055_vm2, %v3511_v37 }
0x182e   :  { %v1174_v42 = vmul.f32 %v14642_v40, %v1171_v39 }
0x1882   :  { %v1280_v33 = vpop.xlane.xlu0 %1279 }
0x1883   :  { %v1282_v13 = vmax.f32 %v1280_v33, 1e-30 }
0x1886   :  { %v3504_v56 = vpop.xlane.xlu0 %3503 }
0x1887   :  { %v3506_v62 = vmax.f32 %v3504_v56, 1e-30 }
0x1889   :  { %13668 = vrcp.f32 %v3506_v62 }
0x188a   :  { %v3771_v63 = vpop.xlane.xlu0 %3770 }
0x188b   :  { %v3773_v34 = vmax.f32 %v3771_v63, 1e-30 }
0x188d   :  { %13670 = vrcp.f32 %v3773_v34 }
0x188e   :  { %v3768_v50 = vpop.xlane.xlu0 %3767  ;;  %13672 = vrcp.f32 %v1169_v5 }
0x188f   :  { %v3772_v36 = vmax.f32 %v3768_v50, 1e-30  ;;  %13674 = vrcp.f32 %v1281_v11 }
0x1891   :  { %13676 = vrcp.f32 %v3772_v36  ;;  %v4224_v36 = vpop.permute.xlu1 %4223 }
0x1892   :  { %v1061_v3 = vpop.xlane.xlu0 %1060  ;;  %13678 = vrcp.f32 %v1282_v13  ;;  %v1481_v13 = vadd.f32 %v14362_v28, %v14615_v4  ;;  %v1486_v28 = vadd.f32 %v14358_v27, %v14610_v61 }
0x1893   :  { %v13669_v46 = vpop.eup %13668  ;;  %vm1063_vm10 = vcmp.gt.f32.partialorder %v1061_v3, -1e+29 }
0x1894   :  { %v3510_v44 = vmul.f32 %v13669_v46, %v14692_v59  ;;  %v14697_v49 = vsel %vm1063_vm10, 1.0, %v14005_v1 }
0x1896   :  { %v3512_v14 = vmul.f32 %v13659_v18, %v3510_v44  ;;  %v3951_v35 = vpop.permute.xlu0 %3950  ;;  %v1379_v44 = vsel %vm1055_vm2, %v1373_v38, -inf }
0x1897   :  { %v13671_v52 = vpop.eup %13670 }
0x1898   :  { %12512 = vmatmul.mubr.msk.f32.vlgmr.msra.gmra.mrb[38].mxu1 %vm1055_vm2, %v3512_v14  ;;  %v13673_v37 = vpop.eup %13672  ;;  %v3777_v56 = vmul.f32 %v13671_v52, %v14692_v59  ;;  %v1489_v52 = vsel %vm1055_vm2, %v1481_v13, -inf }
0x1899   :  { %12515 = vmatpush3.msra.mxu1 %v14279_v45  ;;  %12516 = vmatprep.mubr.msk.f32.mxu1 %vm1055_vm2, %v1174_v42  ;;  %v13675_v33 = vpop.eup %13674  ;;  %v1173_v18 = vmul.f32 %v13673_v37, %v14697_v49 }
0x189a   :  { %12534 = vmatprep.subr.msk.mxu1 %vm1055_vm2, %v3951_v35  ;;  %v1284_v62 = vmul.f32 %v13675_v33, %v14689_v26  ;;  %v3779_v34 = vmul.f32 %v14671_v21, %v3777_v56  ;;  %v1492_v33 = vsel %vm1055_vm2, %v1486_v28, -inf }
0x189b   :  { %v13677_v55 = vpop.eup %13676  ;;  %v1175_v63 = vmul.f32 %v14646_v48, %v1173_v18 }
0x189c   :  { %v3775_v40 = vmul.f32 %v13677_v55, %v14684_v31  ;;  %v1287_v11 = vmul.f32 %v14652_v43, %v1284_v62  ;;  %v13679_v50 = vpop.eup %13678 }
0x189d   :  { %v1286_v48 = vmul.f32 %v13679_v50, %v14697_v49 }
0x189e   :  { %v3778_v5 = vmul.f32 %v14675_v15, %v3775_v40 }
0x189f   :  { %v1288_v21 = vmul.f32 %v14666_v29, %v1286_v48 }
0x18a0   :  { %12517 = vmatmul.mubr.msk.f32.vlgmr.msra.gmra.mrb[38].mxu1 %vm1055_vm2, %v1175_v63  ;;  %12526 = vmatprep.mubr.msk.f32.mxu0 %vm1055_vm2, %v3778_v5 }
0x18a1   :  { %12535 = vmatpush3.xpose.msk.msra.mxu1 %vm1055_vm2, %v3951_v35  ;;  %12527 = vmatmul.mubr.msk.f32.vlgmr.msra.gmra.mrb[40].mxu0 %vm1055_vm2, %v3779_v34 }
0x18a2   :  { %12530 = vmatpush3.msra.mxu0 %v3867_v51  ;;  %12536 = vmatprep.mubr.msk.f32.mxu1 %vm1055_vm2, %v14289_v57 }
0x18a3   :  { %12531 = vmatprep.mubr.msk.f32.mxu0 %vm1055_vm2, %v1287_v11  ;;  %12549 = vmatprep.subr.msk.mxu0 %vm1055_vm2, %v4224_v36 }
0x18a4   :  { %12537 = vmatmul.mubr.msk.f32.vlgmr.msra.gmra.mrb[40].mxu1 %vm1055_vm2, %v14283_v47 }
0x18a9   :  { %12532 = vmatmul.mubr.msk.f32.vlgmr.msra.gmra.mrb[40].mxu0 %vm1055_vm2, %v1288_v21 }
0x18aa   :  { %12550 = vmatpush3.xpose.msk.msra.mxu0 %vm1055_vm2, %v4224_v36  ;;  %12551 = vmatprep.mubr.msk.f32.mxu0 %vm1055_vm2, %v14312_v8  ;;  %v1368_v8 = vadd.f32 %v14344_v17, %v14615_v4 }
0x18ac   :  { %v1376_v16 = vsel %vm1055_vm2, %v1368_v8, -inf }
0x18ad   :  { %12552 = vmatmul.mubr.msk.f32.vlgmr.msra.gmra.mrb[42].mxu0 %vm1055_vm2, %v14322_v12 }
0x1973   :  { %v14730_v57 = vpop.f32.mrb[38].mxu1 }
0x1974   :  { %v14732_v43 = vpop.f32.mrb[39].mxu1 }
0x1977   :  { %v12538_v15 = vpop.f32.mrb[40].mxu1 }
0x1978   :  { %v4026_v51 = vadd.f32 %v12538_v15, %v14600_v41  ;;  %v4020_v47 = vpop.f32.mrb[41].mxu1 }
0x1979   :  { %v4021_v29 = vadd.f32 %v14605_v32, %v4020_v47 }
0x197a   :  { %v4032_v3 = vsel %vm1055_vm2, %v4026_v51, -inf }
0x197b   :  { %4033 = vmax.xlane.f32.xlu1 %v4032_v3  ;;  %v4029_v12 = vsel %vm1055_vm2, %v4021_v29, -inf }
0x197c   :  { %v14742_v46 = vpop.f32.mrb[40].mxu0  ;;  %4030 = vmax.xlane.f32.xlu0 %v4029_v12 }
0x197d   :  { %v14744_v39 = vpop.f32.mrb[41].mxu0 }
0x197f   :  { %1380 = vmax.xlane.f32.xlu1 %v1379_v44 }
0x1980   :  { %v12553_v14 = vpop.f32.mrb[42].mxu0  ;;  %1377 = vmax.xlane.f32.xlu0 %v1376_v16 }
0x1981   :  { %v4293_v42 = vpop.f32.mrb[43].mxu0  ;;  %v4299_v37 = vadd.f32 %v12553_v14, %v14600_v41 }
0x1982   :  { %v4294_v17 = vadd.f32 %v14605_v32, %v4293_v42 }
0x1983   :  { %1490 = vmax.xlane.f32.xlu1 %v1489_v52  ;;  %v4305_v4 = vsel %vm1055_vm2, %v4299_v37, -inf }
0x1984   :  { %v4302_v35 = vsel %vm1055_vm2, %v4294_v17, -inf }
0x1985   :  { %4303 = vmax.xlane.f32.xlu0 %v4302_v35 }
0x1989   :  { %4306 = vmax.xlane.f32.xlu0 %v4305_v4 }
0x198d   :  { %1493 = vmax.xlane.f32.xlu0 %v1492_v33 }
0x1a08   :  { %v4034_v18 = vpop.xlane.xlu1 %4033 }
0x1a09   :  { %v4031_v55 = vpop.xlane.xlu0 %4030  ;;  %v4036_v48 = vsub.f32 %v4026_v51, %v4034_v18 }
0x1a0a   :  { %v4035_v50 = vsub.f32 %v4021_v29, %v4031_v55 }
0x1a0c   :  { %v1381_v32 = vpop.xlane.xlu1 %1380  ;;  %v4037_v36 = vmul.f32 1.442695, %v4035_v50 }
0x1a0d   :  { %v1383_v56 = vsub.f32 %v1373_v38, %v1381_v32  ;;  %v1378_v40 = vpop.xlane.xlu0 %1377  ;;  %v4039_v38 = vmul.f32 1.442695, %v4036_v48 }
0x1a0e   :  { %v1382_v62 = vsub.f32 %v1368_v8, %v1378_v40  ;;  %v14009_v40 = vmov 0  }
0x1a0f   :  { %v1386_v63 = vmul.f32 1.442695, %v1383_v56  ;;  %v4804_v56 = vld [vmem:[%s15682_s5] sm:$0x1]  ;;  %13555 = vset.pattern.permute.xlu1 %v14009_v40  ;;  %13554 = vset.pattern.permute.xlu0 %v14009_v40 }
0x1a10   :  { %v1384_v41 = vmul.f32 1.442695, %v1382_v62  ;;  %v1491_v5 = vpop.xlane.xlu1 %1490  ;;  %v4815_v62 = vsub.f32 1.0, %v4804_v56 }
0x1a11   :  { %v1495_v34 = vsub.f32 %v1481_v13, %v1491_v5 }
0x1a12   :  { %13680 = vpow2.f32 %v1384_v41  ;;  %v4304_v11 = vpop.xlane.xlu0 %4303  ;;  %v4820_v41 = vrot.slane %v4815_v62, %v14171_v10 }
0x1a13   :  { %13682 = vpow2.f32 %v1386_v63  ;;  %v1497_v27 = vmul.f32 1.442695, %v1495_v34  ;;  %v4308_v29 = vsub.f32 %v4294_v17, %v4304_v11  ;;  %v4809_v63 = vrot.slane %v4804_v56, %v14171_v10 }
0x1a15   :  { %13684 = vpow2.f32 %v1497_v27  ;;  %v4310_v14 = vmul.f32 1.442695, %v4308_v29 }
0x1a16   :  { %v4307_v61 = vpop.xlane.xlu0 %4306  ;;  %13686 = vpow2.f32 %v4037_v36 }
0x1a17   :  { %v4309_v3 = vsub.f32 %v4299_v37, %v4307_v61 }
0x1a19   :  { %v4312_v44 = vmul.f32 1.442695, %v4309_v3 }
0x1a1a   :  { %v1494_v21 = vpop.xlane.xlu0 %1493 }
0x1a1b   :  { %v1496_v15 = vsub.f32 %v1486_v28, %v1494_v21 }
0x1a1c   :  { %v14758_v47 = vpop.eup %13680 }
0x1a1d   :  { %v1499_v8 = vmul.f32 1.442695, %v1496_v15  ;;  %v1388_v12 = vsel %vm1055_vm2, %v14758_v47, 0.0  ;;  %v14762_v13 = vpop.eup %13682 }
0x1a1e   :  { %1389 = vadd.xlane.f32.xlu1 %v1388_v12  ;;  %v1391_v51 = vsel %vm1055_vm2, %v14762_v13, 0.0 }
0x1a1f   :  { %13688 = vpow2.f32 %v1499_v8  ;;  %v14766_v16 = vpop.eup %13684 }
0x1a20   :  { %13690 = vpow2.f32 %v4039_v38  ;;  %v1501_v42 = vsel %vm1055_vm2, %v14766_v16, 0.0  ;;  %v14770_v52 = vpop.eup %13686 }
0x1a21   :  { %13692 = vpow2.f32 %v4312_v44  ;;  %v4041_v17 = vsel %vm1055_vm2, %v14770_v52, 0.0 }
0x1a22   :  { %1392 = vadd.xlane.f32.xlu1 %v1391_v51  ;;  %13694 = vpow2.f32 %v4310_v14 }
0x1a26   :  { %1502 = vadd.xlane.f32.xlu1 %v1501_v42 }
0x1a29   :  { %v14772_v37 = vpop.eup %13688 }
0x1a2a   :  { %4042 = vadd.xlane.f32.xlu1 %v4041_v17  ;;  %v1504_v35 = vsel %vm1055_vm2, %v14772_v37, 0.0  ;;  %v14778_v28 = vpop.eup %13690 }
0x1a2b   :  { %1505 = vadd.xlane.f32.xlu0 %v1504_v35  ;;  %v4044_v4 = vsel %vm1055_vm2, %v14778_v28, 0.0  ;;  %v14782_v33 = vpop.eup %13692 }
0x1a2c   :  { %v4317_v18 = vsel %vm1055_vm2, %v14782_v33, 0.0  ;;  %v14786_v55 = vpop.eup %13694 }
0x1a2d   :  { %v4314_v32 = vsel %vm1055_vm2, %v14786_v55, 0.0 }
0x1a2f   :  { %4045 = vadd.xlane.f32.xlu0 %v4044_v4 }
0x1a33   :  { %4318 = vadd.xlane.f32.xlu0 %v4317_v18 }
0x1a37   :  { %4315 = vadd.xlane.f32.xlu0 %v4314_v32 }
0x1a3b   :  { %4055 = vrot.lane.b32.xlu1 %v14561_v20, %s14006_s0 }
0x1a3f   :  { %4328 = vrot.lane.b32.xlu1 %v14561_v20, %s14008_s25 }
0x1a43   :  { %4412 = vrot.lane.b32.xlu1 %v14279_v45, %s14008_s25 }
0x1a47   :  { %4822 = vperm.xlu1 %13555, %v4820_v41  }
0x1a4d   :  { %4139 = vrot.lane.b32.xlu0 %v14279_v45, %s14006_s0 }
0x1a51   :  { %4811 = vperm.xlu0 %13554, %v4809_v63  }
0x1aab   :  { %v1390_v20 = vpop.xlane.xlu1 %1389 }
0x1aac   :  { %v1394_v50 = vmax.f32 %v1390_v20, 1e-30 }
0x1aaf   :  { %v1393_v5 = vpop.xlane.xlu1 %1392 }
0x1ab0   :  { %v1395_v21 = vmax.f32 %v1393_v5, 1e-30 }
0x1ab3   :  { %v1503_v34 = vpop.xlane.xlu1 %1502 }
0x1ab4   :  { %v1507_v3 = vmax.f32 %v1503_v34, 1e-30 }
0x1ab7   :  { %v4043_v11 = vpop.xlane.xlu1 %4042 }
0x1ab8   :  { %v4047_v45 = vmax.f32 %v4043_v11, 1e-30  ;;  %v1506_v27 = vpop.xlane.xlu0 %1505 }
0x1ab9   :  { %v1508_v35 = vmax.f32 %v1506_v27, 1e-30 }
0x1aba   :  { %13696 = vrcp.f32 %v4047_v45  ;;  %v4498_v45 = vld [vmem:[#allocation2 + $0x68] sm:$0xff] }
0x1abb   :  { %v4056_v61 = vpop.permute.xlu1 %4055  ;;  %13698 = vrcp.f32 %v1394_v50 }
0x1abc   :  { %12539 = vmatprep.subr.mxu1 %v4056_v61  ;;  %v4046_v36 = vpop.xlane.xlu0 %4045 }
0x1abd   :  { %v4048_v48 = vmax.f32 %v4046_v36, 1e-30  ;;  %12540 = vmatpush3.msra.mxu1 %v4056_v61 }
0x1abf   :  { %13700 = vrcp.f32 %v4048_v48  ;;  %v4329_v15 = vpop.permute.xlu1 %4328  ;;  %v4497_v48 = vld [vmem:[#allocation2 + $0x60] sm:$0xff] }
0x1ac0   :  { %12554 = vmatprep.subr.mxu0 %v4329_v15  ;;  %v4319_v38 = vpop.xlane.xlu0 %4318  ;;  %13702 = vrcp.f32 %v1395_v21  ;;  %v4859_v21 = vld [vmem:[#allocation2 + $0xe8] sm:$0xff] }
0x1ac1   :  { %v4321_v8 = vmax.f32 %v4319_v38, 1e-30  ;;  %12555 = vmatpush3.msra.mxu0 %v4329_v15 }
0x1ac3   :  { %v4413_v12 = vpop.permute.xlu1 %4412  ;;  %13704 = vrcp.f32 %v4321_v8 }
0x1ac4   :  { %v13697_v29 = vpop.eup %13696  ;;  %12559 = vmatprep.subr.mxu0 %v4413_v12  ;;  %v4316_v44 = vpop.xlane.xlu0 %4315  ;;  %13706 = vrcp.f32 %v1507_v3 }
0x1ac5   :  { %v4320_v51 = vmax.f32 %v4316_v44, 1e-30  ;;  %v4050_v14 = vmul.f32 %v13697_v29, %v14684_v31  ;;  %v13699_v42 = vpop.eup %13698 }
0x1ac6   :  { %v1397_v32 = vmul.f32 %v13699_v42, %v14689_v26  ;;  %v11575_v42 = vld [vmem:[#allocation5 + $0x3] ss:$0 sm:$0xff] }
0x1ac7   :  { %13708 = vrcp.f32 %v4320_v51  ;;  %v4053_v17 = vmul.f32 %v14770_v52, %v4050_v14  ;;  %v4823_v14 = vpop.permute.xlu1 %4822 }
0x1ac8   :  { %v4140_v4 = vpop.permute.xlu0 %4139  ;;  %13710 = vrcp.f32 %v1508_v35  ;;  %v1400_v63 = vmul.f32 %v14758_v47, %v1397_v32  ;;  %v4825_v32 = vmul.f32 %v4823_v14, %v14182_v23 }
0x1ac9   :  { %v13701_v18 = vpop.eup %13700  ;;  %12541 = vmatprep.mubr.msk.f32.mxu1 %vm1055_vm2, %v4053_v17  ;;  %12544 = vmatprep.subr.mxu1 %v4140_v4 }
0x1aca   :  { %v4052_v56 = vmul.f32 %v13701_v18, %v14692_v59  ;;  %v13703_v62 = vpop.eup %13702 }
0x1acb   :  { %v1399_v20 = vmul.f32 %v13703_v62, %v14697_v49 }
0x1acc   :  { %v4054_v40 = vmul.f32 %v14778_v28, %v4052_v56 }
0x1acd   :  { %v13705_v41 = vpop.eup %13704  ;;  %v1401_v47 = vmul.f32 %v14762_v13, %v1399_v20 }
0x1ace   :  { %12542 = vmatmul.mubr.msk.f32.vlgmr.msra.gmra.mrb[42].mxu1 %vm1055_vm2, %v4054_v40  ;;  %v13707_v52 = vpop.eup %13706  ;;  %v4325_v34 = vmul.f32 %v13705_v41, %v14692_v59 }
0x1acf   :  { %12545 = vmatpush3.msra.mxu1 %v4140_v4  ;;  %12546 = vmatprep.mubr.msk.f32.mxu1 %vm1055_vm2, %v1400_v63  ;;  %v1510_v28 = vmul.f32 %v13707_v52, %v14689_v26 }
0x1ad0   :  { %12564 = vmatprep.subr.mxu1 %v14005_v1  ;;  %v4327_v27 = vmul.f32 %v14782_v33, %v4325_v34  ;;  %v4812_v18 = vpop.permute.xlu0 %4811 }
0x1ad1   :  { %v13709_v5 = vpop.eup %13708  ;;  %v1513_v36 = vmul.f32 %v14766_v16, %v1510_v28  ;;  %v4500_v16 = vld [vmem:[#allocation2 + $0x78] sm:$0xff] }
0x1ad2   :  { %v4323_v11 = vmul.f32 %v13709_v5, %v14684_v31  ;;  %v13711_v61 = vpop.eup %13710 }
0x1ad3   :  { %v1512_v13 = vmul.f32 %v13711_v61, %v14697_v49  ;;  %v11596_v61 = vld [vmem:[%s15682_s5 + $0x2] sm:$0x1] }
0x1ad4   :  { %v4326_v50 = vmul.f32 %v14786_v55, %v4323_v11  ;;  %v4499_v55 = vld [vmem:[#allocation2 + $0x70] sm:$0xff] }
0x1ad5   :  { %v1514_v33 = vmul.f32 %v14772_v37, %v1512_v13  ;;  %v5275_v37 = vld [vmem:[#allocation2 + $0x160] sm:$0xff] }
0x1ad6   :  { %12547 = vmatmul.mubr.msk.f32.vlgmr.msra.gmra.mrb[42].mxu1 %vm1055_vm2, %v1401_v47  ;;  %12556 = vmatprep.mubr.msk.f32.mxu0 %vm1055_vm2, %v4326_v50 }
0x1ad7   :  { %12557 = vmatmul.mubr.msk.f32.vlgmr.msra.gmra.mrb[44].mxu0 %vm1055_vm2, %v4327_v27  ;;  %12565 = vmatpush3.msra.mxu1 %v4498_v45  ;;  %v11587_v45 = vld [vmem:[%s15682_s5 + $0x1] sm:$0x1] }
0x1ad8   :  { %12560 = vmatpush3.msra.mxu0 %v4413_v12  ;;  %12561 = vmatprep.mubr.msk.f32.mxu0 %vm1055_vm2, %v1513_v36  ;;  %v5215_v23 = vsub.f32 1.0, %v11587_v45  ;;  %v5588_v36 = vrot.slane %v11596_v61, %v14171_v10 }
0x1ad9   :  { %12566 = vmatprep.mubr.msk.f32.mxu1 %vm14004_vm0, %v14005_v1  ;;  %12569 = vmatprep.subr.mxu1 %v14005_v1 }
0x1ada   :  { %12567 = vmatmul.mubr.msk.f32.vlgmr.msra.gmra.mrb[44].mxu1 %vm1055_vm2, %v14424_v6  ;;  %12574 = vmatprep.subr.mxu0 %v14005_v1  ;;  %v5276_v6 = vld [vmem:[#allocation2 + $0x168] sm:$0xff]  ;;  %v5220_v27 = vrot.slane %v5215_v23, %v14171_v10 }
0x1adb   :  { %12570 = vmatpush3.msra.mxu1 %v4497_v48  ;;  %12571 = vmatprep.mubr.msk.f32.mxu1 %vm14004_vm0, %v14005_v1 }
0x1adc   :  { %12579 = vmatprep.subr.mxu1 %v14005_v1 }
0x1ade   :  { %12572 = vmatmul.mubr.msk.f32.vlgmr.msra.gmra.mrb[46].mxu1 %vm1055_vm2, %v14402_v19  ;;  %v4858_v19 = vld [vmem:[#allocation2 + $0xe0] sm:$0xff] }
0x1adf   :  { %12562 = vmatmul.mubr.msk.f32.vlgmr.msra.gmra.mrb[44].mxu0 %vm1055_vm2, %v1514_v33  ;;  %12580 = vmatpush3.msra.mxu1 %v4500_v16 }
0x1ae0   :  { %12575 = vmatpush3.msra.mxu0 %v4499_v55  ;;  %12581 = vmatprep.mubr.msk.f32.mxu1 %vm14004_vm0, %v14005_v1 }
0x1ae1   :  { %12576 = vmatprep.mubr.msk.f32.mxu0 %vm14004_vm0, %v14005_v1  ;;  %12604 = vmatprep.subr.mxu1 %v14005_v1 }
0x1ae2   :  { %12582 = vmatmul.mubr.msk.f32.vlgmr.msra.gmra.mrb[48].mxu1 %vm1055_vm2, %v14474_v9  ;;  %12584 = vmatprep.subr.mxu0 %v4859_v21  ;;  %v5278_v9 = vld [vmem:[#allocation2 + $0x178] sm:$0xff] }
0x1ae3   :  { %12577 = vmatmul.mubr.msk.f32.vlgmr.msra.gmra.mrb[46].mxu0 %vm1055_vm2, %v14450_v22  ;;  %12605 = vmatpush3.msra.mxu1 %v5276_v6  ;;  %v5277_v22 = vld [vmem:[#allocation2 + $0x170] sm:$0xff]  ;;  %v5594_v6 = vsub.f32 1.0, %v11596_v61 }
0x1ae4   :  { %12586 = vmatprep.mubr.msk.f32.mxu0 %vm1055_vm2, %v14744_v39  ;;  %12606 = vmatprep.mubr.msk.f32.mxu1 %vm14004_vm0, %v14005_v1 }
0x1ae5   :  { %12585 = vmatpush3.msra.mxu0 %v4859_v21  ;;  %12609 = vmatprep.subr.mxu1 %v14005_v1  ;;  %v5208_v21 = vrot.slane %v11587_v45, %v14171_v10 }
0x1ae6   :  { %12607 = vmatmul.mubr.msk.f32.vlgmr.msra.gmra.mrb[50].mxu1 %vm1055_vm2, %v14532_v58  ;;  %12589 = vmatprep.subr.mxu0 %v4858_v19  ;;  %v4861_v58 = vld [vmem:[#allocation2 + $0xf8] sm:$0xff] }
0x1ae7   :  { %12587 = vmatmul.mubr.msk.f32.vlgmr.msra.gmra.mrb[48].mxu0 %vm1055_vm2, %v14742_v46  ;;  %12610 = vmatpush3.msra.mxu1 %v5275_v37  ;;  %v5638_v37 = vld [vmem:[#allocation2 + $0x180] sm:$0xff] }
0x1ae8   :  { %12591 = vmatprep.mubr.msk.f32.mxu0 %vm1055_vm2, %v14732_v43  ;;  %12611 = vmatprep.mubr.msk.f32.mxu1 %vm14004_vm0, %v14005_v1 }
0x1ae9   :  { %12614 = vmatprep.subr.mxu1 %v14005_v1  ;;  %12590 = vmatpush3.msra.mxu0 %v4858_v19  ;;  %v5599_v19 = vrot.slane %v5594_v6, %v14171_v10 }
0x1aea   :  { %12612 = vmatmul.mubr.msk.f32.vlgmr.msra.gmra.mrb[52].mxu1 %vm1055_vm2, %v14510_v2  ;;  %v4860_v2 = vld [vmem:[#allocation2 + $0xf0] sm:$0xff] }
0x1aeb   :  { %12615 = vmatpush3.msra.mxu1 %v5277_v22  ;;  %12616 = vmatprep.mubr.msk.f32.mxu1 %vm14004_vm0, %v14005_v1  ;;  %v5639_v22 = vld [vmem:[#allocation2 + $0x188] sm:$0xff] }
0x1aec   :  { %12619 = vmatprep.subr.mxu1 %v14005_v1  ;;  %12594 = vmatprep.subr.mxu0 %v4860_v2 }
0x1aee   :  { %12617 = vmatmul.mubr.msk.f32.vlgmr.msra.gmra.mrb[54].mxu1 %vm1055_vm2, %v14557_v25 }
0x1aef   :  { %12592 = vmatmul.mubr.msk.f32.vlgmr.msra.gmra.mrb[48].mxu0 %vm1055_vm2, %v14730_v57  ;;  %12620 = vmatpush3.msra.mxu1 %v5278_v9  ;;  %v13264_v9 = vpack.c.bf16 %v5639_v22, %v5638_v37 }
0x1af0   :  { %12621 = vmatprep.mubr.msk.f32.mxu1 %vm14004_vm0, %v14005_v1  ;;  %13269 = vmatprep.subr.bf16.mxu1 %v14003_v0 }
0x1af1   :  { %12595 = vmatpush3.msra.mxu0 %v4860_v2  ;;  %v5724_v2 = vld [vmem:[#allocation2 + $0x1a0] sm:$0xff] }
0x1af2   :  { %12622 = vmatmul.mubr.msk.f32.vlgmr.msra.gmra.mrb[56].mxu1 %vm1055_vm2, %v14579_v7  ;;  %12599 = vmatprep.subr.mxu0 %v4861_v58 }
0x1af3   :  { %12643 = vmatprep.mubr.msk.f32.mxu1 %vm14004_vm0, %v14005_v1 }
0x1ba9   :  { %v12548_v25 = vpop.f32.mrb[42].mxu1 }
0x1baa   :  { %v4214_v43 = vpop.f32.mrb[43].mxu1 }
0x1bab   :  { %12596 = vmatprep.mubr.msk.f32.mxu0 %vm1055_vm2, %v4214_v43  ;;  %v5640_v43 = vld [vmem:[#allocation2 + $0x190] sm:$0xff] }
0x1bac   :  { %12597 = vmatmul.mubr.msk.f32.vlgmr.msra.gmra.mrb[48].mxu0 %vm1055_vm2, %v12548_v25 }
0x1bad   :  { %v4570_v57 = vpop.f32.mrb[44].mxu1  ;;  %12600 = vmatpush3.msra.mxu0 %v4861_v58  ;;  %v5725_v58 = vld [vmem:[#allocation2 + $0x1a8] sm:$0xff] }
0x1bae   :  { %v12568_v46 = vpop.f32.mrb[45].mxu1  ;;  %13263 = vmatprep.subr.bf16.mxu0 %v14003_v0  ;;  %v13270_v25 = vpack.c.bf16 %v5725_v58, %v5724_v2 }
0x1bb0   :  { %13271 = vmatpush3.bf16.msra.mxu1 %v13270_v25 }
0x1bb1   :  { %v4643_v7 = vpop.f32.mrb[46].mxu1  ;;  %13272 = vmatprep.subr.bf16.mxu1 %v14003_v0 }
0x1bb2   :  { %v4644_v39 = vadd.f32 %v4643_v7, %v4570_v57  ;;  %v12563_v15 = vpop.f32.mrb[44].mxu0  ;;  %v12573_v38 = vpop.f32.mrb[47].mxu1  ;;  %v5641_v57 = vld [vmem:[#allocation2 + $0x198] sm:$0xff]  ;;  %v5726_v7 = vld [vmem:[#allocation2 + $0x1b0] sm:$0xff] }
0x1bb3   :  { %v4487_v3 = vpop.f32.mrb[45].mxu0  ;;  %v13267_v46 = vpack.c.bf16 %v5641_v57, %v5640_v43 }
0x1bb4   :  { %12601 = vmatprep.mubr.msk.f32.mxu0 %vm1055_vm2, %v4487_v3 }
0x1bb5   :  { %v4790_v8 = vpop.f32.mrb[48].mxu1  ;;  %12602 = vmatmul.mubr.msk.f32.vlgmr.msra.gmra.mrb[48].mxu0 %vm1055_vm2, %v12563_v15 }
0x1bb6   :  { %v4716_v12 = vpop.f32.mrb[46].mxu0  ;;  %v12583_v29 = vpop.f32.mrb[49].mxu1  ;;  %12632 = vmatprep.mubr.msk.f32.mxu0 %vm14004_vm0, %v14005_v1  ;;  %13265 = vmatpush3.bf16.msra.mxu0 %v13264_v9 }
0x1bb7   :  { %v4720_v44 = vadd.f32 %v4716_v12, %v4644_v39  ;;  %v12578_v51 = vpop.f32.mrb[47].mxu0  ;;  %13266 = vmatprep.subr.bf16.mxu0 %v14003_v0  ;;  %v5727_v39 = vld [vmem:[#allocation2 + $0x1b8] sm:$0xff] }
0x1bb8   :  { %v13273_v15 = vpack.c.bf16 %v5727_v39, %v5726_v7 }
0x1bb9   :  { %v4794_v17 = vadd.f32 %v4790_v8, %v4720_v44  ;;  %v5348_v35 = vpop.f32.mrb[50].mxu1 }
0x1bba   :  { %v12608_v4 = vpop.f32.mrb[51].mxu1  ;;  %13268 = vmatpush3.bf16.msra.mxu0 %v13267_v46  ;;  %13274 = vmatpush3.bf16.msra.mxu1 %v13273_v15 }
0x1bbb   :  { %v4803_v56 = vadd.f32 %v11575_v42, %v4794_v17  ;;  %13275 = vmatprep.subr.bf16.mxu0 %v14003_v0  ;;  %v11586_v42 = vld [vmem:[#allocation5 + $0x7] ss:$0 sm:$0xff]  ;;  %v11595_v4 = vld [vmem:[#allocation5 + $0xb] ss:$0 sm:$0xff] }
0x1bbd   :  { %v4814_v40 = vmul.f32 %v4812_v18, %v4803_v56  ;;  %v5421_v62 = vpop.f32.mrb[52].mxu1 }
0x1bbe   :  { %v5422_v63 = vadd.f32 %v5421_v62, %v5348_v35  ;;  %v12613_v41 = vpop.f32.mrb[53].mxu1 }
0x1bbf   :  { %v4826_v52 = vadd.f32 %v4825_v32, %v4814_v40 }
0x1bc1   :  { %v5494_v20 = vpop.f32.mrb[54].mxu1  ;;  %v4827_v5 = vsel %vm140_vm1, %v4826_v52, 0.0 }
0x1bc2   :  { %v5498_v34 = vadd.f32 %v5494_v20, %v5422_v63  ;;  %v12618_v11 = vpop.f32.mrb[55].mxu1  ;;  %4828 = vadd.xlane.f32.xlu1 %v4827_v5 }
0x1bc5   :  { %v5568_v28 = vpop.f32.mrb[56].mxu1 }
0x1bc6   :  { %v5572_v47 = vadd.f32 %v5568_v28, %v5498_v34  ;;  %v12623_v50 = vpop.f32.mrb[57].mxu1 }
0x1bc8   :  { %v5581_v63 = vadd.f32 %v11595_v4, %v5572_v47  ;;  %v5807_v47 = vld [vmem:[#allocation2 + $0x1c0] sm:$0xff] }
0x1bd3   :  { %5222 = vperm.xlu1 %13555, %v5220_v27   ;;  %v5808_v27 = vld [vmem:[#allocation2 + $0x1c8] sm:$0xff] }
0x1bd7   :  { %5590 = vperm.xlu1 %13555, %v5588_v36   ;;  %v11577_v36 = vld [vmem:[#allocation7] ss:$0 sm:$0xff] }
0x1c4f   :  { %v4829_v48 = vpop.xlane.xlu1 %4828 }
0x1c50   :  { %v4831_v13 = vmul.f32 0.03125, %v4829_v48  ;;  %v13276_v48 = vpack.c.bf16 %v5808_v27, %v5807_v47 }
0x1c52   :  { %v4832_v16 = vsub.f32 %v4826_v52, %v4831_v13 }
0x1c53   :  { %v5223_v14 = vpop.permute.xlu1 %5222 }
0x1c54   :  { %v4833_v33 = vmul.f32 %v4832_v16, %v4832_v16  ;;  %v5225_v32 = vmul.f32 %v5223_v14, %v14187_v30  ;;  %v11576_v30 = vld [vmem:[%s15680_s3] ss:$0 sm:$0xff]  ;;  %v5893_v14 = vld [vmem:[#allocation2 + $0x218] sm:$0xff] }
0x1c56   :  { %v4834_v55 = vsel %vm140_vm1, %v4833_v33, 0.0  ;;  %v5809_v33 = vld [vmem:[#allocation2 + $0x1d0] sm:$0xff] }
0x1c57   :  { %4835 = vadd.xlane.f32.xlu0 %v4834_v55  ;;  %v5591_v62 = vpop.permute.xlu1 %5590  ;;  %v5810_v55 = vld [vmem:[#allocation2 + $0x1d8] sm:$0xff] }
0x1c58   :  { %v5593_v5 = vmul.f32 %v5591_v62, %v5581_v63 }
0x1c6d   :  { %5210 = vperm.xlu0 %13554, %v5208_v21  }
0x1c71   :  { %5601 = vperm.xlu0 %13554, %v5599_v19  }
0x1c88   :  { %v12603_v38 = vpop.f32.mrb[48].mxu0 }
0x1c89   :  { %v5179_v3 = vpop.f32.mrb[49].mxu0  ;;  %v5191_v29 = vmul.f32 0.5, %v12603_v38  ;;  %v5890_v38 = vld [vmem:[#allocation2 + $0x200] sm:$0xff] }
0x1c8a   :  { %v5190_v44 = vmul.f32 0.5, %v5179_v3  ;;  %v5891_v3 = vld [vmem:[#allocation2 + $0x208] sm:$0xff] }
0x1c8b   :  { %v5201_v17 = vadd.f32 %v11586_v42, %v5191_v29  ;;  %v5985_v29 = vld [vmem:[#allocation2 + $0x228] sm:$0xff] }
0x1c8c   :  { %v5200_v35 = vadd.f32 %v11586_v42, %v5190_v44  ;;  %v5986_v42 = vld [vmem:[#allocation2 + $0x230] sm:$0xff] }
0x1ce4   :  { %v4836_v8 = vpop.xlane.xlu0 %4835 }
0x1ce5   :  { %v4837_v12 = vmul.f32 0.03125, %v4836_v8  ;;  %v5984_v8 = vld [vmem:[#allocation2 + $0x220] sm:$0xff] }
0x1ce6   :  { %v13289_v44 = vpack.c.bf16 %v5985_v29, %v5984_v8  ;;  %v6329_v8 = vld [vmem:[#allocation2 + $0x2c0] sm:$0xff]  ;;  %v11599_v29 = vld [vmem:[#allocation7 + $0x2] ss:$0 sm:$0xff] }
0x1ce7   :  { %v4838_v51 = vadd.f32 1e-05, %v4837_v12  ;;  %v13281_v12 = vpack.c.bf16 %v5891_v3, %v5890_v38  ;;  %v6247_v3 = vld [vmem:[#allocation2 + $0x2a8] sm:$0xff] }
0x1ce9   :  { %13712 = vrsqrt.f32 %v4838_v51  ;;  %13282 = vmatprep.subr.bf16.mxu1 %v13281_v12  ;;  %v5892_v51 = vld [vmem:[#allocation2 + $0x210] sm:$0xff] }
0x1cec   :  { %v5211_v18 = vpop.permute.xlu0 %5210 }
0x1ced   :  { %v5213_v56 = vmul.f32 %v5211_v18, %v5200_v35  ;;  %v5214_v40 = vmul.f32 %v5211_v18, %v5201_v17  ;;  %v13285_v17 = vpack.c.bf16 %v5893_v14, %v5892_v51  ;;  %v5987_v35 = vld [vmem:[#allocation2 + $0x238] sm:$0xff]  ;;  %v6072_v18 = vld [vmem:[#allocation2 + $0x240] sm:$0xff]  ;;  %v6248_v14 = vld [vmem:[#allocation2 + $0x2b0] sm:$0xff] }
0x1cee   :  { %v13293_v4 = vpack.c.bf16 %v5987_v35, %v5986_v42  ;;  %v6331_v35 = vld [vmem:[#allocation2 + $0x2d0] sm:$0xff] }
0x1cef   :  { %v5227_v41 = vadd.f32 %v5225_v32, %v5214_v40  ;;  %v5226_v52 = vadd.f32 %v5225_v32, %v5213_v56  ;;  %v6073_v32 = vld [vmem:[#allocation2 + $0x248] sm:$0xff] }
0x1cf0   :  { %v5602_v20 = vpop.permute.xlu0 %5601  ;;  %v13297_v56 = vpack.c.bf16 %v6073_v32, %v6072_v18 }
0x1cf1   :  { %v5604_v34 = vmul.f32 %v5602_v20, %v14219_v54  ;;  %v5231_v11 = vsel %vm140_vm1, %v5227_v41, 0.0  ;;  %v5228_v28 = vsel %vm140_vm1, %v5226_v52, 0.0 }
0x1cf2   :  { %5232 = vadd.xlane.f32.xlu0 %v5231_v11  ;;  %5229 = vadd.xlane.f32.xlu1 %v5228_v28 }
0x1cf3   :  { %v13713_v50 = vpop.eup %13712  ;;  %v5605_v45 = vadd.f32 %v5604_v34, %v5593_v5 }
0x1cf4   :  { %v4840_v23 = vmul.f32 %v13713_v50, %v4832_v16  ;;  %v13279_v16 = vpack.c.bf16 %v5810_v55, %v5809_v33  ;;  %v11590_v33 = vld [vmem:[#allocation7 + $0x1] ss:$0 sm:$0xff] }
0x1cf5   :  { %v5606_v61 = vsel %vm140_vm1, %v5605_v45, 0.0 }
0x1cf6   :  { %5607 = vadd.xlane.f32.xlu0 %v5606_v61  ;;  %v4848_v54 = vmul.f32 %v11576_v30, %v4840_v23  ;;  %v11589_v61 = vld [vmem:[%s15680_s3 + $0x1] ss:$0 sm:$0xff] }
0x1cf8   :  { %v14909_v13 = vadd.f32 %v11577_v36, %v4848_v54 }
0x1cfa   :  { %12633 = vmatmul.mubr.msk.f32.vlgmr.msra.gmra.mrb[50].mxu0 %vm140_vm1, %v14909_v13  ;;  %12644 = vmatmul.mubr.msk.f32.vlgmr.msra.gmra.mrb[58].mxu1 %vm140_vm1, %v14909_v13 }
0x1cfb   :  { %13277 = vmatpush3.bf16.msra.mxu0 %v13276_v48  ;;  %12654 = vmatprep.mubr.msk.f32.mxu0 %vm14004_vm0, %v14005_v1 }
0x1cfc   :  { %13278 = vmatprep.subr.bf16.mxu0 %v14003_v0  ;;  %13284 = vmatpush3.bf16.msra.mxu1 %v13281_v12  ;;  %v6330_v12 = vld [vmem:[#allocation2 + $0x2c8] sm:$0xff] }
0x1cfd   :  { %13286 = vmatprep.subr.bf16.mxu1 %v13285_v17  ;;  %v13318_v51 = vpack.c.bf16 %v6330_v12, %v6329_v8  ;;  %v7017_v8 = vld [vmem:[#allocation8 + $0xa0] sm:$0xff]  ;;  %v7018_v12 = vld [vmem:[#allocation8 + $0xa8] sm:$0xff] }
0x1cff   :  { %13280 = vmatpush3.bf16.msra.mxu0 %v13279_v16  ;;  %v6160_v16 = vld [vmem:[#allocation2 + $0x280] sm:$0xff] }
0x1d00   :  { %13290 = vmatprep.subr.bf16.mxu0 %v13289_v44  ;;  %13288 = vmatpush3.bf16.msra.mxu1 %v13285_v17  ;;  %v6249_v17 = vld [vmem:[#allocation2 + $0x2b8] sm:$0xff] }
0x1d01   :  { %13298 = vmatprep.subr.bf16.mxu1 %v13297_v56  ;;  %v13315_v18 = vpack.c.bf16 %v6249_v17, %v6248_v14  ;;  %v7020_v14 = vld [vmem:[#allocation8 + $0xb8] sm:$0xff]  ;;  %v11606_v17 = vld [vmem:[#allocation5 + $0x10] ss:$0 sm:$0xff] }
0x1d02   :  { %12655 = vmatmul.mubr.msk.f32.vlgmr.msra.gmra.mrb[52].mxu0 %vm140_vm1, %v14909_v13 }
0x1d03   :  { %13292 = vmatpush3.bf16.msra.mxu0 %v13289_v44 }
0x1d04   :  { %13294 = vmatprep.subr.bf16.mxu0 %v13293_v4 }
0x1d07   :  { %13296 = vmatpush3.bf16.msra.mxu0 %v13293_v4  ;;  %v6332_v4 = vld [vmem:[#allocation2 + $0x2d8] sm:$0xff] }
0x1d08   :  { %13305 = vmatprep.subr.bf16.mxu0 %v14003_v0  ;;  %v13321_v32 = vpack.c.bf16 %v6332_v4, %v6331_v35 }
0x1d7f   :  { %v5233_v21 = vpop.xlane.xlu0 %5232  ;;  %v5230_v6 = vpop.xlane.xlu1 %5229 }
0x1d80   :  { %v5235_v19 = vmul.f32 0.03125, %v5233_v21  ;;  %v5234_v37 = vmul.f32 0.03125, %v5230_v6  ;;  %v6161_v21 = vld [vmem:[#allocation2 + $0x288] sm:$0xff] }
0x1d82   :  { %v5237_v22 = vsub.f32 %v5227_v41, %v5235_v19  ;;  %v5236_v9 = vsub.f32 %v5226_v52, %v5234_v37  ;;  %v6074_v37 = vld [vmem:[#allocation2 + $0x250] sm:$0xff] }
0x1d83   :  { %v5608_v2 = vpop.xlane.xlu0 %5607 }
0x1d84   :  { %v5609_v58 = vmul.f32 0.03125, %v5608_v2  ;;  %v5239_v25 = vmul.f32 %v5237_v22, %v5237_v22  ;;  %v5238_v43 = vmul.f32 %v5236_v9, %v5236_v9  ;;  %v6075_v2 = vld [vmem:[#allocation2 + $0x258] sm:$0xff] }
0x1d86   :  { %v14920_v57 = vsub.f32 %v5605_v45, %v5609_v58  ;;  %v5243_v46 = vsel %vm140_vm1, %v5239_v25, 0.0  ;;  %v5240_v7 = vsel %vm140_vm1, %v5238_v43, 0.0  ;;  %v13306_v43 = vpack.c.bf16 %v6161_v21, %v6160_v16 }
0x1d87   :  { %5244 = vadd.xlane.f32.xlu0 %v5243_v46  ;;  %5241 = vadd.xlane.f32.xlu1 %v5240_v7  ;;  %v13301_v7 = vpack.c.bf16 %v6075_v2, %v6074_v37 }
0x1d88   :  { %v5611_v39 = vmul.f32 %v14920_v57, %v14920_v57 }
0x1d8a   :  { %v5612_v15 = vsel %vm140_vm1, %v5611_v39, 0.0  ;;  %v6162_v39 = vld [vmem:[#allocation2 + $0x290] sm:$0xff] }
0x1d8b   :  { %5613 = vadd.xlane.f32.xlu1 %v5612_v15  ;;  %v6163_v15 = vld [vmem:[#allocation2 + $0x298] sm:$0xff] }
0x1dcd   :  { %v14928_v40 = vpop.f32.mrb[50].mxu0  ;;  %v14930_v62 = vpop.f32.mrb[58].mxu1 }
0x1dce   :  { %v12634_v63 = vpop.f32.mrb[51].mxu0  ;;  %v12645_v41 = vpop.f32.mrb[59].mxu1 }
0x1dcf   :  { %v6413_v63 = vld [vmem:[#allocation8 + $0x88] sm:$0xff]  ;;  %v6490_v41 = vld [vmem:[#allocation10 + $0x80] sm:$0xff] }
0x1dd5   :  { %v14932_v52 = vpop.f32.mrb[52].mxu0 }
0x1dd6   :  { %v12656_v20 = vpop.f32.mrb[53].mxu0 }
0x1dd7   :  { %v6491_v20 = vld [vmem:[#allocation10 + $0x88] sm:$0xff] }
0x1e14   :  { %v5245_v5 = vpop.xlane.xlu0 %5244  ;;  %v5242_v34 = vpop.xlane.xlu1 %5241 }
0x1e15   :  { %v5247_v11 = vmul.f32 0.03125, %v5245_v5  ;;  %v5246_v28 = vmul.f32 0.03125, %v5242_v34  ;;  %v13330_v34 = vpack.c.bf16 %v6491_v20, %v6490_v41 }
0x1e17   :  { %v5249_v50 = vadd.f32 1e-05, %v5247_v11  ;;  %v5248_v45 = vadd.f32 1e-05, %v5246_v28  ;;  %v6414_v11 = vld [vmem:[#allocation8 + $0x90] sm:$0xff]  ;;  %v6415_v28 = vld [vmem:[#allocation8 + $0x98] sm:$0xff] }
0x1e18   :  { %v5614_v30 = vpop.xlane.xlu1 %5613 }
0x1e19   :  { %13714 = vrsqrt.f32 %v5249_v50  ;;  %v5615_v23 = vmul.f32 0.03125, %v5614_v30  ;;  %v6492_v50 = vld [vmem:[#allocation10 + $0x90] sm:$0xff]  ;;  %v13327_v30 = vpack.c.bf16 %v6415_v28, %v6414_v11 }
0x1e1a   :  { %13716 = vrsqrt.f32 %v5248_v45  ;;  %v6493_v45 = vld [vmem:[#allocation10 + $0x98] sm:$0xff]  ;;  %v11612_v11 = vld [vmem:[#allocation5 + $0x12] ss:$0 sm:$0xff] }
0x1e1b   :  { %v5616_v47 = vadd.f32 1e-05, %v5615_v23  ;;  %v13333_v23 = vpack.c.bf16 %v6493_v45, %v6492_v50 }
0x1e1d   :  { %13718 = vrsqrt.f32 %v5616_v47  ;;  %v11600_v47 = vld [vmem:[#allocation5 + $0xc] ss:$0 sm:$0xff] }
0x1e23   :  { %v13715_v27 = vpop.eup %13714 }
0x1e24   :  { %v13717_v36 = vpop.eup %13716  ;;  %v5253_v54 = vmul.f32 %v13715_v27, %v5237_v22  ;;  %v11598_v22 = vld [vmem:[%s15680_s3 + $0x2] ss:$0 sm:$0xff]  ;;  %v11604_v27 = vld [vmem:[#allocation5 + $0xe] ss:$0 sm:$0xff] }
0x1e25   :  { %v5252_v48 = vmul.f32 %v13717_v36, %v5236_v9  ;;  %v13309_v9 = vpack.c.bf16 %v6163_v15, %v6162_v39  ;;  %v5886_v36 = vadd.f32 %v11604_v27, %v14932_v52 }
0x1e26   :  { %v5263_v55 = vmul.f32 %v11589_v61, %v5253_v54  ;;  %v11609_v54 = vld [vmem:[#allocation5 + $0x11] ss:$0 sm:$0xff] }
0x1e27   :  { %v13719_v6 = vpop.eup %13718  ;;  %v5262_v19 = vmul.f32 %v11589_v61, %v5252_v48  ;;  %v5720_v61 = vadd.f32 %v11600_v47, %v14928_v40 }
0x1e28   :  { %v14937_v58 = vadd.f32 %v11590_v33, %v5263_v55  ;;  %v5618_v46 = vmul.f32 %v13719_v6, %v14920_v57  ;;  %v6246_v57 = vld [vmem:[#allocation2 + $0x2a0] sm:$0xff] }
0x1e29   :  { %v14939_v25 = vadd.f32 %v11590_v33, %v5262_v19  ;;  %v13312_v44 = vpack.c.bf16 %v6247_v3, %v6246_v57 }
0x1e2a   :  { %v5627_v38 = vmul.f32 %v11598_v22, %v5618_v46 }
0x1e2b   :  { %12665 = vmatprep.mubr.msk.f32.mxu1 %vm140_vm1, %v14939_v25  ;;  %12676 = vmatprep.mubr.msk.f32.mxu0 %vm140_vm1, %v14939_v25 }
0x1e2c   :  { %12666 = vmatmul.mubr.msk.f32.vlgmr.msra.gmra.mrb[60].mxu1 %vm140_vm1, %v14937_v58  ;;  %12677 = vmatmul.mubr.msk.f32.vlgmr.msra.gmra.mrb[54].mxu0 %vm140_vm1, %v14937_v58  ;;  %v14958_v42 = vadd.f32 %v11599_v29, %v5627_v38  ;;  %v13335_v29 = vpack.c.bf16 %v7018_v12, %v7017_v8 }
0x1e2d   :  { %13300 = vmatpush3.bf16.msra.mxu1 %v13297_v56  ;;  %13307 = vmatpush3.bf16.msra.mxu0 %v13306_v43  ;;  %v6412_v56 = vld [vmem:[#allocation8 + $0x80] sm:$0xff] }
0x1e2e   :  { %12687 = vmatprep.mubr.msk.f32.mxu1 %vm140_vm1, %v14939_v25  ;;  %13302 = vmatprep.subr.bf16.mxu1 %v13301_v7  ;;  %v13324_v5 = vpack.c.bf16 %v6413_v63, %v6412_v56 }
0x1e2f   :  { %13308 = vmatprep.subr.bf16.mxu0 %v14003_v0  ;;  %12698 = vmatprep.mubr.msk.f32.mxu0 %vm14004_vm0, %v14005_v1 }
0x1e31   :  { %13304 = vmatpush3.bf16.msra.mxu1 %v13301_v7  ;;  %13310 = vmatpush3.bf16.msra.mxu0 %v13309_v9 }
0x1e32   :  { %13311 = vmatprep.subr.bf16.mxu1 %v14003_v0  ;;  %13317 = vmatprep.subr.bf16.mxu0 %v14003_v0 }
0x1e34   :  { %12688 = vmatmul.mubr.msk.f32.vlgmr.msra.gmra.mrb[62].mxu1 %vm140_vm1, %v14937_v58  ;;  %12699 = vmatmul.mubr.msk.f32.vlgmr.msra.gmra.mrb[56].mxu0 %vm140_vm1, %v14958_v42 }
0x1e35   :  { %13313 = vmatpush3.bf16.msra.mxu1 %v13312_v44  ;;  %13319 = vmatpush3.bf16.msra.mxu0 %v13318_v51  ;;  %v7019_v51 = vld [vmem:[#allocation8 + $0xb0] sm:$0xff] }
0x1e36   :  { %13314 = vmatprep.subr.bf16.mxu1 %v14003_v0  ;;  %13320 = vmatprep.subr.bf16.mxu0 %v14003_v0  ;;  %v13339_v35 = vpack.c.bf16 %v7020_v14, %v7019_v51 }
0x1e37   :  { %12709 = vmatprep.mubr.msk.f32.mxu1 %vm14004_vm0, %v14005_v1  ;;  %12720 = vmatprep.mubr.msk.f32.mxu0 %vm14004_vm0, %v14005_v1 }
0x1e39   :  { %13316 = vmatpush3.bf16.msra.mxu1 %v13315_v18  ;;  %13322 = vmatpush3.bf16.msra.mxu0 %v13321_v32  ;;  %v7103_v18 = vld [vmem:[#allocation10 + $0xa0] sm:$0xff]  ;;  %v7104_v32 = vld [vmem:[#allocation10 + $0xa8] sm:$0xff] }
0x1e3a   :  { %13323 = vmatprep.subr.bf16.mxu1 %v14003_v0  ;;  %13329 = vmatprep.subr.bf16.mxu0 %v14003_v0  ;;  %v13343_v41 = vpack.c.bf16 %v7104_v32, %v7103_v18 }
0x1e3c   :  { %12710 = vmatmul.mubr.msk.f32.vlgmr.msra.gmra.mrb[64].mxu1 %vm140_vm1, %v14958_v42  ;;  %12721 = vmatmul.mubr.msk.f32.vlgmr.msra.gmra.mrb[58].mxu0 %vm140_vm1, %v14958_v42 }
0x1e3d   :  { %13325 = vmatpush3.bf16.msra.mxu1 %v13324_v5  ;;  %13331 = vmatpush3.bf16.msra.mxu0 %v13330_v34  ;;  %v7105_v5 = vld [vmem:[#allocation10 + $0xb0] sm:$0xff]  ;;  %v7106_v34 = vld [vmem:[#allocation10 + $0xb8] sm:$0xff] }
0x1e3e   :  { %13326 = vmatprep.subr.bf16.mxu1 %v14003_v0  ;;  %13332 = vmatprep.subr.bf16.mxu0 %v14003_v0  ;;  %v13347_v45 = vpack.c.bf16 %v7106_v34, %v7105_v5 }
0x1e3f   :  { %12731 = vmatprep.mubr.msk.f32.mxu1 %vm14004_vm0, %v14005_v1  ;;  %12742 = vmatprep.mubr.msk.f32.mxu0 %vm14004_vm0, %v14005_v1 }
0x1e41   :  { %13328 = vmatpush3.bf16.msra.mxu1 %v13327_v30  ;;  %13334 = vmatpush3.bf16.msra.mxu0 %v13333_v23 }
0x1e44   :  { %12732 = vmatmul.mubr.msk.f32.vlgmr.msra.gmra.mrb[66].mxu1 %vm140_vm1, %v5720_v61  ;;  %12743 = vmatmul.mubr.msk.f32.vlgmr.msra.gmra.mrb[60].mxu0 %vm140_vm1, %v5886_v36 }
0x1eff   :  { %v14988_v48 = vpop.f32.mrb[60].mxu1  ;;  %v12678_v33 = vpop.f32.mrb[54].mxu0 }
0x1f00   :  { %v5974_v55 = vpop.f32.mrb[61].mxu1  ;;  %v6062_v16 = vpop.f32.mrb[55].mxu0  ;;  %v14996_v40 = vadd.f32 %v12678_v33, %v11609_v54  ;;  %v15052_v28 = vadd.f32 %v14988_v48, %v11606_v17 }
0x1f01   :  { %v14990_v21 = vadd.f32 %v11609_v54, %v6062_v16  ;;  %v15037_v56 = vadd.f32 %v11606_v17, %v5974_v55 }
0x1f03   :  { %6790 = vrot.lane.b32.xlu1 %v14990_v21, %s14006_s0  ;;  %12747 = vmatprep.mubr.msk.f32.mxu1 %vm1055_vm2, %v14990_v21 }
0x1f07   :  { %v14998_v52 = vpop.f32.mrb[62].mxu1  ;;  %v15000_v6 = vpop.f32.mrb[56].mxu0  ;;  %6792 = vrot.lane.b32.xlu1 %v14996_v40, %s14006_s0 }
0x1f08   :  { %v6150_v19 = vpop.f32.mrb[63].mxu1  ;;  %v12700_v37 = vpop.f32.mrb[57].mxu0  ;;  %v15072_v47 = vadd.f32 %v14998_v52, %v11612_v11 }
0x1f09   :  { %v15057_v30 = vadd.f32 %v11612_v11, %v6150_v19 }
0x1f0b   :  { %6677 = vrot.lane.b32.xlu1 %v14990_v21, %s14007_s30 }
0x1f0f   :  { %v15006_v2 = vpop.f32.mrb[64].mxu1  ;;  %v15008_v43 = vpop.f32.mrb[58].mxu0  ;;  %6679 = vrot.lane.b32.xlu1 %v14996_v40, %s14007_s30 }
0x1f10   :  { %v12711_v46 = vpop.f32.mrb[65].mxu1  ;;  %v12722_v7 = vpop.f32.mrb[59].mxu0 }
0x1f11   :  { %v11602_v7 = vld [vmem:[#allocation5 + $0xd] ss:$0 sm:$0xff] }
0x1f13   :  { %6905 = vrot.lane.b32.xlu1 %v14996_v40, %s14008_s25 }
0x1f17   :  { %v6485_v39 = vpop.f32.mrb[66].mxu1  ;;  %v15014_v15 = vpop.f32.mrb[60].mxu0 }
0x1f18   :  { %6794 = vrot.lane.b32.xlu0 %v6485_v39, %s14006_s0  ;;  %v12733_v22 = vpop.f32.mrb[67].mxu1  ;;  %v12744_v9 = vpop.f32.mrb[61].mxu0  ;;  %12745 = vmatprep.subr.msk.mxu1 %vm1055_vm2, %v6485_v39 }
0x1f19   :  { %12746 = vmatpush3.xpose.msk.msra.mxu1 %vm1055_vm2, %v6485_v39  ;;  %v15101_v22 = vadd.f32 %v11602_v7, %v14930_v62 }
0x1f1c   :  { %6681 = vrot.lane.b32.xlu0 %v6485_v39, %s14007_s30  ;;  %12748 = vmatmul.mubr.msk.f32.vlgmr.msra.gmra.mrb[68].mxu1 %vm1055_vm2, %v14996_v40 }
0x1f20   :  { %6907 = vrot.lane.b32.xlu0 %v6485_v39, %s14008_s25 }
0x1f24   :  { %6903 = vrot.lane.b32.xlu0 %v14990_v21, %s14008_s25 }
0x1f75   :  { %v15025_v57 = vpop.permute.xlu1 %6790 }
0x1f76   :  { %12757 = vmatprep.mubr.msk.f32.mxu0 %vm1055_vm2, %v15025_v57 }
0x1f79   :  { %v15029_v38 = vpop.permute.xlu1 %6792 }
0x1f7d   :  { %v15031_v3 = vpop.permute.xlu1 %6677 }
0x1f7e   :  { %12752 = vmatprep.mubr.msk.f32.mxu1 %vm1055_vm2, %v15031_v3 }
0x1f81   :  { %v15043_v63 = vpop.permute.xlu1 %6679 }
0x1f85   :  { %v15059_v23 = vpop.permute.xlu1 %6905 }
0x1f8a   :  { %v6795_v44 = vpop.permute.xlu0 %6794 }
0x1f8b   :  { %12755 = vmatprep.subr.msk.mxu0 %vm1055_vm2, %v6795_v44 }
0x1f8c   :  { %12756 = vmatpush3.xpose.msk.msra.mxu0 %vm1055_vm2, %v6795_v44  ;;  %v15113_v44 = vld [vmem:[%s15685_s8 + $0x10] sm:$0xff] }
0x1f8d   :  { %13336 = vmatprep.subr.bf16.mxu0 %v13335_v29 }
0x1f8e   :  { %v6682_v4 = vpop.permute.xlu0 %6681 }
0x1f8f   :  { %12750 = vmatprep.subr.msk.mxu1 %vm1055_vm2, %v6682_v4  ;;  %12758 = vmatmul.mubr.msk.f32.vlgmr.msra.gmra.mrb[62].mxu0 %vm1055_vm2, %v15029_v38 }
0x1f90   :  { %12751 = vmatpush3.xpose.msk.msra.mxu1 %vm1055_vm2, %v6682_v4  ;;  %13338 = vmatpush3.bf16.msra.mxu0 %v13335_v29 }
0x1f91   :  { %12773 = vmatprep.mubr.msk.f32.mxu0 %vm140_vm1, %v15037_v56  ;;  %13340 = vmatprep.subr.bf16.mxu0 %v13339_v35 }
0x1f92   :  { %v6908_v20 = vpop.permute.xlu0 %6907 }
0x1f93   :  { %12753 = vmatmul.mubr.msk.f32.vlgmr.msra.gmra.mrb[70].mxu1 %vm1055_vm2, %v15043_v63  ;;  %12760 = vmatprep.subr.msk.mxu1 %vm1055_vm2, %v6908_v20 }
0x1f94   :  { %12761 = vmatpush3.xpose.msk.msra.mxu1 %vm1055_vm2, %v6908_v20  ;;  %13342 = vmatpush3.bf16.msra.mxu0 %v13339_v35 }
0x1f95   :  { %13344 = vmatprep.subr.bf16.mxu1 %v13343_v41  ;;  %13351 = vmatprep.subr.bf16.mxu0 %v14003_v0 }
0x1f96   :  { %v15055_v50 = vpop.permute.xlu0 %6903 }
0x1f97   :  { %12762 = vmatprep.mubr.msk.f32.mxu1 %vm1055_vm2, %v15055_v50  ;;  %12774 = vmatmul.mubr.msk.f32.vlgmr.msra.gmra.mrb[64].mxu0 %vm140_vm1, %v15052_v28 }
0x1f98   :  { %12763 = vmatmul.mubr.msk.f32.vlgmr.msra.gmra.mrb[72].mxu1 %vm1055_vm2, %v15059_v23  ;;  %12791 = vmatprep.mubr.msk.f32.mxu0 %vm14004_vm0, %v14005_v1 }
0x1f99   :  { %13346 = vmatpush3.bf16.msra.mxu1 %v13343_v41  ;;  %12784 = vmatprep.mubr.msk.f32.mxu1 %vm140_vm1, %v15057_v30 }
0x1f9a   :  { %13348 = vmatprep.subr.bf16.mxu1 %v13347_v45 }
0x1f9d   :  { %13350 = vmatpush3.bf16.msra.mxu1 %v13347_v45 }
0x1f9e   :  { %13355 = vmatprep.subr.bf16.mxu1 %v14003_v0 }
0x1fa0   :  { %12785 = vmatmul.mubr.msk.f32.vlgmr.msra.gmra.mrb[74].mxu1 %vm140_vm1, %v15072_v47 }
0x1fa1   :  { %12798 = vmatprep.mubr.msk.f32.mxu1 %vm14004_vm0, %v14005_v1 }
0x1fef   :  { %v15079_v27 = vpop.f32.mrb[68].mxu1 }
0x1ff0   :  { %v15081_v61 = vpop.f32.mrb[69].mxu1 }
0x2062   :  { %v15083_v36 = vpop.f32.mrb[62].mxu0 }
0x2063   :  { %v15085_v54 = vpop.f32.mrb[63].mxu0 }
0x2066   :  { %v15087_v48 = vpop.f32.mrb[70].mxu1 }
0x2067   :  { %v15089_v33 = vpop.f32.mrb[71].mxu1 }
0x206a   :  { %v12775_v55 = vpop.f32.mrb[64].mxu0 }
0x206b   :  { %v15091_v16 = vpop.f32.mrb[72].mxu1  ;;  %v7093_v52 = vpop.f32.mrb[65].mxu0 }
0x206c   :  { %v15093_v19 = vpack.i.bf16 %v12775_v55, %v7093_v52  ;;  %v15095_v37 = vpop.f32.mrb[73].mxu1  ;;  %v13352_v46 = vpack.c.bf16 %v12775_v55, %v7093_v52 }
0x206e   :  { %13354 = vmatpush3.bf16.xpose.msk.msra.mxu0 %vm14352_vm3, %v13352_v46 }
0x206f   :  { %13362 = vmatprep.subr.bf16.mxu0 %v14003_v0 }
0x2073   :  { %v12786_v39 = vpop.f32.mrb[74].mxu1 }
0x2074   :  { %v7179_v9 = vpop.f32.mrb[75].mxu1 }
0x2075   :  { %v15103_v8 = vpack.i.bf16 %v12786_v39, %v7179_v9  ;;  %v13356_v12 = vpack.c.bf16 %v12786_v39, %v7179_v9  ;;  %12792 = vmatmul.mubr.msk.f32.vlgmr.msra.gmra.mrb[66].mxu0 %vm1055_vm2, %v15101_v22 }
0x2076   :  { %12812 = vmatprep.mubr.msk.f32.mxu0 %vm14004_vm0, %v14005_v1 }
0x2077   :  { %13357 = vmatpush3.bf16.msra.mxu1 %v13356_v12 }
0x2078   :  { %13358 = vmatprep.subr.bf16.mxu1 %v14003_v0 }
0x2148   :  { %v7263_v29 = vpop.f32.mrb[66].mxu0 }
0x2149   :  { %v7264_v62 = vadd.f32 %v15113_v44, %v7263_v29  ;;  %v12793_v51 = vpop.f32.mrb[67].mxu0 }
0x214b   :  { %v7267_v14 = vsel %vm1689_vm4, %v7264_v62, -inf }
0x214c   :  { %7268 = vmax.xlane.f32.xlu0 %v7267_v14 }
0x2162   :  { %13557 = vrot.lane.b32.xlu0 %v15093_v19, %s14007_s30 }
0x21d9   :  { %v7269_v17 = vpop.xlane.xlu0 %7268 }
0x21da   :  { %v7270_v35 = vsub.f32 %v7264_v62, %v7269_v17 }
0x21dc   :  { %v7271_v4 = vmul.f32 1.442695, %v7270_v35 }
0x21dd   :  { %v13558_v5 = vpop.permute.xlu0 %13557 }
0x21de   :  { %13720 = vpow2.f32 %v7271_v4  ;;  %v13560_v11 = vunpack.i.h.bf16 %v13558_v5  ;;  %v13559_v45 = vunpack.i.l.bf16 %v13558_v5 }
0x21e0   :  { %v13359_v46 = vpack.c.bf16 %v13560_v11, %v13559_v45 }
0x21e8   :  { %v13721_v18 = vpop.eup %13720 }
0x21e9   :  { %v7273_v32 = vsel %vm1689_vm4, %v13721_v18, 0.0 }
0x21ea   :  { %7274 = vadd.xlane.f32.xlu1 %v7273_v32 }
0x21fb   :  { %7353 = vrot.lane.b32.xlu1 %v15101_v22, %s14007_s30 }
0x2277   :  { %v7275_v41 = vpop.xlane.xlu1 %7274 }
0x2278   :  { %v7276_v20 = vmax.f32 %v7275_v41, 1e-30 }
0x227a   :  { %13722 = vrcp.f32 %v7276_v20 }
0x227b   :  { %v7354_v7 = vpop.permute.xlu1 %7353 }
0x2284   :  { %v13723_v34 = vpop.eup %13722 }
0x2285   :  { %v7278_v55 = vmul.f32 %v13723_v34, %v14390_v60 }
0x2287   :  { %v7279_v52 = vmul.f32 %v13721_v18, %v7278_v55 }
0x2289   :  { %12799 = vmatmul.mubr.msk.f32.vlgmr.msra.gmra.mrb[76].mxu1 %vm1689_vm4, %v7279_v52 }
0x228a   :  { %13361 = vmatpush3.bf16.xpose.msk.msra.mxu1 %vm14352_vm3, %v13359_v46  ;;  %12805 = vmatprep.mubr.msk.f32.mxu1 %vm14004_vm0, %v14005_v1 }
0x228b   :  { %13369 = vmatprep.subr.bf16.mxu1 %v14003_v0 }
0x2291   :  { %12806 = vmatmul.mubr.msk.f32.vlgmr.msra.gmra.mrb[78].mxu1 %vm1055_vm2, %v7354_v7 }
0x2292   :  { %12826 = vmatprep.mubr.msk.f32.mxu1 %vm14004_vm0, %v14005_v1 }
0x235c   :  { %v15132_v39 = vpop.f32.mrb[76].mxu1 }
0x235d   :  { %v12800_v9 = vpop.f32.mrb[77].mxu1 }
0x2364   :  { %v7431_v12 = vpop.f32.mrb[78].mxu1 }
0x2365   :  { %v7432_v29 = vadd.f32 %v15113_v44, %v7431_v12  ;;  %v12807_v62 = vpop.f32.mrb[79].mxu1 }
0x2367   :  { %v7435_v51 = vsel %vm1689_vm4, %v7432_v29, -inf }
0x2368   :  { %7436 = vmax.xlane.f32.xlu0 %v7435_v51 }
0x237e   :  { %13562 = vrot.lane.b32.xlu0 %v15103_v8, %s14007_s30 }
0x2382   :  { %7529 = vrot.lane.b32.xlu0 %v15101_v22, %s14006_s0 }
0x23f5   :  { %v7437_v14 = vpop.xlane.xlu0 %7436 }
0x23f6   :  { %v7438_v17 = vsub.f32 %v7432_v29, %v7437_v14 }
0x23f8   :  { %v7439_v35 = vmul.f32 1.442695, %v7438_v17 }
0x23f9   :  { %v13563_v4 = vpop.permute.xlu0 %13562 }
0x23fa   :  { %13724 = vpow2.f32 %v7439_v35  ;;  %v13565_v18 = vunpack.i.h.bf16 %v13563_v4  ;;  %v13564_v32 = vunpack.i.l.bf16 %v13563_v4 }
0x23fc   :  { %v13363_v41 = vpack.c.bf16 %v13565_v18, %v13564_v32 }
0x23fd   :  { %v7530_v29 = vpop.permute.xlu0 %7529 }
0x23fe   :  { %13364 = vmatpush3.bf16.msra.mxu0 %v13363_v41 }
0x23ff   :  { %13365 = vmatprep.subr.bf16.mxu0 %v14003_v0 }
0x2404   :  { %v13725_v20 = vpop.eup %13724 }
0x2405   :  { %v7441_v5 = vsel %vm1689_vm4, %v13725_v20, 0.0 }
0x2406   :  { %7442 = vadd.xlane.f32.xlu1 %v7441_v5 }
0x2417   :  { %13567 = vrot.lane.b32.xlu1 %v15093_v19, %s14006_s0 }
0x2493   :  { %v7443_v34 = vpop.xlane.xlu1 %7442 }
0x2494   :  { %v7444_v11 = vmax.f32 %v7443_v34, 1e-30 }
0x2496   :  { %13726 = vrcp.f32 %v7444_v11 }
0x2497   :  { %v13568_v45 = vpop.permute.xlu1 %13567 }
0x2498   :  { %v13570_v52 = vunpack.i.h.bf16 %v13568_v45  ;;  %v13569_v46 = vunpack.i.l.bf16 %v13568_v45 }
0x249a   :  { %v13366_v12 = vpack.c.bf16 %v13570_v52, %v13569_v46 }
0x24a0   :  { %v13727_v55 = vpop.eup %13726 }
0x24a1   :  { %v7446_v7 = vmul.f32 %v13727_v55, %v14390_v60 }
0x24a3   :  { %v7447_v9 = vmul.f32 %v13725_v20, %v7446_v7 }
0x24a5   :  { %12813 = vmatmul.mubr.msk.f32.vlgmr.msra.gmra.mrb[68].mxu0 %vm1689_vm4, %v7447_v9 }
0x24a6   :  { %13368 = vmatpush3.bf16.xpose.msk.msra.mxu0 %vm14352_vm3, %v13366_v12  ;;  %12819 = vmatprep.mubr.msk.f32.mxu0 %vm14004_vm0, %v14005_v1  ;;  %v7958_v12 = vld [vmem:[#allocation10 + $0xc0] sm:$0xff] }
0x24a7   :  { %13376 = vmatprep.subr.bf16.mxu0 %v14003_v0 }
0x24ad   :  { %12820 = vmatmul.mubr.msk.f32.vlgmr.msra.gmra.mrb[70].mxu0 %vm1055_vm2, %v7530_v29  ;;  %v7959_v29 = vld [vmem:[#allocation10 + $0xc8] sm:$0xff] }
0x24ae   :  { %12840 = vmatprep.mubr.msk.f32.mxu0 %vm14004_vm0, %v14005_v1 }
0x2578   :  { %v15154_v62 = vpop.f32.mrb[68].mxu0 }
0x2579   :  { %v12814_v51 = vpop.f32.mrb[69].mxu0 }
0x2580   :  { %v7607_v14 = vpop.f32.mrb[70].mxu0 }
0x2581   :  { %v7608_v17 = vadd.f32 %v15113_v44, %v7607_v14  ;;  %v12821_v35 = vpop.f32.mrb[71].mxu0 }
0x2583   :  { %v7611_v4 = vsel %vm1689_vm4, %v7608_v17, -inf }
0x2584   :  { %7612 = vmax.xlane.f32.xlu1 %v7611_v4  ;;  %v7960_v4 = vld [vmem:[#allocation10 + $0xd0] sm:$0xff] }
0x2595   :  { %13577 = vrot.lane.b32.xlu1 %v15093_v19, %s14008_s25 }
0x2599   :  { %7703 = vrot.lane.b32.xlu1 %v15101_v22, %s14008_s25 }
0x2611   :  { %v7613_v18 = vpop.xlane.xlu1 %7612 }
0x2612   :  { %v7614_v32 = vsub.f32 %v7608_v17, %v7613_v18  ;;  %v13387_v17 = vpack.c.bf16 %v7959_v29, %v7958_v12  ;;  %v7961_v18 = vld [vmem:[#allocation10 + $0xd8] sm:$0xff] }
0x2614   :  { %v7615_v41 = vmul.f32 1.442695, %v7614_v32  ;;  %v13391_v32 = vpack.c.bf16 %v7961_v18, %v7960_v4  ;;  %v7879_v4 = vld [vmem:[#allocation8 + $0xc8] sm:$0xff] }
0x2615   :  { %v13578_v22 = vpop.permute.xlu1 %13577 }
0x2616   :  { %13728 = vpow2.f32 %v7615_v41  ;;  %v13580_v7 = vunpack.i.h.bf16 %v13578_v22  ;;  %v13579_v9 = vunpack.i.l.bf16 %v13578_v22 }
0x2618   :  { %v13373_v35 = vpack.c.bf16 %v13580_v7, %v13579_v9 }
0x2619   :  { %v7704_v41 = vpop.permute.xlu1 %7703 }
0x2620   :  { %v13729_v20 = vpop.eup %13728 }
0x2621   :  { %v7617_v5 = vsel %vm1689_vm4, %v13729_v20, 0.0 }
0x2622   :  { %7618 = vadd.xlane.f32.xlu0 %v7617_v5 }
0x2638   :  { %13572 = vrot.lane.b32.xlu0 %v15103_v8, %s14006_s0 }
0x26af   :  { %v7619_v34 = vpop.xlane.xlu0 %7618 }
0x26b0   :  { %v7620_v11 = vmax.f32 %v7619_v34, 1e-30 }
0x26b2   :  { %13730 = vrcp.f32 %v7620_v11 }
0x26b3   :  { %v13573_v45 = vpop.permute.xlu0 %13572 }
0x26b4   :  { %v13575_v55 = vunpack.i.h.bf16 %v13573_v45  ;;  %v13574_v19 = vunpack.i.l.bf16 %v13573_v45 }
0x26b6   :  { %v13370_v52 = vpack.c.bf16 %v13575_v55, %v13574_v19 }
0x26b8   :  { %13371 = vmatpush3.bf16.msra.mxu1 %v13370_v52 }
0x26b9   :  { %13372 = vmatprep.subr.bf16.mxu1 %v14003_v0 }
0x26bc   :  { %v13731_v46 = vpop.eup %13730 }
0x26bd   :  { %v7622_v51 = vmul.f32 %v13731_v46, %v14390_v60 }
0x26bf   :  { %v7623_v14 = vmul.f32 %v13729_v20, %v7622_v51 }
0x26c1   :  { %12827 = vmatmul.mubr.msk.f32.vlgmr.msra.gmra.mrb[80].mxu1 %vm1689_vm4, %v7623_v14 }
0x26c2   :  { %13375 = vmatpush3.bf16.xpose.msk.msra.mxu1 %vm14352_vm3, %v13373_v35  ;;  %12833 = vmatprep.mubr.msk.f32.mxu1 %vm14004_vm0, %v14005_v1 }
0x26c3   :  { %13388 = vmatprep.subr.bf16.mxu1 %v13387_v17 }
0x26c9   :  { %12834 = vmatmul.mubr.msk.f32.vlgmr.msra.gmra.mrb[82].mxu1 %vm1055_vm2, %v7704_v41 }
0x26ca   :  { %13390 = vmatpush3.bf16.msra.mxu1 %v13387_v17  ;;  %12862 = vmatprep.mubr.msk.f32.mxu1 %vm140_vm1, %v15057_v30 }
0x26cb   :  { %13392 = vmatprep.subr.bf16.mxu1 %v13391_v32 }
0x26ce   :  { %13394 = vmatpush3.bf16.msra.mxu1 %v13391_v32 }
0x26cf   :  { %13399 = vmatprep.subr.bf16.mxu1 %v14003_v0 }
0x26d1   :  { %12863 = vmatmul.mubr.msk.f32.vlgmr.msra.gmra.mrb[84].mxu1 %vm140_vm1, %v15072_v47  ;;  %v11617_v47 = vld [vmem:[#allocation5 + $0x15] ss:$0 sm:$0xff] }
0x26d2   :  { %12876 = vmatprep.mubr.msk.f32.mxu1 %vm14004_vm0, %v14005_v1  ;;  %v15190_v46 = vadd.f32 %v11617_v47, %v15006_v2 }
0x2794   :  { %v15180_v20 = vpop.f32.mrb[80].mxu1 }
0x2795   :  { %v12828_v5 = vpop.f32.mrb[81].mxu1 }
0x2796   :  { %v7880_v5 = vld [vmem:[#allocation8 + $0xd0] sm:$0xff] }
0x279c   :  { %v7781_v34 = vpop.f32.mrb[82].mxu1 }
0x279d   :  { %v7782_v11 = vadd.f32 %v15113_v44, %v7781_v34  ;;  %v12835_v45 = vpop.f32.mrb[83].mxu1  ;;  %v7881_v34 = vld [vmem:[#allocation8 + $0xd8] sm:$0xff] }
0x279f   :  { %v7785_v55 = vsel %vm1689_vm4, %v7782_v11, -inf }
0x27a0   :  { %7786 = vmax.xlane.f32.xlu0 %v7785_v55  ;;  %v13383_v55 = vpack.c.bf16 %v7881_v34, %v7880_v5 }
0x27a4   :  { %v12864_v30 = vpop.f32.mrb[84].mxu1 }
0x27a5   :  { %v8028_v19 = vpop.f32.mrb[85].mxu1 }
0x27a6   :  { %v15184_v52 = vpack.i.bf16 %v12864_v30, %v8028_v19  ;;  %v13400_v22 = vpack.c.bf16 %v12864_v30, %v8028_v19 }
0x27a8   :  { %13401 = vmatpush3.bf16.msra.mxu1 %v13400_v22 }
0x27a9   :  { %13402 = vmatprep.subr.bf16.mxu1 %v14003_v0 }
0x27b6   :  { %13582 = vrot.lane.b32.xlu0 %v15103_v8, %s14008_s25  ;;  %v7878_v8 = vld [vmem:[#allocation8 + $0xc0] sm:$0xff] }
0x27b7   :  { %v13379_v2 = vpack.c.bf16 %v7879_v4, %v7878_v8 }
0x27ba   :  { %8202 = vrot.lane.b32.xlu0 %v15190_v46, %s14007_s30 }
0x282d   :  { %v7787_v44 = vpop.xlane.xlu0 %7786 }
0x282e   :  { %v7788_v7 = vsub.f32 %v7782_v11, %v7787_v44 }
0x2830   :  { %v7789_v9 = vmul.f32 1.442695, %v7788_v7 }
0x2831   :  { %v13583_v12 = vpop.permute.xlu0 %13582 }
0x2832   :  { %13732 = vpow2.f32 %v7789_v9  ;;  %v13585_v29 = vunpack.i.h.bf16 %v13583_v12  ;;  %v13584_v51 = vunpack.i.l.bf16 %v13583_v12 }
0x2834   :  { %v13377_v14 = vpack.c.bf16 %v13585_v29, %v13584_v51 }
0x2836   :  { %13378 = vmatpush3.bf16.msra.mxu0 %v13377_v14 }
0x2837   :  { %13380 = vmatprep.subr.bf16.mxu0 %v13379_v2 }
0x283c   :  { %v13733_v17 = vpop.eup %13732 }
0x283d   :  { %v7791_v35 = vsel %vm1689_vm4, %v13733_v17, 0.0 }
0x283e   :  { %7792 = vadd.xlane.f32.xlu1 %v7791_v35 }
0x28cb   :  { %v7793_v18 = vpop.xlane.xlu1 %7792 }
0x28cc   :  { %v7794_v32 = vmax.f32 %v7793_v18, 1e-30 }
0x28ce   :  { %13734 = vrcp.f32 %v7794_v32 }
0x28d8   :  { %v13735_v41 = vpop.eup %13734 }
0x28d9   :  { %v7796_v11 = vmul.f32 %v13735_v41, %v14390_v60 }
0x28db   :  { %v7797_v45 = vmul.f32 %v13733_v17, %v7796_v11 }
0x28dd   :  { %12841 = vmatmul.mubr.msk.f32.vlgmr.msra.gmra.mrb[72].mxu0 %vm1689_vm4, %v7797_v45  ;;  %v8203_v45 = vpop.permute.xlu0 %8202 }
0x28de   :  { %13382 = vmatpush3.bf16.msra.mxu0 %v13379_v2  ;;  %12851 = vmatprep.mubr.msk.f32.mxu0 %vm140_vm1, %v15037_v56 }
0x28df   :  { %13384 = vmatprep.subr.bf16.mxu0 %v13383_v55 }
0x28e2   :  { %13386 = vmatpush3.bf16.msra.mxu0 %v13383_v55 }
0x28e3   :  { %13395 = vmatprep.subr.bf16.mxu0 %v14003_v0 }
0x28e5   :  { %12852 = vmatmul.mubr.msk.f32.vlgmr.msra.gmra.mrb[74].mxu0 %vm140_vm1, %v15052_v28  ;;  %v15218_v28 = vld [vmem:[%s15685_s8 + $0x20] sm:$0xff] }
0x28e6   :  { %12869 = vmatprep.mubr.msk.f32.mxu0 %vm14004_vm0, %v14005_v1 }
0x29b0   :  { %v15204_v30 = vpop.f32.mrb[72].mxu0 }
0x29b1   :  { %v12842_v60 = vpop.f32.mrb[73].mxu0 }
0x29b8   :  { %v12853_v19 = vpop.f32.mrb[74].mxu0 }
0x29b9   :  { %v7948_v22 = vpop.f32.mrb[75].mxu0 }
0x29ba   :  { %v15206_v47 = vpack.i.bf16 %v12853_v19, %v7948_v22  ;;  %v13396_v44 = vpack.c.bf16 %v12853_v19, %v7948_v22 }
0x29bc   :  { %13398 = vmatpush3.bf16.xpose.msk.msra.mxu0 %vm14352_vm3, %v13396_v44 }
0x29bd   :  { %13406 = vmatprep.subr.bf16.mxu0 %v14003_v0 }
0x29c3   :  { %12870 = vmatmul.mubr.msk.f32.vlgmr.msra.gmra.mrb[76].mxu0 %vm1055_vm2, %v15190_v46 }
0x29c4   :  { %12890 = vmatprep.mubr.msk.f32.mxu0 %vm14004_vm0, %v14005_v1 }
0x2a96   :  { %v8112_v56 = vpop.f32.mrb[76].mxu0 }
0x2a97   :  { %v8113_v7 = vadd.f32 %v15218_v28, %v8112_v56  ;;  %v12871_v9 = vpop.f32.mrb[77].mxu0 }
0x2a99   :  { %v8116_v12 = vsel %vm1689_vm4, %v8113_v7, -inf }
0x2a9a   :  { %8117 = vmax.xlane.f32.xlu1 %v8116_v12 }
0x2b27   :  { %v8118_v29 = vpop.xlane.xlu1 %8117 }
0x2b28   :  { %v8119_v51 = vsub.f32 %v8113_v7, %v8118_v29 }
0x2b2a   :  { %v8120_v14 = vmul.f32 1.442695, %v8119_v51 }
0x2b2c   :  { %13736 = vpow2.f32 %v8120_v14 }
0x2b36   :  { %v13737_v17 = vpop.eup %13736 }
0x2b37   :  { %v8122_v35 = vsel %vm1689_vm4, %v13737_v17, 0.0 }
0x2b38   :  { %8123 = vadd.xlane.f32.xlu1 %v8122_v35 }
0x2b49   :  { %13587 = vrot.lane.b32.xlu1 %v15206_v47, %s14007_s30 }
0x2bc5   :  { %v8124_v8 = vpop.xlane.xlu1 %8123 }
0x2bc6   :  { %v8125_v4 = vmax.f32 %v8124_v8, 1e-30 }
0x2bc8   :  { %13738 = vrcp.f32 %v8125_v4 }
0x2bc9   :  { %v13588_v2 = vpop.permute.xlu1 %13587 }
0x2bca   :  { %v13590_v32 = vunpack.i.h.bf16 %v13588_v2  ;;  %v13589_v41 = vunpack.i.l.bf16 %v13588_v2 }
0x2bcc   :  { %v13403_v11 = vpack.c.bf16 %v13590_v32, %v13589_v41 }
0x2bd2   :  { %v13739_v18 = vpop.eup %13738 }
0x2bd3   :  { %v8127_v5 = vmul.f32 %v13739_v18, %v14498_v53 }
0x2bd5   :  { %v8128_v34 = vmul.f32 %v13737_v17, %v8127_v5 }
0x2bd7   :  { %12877 = vmatmul.mubr.msk.f32.vlgmr.msra.gmra.mrb[86].mxu1 %vm1689_vm4, %v8128_v34 }
0x2bd8   :  { %13405 = vmatpush3.bf16.xpose.msk.msra.mxu1 %vm14352_vm3, %v13403_v11  ;;  %12883 = vmatprep.mubr.msk.f32.mxu1 %vm14004_vm0, %v14005_v1 }
0x2bd9   :  { %13413 = vmatprep.subr.bf16.mxu1 %v14003_v0 }
0x2bdf   :  { %12884 = vmatmul.mubr.msk.f32.vlgmr.msra.gmra.mrb[88].mxu1 %vm1055_vm2, %v8203_v45 }
0x2be0   :  { %12904 = vmatprep.mubr.msk.f32.mxu1 %vm14004_vm0, %v14005_v1 }
0x2caa   :  { %v15235_v55 = vpop.f32.mrb[86].mxu1 }
0x2cab   :  { %v12878_v60 = vpop.f32.mrb[87].mxu1 }
0x2cb2   :  { %v8280_v19 = vpop.f32.mrb[88].mxu1 }
0x2cb3   :  { %v8281_v22 = vadd.f32 %v15218_v28, %v8280_v19  ;;  %v12885_v44 = vpop.f32.mrb[89].mxu1 }
0x2cb5   :  { %v8284_v56 = vsel %vm1689_vm4, %v8281_v22, -inf }
0x2cb6   :  { %8285 = vmax.xlane.f32.xlu0 %v8284_v56 }
0x2ccc   :  { %13592 = vrot.lane.b32.xlu0 %v15184_v52, %s14007_s30 }
0x2cd0   :  { %8378 = vrot.lane.b32.xlu0 %v15190_v46, %s14006_s0 }
0x2d43   :  { %v8286_v7 = vpop.xlane.xlu0 %8285 }
0x2d44   :  { %v8287_v9 = vsub.f32 %v8281_v22, %v8286_v7 }
0x2d46   :  { %v8288_v12 = vmul.f32 1.442695, %v8287_v9 }
0x2d47   :  { %v13593_v29 = vpop.permute.xlu0 %13592 }
0x2d48   :  { %13740 = vpow2.f32 %v8288_v12  ;;  %v13595_v51 = vunpack.i.h.bf16 %v13593_v29  ;;  %v13594_v14 = vunpack.i.l.bf16 %v13593_v29 }
0x2d4a   :  { %v13407_v17 = vpack.c.bf16 %v13595_v51, %v13594_v14 }
0x2d4b   :  { %v8379_v60 = vpop.permute.xlu0 %8378 }
0x2d4c   :  { %13408 = vmatpush3.bf16.msra.mxu0 %v13407_v17 }
0x2d4d   :  { %13409 = vmatprep.subr.bf16.mxu0 %v14003_v0 }
0x2d52   :  { %v13741_v35 = vpop.eup %13740 }
0x2d53   :  { %v8290_v8 = vsel %vm1689_vm4, %v13741_v35, 0.0 }
0x2d54   :  { %8291 = vadd.xlane.f32.xlu1 %v8290_v8 }
0x2d65   :  { %13597 = vrot.lane.b32.xlu1 %v15206_v47, %s14006_s0 }
0x2de1   :  { %v8292_v4 = vpop.xlane.xlu1 %8291 }
0x2de2   :  { %v8293_v2 = vmax.f32 %v8292_v4, 1e-30 }
0x2de4   :  { %13742 = vrcp.f32 %v8293_v2 }
0x2de5   :  { %v13598_v18 = vpop.permute.xlu1 %13597 }
0x2de6   :  { %v13600_v41 = vunpack.i.h.bf16 %v13598_v18  ;;  %v13599_v5 = vunpack.i.l.bf16 %v13598_v18 }
0x2de8   :  { %v13410_v45 = vpack.c.bf16 %v13600_v41, %v13599_v5 }
0x2dee   :  { %v13743_v32 = vpop.eup %13742 }
0x2def   :  { %v8295_v34 = vmul.f32 %v13743_v32, %v14498_v53 }
0x2df1   :  { %v8296_v11 = vmul.f32 %v13741_v35, %v8295_v34 }
0x2df3   :  { %12891 = vmatmul.mubr.msk.f32.vlgmr.msra.gmra.mrb[78].mxu0 %vm1689_vm4, %v8296_v11 }
0x2df4   :  { %13412 = vmatpush3.bf16.xpose.msk.msra.mxu0 %vm14352_vm3, %v13410_v45  ;;  %12897 = vmatprep.mubr.msk.f32.mxu0 %vm14004_vm0, %v14005_v1 }
0x2df5   :  { %13420 = vmatprep.subr.bf16.mxu0 %v14003_v0 }
0x2dfb   :  { %12898 = vmatmul.mubr.msk.f32.vlgmr.msra.gmra.mrb[80].mxu0 %vm1055_vm2, %v8379_v60 }
0x2dfc   :  { %12918 = vmatprep.mubr.msk.f32.mxu0 %vm14004_vm0, %v14005_v1 }
0x2ec6   :  { %v15257_v19 = vpop.f32.mrb[78].mxu0 }
0x2ec7   :  { %v12892_v22 = vpop.f32.mrb[79].mxu0 }
0x2ec8   :  { %v8806_v22 = vld [vmem:[#allocation10 + $0xe8] sm:$0xff] }
0x2ece   :  { %v8456_v44 = vpop.f32.mrb[80].mxu0 }
0x2ecf   :  { %v8457_v56 = vadd.f32 %v15218_v28, %v8456_v44  ;;  %v12899_v7 = vpop.f32.mrb[81].mxu0 }
0x2ed0   :  { %v8808_v7 = vld [vmem:[#allocation10 + $0xf8] sm:$0xff] }
0x2ed1   :  { %v8460_v9 = vsel %vm1689_vm4, %v8457_v56, -inf }
0x2ed2   :  { %8461 = vmax.xlane.f32.xlu0 %v8460_v9 }
0x2ee8   :  { %13602 = vrot.lane.b32.xlu0 %v15184_v52, %s14006_s0 }
0x2eec   :  { %8552 = vrot.lane.b32.xlu0 %v15190_v46, %s14008_s25 }
0x2f5f   :  { %v8462_v12 = vpop.xlane.xlu0 %8461 }
0x2f60   :  { %v8463_v29 = vsub.f32 %v8457_v56, %v8462_v12  ;;  %v8807_v56 = vld [vmem:[#allocation10 + $0xf0] sm:$0xff] }
0x2f61   :  { %v13433_v12 = vpack.c.bf16 %v8808_v7, %v8807_v56 }
0x2f62   :  { %v8464_v51 = vmul.f32 1.442695, %v8463_v29  ;;  %v6408_v29 = vadd.f32 %v11619_v24, %v15008_v43  ;;  %v8729_v24 = vld [vmem:[#allocation8 + $0xf0] sm:$0xff] }
0x2f63   :  { %v13603_v14 = vpop.permute.xlu0 %13602 }
0x2f64   :  { %13744 = vpow2.f32 %v8464_v51  ;;  %v13605_v17 = vunpack.i.h.bf16 %v13603_v14  ;;  %v13604_v35 = vunpack.i.l.bf16 %v13603_v14 }
0x2f66   :  { %v13414_v8 = vpack.c.bf16 %v13605_v17, %v13604_v35 }
0x2f67   :  { %v8553_v9 = vpop.permute.xlu0 %8552 }
0x2f68   :  { %13415 = vmatpush3.bf16.msra.mxu1 %v13414_v8 }
0x2f69   :  { %13416 = vmatprep.subr.bf16.mxu1 %v14003_v0 }
0x2f6e   :  { %v13745_v4 = vpop.eup %13744 }
0x2f6f   :  { %v8466_v2 = vsel %vm1689_vm4, %v13745_v4, 0.0 }
0x2f70   :  { %8467 = vadd.xlane.f32.xlu1 %v8466_v2 }
0x2f81   :  { %13607 = vrot.lane.b32.xlu1 %v15206_v47, %s14008_s25  ;;  %v8805_v47 = vld [vmem:[#allocation10 + $0xe0] sm:$0xff] }
0x2f82   :  { %v13430_v44 = vpack.c.bf16 %v8806_v22, %v8805_v47  ;;  %v8727_v22 = vld [vmem:[#allocation8 + $0xe0] sm:$0xff] }
0x2ffd   :  { %v8468_v18 = vpop.xlane.xlu1 %8467 }
0x2ffe   :  { %v8469_v46 = vmax.f32 %v8468_v18, 1e-30 }
0x3000   :  { %13746 = vrcp.f32 %v8469_v46 }
0x3001   :  { %v13608_v32 = vpop.permute.xlu1 %13607 }
0x3002   :  { %v13610_v5 = vunpack.i.h.bf16 %v13608_v32  ;;  %v13609_v34 = vunpack.i.l.bf16 %v13608_v32 }
0x3004   :  { %v13417_v60 = vpack.c.bf16 %v13610_v5, %v13609_v34 }
0x300a   :  { %v13747_v41 = vpop.eup %13746 }
0x300b   :  { %v8471_v11 = vmul.f32 %v13747_v41, %v14498_v53 }
0x300d   :  { %v8472_v45 = vmul.f32 %v13745_v4, %v8471_v11 }
0x300f   :  { %12905 = vmatmul.mubr.msk.f32.vlgmr.msra.gmra.mrb[90].mxu1 %vm1689_vm4, %v8472_v45 }
0x3010   :  { %13419 = vmatpush3.bf16.xpose.msk.msra.mxu1 %vm14352_vm3, %v13417_v60  ;;  %12911 = vmatprep.mubr.msk.f32.mxu1 %vm14004_vm0, %v14005_v1 }
0x3011   :  { %13429 = vmatprep.subr.bf16.mxu1 %v14003_v0 }
0x3017   :  { %12912 = vmatmul.mubr.msk.f32.vlgmr.msra.gmra.mrb[92].mxu1 %vm1055_vm2, %v8553_v9 }
0x3018   :  { %13431 = vmatpush3.bf16.msra.mxu1 %v13430_v44  ;;  %12940 = vmatprep.mubr.msk.f32.mxu1 %vm14004_vm0, %v14005_v1  ;;  %v8728_v44 = vld [vmem:[#allocation8 + $0xe8] sm:$0xff] }
0x3019   :  { %13432 = vmatprep.subr.bf16.mxu1 %v14003_v0  ;;  %v13424_v9 = vpack.c.bf16 %v8728_v44, %v8727_v22 }
0x301c   :  { %13434 = vmatpush3.bf16.msra.mxu1 %v13433_v12 }
0x301f   :  { %12941 = vmatmul.mubr.msk.f32.vlgmr.msra.gmra.mrb[94].mxu1 %vm140_vm1, %v6408_v29  ;;  %v8730_v29 = vld [vmem:[#allocation8 + $0xf8] sm:$0xff] }
0x30e2   :  { %v15282_v51 = vpop.f32.mrb[90].mxu1 }
0x30e3   :  { %v12906_v14 = vpop.f32.mrb[91].mxu1 }
0x30e4   :  { %v11615_v14 = vld [vmem:[#allocation5 + $0x14] ss:$0 sm:$0xff] }
0x30ea   :  { %v8630_v17 = vpop.f32.mrb[92].mxu1 }
0x30eb   :  { %v8631_v35 = vadd.f32 %v15218_v28, %v8630_v17  ;;  %v12913_v8 = vpop.f32.mrb[93].mxu1  ;;  %v6242_v17 = vadd.f32 %v11615_v14, %v15000_v6 }
0x30ed   :  { %v8634_v4 = vsel %vm1689_vm4, %v8631_v35, -inf }
0x30ee   :  { %8635 = vmax.xlane.f32.xlu1 %v8634_v4 }
0x30f2   :  { %v15286_v2 = vpop.f32.mrb[94].mxu1 }
0x30f3   :  { %v12942_v18 = vpop.f32.mrb[95].mxu1  ;;  %12948 = vmatprep.subr.mxu1 %v15286_v2 }
0x30f4   :  { %12949 = vmatpush3.msra.mxu1 %v15286_v2  ;;  %v15325_v18 = vld [vmem:[%s15685_s8 + $0x38] sm:$0xff] }
0x30f5   :  { %12953 = vmatprep.subr.mxu1 %v15014_v15 }
0x317b   :  { %v8636_v43 = vpop.xlane.xlu1 %8635 }
0x317c   :  { %v8637_v46 = vsub.f32 %v8631_v35, %v8636_v43 }
0x317e   :  { %v8638_v32 = vmul.f32 1.442695, %v8637_v46 }
0x3180   :  { %13748 = vpow2.f32 %v8638_v32 }
0x318a   :  { %v13749_v41 = vpop.eup %13748 }
0x318b   :  { %v8640_v28 = vsel %vm1689_vm4, %v13749_v41, 0.0 }
0x318c   :  { %8641 = vadd.xlane.f32.xlu0 %v8640_v28 }
0x31a2   :  { %13612 = vrot.lane.b32.xlu0 %v15184_v52, %s14008_s25  ;;  %v13427_v52 = vpack.c.bf16 %v8730_v29, %v8729_v24 }
0x3219   :  { %v8642_v5 = vpop.xlane.xlu0 %8641 }
0x321a   :  { %v8643_v34 = vmax.f32 %v8642_v5, 1e-30  ;;  %v15346_v5 = vld [vmem:[%s15685_s8 + $0x8] sm:$0xff] }
0x321c   :  { %13750 = vrcp.f32 %v8643_v34  ;;  %v6648_v34 = vadd.f32 %v15346_v5, %v15079_v27 }
0x321d   :  { %v13613_v11 = vpop.permute.xlu0 %13612 }
0x321e   :  { %v13615_v45 = vunpack.i.h.bf16 %v13613_v11  ;;  %v13614_v60 = vunpack.i.l.bf16 %v13613_v11 }
0x3220   :  { %v13421_v47 = vpack.c.bf16 %v13615_v45, %v13614_v60  ;;  %v6654_v45 = vsel %vm1055_vm2, %v6648_v34, -inf }
0x3222   :  { %13422 = vmatpush3.bf16.msra.mxu0 %v13421_v47 }
0x3223   :  { %13423 = vmatprep.subr.bf16.mxu0 %v14003_v0 }
0x3226   :  { %v13751_v56 = vpop.eup %13750 }
0x3227   :  { %v8645_v7 = vmul.f32 %v13751_v56, %v14498_v53 }
0x3229   :  { %v8646_v12 = vmul.f32 %v13749_v41, %v8645_v7 }
0x322b   :  { %12919 = vmatmul.mubr.msk.f32.vlgmr.msra.gmra.mrb[82].mxu0 %vm1689_vm4, %v8646_v12 }
0x322c   :  { %13425 = vmatpush3.bf16.msra.mxu0 %v13424_v9  ;;  %12929 = vmatprep.mubr.msk.f32.mxu0 %vm14004_vm0, %v14005_v1 }
0x322d   :  { %13426 = vmatprep.subr.bf16.mxu0 %v14003_v0 }
0x3230   :  { %13428 = vmatpush3.bf16.msra.mxu0 %v13427_v52 }
0x3233   :  { %12930 = vmatmul.mubr.msk.f32.vlgmr.msra.gmra.mrb[84].mxu0 %vm140_vm1, %v6242_v17 }
0x3234   :  { %12945 = vmatprep.mubr.msk.f32.mxu0 %vm1055_vm2, %v14990_v21 }
0x32fe   :  { %v15304_v53 = vpop.f32.mrb[82].mxu0 }
0x32ff   :  { %v12920_v35 = vpop.f32.mrb[83].mxu0 }
0x3306   :  { %v15306_v8 = vpop.f32.mrb[84].mxu0 }
0x3307   :  { %9148 = vrot.lane.b32.xlu1 %v15306_v8, %s14007_s30  ;;  %v12931_v4 = vpop.f32.mrb[85].mxu0  ;;  %12943 = vmatprep.subr.msk.mxu0 %vm1055_vm2, %v15306_v8 }
0x3308   :  { %12944 = vmatpush3.xpose.msk.msra.mxu0 %vm1055_vm2, %v15306_v8 }
0x330b   :  { %12946 = vmatmul.mubr.msk.f32.vlgmr.msra.gmra.mrb[86].mxu0 %vm1055_vm2, %v14996_v40 }
0x330c   :  { %12960 = vmatprep.mubr.msk.f32.mxu0 %vm1055_vm2, %v15031_v3  ;;  %v15331_v3 = vld [vmem:[%s15685_s8 + $0x30] sm:$0xff] }
0x3379   :  { %v9149_v21 = vpop.permute.xlu1 %9148 }
0x337a   :  { %12958 = vmatprep.subr.msk.mxu0 %vm1055_vm2, %v9149_v21 }
0x337b   :  { %12959 = vmatpush3.xpose.msk.msra.mxu0 %vm1055_vm2, %v9149_v21 }
0x337e   :  { %12961 = vmatmul.mubr.msk.f32.vlgmr.msra.gmra.mrb[88].mxu0 %vm1055_vm2, %v15043_v63  ;;  %v15337_v63 = vld [vmem:[%s15685_s8] sm:$0xff] }
0x337f   :  { %v6643_v32 = vadd.f32 %v15337_v63, %v15081_v61  ;;  %v6756_v61 = vadd.f32 %v15337_v63, %v15089_v33  ;;  %v6761_v33 = vadd.f32 %v15346_v5, %v15087_v48 }
0x3381   :  { %v6651_v11 = vsel %vm1055_vm2, %v6643_v32, -inf  ;;  %v6764_v60 = vsel %vm1055_vm2, %v6756_v61, -inf  ;;  %v6767_v9 = vsel %vm1055_vm2, %v6761_v33, -inf }
0x33de   :  { %v12947_v6 = vpop.f32.mrb[86].mxu0 }
0x33df   :  { %v8957_v43 = vadd.f32 %v15325_v18, %v12947_v6  ;;  %v8951_v40 = vpop.f32.mrb[87].mxu0 }
0x33e0   :  { %v8952_v46 = vadd.f32 %v15331_v3, %v8951_v40 }
0x33e1   :  { %v8963_v41 = vsel %vm1055_vm2, %v8957_v43, -inf }
0x33e2   :  { %8964 = vmax.xlane.f32.xlu0 %v8963_v41  ;;  %v8960_v28 = vsel %vm1055_vm2, %v8952_v46, -inf }
0x33e3   :  { %8961 = vmax.xlane.f32.xlu1 %v8960_v28 }
0x33e6   :  { %6652 = vmax.xlane.f32.xlu0 %v6651_v11 }
0x33ea   :  { %6655 = vmax.xlane.f32.xlu0 %v6654_v45 }
0x33ee   :  { %6765 = vmax.xlane.f32.xlu0 %v6764_v60 }
0x3451   :  { %v12962_v47 = vpop.f32.mrb[88].mxu0 }
0x3452   :  { %v9218_v22 = vpop.f32.mrb[89].mxu0  ;;  %v15359_v56 = vadd.f32 %v15325_v18, %v12962_v47 }
0x3453   :  { %v15356_v44 = vadd.f32 %v15331_v3, %v9218_v22 }
0x3454   :  { %v9230_v7 = vsel %vm1055_vm2, %v15359_v56, -inf }
0x3455   :  { %v9227_v27 = vsel %vm1055_vm2, %v15356_v44, -inf }
0x3456   :  { %9228 = vmax.xlane.f32.xlu1 %v9227_v27 }
0x345a   :  { %9231 = vmax.xlane.f32.xlu1 %v9230_v7 }
0x345e   :  { %6768 = vmax.xlane.f32.xlu1 %v6767_v9 }
0x346f   :  { %v8965_v12 = vpop.xlane.xlu0 %8964 }
0x3470   :  { %v8967_v24 = vsub.f32 %v8957_v43, %v8965_v12  ;;  %v8962_v29 = vpop.xlane.xlu1 %8961 }
0x3471   :  { %v8966_v14 = vsub.f32 %v8952_v46, %v8962_v29 }
0x3472   :  { %v8970_v52 = vmul.f32 1.442695, %v8967_v24 }
0x3473   :  { %v6653_v17 = vpop.xlane.xlu0 %6652  ;;  %v8968_v4 = vmul.f32 1.442695, %v8966_v14 }
0x3474   :  { %13752 = vpow2.f32 %v8970_v52  ;;  %v6657_v35 = vsub.f32 %v6643_v32, %v6653_v17 }
0x3476   :  { %v6659_v21 = vmul.f32 1.442695, %v6657_v35 }
0x3477   :  { %v6656_v6 = vpop.xlane.xlu0 %6655 }
0x3478   :  { %13754 = vpow2.f32 %v6659_v21  ;;  %v6658_v48 = vsub.f32 %v6648_v34, %v6656_v6 }
0x3479   :  { %13756 = vpow2.f32 %v8968_v4 }
0x347a   :  { %v6661_v40 = vmul.f32 1.442695, %v6658_v48 }
0x347b   :  { %v6766_v41 = vpop.xlane.xlu0 %6765 }
0x347c   :  { %v6770_v28 = vsub.f32 %v6756_v61, %v6766_v41  ;;  %13758 = vpow2.f32 %v6661_v40 }
0x347e   :  { %v13753_v11 = vpop.eup %13752  ;;  %v6772_v45 = vmul.f32 1.442695, %v6770_v28 }
0x347f   :  { %v8975_v43 = vsel %vm1055_vm2, %v13753_v11, 0.0 }
0x3480   :  { %8976 = vadd.xlane.f32.xlu1 %v8975_v43  ;;  %13760 = vpow2.f32 %v6772_v45 }
0x3482   :  { %v13755_v60 = vpop.eup %13754 }
0x3483   :  { %v6663_v46 = vsel %vm1055_vm2, %v13755_v60, 0.0  ;;  %v13757_v32 = vpop.eup %13756 }
0x3484   :  { %6664 = vadd.xlane.f32.xlu0 %v6663_v46  ;;  %v8972_v47 = vsel %vm1055_vm2, %v13757_v32, 0.0 }
0x3486   :  { %v13759_v22 = vpop.eup %13758 }
0x3487   :  { %v6666_v34 = vsel %vm1055_vm2, %v13759_v22, 0.0 }
0x3488   :  { %8973 = vadd.xlane.f32.xlu0 %v8972_v47 }
0x348a   :  { %v15372_v27 = vpop.eup %13760 }
0x348b   :  { %v6776_v61 = vsel %vm1055_vm2, %v15372_v27, 0.0 }
0x348c   :  { %6667 = vadd.xlane.f32.xlu0 %v6666_v34 }
0x3490   :  { %6777 = vadd.xlane.f32.xlu0 %v6776_v61 }
0x34a6   :  { %9254 = vrot.lane.b32.xlu0 %v15286_v2, %s14007_s30 }
0x34aa   :  { %9696 = vrot.lane.b32.xlu0 %v15306_v8, %s14008_s25 }
0x34e3   :  { %v9229_v7 = vpop.xlane.xlu1 %9228 }
0x34e4   :  { %v9233_v43 = vsub.f32 %v15356_v44, %v9229_v7 }
0x34e7   :  { %v9232_v9 = vpop.xlane.xlu1 %9231 }
0x34e8   :  { %v9234_v41 = vsub.f32 %v15359_v56, %v9232_v9 }
0x34ea   :  { %v9237_v46 = vmul.f32 1.442695, %v9234_v41 }
0x34eb   :  { %v6769_v12 = vpop.xlane.xlu1 %6768 }
0x34ec   :  { %v6771_v24 = vsub.f32 %v6761_v33, %v6769_v12  ;;  %v9235_v12 = vmul.f32 1.442695, %v9233_v43 }
0x34ee   :  { %v6774_v29 = vmul.f32 1.442695, %v6771_v24 }
0x34f0   :  { %13762 = vpow2.f32 %v6774_v29 }
0x34fa   :  { %v15380_v52 = vpop.eup %13762 }
0x34fb   :  { %v6779_v14 = vsel %vm1055_vm2, %v15380_v52, 0.0 }
0x34fc   :  { %6780 = vadd.xlane.f32.xlu1 %v6779_v14 }
0x350d   :  { %9423 = vrot.lane.b32.xlu1 %v15306_v8, %s14006_s0  ;;  %v8977_v17 = vpop.xlane.xlu1 %8976 }
0x350e   :  { %v8979_v35 = vmax.f32 %v8977_v17, 1e-30 }
0x3510   :  { %13764 = vrcp.f32 %v8979_v35 }
0x3511   :  { %v6665_v4 = vpop.xlane.xlu0 %6664 }
0x3512   :  { %v6669_v21 = vmax.f32 %v6665_v4, 1e-30 }
0x3514   :  { %13766 = vrcp.f32 %v6669_v21 }
0x3515   :  { %v8974_v6 = vpop.xlane.xlu0 %8973 }
0x3516   :  { %v8978_v48 = vmax.f32 %v8974_v6, 1e-30 }
0x3518   :  { %13768 = vrcp.f32 %v8978_v48 }
0x3519   :  { %v6668_v33 = vpop.xlane.xlu0 %6667 }
0x351a   :  { %v6670_v40 = vmax.f32 %v6668_v33, 1e-30  ;;  %v13765_v45 = vpop.eup %13764 }
0x351b   :  { %v8983_v61 = vmul.f32 %v13765_v45, %v14692_v59 }
0x351c   :  { %13770 = vrcp.f32 %v6670_v40 }
0x351d   :  { %v6778_v28 = vpop.xlane.xlu0 %6777  ;;  %13772 = vpow2.f32 %v9237_v46  ;;  %v8985_v9 = vmul.f32 %v13753_v11, %v8983_v61 }
0x351e   :  { %v13767_v8 = vpop.eup %13766  ;;  %13774 = vpow2.f32 %v9235_v12  ;;  %v6782_v6 = vmax.f32 %v6778_v28, 1e-30 }
0x351f   :  { %v6672_v29 = vmul.f32 %v13767_v8, %v14689_v26 }
0x3521   :  { %v9255_v47 = vpop.permute.xlu0 %9254  ;;  %v6675_v44 = vmul.f32 %v13755_v60, %v6672_v29 }
0x3522   :  { %v13769_v34 = vpop.eup %13768  ;;  %12963 = vmatprep.subr.mxu0 %v9255_v47 }
0x3523   :  { %12964 = vmatpush3.msra.mxu0 %v9255_v47  ;;  %v8981_v24 = vmul.f32 %v13769_v34, %v14684_v31 }
0x3525   :  { %v8984_v56 = vmul.f32 %v13757_v32, %v8981_v24  ;;  %v9697_v24 = vpop.permute.xlu0 %9696 }
0x3526   :  { %v13771_v14 = vpop.eup %13770 }
0x3527   :  { %12950 = vmatprep.mubr.msk.f32.mxu1 %vm1055_vm2, %v8984_v56  ;;  %v6674_v7 = vmul.f32 %v13771_v14, %v14697_v49  ;;  %v13773_v17 = vpop.eup %13772 }
0x3528   :  { %12951 = vmatmul.mubr.msk.f32.vlgmr.msra.gmra.mrb[96].mxu1 %vm1055_vm2, %v8985_v9  ;;  %v9242_v32 = vsel %vm1055_vm2, %v13773_v17, 0.0  ;;  %v13775_v11 = vpop.eup %13774 }
0x3529   :  { %12954 = vmatpush3.msra.mxu1 %v15014_v15  ;;  %12955 = vmatprep.mubr.msk.f32.mxu1 %vm1055_vm2, %v6675_v44  ;;  %v6676_v35 = vmul.f32 %v13759_v22, %v6674_v7  ;;  %v9239_v60 = vsel %vm1055_vm2, %v13775_v11, 0.0 }
0x3530   :  { %12956 = vmatmul.mubr.msk.f32.vlgmr.msra.gmra.mrb[96].mxu1 %vm1055_vm2, %v6676_v35  ;;  %v6874_v35 = vadd.f32 %v15346_v5, %v15083_v36 }
0x3531   :  { %9243 = vadd.xlane.f32.xlu1 %v9242_v32  ;;  %12975 = vmatprep.mubr.msk.f32.mxu1 %vm1055_vm2, %v15025_v57 }
0x3535   :  { %9240 = vadd.xlane.f32.xlu1 %v9239_v60  ;;  %v6880_v60 = vsel %vm1055_vm2, %v6874_v35, -inf }
0x3546   :  { %9339 = vrot.lane.b32.xlu1 %v15014_v15, %s14007_s30 }
0x3589   :  { %v6781_v4 = vpop.xlane.xlu1 %6780 }
0x358a   :  { %v6783_v40 = vmax.f32 %v6781_v4, 1e-30 }
0x358d   :  { %v9424_v21 = vpop.permute.xlu1 %9423 }
0x358e   :  { %12973 = vmatprep.subr.msk.mxu1 %vm1055_vm2, %v9424_v21 }
0x358f   :  { %12974 = vmatpush3.xpose.msk.msra.mxu1 %vm1055_vm2, %v9424_v21 }
0x3592   :  { %12976 = vmatmul.mubr.msk.f32.vlgmr.msra.gmra.mrb[98].mxu1 %vm1055_vm2, %v15029_v38 }
0x35be   :  { %v9244_v22 = vpop.xlane.xlu1 %9243 }
0x35bf   :  { %v9246_v48 = vmax.f32 %v9244_v22, 1e-30 }
0x35c1   :  { %13776 = vrcp.f32 %v9246_v48 }
0x35c2   :  { %v9241_v57 = vpop.xlane.xlu1 %9240  ;;  %13778 = vrcp.f32 %v6782_v6 }
0x35c3   :  { %v9245_v33 = vmax.f32 %v9241_v57, 1e-30 }
0x35c5   :  { %13780 = vrcp.f32 %v9245_v33 }
0x35c6   :  { %v9340_v41 = vpop.permute.xlu1 %9339  ;;  %13782 = vrcp.f32 %v6783_v40 }
0x35c7   :  { %12968 = vmatprep.subr.mxu0 %v9340_v41 }
0x35cb   :  { %v13777_v45 = vpop.eup %13776 }
0x35cc   :  { %v13779_v43 = vpop.eup %13778  ;;  %v9250_v8 = vmul.f32 %v13777_v45, %v14692_v59 }
0x35cd   :  { %v6785_v38 = vmul.f32 %v13779_v43, %v14689_v26 }
0x35ce   :  { %v9252_v34 = vmul.f32 %v13773_v17, %v9250_v8  ;;  %v6869_v17 = vadd.f32 %v15337_v63, %v15085_v54 }
0x35cf   :  { %v13781_v46 = vpop.eup %13780  ;;  %v6788_v12 = vmul.f32 %v15372_v27, %v6785_v38 }
0x35d0   :  { %v9248_v47 = vmul.f32 %v13781_v46, %v14684_v31  ;;  %v13783_v61 = vpop.eup %13782  ;;  %v6877_v32 = vsel %vm1055_vm2, %v6869_v17, -inf }
0x35d1   :  { %v6787_v29 = vmul.f32 %v13783_v61, %v14697_v49 }
0x35d2   :  { %v9251_v28 = vmul.f32 %v13775_v11, %v9248_v47  ;;  %v6982_v11 = vadd.f32 %v15337_v63, %v15095_v37  ;;  %v6987_v63 = vadd.f32 %v15346_v5, %v15091_v16 }
0x35d3   :  { %v6789_v56 = vmul.f32 %v15380_v52, %v6787_v29 }
0x35d4   :  { %12965 = vmatprep.mubr.msk.f32.mxu0 %vm1055_vm2, %v9251_v28  ;;  %v6990_v54 = vsel %vm1055_vm2, %v6982_v11, -inf  ;;  %v6993_v33 = vsel %vm1055_vm2, %v6987_v63, -inf }
0x35d5   :  { %12966 = vmatmul.mubr.msk.f32.vlgmr.msra.gmra.mrb[90].mxu0 %vm1055_vm2, %v9252_v34 }
0x35d6   :  { %12969 = vmatpush3.msra.mxu0 %v9340_v41  ;;  %12970 = vmatprep.mubr.msk.f32.mxu0 %vm1055_vm2, %v6788_v12 }
0x35d7   :  { %12988 = vmatprep.subr.msk.mxu0 %vm1055_vm2, %v9697_v24 }
0x35dd   :  { %12971 = vmatmul.mubr.msk.f32.vlgmr.msra.gmra.mrb[90].mxu0 %vm1055_vm2, %v6789_v56 }
0x35de   :  { %12989 = vmatpush3.xpose.msk.msra.mxu0 %vm1055_vm2, %v9697_v24  ;;  %12990 = vmatprep.mubr.msk.f32.mxu0 %vm1055_vm2, %v15055_v50 }
0x35e1   :  { %12991 = vmatmul.mubr.msk.f32.vlgmr.msra.gmra.mrb[92].mxu0 %vm1055_vm2, %v15059_v23 }
0x3603   :  { %v15423_v27 = vpop.f32.mrb[96].mxu1 }
0x3604   :  { %v15425_v9 = vpop.f32.mrb[97].mxu1 }
0x3665   :  { %v12977_v14 = vpop.f32.mrb[98].mxu1 }
0x3666   :  { %v15428_v44 = vadd.f32 %v15325_v18, %v12977_v14  ;;  %v9493_v7 = vpop.f32.mrb[99].mxu1 }
0x3667   :  { %v9494_v52 = vadd.f32 %v15331_v3, %v9493_v7 }
0x3668   :  { %v9505_v50 = vsel %vm1055_vm2, %v15428_v44, -inf }
0x3669   :  { %9506 = vmax.xlane.f32.xlu0 %v9505_v50  ;;  %v9502_v23 = vsel %vm1055_vm2, %v9494_v52, -inf  ;;  %v11710_v50 = vld [vmem:[%s15682_s5 + $0x3] sm:$0x1] }
0x366a   :  { %9503 = vmax.xlane.f32.xlu1 %v9502_v23 }
0x366d   :  { %6878 = vmax.xlane.f32.xlu0 %v6877_v32  ;;  %v11732_v32 = vld [vmem:[%s15682_s5 + $0x5] sm:$0x1] }
0x3671   :  { %6881 = vmax.xlane.f32.xlu0 %v6880_v60  ;;  %v11070_v60 = vsub.f32 1.0, %v11732_v32 }
0x3675   :  { %6991 = vmax.xlane.f32.xlu0 %v6990_v54  ;;  %v11075_v54 = vrot.slane %v11070_v60, %v14171_v10 }
0x36b0   :  { %v15443_v4 = vpop.f32.mrb[90].mxu0 }
0x36b1   :  { %v15445_v21 = vpop.f32.mrb[91].mxu0 }
0x36b4   :  { %v12992_v22 = vpop.f32.mrb[92].mxu0 }
0x36b5   :  { %v9766_v6 = vpop.f32.mrb[93].mxu0  ;;  %v15451_v48 = vadd.f32 %v15325_v18, %v12992_v22 }
0x36b6   :  { %v15448_v36 = vadd.f32 %v15331_v3, %v9766_v6 }
0x36b7   :  { %v9778_v57 = vsel %vm1055_vm2, %v15451_v48, -inf }
0x36b8   :  { %v9775_v37 = vsel %vm1055_vm2, %v15448_v36, -inf }
0x36b9   :  { %9776 = vmax.xlane.f32.xlu1 %v9775_v37 }
0x36bd   :  { %9779 = vmax.xlane.f32.xlu1 %v9778_v57 }
0x36c1   :  { %6994 = vmax.xlane.f32.xlu1 %v6993_v33 }
0x36f6   :  { %v9507_v40 = vpop.xlane.xlu0 %9506 }
0x36f7   :  { %v9504_v18 = vpop.xlane.xlu1 %9503  ;;  %v9509_v37 = vsub.f32 %v15428_v44, %v9507_v40 }
0x36f8   :  { %v9508_v8 = vsub.f32 %v9494_v52, %v9504_v18  ;;  %v11723_v52 = vld [vmem:[%s15682_s5 + $0x4] sm:$0x1] }
0x36fa   :  { %v6879_v3 = vpop.xlane.xlu0 %6878  ;;  %v9510_v5 = vmul.f32 1.442695, %v9508_v8 }
0x36fb   :  { %v6883_v41 = vsub.f32 %v6869_v17, %v6879_v3  ;;  %v10690_v17 = vsub.f32 1.0, %v11723_v52  ;;  %v9512_v3 = vmul.f32 1.442695, %v9509_v37 }
0x36fd   :  { %v6885_v45 = vmul.f32 1.442695, %v6883_v41  ;;  %v10695_v23 = vrot.slane %v10690_v17, %v14171_v10  ;;  %v10283_v17 = vrot.slane %v11710_v50, %v14171_v10 }
0x36fe   :  { %v6882_v43 = vpop.xlane.xlu0 %6881 }
0x36ff   :  { %13784 = vpow2.f32 %v6885_v45  ;;  %v6884_v46 = vsub.f32 %v6874_v35, %v6882_v43  ;;  %v10289_v35 = vsub.f32 1.0, %v11710_v50 }
0x3701   :  { %v6887_v47 = vmul.f32 1.442695, %v6884_v46 }
0x3702   :  { %v6992_v38 = vpop.xlane.xlu0 %6991 }
0x3703   :  { %13786 = vpow2.f32 %v6887_v47  ;;  %v6996_v16 = vsub.f32 %v6982_v11, %v6992_v38  ;;  %v10294_v11 = vrot.slane %v10289_v35, %v14171_v10 }
0x3705   :  { %v6998_v28 = vmul.f32 1.442695, %v6996_v16 }
0x3707   :  { %13788 = vpow2.f32 %v6998_v28 }
0x3708   :  { %13790 = vpow2.f32 %v9510_v5 }
0x3709   :  { %v15460_v34 = vpop.eup %13784 }
0x370a   :  { %v6889_v61 = vsel %vm1055_vm2, %v15460_v34, 0.0 }
0x370b   :  { %6890 = vadd.xlane.f32.xlu0 %v6889_v61 }
0x370d   :  { %v15464_v12 = vpop.eup %13786 }
0x370e   :  { %v6892_v24 = vsel %vm1055_vm2, %v15464_v12, 0.0 }
0x370f   :  { %6893 = vadd.xlane.f32.xlu0 %v6892_v24 }
0x3711   :  { %v15468_v29 = vpop.eup %13788 }
0x3712   :  { %v7002_v56 = vsel %vm1055_vm2, %v15468_v29, 0.0  ;;  %v13791_v14 = vpop.eup %13790 }
0x3713   :  { %7003 = vadd.xlane.f32.xlu0 %v7002_v56  ;;  %v9514_v7 = vsel %vm1055_vm2, %v13791_v14, 0.0  ;;  %v10683_v56 = vrot.slane %v11723_v52, %v14171_v10 }
0x3717   :  { %9515 = vadd.xlane.f32.xlu0 %v9514_v7 }
0x372d   :  { %9528 = vrot.lane.b32.xlu0 %v15286_v2, %s14006_s0 }
0x3731   :  { %9885 = vrot.lane.b32.xlu0 %v15014_v15, %s14008_s25 }
0x3735   :  { %10697 = vperm.xlu0 %13554, %v10695_v23  }
0x3739   :  { %10296 = vperm.xlu0 %13554, %v10294_v11   ;;  %v11064_v11 = vrot.slane %v11732_v32, %v14171_v10 }
0x373d   :  { %11077 = vperm.xlu0 %13554, %v11075_v54  }
0x3746   :  { %v9777_v22 = vpop.xlane.xlu1 %9776 }
0x374a   :  { %v9780_v6 = vpop.xlane.xlu1 %9779 }
0x374b   :  { %v9782_v44 = vsub.f32 %v15451_v48, %v9780_v6 }
0x374d   :  { %v9785_v40 = vmul.f32 1.442695, %v9782_v44 }
0x374e   :  { %v6995_v57 = vpop.xlane.xlu1 %6994 }
0x374f   :  { %v6997_v33 = vsub.f32 %v6987_v63, %v6995_v57  ;;  %v9781_v63 = vsub.f32 %v15448_v36, %v9777_v22 }
0x3751   :  { %v7000_v41 = vmul.f32 1.442695, %v6997_v33  ;;  %v9783_v8 = vmul.f32 1.442695, %v9781_v63 }
0x3753   :  { %13792 = vpow2.f32 %v7000_v41 }
0x3754   :  { %13794 = vpow2.f32 %v9512_v3 }
0x3755   :  { %13796 = vpow2.f32 %v9785_v40 }
0x3756   :  { %13798 = vpow2.f32 %v9783_v8 }
0x375d   :  { %v15490_v45 = vpop.eup %13792 }
0x375e   :  { %v7005_v18 = vsel %vm1055_vm2, %v15490_v45, 0.0  ;;  %v13795_v43 = vpop.eup %13794 }
0x375f   :  { %7006 = vadd.xlane.f32.xlu1 %v7005_v18  ;;  %v9517_v46 = vsel %vm1055_vm2, %v13795_v43, 0.0  ;;  %v15499_v47 = vpop.eup %13796  ;;  %v9971_v18 = vld [vmem:[#allocation2 + $0x1e8] sm:$0xff] }
0x3760   :  { %v9790_v38 = vsel %vm1055_vm2, %v15499_v47, 0.0  ;;  %v15503_v16 = vpop.eup %13798 }
0x3763   :  { %9518 = vadd.xlane.f32.xlu1 %v9517_v46 }
0x3774   :  { %9612 = vrot.lane.b32.xlu1 %v15014_v15, %s14006_s0  ;;  %v9787_v15 = vsel %vm1055_vm2, %v15503_v16, 0.0 }
0x3798   :  { %v6891_v5 = vpop.xlane.xlu0 %6890  ;;  %9791 = vadd.xlane.f32.xlu1 %v9790_v38 }
0x3799   :  { %v6895_v60 = vmax.f32 %v6891_v5, 1e-30 }
0x379c   :  { %v6894_v28 = vpop.xlane.xlu0 %6893  ;;  %9788 = vadd.xlane.f32.xlu1 %v9787_v15 }
0x379d   :  { %v6896_v52 = vmax.f32 %v6894_v28, 1e-30 }
0x37a0   :  { %v15507_v48 = vpop.xlane.xlu0 %7003 }
0x37a1   :  { %v7008_v46 = vmax.f32 %v15507_v48, 1e-30 }
0x37a4   :  { %v9516_v36 = vpop.xlane.xlu0 %9515 }
0x37a5   :  { %v9520_v61 = vmax.f32 %v9516_v36, 1e-30 }
0x37a7   :  { %13800 = vrcp.f32 %v9520_v61 }
0x37a8   :  { %v9529_v24 = vpop.permute.xlu0 %9528  ;;  %13802 = vrcp.f32 %v6895_v60 }
0x37a9   :  { %12978 = vmatprep.subr.mxu1 %v9529_v24 }
0x37aa   :  { %12979 = vmatpush3.msra.mxu1 %v9529_v24 }
0x37ac   :  { %v9886_v8 = vpop.permute.xlu0 %9885 }
0x37ad   :  { %9801 = vrot.lane.b32.xlu1 %v15286_v2, %s14008_s25 }
0x37b1   :  { %v13801_v7 = vpop.eup %13800  ;;  %10685 = vperm.xlu1 %13555, %v10683_v56  }
0x37b2   :  { %v9523_v23 = vmul.f32 %v13801_v7, %v14684_v31  ;;  %v13803_v50 = vpop.eup %13802 }
0x37b4   :  { %v9526_v35 = vmul.f32 %v13791_v14, %v9523_v23  ;;  %v6898_v14 = vmul.f32 %v13803_v50, %v14689_v26 }
0x37b5   :  { %10285 = vperm.xlu1 %13555, %v10283_v17  }
0x37b6   :  { %12980 = vmatprep.mubr.msk.f32.mxu1 %vm1055_vm2, %v9526_v35  ;;  %v6901_v33 = vmul.f32 %v15460_v34, %v6898_v14  ;;  %v9970_v34 = vld [vmem:[#allocation2 + $0x1e0] sm:$0xff] }
0x37b9   :  { %11066 = vperm.xlu1 %13555, %v11064_v11  }
0x37ec   :  { %v15516_v54 = vpop.xlane.xlu1 %7006 }
0x37ed   :  { %v7009_v63 = vmax.f32 %v15516_v54, 1e-30 }
0x37f0   :  { %v9519_v2 = vpop.xlane.xlu1 %9518 }
0x37f1   :  { %v9521_v22 = vmax.f32 %v9519_v2, 1e-30 }
0x37f3   :  { %13804 = vrcp.f32 %v9521_v22 }
0x37f4   :  { %v9613_v6 = vpop.permute.xlu1 %9612  ;;  %13806 = vrcp.f32 %v6896_v52 }
0x37f5   :  { %12983 = vmatprep.subr.mxu1 %v9613_v6 }
0x37fd   :  { %v13805_v37 = vpop.eup %13804 }
0x37fe   :  { %v9525_v10 = vmul.f32 %v13805_v37, %v14692_v59  ;;  %v13807_v57 = vpop.eup %13806 }
0x37ff   :  { %v6900_v3 = vmul.f32 %v13807_v57, %v14697_v49 }
0x3800   :  { %v9527_v32 = vmul.f32 %v13795_v43, %v9525_v10  ;;  %v10752_v43 = vld [vmem:[#allocation2 + $0x2e8] sm:$0xff] }
0x3801   :  { %v6902_v41 = vmul.f32 %v15464_v12, %v6900_v3  ;;  %v9973_v12 = vld [vmem:[#allocation2 + $0x1f8] sm:$0xff] }
0x3802   :  { %12981 = vmatmul.mubr.msk.f32.vlgmr.msra.gmra.mrb[100].mxu1 %vm1055_vm2, %v9527_v32 }
0x3803   :  { %12984 = vmatpush3.msra.mxu1 %v9613_v6  ;;  %12985 = vmatprep.mubr.msk.f32.mxu1 %vm1055_vm2, %v6901_v33 }
0x3804   :  { %13003 = vmatprep.subr.mxu1 %v14005_v1 }
0x380a   :  { %12986 = vmatmul.mubr.msk.f32.vlgmr.msra.gmra.mrb[100].mxu1 %vm1055_vm2, %v6902_v41 }
0x380b   :  { %13004 = vmatpush3.msra.mxu1 %v9971_v18  ;;  %13005 = vmatprep.mubr.msk.f32.mxu1 %vm14004_vm0, %v14005_v1  ;;  %v10698_v18 = vpop.permute.xlu0 %10697 }
0x380c   :  { %13008 = vmatprep.subr.mxu1 %v14005_v1 }
0x380e   :  { %13006 = vmatmul.mubr.msk.f32.vlgmr.msra.gmra.mrb[102].mxu1 %vm1055_vm2, %v15154_v62  ;;  %v10751_v62 = vld [vmem:[#allocation2 + $0x2e0] sm:$0xff] }
0x380f   :  { %13009 = vmatpush3.msra.mxu1 %v9970_v34  ;;  %13010 = vmatprep.mubr.msk.f32.mxu1 %vm14004_vm0, %v14005_v1 }
0x3810   :  { %13018 = vmatprep.subr.mxu1 %v14005_v1 }
0x3812   :  { %13011 = vmatmul.mubr.msk.f32.vlgmr.msra.gmra.mrb[104].mxu1 %vm1055_vm2, %v15132_v39  ;;  %v10753_v39 = vld [vmem:[#allocation2 + $0x2f0] sm:$0xff] }
0x3813   :  { %13019 = vmatpush3.msra.mxu1 %v9973_v12  ;;  %13020 = vmatprep.mubr.msk.f32.mxu1 %vm14004_vm0, %v14005_v1  ;;  %v11709_v12 = vld [vmem:[#allocation5 + $0xf] ss:$0 sm:$0xff] }
0x3814   :  { %13043 = vmatprep.subr.mxu1 %v14005_v1 }
0x3816   :  { %13021 = vmatmul.mubr.msk.f32.vlgmr.msra.gmra.mrb[106].mxu1 %vm1055_vm2, %v15204_v30  ;;  %v10754_v30 = vld [vmem:[#allocation2 + $0x2f8] sm:$0xff] }
0x3817   :  { %13044 = vmatpush3.msra.mxu1 %v10752_v43  ;;  %13045 = vmatprep.mubr.msk.f32.mxu1 %vm14004_vm0, %v14005_v1  ;;  %v10297_v43 = vpop.permute.xlu0 %10296 }
0x3818   :  { %13048 = vmatprep.subr.mxu1 %v14005_v1 }
0x381a   :  { %13046 = vmatmul.mubr.msk.f32.vlgmr.msra.gmra.mrb[108].mxu1 %vm1055_vm2, %v15257_v19 }
0x381b   :  { %13049 = vmatpush3.msra.mxu1 %v10751_v62  ;;  %13050 = vmatprep.mubr.msk.f32.mxu1 %vm14004_vm0, %v14005_v1 }
0x381c   :  { %13053 = vmatprep.subr.mxu1 %v14005_v1 }
0x381e   :  { %13051 = vmatmul.mubr.msk.f32.vlgmr.msra.gmra.mrb[110].mxu1 %vm1055_vm2, %v15235_v55 }
0x381f   :  { %13054 = vmatpush3.msra.mxu1 %v10753_v39  ;;  %13055 = vmatprep.mubr.msk.f32.mxu1 %vm14004_vm0, %v14005_v1  ;;  %v11731_v39 = vld [vmem:[#allocation5 + $0x17] ss:$0 sm:$0xff] }
0x3820   :  { %13058 = vmatprep.subr.mxu1 %v14005_v1 }
0x3822   :  { %13056 = vmatmul.mubr.msk.f32.vlgmr.msra.gmra.mrb[112].mxu1 %vm1055_vm2, %v15282_v51 }
0x3823   :  { %13059 = vmatpush3.msra.mxu1 %v10754_v30  ;;  %13060 = vmatprep.mubr.msk.f32.mxu1 %vm14004_vm0, %v14005_v1 }
0x3824   :  { %13438 = vmatprep.subr.bf16.mxu1 %v14003_v0 }
0x3825   :  { %v9792_v19 = vpop.xlane.xlu1 %9791 }
0x3826   :  { %v9794_v55 = vmax.f32 %v9792_v19, 1e-30  ;;  %13061 = vmatmul.mubr.msk.f32.vlgmr.msra.gmra.mrb[114].mxu1 %vm1055_vm2, %v15304_v53  ;;  %v11722_v19 = vld [vmem:[#allocation5 + $0x13] ss:$0 sm:$0xff] }
0x3827   :  { %13088 = vmatprep.mubr.msk.f32.mxu1 %vm14004_vm0, %v14005_v1 }
0x3828   :  { %13808 = vrcp.f32 %v9794_v55 }
0x3829   :  { %v9789_v44 = vpop.xlane.xlu1 %9788  ;;  %13810 = vrcp.f32 %v7008_v46 }
0x382a   :  { %v9793_v51 = vmax.f32 %v9789_v44, 1e-30 }
0x382c   :  { %13812 = vrcp.f32 %v9793_v51 }
0x382d   :  { %v9802_v40 = vpop.permute.xlu1 %9801  ;;  %13814 = vrcp.f32 %v7009_v63 }
0x382e   :  { %12993 = vmatprep.subr.mxu0 %v9802_v40 }
0x382f   :  { %12994 = vmatpush3.msra.mxu0 %v9802_v40 }
0x3830   :  { %12998 = vmatprep.subr.mxu0 %v9886_v8 }
0x3831   :  { %v10686_v34 = vpop.permute.xlu1 %10685 }
0x3832   :  { %v13809_v38 = vpop.eup %13808 }
0x3833   :  { %v13811_v5 = vpop.eup %13810  ;;  %v9798_v53 = vmul.f32 %v13809_v38, %v14692_v59  ;;  %v10701_v38 = vmul.f32 %v10698_v18, %v14937_v58 }
0x3834   :  { %v7011_v48 = vmul.f32 %v13811_v5, %v14689_v26  ;;  %v9972_v26 = vld [vmem:[#allocation2 + $0x1f0] sm:$0xff]  ;;  %v11078_v5 = vpop.permute.xlu0 %11077 }
0x3835   :  { %v9800_v61 = vmul.f32 %v15499_v47, %v9798_v53  ;;  %v10286_v62 = vpop.permute.xlu1 %10285 }
0x3836   :  { %v13813_v15 = vpop.eup %13812  ;;  %v7014_v56 = vmul.f32 %v15468_v29, %v7011_v48  ;;  %v10333_v29 = vld [vmem:[#allocation2 + $0x260] sm:$0xff]  ;;  %v10700_v48 = vmul.f32 %v10698_v18, %v14939_v25 }
0x3837   :  { %v9796_v28 = vmul.f32 %v13813_v15, %v14684_v31  ;;  %v13815_v24 = vpop.eup %13814 }
0x3838   :  { %v7013_v59 = vmul.f32 %v13815_v24, %v14697_v49  ;;  %v10335_v49 = vld [vmem:[#allocation2 + $0x270] sm:$0xff]  ;;  %v10299_v24 = vmul.f32 %v10297_v43, %v14909_v13 }
0x3839   :  { %v9799_v36 = vmul.f32 %v15503_v16, %v9796_v28  ;;  %v10334_v16 = vld [vmem:[#allocation2 + $0x268] sm:$0xff]  ;;  %v11067_v15 = vpop.permute.xlu1 %11066 }
0x383a   :  { %v7015_v31 = vmul.f32 %v15490_v45, %v7013_v59  ;;  %v10336_v45 = vld [vmem:[#allocation2 + $0x278] sm:$0xff]  ;;  %v11080_v59 = vmul.f32 %v11078_v5, %v14958_v42 }
0x383b   :  { %12995 = vmatprep.mubr.msk.f32.mxu0 %vm1055_vm2, %v9799_v36 }
0x383c   :  { %12996 = vmatmul.mubr.msk.f32.vlgmr.msra.gmra.mrb[94].mxu0 %vm1055_vm2, %v9800_v61 }
0x383d   :  { %12999 = vmatpush3.msra.mxu0 %v9886_v8  ;;  %13000 = vmatprep.mubr.msk.f32.mxu0 %vm1055_vm2, %v7014_v56 }
0x383e   :  { %13013 = vmatprep.subr.mxu0 %v14005_v1 }
0x3844   :  { %13001 = vmatmul.mubr.msk.f32.vlgmr.msra.gmra.mrb[94].mxu0 %vm1055_vm2, %v7015_v31 }
0x3845   :  { %13014 = vmatpush3.msra.mxu0 %v9972_v26  ;;  %13015 = vmatprep.mubr.msk.f32.mxu0 %vm14004_vm0, %v14005_v1 }
0x3846   :  { %13023 = vmatprep.subr.mxu0 %v10334_v16 }
0x3848   :  { %13016 = vmatmul.mubr.msk.f32.vlgmr.msra.gmra.mrb[96].mxu0 %vm1055_vm2, %v15180_v20 }
0x3849   :  { %13025 = vmatprep.mubr.msk.f32.mxu0 %vm1055_vm2, %v15445_v21  ;;  %13024 = vmatpush3.msra.mxu0 %v10334_v16 }
0x384a   :  { %13028 = vmatprep.subr.mxu0 %v10333_v29 }
0x384c   :  { %13026 = vmatmul.mubr.msk.f32.vlgmr.msra.gmra.mrb[98].mxu0 %vm1055_vm2, %v15443_v4 }
0x384d   :  { %13030 = vmatprep.mubr.msk.f32.mxu0 %vm1055_vm2, %v15425_v9  ;;  %13029 = vmatpush3.msra.mxu0 %v10333_v29 }
0x384e   :  { %13033 = vmatprep.subr.mxu0 %v10335_v49 }
0x3854   :  { %13031 = vmatmul.mubr.msk.f32.vlgmr.msra.gmra.mrb[98].mxu0 %vm1055_vm2, %v15423_v27 }
0x3855   :  { %13034 = vmatpush3.msra.mxu0 %v10335_v49 }
0x3856   :  { %13038 = vmatprep.subr.mxu0 %v10336_v45 }
0x38dd   :  { %v12987_v20 = vpop.f32.mrb[100].mxu1 }
0x38de   :  { %v9687_v47 = vpop.f32.mrb[101].mxu1 }
0x38df   :  { %13035 = vmatprep.mubr.msk.f32.mxu0 %vm1055_vm2, %v9687_v47 }
0x38e0   :  { %13036 = vmatmul.mubr.msk.f32.vlgmr.msra.gmra.mrb[98].mxu0 %vm1055_vm2, %v12987_v20 }
0x38e1   :  { %v10043_v21 = vpop.f32.mrb[102].mxu1  ;;  %13039 = vmatpush3.msra.mxu0 %v10336_v45 }
0x38e2   :  { %v13007_v4 = vpop.f32.mrb[103].mxu1  ;;  %13435 = vmatprep.subr.bf16.mxu0 %v14003_v0 }
0x38e5   :  { %v10116_v9 = vpop.f32.mrb[104].mxu1 }
0x38e6   :  { %v10117_v7 = vadd.f32 %v10116_v9, %v10043_v21  ;;  %v13012_v17 = vpop.f32.mrb[105].mxu1 }
0x38e9   :  { %v10263_v27 = vpop.f32.mrb[106].mxu1 }
0x38ea   :  { %v13022_v23 = vpop.f32.mrb[107].mxu1 }
0x38ed   :  { %v10824_v35 = vpop.f32.mrb[108].mxu1 }
0x38ee   :  { %v13047_v11 = vpop.f32.mrb[109].mxu1 }
0x38f1   :  { %v10897_v60 = vpop.f32.mrb[110].mxu1 }
0x38f2   :  { %v10898_v54 = vadd.f32 %v10897_v60, %v10824_v35  ;;  %v13052_v2 = vpop.f32.mrb[111].mxu1 }
0x38f5   :  { %v10970_v22 = vpop.f32.mrb[112].mxu1 }
0x38f6   :  { %v10974_v52 = vadd.f32 %v10970_v22, %v10898_v54  ;;  %v13057_v6 = vpop.f32.mrb[113].mxu1 }
0x38f9   :  { %v11044_v50 = vpop.f32.mrb[114].mxu1 }
0x38fa   :  { %v11048_v37 = vadd.f32 %v11044_v50, %v10974_v52  ;;  %v13062_v14 = vpop.f32.mrb[115].mxu1  ;;  %v11113_v50 = vld [vmem:[%s15686_s9] sm:$0x3] }
0x38fb   :  { %v11345_v14 = vld [vmem:[%s15688_s11] sm:$0xff] }
0x38fc   :  { %v11057_v51 = vadd.f32 %v11731_v39, %v11048_v37  ;;  %v11336_v37 = vld [vmem:[%s15687_s10] sm:$0x3] }
0x38fe   :  { %v11069_v36 = vmul.f32 %v11067_v15, %v11057_v51  ;;  %v11712_v15 = vld [vmem:[%s15680_s3 + $0x3] ss:$0 sm:$0xff] }
0x3900   :  { %v11081_v29 = vadd.f32 %v11080_v59, %v11069_v36 }
0x3902   :  { %v11082_v25 = vsel %vm140_vm1, %v11081_v29, 0.0 }
0x3917   :  { %v13002_v10 = vpop.f32.mrb[94].mxu0 }
0x3918   :  { %v9960_v32 = vpop.f32.mrb[95].mxu0 }
0x3919   :  { %13040 = vmatprep.mubr.msk.f32.mxu0 %vm1055_vm2, %v9960_v32 }
0x391a   :  { %13041 = vmatmul.mubr.msk.f32.vlgmr.msra.gmra.mrb[98].mxu0 %vm1055_vm2, %v13002_v10  ;;  %v11346_v10 = vld [vmem:[%s15688_s11 + $0x8] sm:$0xff] }
0x391b   :  { %v10189_v57 = vpop.f32.mrb[96].mxu0  ;;  %13067 = vmatprep.mubr.msk.f32.mxu0 %vm14004_vm0, %v14005_v1  ;;  %v13439_v32 = vpack.c.bf16 %v11346_v10, %v11345_v14 }
0x391c   :  { %v10193_v33 = vadd.f32 %v10189_v57, %v10117_v7  ;;  %v13017_v3 = vpop.f32.mrb[97].mxu0 }
0x391d   :  { %13440 = vmatpush3.bf16.msra.mxu1 %v13439_v32 }
0x391e   :  { %v10267_v41 = vadd.f32 %v10263_v27, %v10193_v33  ;;  %13441 = vmatprep.subr.bf16.mxu1 %v14003_v0  ;;  %v11725_v0 = vld [vmem:[%s15680_s3 + $0x4] ss:$0 sm:$0xff] }
0x3920   :  { %v10276_v46 = vadd.f32 %v11709_v12, %v10267_v41 }
0x3922   :  { %v10288_v28 = vmul.f32 %v10286_v62, %v10276_v46 }
0x3924   :  { %v10300_v16 = vadd.f32 %v10299_v24, %v10288_v28  ;;  %v11713_v24 = vld [vmem:[#allocation7 + $0x3] ss:$0 sm:$0xff] }
0x3926   :  { %v10301_v49 = vsel %vm140_vm1, %v10300_v16, 0.0 }
0x39ed   :  { %v13042_v30 = vpop.f32.mrb[98].mxu0 }
0x39ee   :  { %v10666_v55 = vmul.f32 0.5, %v13042_v30  ;;  %v10654_v44 = vpop.f32.mrb[99].mxu0 }
0x39ef   :  { %v10665_v63 = vmul.f32 0.5, %v10654_v44 }
0x39f0   :  { %v10676_v40 = vadd.f32 %v11722_v19, %v10666_v55 }
0x39f1   :  { %v10675_v8 = vadd.f32 %v11722_v19, %v10665_v63  ;;  %v11726_v63 = vld [vmem:[#allocation7 + $0x4] ss:$0 sm:$0xff] }
0x39f2   :  { %v10689_v53 = vmul.f32 %v10686_v34, %v10676_v40 }
0x39f3   :  { %v10688_v61 = vmul.f32 %v10686_v34, %v10675_v8 }
0x39f4   :  { %v10703_v56 = vadd.f32 %v10701_v38, %v10689_v53 }
0x39f5   :  { %v10702_v31 = vadd.f32 %v10700_v48, %v10688_v61 }
0x39f6   :  { %v10707_v26 = vsel %vm140_vm1, %v10703_v56, 0.0 }
0x39f7   :  { %10708 = vadd.xlane.f32.xlu0 %v10707_v26  ;;  %v10704_v58 = vsel %vm140_vm1, %v10702_v31, 0.0  ;;  %v11734_v26 = vld [vmem:[%s15680_s3 + $0x5] ss:$0 sm:$0xff] }
0x39f8   :  { %10705 = vadd.xlane.f32.xlu1 %v10704_v58  ;;  %v11735_v58 = vld [vmem:[#allocation7 + $0x5] ss:$0 sm:$0xff] }
0x39fb   :  { %10302 = vadd.xlane.f32.xlu0 %v10301_v49 }
0x39fc   :  { %11083 = vadd.xlane.f32.xlu1 %v11082_v25  ;;  %v11347_v25 = vld [vmem:[%s15688_s11 + $0x10] sm:$0xff] }
0x3a84   :  { %v10709_v45 = vpop.xlane.xlu0 %10708 }
0x3a85   :  { %v10711_v13 = vmul.f32 0.03125, %v10709_v45  ;;  %v10706_v20 = vpop.xlane.xlu1 %10705  ;;  %v11348_v45 = vld [vmem:[%s15688_s11 + $0x18] sm:$0xff] }
0x3a86   :  { %v10710_v47 = vmul.f32 0.03125, %v10706_v20 }
0x3a87   :  { %v10713_v42 = vsub.f32 %v10703_v56, %v10711_v13  ;;  %v13442_v13 = vpack.c.bf16 %v11348_v45, %v11347_v25 }
0x3a88   :  { %v10712_v21 = vsub.f32 %v10702_v31, %v10710_v47  ;;  %v10303_v4 = vpop.xlane.xlu0 %10302 }
0x3a89   :  { %v10304_v9 = vmul.f32 0.03125, %v10303_v4  ;;  %v11084_v7 = vpop.xlane.xlu1 %11083  ;;  %v10715_v17 = vmul.f32 %v10713_v42, %v10713_v42  ;;  %13443 = vmatpush3.bf16.msra.mxu1 %v13442_v13 }
0x3a8a   :  { %v11085_v27 = vmul.f32 0.03125, %v11084_v7  ;;  %v10714_v23 = vmul.f32 %v10712_v21, %v10712_v21 }
0x3a8b   :  { %v10305_v35 = vsub.f32 %v10300_v16, %v10304_v9  ;;  %v10719_v11 = vsel %vm140_vm1, %v10715_v17, 0.0 }
0x3a8c   :  { %v11086_v60 = vsub.f32 %v11081_v29, %v11085_v27  ;;  %10720 = vadd.xlane.f32.xlu1 %v10719_v11  ;;  %v10716_v54 = vsel %vm140_vm1, %v10714_v23, 0.0 }
0x3a8d   :  { %10717 = vadd.xlane.f32.xlu0 %v10716_v54  ;;  %v10306_v2 = vmul.f32 %v10305_v35, %v10305_v35 }
0x3a8e   :  { %v11087_v22 = vmul.f32 %v11086_v60, %v11086_v60 }
0x3a8f   :  { %v10307_v52 = vsel %vm140_vm1, %v10306_v2, 0.0 }
0x3a90   :  { %v11088_v6 = vsel %vm140_vm1, %v11087_v22, 0.0 }
0x3a91   :  { %10308 = vadd.xlane.f32.xlu0 %v10307_v52  ;;  %11089 = vadd.xlane.f32.xlu1 %v11088_v6 }
0x3aa2   :  { %11261 = vrot.lane.b32.xlu1 %v11113_v50, %s14008_s25 }
0x3aa6   :  { %11339 = vperm.xlu1 %13555, %v11336_v37  }
0x3aa7   :  { %11115 = vrot.lane.b32.xlu0 %v11113_v50, %s14007_s30 }
0x3b19   :  { %v10721_v57 = vpop.xlane.xlu1 %10720 }
0x3b1a   :  { %v10723_v33 = vmul.f32 0.03125, %v10721_v57  ;;  %v10718_v3 = vpop.xlane.xlu0 %10717 }
0x3b1b   :  { %v10722_v41 = vmul.f32 0.03125, %v10718_v3 }
0x3b1c   :  { %v10725_v18 = vadd.f32 1e-05, %v10723_v33 }
0x3b1d   :  { %v10724_v34 = vadd.f32 1e-05, %v10722_v41 }
0x3b1e   :  { %13816 = vrsqrt.f32 %v10725_v18  ;;  %v10309_v12 = vpop.xlane.xlu0 %10308  ;;  %v11090_v43 = vpop.xlane.xlu1 %11089 }
0x3b1f   :  { %13818 = vrsqrt.f32 %v10724_v34  ;;  %v10310_v62 = vmul.f32 0.03125, %v10309_v12  ;;  %v11091_v39 = vmul.f32 0.03125, %v11090_v43 }
0x3b21   :  { %v10311_v30 = vadd.f32 1e-05, %v10310_v62  ;;  %v11092_v19 = vadd.f32 1e-05, %v11091_v39 }
0x3b22   :  { %v11116_v56 = vpop.permute.xlu0 %11115  ;;  %v11262_v49 = vpop.permute.xlu1 %11261 }
0x3b23   :  { %13820 = vrsqrt.f32 %v10311_v30 }
0x3b24   :  { %13822 = vrsqrt.f32 %v11092_v19 }
0x3b26   :  { %v11340_v20 = vpop.permute.xlu1 %11339 }
0x3b28   :  { %v13817_v46 = vpop.eup %13816 }
0x3b29   :  { %v13819_v55 = vpop.eup %13818  ;;  %v10729_v44 = vmul.f32 %v13817_v46, %v10713_v42 }
0x3b2a   :  { %v10728_v51 = vmul.f32 %v13819_v55, %v10712_v21 }
0x3b2b   :  { %v10739_v40 = vmul.f32 %v11725_v0, %v10729_v44 }
0x3b2c   :  { %v10738_v8 = vmul.f32 %v11725_v0, %v10728_v51 }
0x3b2d   :  { %v13821_v38 = vpop.eup %13820  ;;  %v10749_v5 = vadd.f32 %v11726_v63, %v10739_v40 }
0x3b2e   :  { %v10748_v53 = vadd.f32 %v11726_v63, %v10738_v8  ;;  %v10313_v28 = vmul.f32 %v13821_v38, %v10305_v35  ;;  %v13823_v61 = vpop.eup %13822 }
0x3b2f   :  { %v11094_v31 = vmul.f32 %v13823_v61, %v11086_v60 }
0x3b30   :  { %v13436_v48 = vpack.c.bf16 %v10749_v5, %v10748_v53  ;;  %v10322_v36 = vmul.f32 %v11712_v15, %v10313_v28 }
0x3b31   :  { %v11103_v16 = vmul.f32 %v11734_v26, %v11094_v31 }
0x3b32   :  { %13437 = vmatpush3.bf16.msra.mxu0 %v13436_v48  ;;  %v10331_v59 = vadd.f32 %v11713_v24, %v10322_v36 }
0x3b33   :  { %13070 = vmatprep.subr.mxu0 %v14005_v1  ;;  %v11112_v29 = vadd.f32 %v11735_v58, %v11103_v16 }
0x3b35   :  { %13068 = vmatmul.mubr.msk.f32.vlgmr.msra.gmra.mrb[100].mxu0 %vm1689_vm4, %v11116_v56 }
0x3b36   :  { %13071 = vmatpush3.msra.mxu0 %v10331_v59  ;;  %13072 = vmatprep.mubr.msk.f32.mxu0 %vm14004_vm0, %v14005_v1 }
0x3b37   :  { %13075 = vmatprep.subr.mxu0 %v14005_v1 }
0x3b3d   :  { %13073 = vmatmul.mubr.msk.f32.vlgmr.msra.gmra.mrb[100].mxu0 %vm1055_vm2, %v11113_v50 }
0x3b3e   :  { %13076 = vmatpush3.msra.mxu0 %v11112_v29  ;;  %13077 = vmatprep.mubr.msk.f32.mxu0 %vm14004_vm0, %v14005_v1 }
0x3b45   :  { %13078 = vmatmul.mubr.msk.f32.vlgmr.msra.gmra.mrb[100].mxu0 %vm1055_vm2, %v11262_v49 }
0x3c18   :  { %v11331_v47 = vpop.f32.mrb[100].mxu0 }
0x3c19   :  { %v11342_v42 = vmul.f32 %v11340_v20, %v11331_v47  ;;  %v13079_v21 = vpop.f32.mrb[101].mxu0 }
0x3c1b   :  { %13089 = vmatmul.mubr.msk.f32.vlgmr.msra.gmra.mrb[116].mxu1 %vm140_vm1, %v11342_v42  ;;  %11344 = vst.msk [vmem:[#allocation12] sm:$0x3] %vm11343_vm11, %v11342_v42 }
0x3c1c   :  { %13951 = shalt.err (!%p13948_p2)
}
0x3c1d   :  { %s13952_s7 = scalar_lea.hbm %s15691_s14, 32 }
0x3c1e   :  { %p13953_p3 = scmp.ne.s32.totalorder %s15691_s14, %s13952_s7  ;;  %p13956_p4 = scmp.lt.u32.totalorder %s13952_s7, %s15691_s14 }
0x3c20   :  { %p13958_p5 = pnand %p13956_p4, %p13953_p3 }
0x3c22   :  { %13961 = shalt.err (!%p13958_p5)
}
0x3c23   :  { %11450 = dma.vmem_to_hbm [thread:$0]  %s11448_s4, 32, %s15691_s14, [#allocation13]   ;;  %v11739_v1 = vld [vmem:[%s15689_s12] ss:$0 sm:$0xff]  ;;  %vm11429_vm12 = vcmask 9216  }
0x3c24   :  { %s14011_s15 = smov [#allocation11]  }
0x3c25   :  { %s11437_s6 = sshll.u32 %s14011_s15, 4  ;;  %s11438_s6 = int_to_ptr.vmem [resolvable:$true] %s11437_s6 }
0x3c26   :  { %s13962_s28 = scalar_lea.vmem %s11438_s6, 32  ;;  %p13967_p7 = scmp.lt.s32.totalorder %s11438_s6, %s11438_s6 }
0x3c27   :  { %p13963_p6 = scmp.ne.s32.totalorder %s11438_s6, %s13962_s28  ;;  %p13968_p8 = scmp.lt.s32.totalorder %s13962_s28, %s13962_s28 }
0x3c29   :  { %p13969_p9 = por %p13968_p8, %p13967_p7 }
0x3c2b   :  { %p13970_p10 = pnand %p13969_p9, %p13963_p6 }
0x3cee   :  { %v11425_v4 = vpop.f32.mrb[116].mxu1 }
0x3cef   :  { %v11426_v9 = vadd.f32 %v11739_v1, %v11425_v4  ;;  %v13090_v7 = vpop.f32.mrb[117].mxu1 }
0x3cf1   :  { %11430 = vst.msk [vmem:[#allocation11] sm:$0x3] %vm11429_vm12, %v11426_v9 }
0x3cf2   :  { %13973 = shalt.err (!%p13970_p10)
}
0x3cf3   :  { %s13974_s9 = scalar_lea.hbm %s15690_s13, 32 }
0x3cf4   :  { %p13975_p11 = scmp.ne.s32.totalorder %s15690_s13, %s13974_s9  ;;  %p13978_p12 = scmp.lt.u32.totalorder %s13974_s9, %s15690_s13 }
0x3cf6   :  { %p13980_p13 = pnand %p13978_p12, %p13975_p11 }
0x3cf8   :  { %13983 = shalt.err (!%p13980_p13)
}
0x3cf9   :  { %11440 = dma.vmem_to_hbm [thread:$0]  %s11438_s6, 32, %s15690_s13, [#allocation4]  }
0x3cfa   :  { %13990 = dma.done.wait [#allocation4], 32  }
0x3cfb   :  { %13991 = vsyncadd [#allocation4], 4294967264 }
0x3cfc   :  { %13992 = dma.done.wait [#allocation13], 32  }
0x3cfd   :  { %13993 = vsyncadd [#allocation13], 4294967264 }
0x3cfe   :  { %11457 = vsyncpa [#allocation3], 1 }
0x3cff   :  { %11458 = vsyncpa [#allocation6], 1 }
0x3d00   :  { %11459 = vsyncpa [#allocation9], 1 }
0x3d01   :  { %11460 = vsyncpa [#allocation4], 1 }
0x3d02   :  { %11461 = vsyncpa [#allocation13], 1 }

</bundles_post_ra>
